<compile_context>
chip_gen: v6e
topology: v6e:2x2x1
jax: 0.10.0
libtpu: 0.0.40
codegen_flags: <defaults>
</compile_context>

<pallas_src>
import functools

import numpy as np
import jax
import jax.numpy as jnp
from jax.experimental import pallas as pl
from jax.experimental.pallas import tpu as pltpu

BN_EPS = 1e-5


# ------------------------- in-kernel helpers (trace-time) -------------------------

def _bn_scale_shift(ssum_nc, ssq_nc, gamma, beta, n_total):
    """Fold training-mode BatchNorm (batch mean, biased var) into y*scale+shift.

    ssum_nc / ssq_nc: [N, C] per-image partial sums of y and y*y.
    gamma / beta: [1, C].  Returns (scale, shift), each [1, C].
    """
    tsum = jnp.sum(ssum_nc, axis=0, keepdims=True)
    tsq = jnp.sum(ssq_nc, axis=0, keepdims=True)
    mean = tsum / n_total
    var = tsq / n_total - mean * mean              # biased variance (PyTorch training mode)
    scale = jax.lax.rsqrt(var + BN_EPS) * gamma
    shift = beta - mean * scale
    return scale, shift


def _conv3x3_from_padded(xp_ref, w_ref, H, W, cdt):
    """3x3 'same' conv reading a zero-padded [H+2, W+2, Cin] VMEM scratch.

    Only 3 ref slices (one per dy); the three dx taps are concatenated on the
    channel-minor axis so the MXU sees K = 3*Cin and only 3 matmuls are issued
    (instead of 9 strided slices / 9 K=Cin matmuls).
    Returns an f32 accumulator of shape [H*W, Cout].
    """
    Cin = xp_ref.shape[2]
    Cout = w_ref.shape[3]
    acc = jnp.zeros((H * W, Cout), jnp.float32)
    for dy in range(3):
        rows = xp_ref[dy:dy + H, :, :]                                   # [H, W+2, Cin]
        win = jnp.concatenate(
            [rows[:, 0:W, :], rows[:, 1:W + 1, :], rows[:, 2:W + 2, :]],
            axis=-1)                                                     # [H, W, 3*Cin] (dx-major)
        acc = acc + jnp.dot(
            win.reshape(H * W, 3 * Cin).astype(cdt),
            w_ref[dy].reshape(3 * Cin, Cout),                            # weights already in cdt
            preferred_element_type=jnp.float32)
    return acc


# ------------------------- Pallas kernels -------------------------

def _conv1_kernel(x2_ref, x1_ref, mw_ref, wh_ref, wa_ref, wb_ref,
                  y_ref, s_ref, q_ref, xpa_ref, xpb_ref, *, cdt):
    # x2_ref : [1, H, W, C2]   skip connection (NHWC)
    # x1_ref : [1, Hs, Ws, C1] decoder feature (NHWC)
    # mw_ref : [Ws*C1, 2*Ws*C1] = kron(Ww^T, I_C1)  (W-axis bilinear interp)
    # wh_ref : [2*Hs, Hs]                            (H-axis bilinear interp)
    # wa_ref : [3, 3, C2, Cmid]  conv1 weights for the x2 channels
    # wb_ref : [3, 3, C1, Cmid]  conv1 weights for the upsampled-x1 channels
    # y_ref  : [1, H, W, Cmid]   pre-BN conv1 output
    # s_ref/q_ref : [1, 1, Cmid] per-image sum / sum-of-squares (BN1 partials)
    # xpa_ref/xpb_ref : VMEM scratches [H+2, W+2, C2] / [H+2, W+2, C1]
    H, W, Cmid = y_ref.shape[1], y_ref.shape[2], y_ref.shape[3]
    Hs, Ws, C1 = x1_ref.shape[1], x1_ref.shape[2], x1_ref.shape[3]
    H2u = wh_ref.shape[0]
    W2u = mw_ref.shape[1] // C1

    # bilinear 2x upsample (align_corners=True) of x1 as two MXU matmuls
    xf = x1_ref[0].reshape(Hs, Ws * C1).astype(cdt)
    xw = jnp.dot(xf, mw_ref[...], preferred_element_type=jnp.float32)          # [Hs, W2u*C1]
    xu = jnp.dot(wh_ref[...], xw.astype(cdt),
                 preferred_element_type=jnp.float32)                            # [H2u, W2u*C1]

    # zero-padded conv input built directly in VMEM (no HBM pad / concat):
    #   virtual channel-concat order is [x2 | upsampled x1], split across two
    #   scratches + split weights so both partial matmuls hit the same acc.
    xpa_ref[...] = jnp.zeros_like(xpa_ref)
    xpa_ref[1:H + 1, 1:W + 1, :] = x2_ref[0]
    oy = 1 + (H - H2u) // 2                       # F.pad(x1, ...) offsets (static)
    ox = 1 + (W - W2u) // 2
    xpb_ref[...] = jnp.zeros_like(xpb_ref)
    xpb_ref[oy:oy + H2u, ox:ox + W2u, :] = xu.reshape(H2u, W2u, C1)

    acc = _conv3x3_from_padded(xpa_ref, wa_ref, H, W, cdt)
    acc = acc + _conv3x3_from_padded(xpb_ref, wb_ref, H, W, cdt)
    # conv bias omitted: cancelled exactly by the following training-mode BN.

    y_ref[0] = acc.reshape(H, W, Cmid)
    s_ref[0] = jnp.sum(acc, axis=0, keepdims=True)
    q_ref[0] = jnp.sum(acc * acc, axis=0, keepdims=True)


def _conv2_kernel(y1_ref, s1_ref, q1_ref, g1_ref, b1_ref, w_ref,
                  y_ref, s_ref, q_ref, xp_ref, *, cdt):
    # BN1 normalize + ReLU fused into the conv2 input read (saves one HBM
    # round trip of the activation), then 3x3 conv + BN2 partial stats.
    H, W, Cout = y_ref.shape[1], y_ref.shape[2], y_ref.shape[3]
    Cmid = y1_ref.shape[3]
    N = s1_ref.shape[0]
    n_total = float(N * H * W)

    scale, shift = _bn_scale_shift(s1_ref[...].reshape(N, Cmid),
                                   q1_ref[...].reshape(N, Cmid),
                                   g1_ref[...], b1_ref[...], n_total)
    xhat = jnp.maximum(y1_ref[0].reshape(H * W, Cmid) * scale + shift, 0.0)

    xp_ref[...] = jnp.zeros_like(xp_ref)
    xp_ref[1:H + 1, 1:W + 1, :] = xhat.reshape(H, W, Cmid)

    acc = _conv3x3_from_padded(xp_ref, w_ref, H, W, cdt)

    y_ref[0] = acc.reshape(H, W, Cout)
    s_ref[0] = jnp.sum(acc, axis=0, keepdims=True)
    q_ref[0] = jnp.sum(acc * acc, axis=0, keepdims=True)


def _bn_relu_kernel(y_ref, s_ref, q_ref, g_ref, b_ref, o_ref):
    # Final BN2 normalize + ReLU.
    H, W, C = o_ref.shape[1], o_ref.shape[2], o_ref.shape[3]
    N = s_ref.shape[0]
    n_total = float(N * H * W)
    scale, shift = _bn_scale_shift(s_ref[...].reshape(N, C),
                                   q_ref[...].reshape(N, C),
                                   g_ref[...], b_ref[...], n_total)
    y = y_ref[0].reshape(H * W, C)
    o_ref[0] = jnp.maximum(y * scale + shift, 0.0).reshape(H, W, C)


# ------------------------- wrappers -------------------------

def _bilinear_matrix(n_in, n_out):
    """1-D bilinear resize matrix, align_corners=True (matches nn.Upsample)."""
    m = np.zeros((n_out, n_in), dtype=np.float32)
    if n_out == 1 or n_in == 1:
        m[:, 0] = 1.0
        return m
    scale = (n_in - 1) / (n_out - 1)
    for i in range(n_out):
        src = i * scale
        i0 = int(np.floor(src))
        i1 = min(i0 + 1, n_in - 1)
        f = src - i0
        m[i, i0] += 1.0 - f
        m[i, i1] += f
    return m


def up_forward(x1_nchw, x2_nchw, params, compute_dtype=jnp.float32):
    """Up.forward(x1, x2) — NCHW in/out to match the PyTorch module exactly."""
    x1 = jnp.transpose(x1_nchw, (0, 2, 3, 1)).astype(jnp.float32)   # NHWC
    x2 = jnp.transpose(x2_nchw, (0, 2, 3, 1)).astype(jnp.float32)   # NHWC
    N, Hs, Ws, C1 = x1.shape
    _, H, W, C2 = x2.shape
    H2u, W2u = 2 * Hs, 2 * Ws
    assert H2u <= H and W2u <= W, "x2 must be at least as large as upsampled x1"
    Cmid = params["w1"].shape[-1]
    Cout = params["w2"].shape[-1]
    cdt = compute_dtype

    # Interpolation matrices (host-built from static shapes). kron with I_C1
    # keeps channels contiguous on the lane axis -> one batched matmul each.
    mw = jnp.asarray(np.kron(_bilinear_matrix(Ws, W2u).T,
                             np.eye(C1, dtype=np.float32)), cdt)     # [Ws*C1, W2u*C1]
    wh = jnp.asarray(_bilinear_matrix(Hs, H2u), cdt)                 # [H2u, Hs]

    # Split w1 along Cin to fuse the concat ([x2 | x1u]) into conv1.
    w1a = params["w1"][:, :, :C2, :].astype(cdt)
    w1b = params["w1"][:, :, C2:, :].astype(cdt)
    w2 = params["w2"].astype(cdt)
    g1 = params["g1"].reshape(1, Cmid).astype(jnp.float32)
    be1 = params["beta1"].reshape(1, Cmid).astype(jnp.float32)
    g2 = params["g2"].reshape(1, Cout).astype(jnp.float32)
    be2 = params["beta2"].reshape(1, Cout).astype(jnp.float32)
    # NOTE: conv biases b1/b2 are intentionally not used by the kernels — with
    # training-mode BatchNorm right after each conv they cancel exactly.

    par = pltpu.CompilerParams(dimension_semantics=("parallel",))

    # ---- kernel 1: upsample + pad + concat + conv1 + BN1 partial stats ----
    y1, s1, q1 = pl.pallas_call(
        functools.partial(_conv1_kernel, cdt=cdt),
        out_shape=(jax.ShapeDtypeStruct((N, H, W, Cmid), jnp.float32),
                   jax.ShapeDtypeStruct((N, 1, Cmid), jnp.float32),
                   jax.ShapeDtypeStruct((N, 1, Cmid), jnp.float32)),
        grid=(N,),
        in_specs=[
            pl.BlockSpec((1, H, W, C2), lambda n: (n, 0, 0, 0)),
            pl.BlockSpec((1, Hs, Ws, C1), lambda n: (n, 0, 0, 0)),
            pl.BlockSpec((Ws * C1, W2u * C1), lambda n: (0, 0)),
            pl.BlockSpec((H2u, Hs), lambda n: (0, 0)),
            pl.BlockSpec((3, 3, C2, Cmid), lambda n: (0, 0, 0, 0)),
            pl.BlockSpec((3, 3, C1, Cmid), lambda n: (0, 0, 0, 0)),
        ],
        out_specs=(
            pl.BlockSpec((1, H, W, Cmid), lambda n: (n, 0, 0, 0)),
            pl.BlockSpec((1, 1, Cmid), lambda n: (n, 0, 0)),
            pl.BlockSpec((1, 1, Cmid), lambda n: (n, 0, 0)),
        ),
        scratch_shapes=[pltpu.VMEM((H + 2, W + 2, C2), jnp.float32),
                        pltpu.VMEM((H + 2, W + 2, C1), jnp.float32)],
        compiler_params=par,
    )(x2, x1, mw, wh, w1a, w1b)

    # ---- kernel 2: BN1 normalize+ReLU fused into conv2 + BN2 partial stats ----
    y2, s2, q2 = pl.pallas_call(
        functools.partial(_conv2_kernel, cdt=cdt),
        out_shape=(jax.ShapeDtypeStruct((N, H, W, Cout), jnp.float32),
                   jax.ShapeDtypeStruct((N, 1, Cout), jnp.float32),
                   jax.ShapeDtypeStruct((N, 1, Cout), jnp.float32)),
        grid=(N,),
        in_specs=[
            pl.BlockSpec((1, H, W, Cmid), lambda n: (n, 0, 0, 0)),
            pl.BlockSpec((N, 1, Cmid), lambda n: (0, 0, 0)),
            pl.BlockSpec((N, 1, Cmid), lambda n: (0, 0, 0)),
            pl.BlockSpec((1, Cmid), lambda n: (0, 0)),
            pl.BlockSpec((1, Cmid), lambda n: (0, 0)),
            pl.BlockSpec((3, 3, Cmid, Cout), lambda n: (0, 0, 0, 0)),
        ],
        out_specs=(
            pl.BlockSpec((1, H, W, Cout), lambda n: (n, 0, 0, 0)),
            pl.BlockSpec((1, 1, Cout), lambda n: (n, 0, 0)),
            pl.BlockSpec((1, 1, Cout), lambda n: (n, 0, 0)),
        ),
        scratch_shapes=[pltpu.VMEM((H + 2, W + 2, Cmid), jnp.float32)],
        compiler_params=par,
    )(y1, s1, q1, g1, be1, w2)

    # ---- kernel 3: BN2 normalize + ReLU ----
    out = pl.pallas_call(
        _bn_relu_kernel,
        out_shape=jax.ShapeDtypeStruct((N, H, W, Cout), jnp.float32),
        grid=(N,),
        in_specs=[
            pl.BlockSpec((1, H, W, Cout), lambda n: (n, 0, 0, 0)),
            pl.BlockSpec((N, 1, Cout), lambda n: (0, 0, 0)),
            pl.BlockSpec((N, 1, Cout), lambda n: (0, 0, 0)),
            pl.BlockSpec((1, Cout), lambda n: (0, 0)),
            pl.BlockSpec((1, Cout), lambda n: (0, 0)),
        ],
        out_specs=pl.BlockSpec((1, H, W, Cout), lambda n: (n, 0, 0, 0)),
        compiler_params=par,
    )(y2, s2, q2, g2, be2)

    # TODO(synk): at real UNet resolutions, tile the H axis (2-row halo in the
    # VMEM scratch, VMEM accumulator, raised vmem_limit_bytes) so blocks fit
    # v7x's 64 MiB VMEM; whole-image blocks are fine only at these sizes.
    return jnp.transpose(out, (0, 3, 1, 2))                        # -> NCHW


def init_params(key, in_channels, out_channels):
    mid = in_channels // 2
    k1, k2 = jax.random.split(key)

    def conv_init(k, cin, cout):
        fan_in = cin * 9
        bound = 1.0 / np.sqrt(fan_in)
        kw, kb = jax.random.split(k)
        w = jax.random.uniform(kw, (3, 3, cin, cout), jnp.float32, -bound, bound)
        b = jax.random.uniform(kb, (cout,), jnp.float32, -bound, bound)
        return w, b

    w1, b1 = conv_init(k1, in_channels, mid)
    w2, b2 = conv_init(k2, mid, out_channels)
    return dict(
        w1=w1, b1=b1, g1=jnp.ones((mid,), jnp.float32), beta1=jnp.zeros((mid,), jnp.float32),
        w2=w2, b2=b2, g2=jnp.ones((out_channels,), jnp.float32),
        beta2=jnp.zeros((out_channels,), jnp.float32),
    )


# ------------------------- pure-JAX reference (faithful to PyTorch) -------------------------

def reference_forward(x1, x2, params):
    N, C, H, W = x1.shape
    wh = jnp.asarray(_bilinear_matrix(H, 2 * H))
    ww = jnp.asarray(_bilinear_matrix(W, 2 * W))
    up = jnp.einsum('ph,nchw,qw->ncpq', wh, x1, ww)
    diffY = x2.shape[2] - up.shape[2]
    diffX = x2.shape[3] - up.shape[3]
    up = jnp.pad(up, ((0, 0), (0, 0),
                      (diffY // 2, diffY - diffY // 2),
                      (diffX // 2, diffX - diffX // 2)))
    x = jnp.concatenate([x2, up], axis=1)

    def block(x, w_hwio, b, g, be):
        w_oihw = jnp.transpose(w_hwio, (3, 2, 0, 1))
        y = jax.lax.conv_general_dilated(x, w_oihw, (1, 1), ((1, 1), (1, 1)),
                                         dimension_numbers=('NCHW', 'OIHW', 'NCHW'))
        y = y + b[None, :, None, None]      # bias kept here (cancelled by BN below)
        mean = jnp.mean(y, axis=(0, 2, 3), keepdims=True)
        var = jnp.mean((y - mean) ** 2, axis=(0, 2, 3), keepdims=True)
        y = (y - mean) * jax.lax.rsqrt(var + BN_EPS) * g[None, :, None, None] \
            + be[None, :, None, None]
        return jnp.maximum(y, 0.0)

    x = block(x, params["w1"], params["b1"], params["g1"], params["beta1"])
    x = block(x, params["w2"], params["b2"], params["g2"], params["beta2"])
    return x


if __name__ == "__main__":
    key = jax.random.PRNGKey(0)
    kx1, kx2, kp = jax.random.split(key, 3)

    in_channels, out_channels = 8, 4      # Up(8, 4, bilinear=True)
    N, H, W = 2, 8, 8
    # x1: deeper feature map (in_channels//2 ch, half spatial); x2: skip connection.
    x1 = jax.random.normal(kx1, (N, in_channels // 2, H, W), jnp.float32)
    x2 = jax.random.normal(kx2, (N, in_channels // 2, 2 * H, 2 * W), jnp.float32)
    params = init_params(kp, in_channels, out_channels)

    ref = reference_forward(x1, x2, params)

    # f32 MXU-operand path: exact-ish, strict tolerance.
    out = jax.jit(up_forward)(x1, x2, params)
    out = jax.block_until_ready(out)
    np.testing.assert_allclose(np.asarray(out), np.asarray(ref), rtol=2e-4, atol=2e-4)
    assert out.shape == (N, out_channels, 2 * H, 2 * W)

    # bf16 MXU-operand path (v6e/v7x perf recommendation): loose tolerance for
    # bf16 operand rounding; accumulation / BN math remain f32.
    out_bf16 = jax.jit(functools.partial(up_forward, compute_dtype=jnp.bfloat16))(x1, x2, params)
    out_bf16 = jax.block_until_ready(out_bf16)
    np.testing.assert_allclose(np.asarray(out_bf16), np.asarray(ref), rtol=5e-2, atol=5e-2)

    print("KERNEL_OK")
</pallas_src>

<mosaic_0001>
module attributes {stable_mosaic.version = 11 : i64} {
  func.func @_conv1_kernel(%arg0: i32, %arg1: memref<1x16x16x4xf32, #tpu.memory_space<vmem>>, %arg2: memref<1x8x8x4xf32, #tpu.memory_space<vmem>>, %arg3: memref<32x64xf32, #tpu.memory_space<vmem>>, %arg4: memref<16x8xf32, #tpu.memory_space<vmem>>, %arg5: memref<3x3x4x4xf32, #tpu.memory_space<vmem>>, %arg6: memref<3x3x4x4xf32, #tpu.memory_space<vmem>>, %arg7: memref<1x16x16x4xf32, #tpu.memory_space<vmem>>, %arg8: memref<1x1x4xf32, #tpu.memory_space<vmem>>, %arg9: memref<1x1x4xf32, #tpu.memory_space<vmem>>, %arg10: memref<18x18x4xf32, #tpu.memory_space<vmem>>, %arg11: memref<18x18x4xf32, #tpu.memory_space<vmem>>) attributes {dimension_semantics = [#tpu.dimension_semantics<parallel>], iteration_bounds = array<i64: 2>, scalar_prefetch = 0 : i64, scratch_operands = 2 : i64, tpu.core_type = #tpu.core_type<tc>, window_params = [{transform_indices = @transform_0, window_bounds = array<i64: 1, 16, 16, 4>}, {transform_indices = @transform_1, window_bounds = array<i64: 1, 8, 8, 4>}, {pipeline_mode = #tpu.pipeline_mode<synchronous>, transform_indices = @transform_2, window_bounds = array<i64: 32, 64>}, {pipeline_mode = #tpu.pipeline_mode<synchronous>, transform_indices = @transform_3, window_bounds = array<i64: 16, 8>}, {pipeline_mode = #tpu.pipeline_mode<synchronous>, transform_indices = @transform_4, window_bounds = array<i64: 3, 3, 4, 4>}, {pipeline_mode = #tpu.pipeline_mode<synchronous>, transform_indices = @transform_5, window_bounds = array<i64: 3, 3, 4, 4>}, {transform_indices = @transform_6, window_bounds = array<i64: 1, 16, 16, 4>}, {transform_indices = @transform_7, window_bounds = array<i64: 1, 1, 4>}, {transform_indices = @transform_8, window_bounds = array<i64: 1, 1, 4>}]} {
    %c0 = arith.constant 0 : index
    %c0_0 = arith.constant 0 : index
    %c0_1 = arith.constant 0 : index
    %c0_2 = arith.constant 0 : index
    %0 = vector.load %arg2[%c0, %c0_0, %c0_1, %c0_2] : memref<1x8x8x4xf32, #tpu.memory_space<vmem>>, vector<1x8x8x4xf32>
    %1 = vector.shape_cast %0 : vector<1x8x8x4xf32> to vector<8x8x4xf32>
    %2 = vector.shape_cast %1 : vector<8x8x4xf32> to vector<8x32xf32>
    %c0_3 = arith.constant 0 : index
    %c0_4 = arith.constant 0 : index
    %3 = vector.load %arg3[%c0_3, %c0_4] : memref<32x64xf32, #tpu.memory_space<vmem>>, vector<32x64xf32>
    %cst = arith.constant dense<0.000000e+00> : vector<8x64xf32>
    %4 = tpu.matmul %2, %3, %cst {dimension_numbers = #tpu.dot_dimension_numbers<[1], [0], [0], [1], [0, 0, 1, 1], [], []>} : vector<8x32xf32>, vector<32x64xf32>, vector<8x64xf32> -> vector<8x64xf32>
    %c0_5 = arith.constant 0 : index
    %c0_6 = arith.constant 0 : index
    %5 = vector.load %arg4[%c0_5, %c0_6] : memref<16x8xf32, #tpu.memory_space<vmem>>, vector<16x8xf32>
    %cst_7 = arith.constant dense<0.000000e+00> : vector<16x64xf32>
    %6 = tpu.matmul %5, %4, %cst_7 {dimension_numbers = #tpu.dot_dimension_numbers<[1], [0], [0], [1], [0, 0, 1, 1], [], []>} : vector<16x8xf32>, vector<8x64xf32>, vector<16x64xf32> -> vector<16x64xf32>
    %cst_8 = arith.constant 0.000000e+00 : f32
    %7 = vector.broadcast %cst_8 : f32 to vector<18x18x4xf32>
    %c0_9 = arith.constant 0 : index
    %c0_10 = arith.constant 0 : index
    %c0_11 = arith.constant 0 : index
    %8 = vector.load %arg10[%c0_9, %c0_10, %c0_11] : memref<18x18x4xf32, #tpu.memory_space<vmem>>, vector<18x18x4xf32>
    tpu.vector_store %arg10[%c0_9, %c0_10, %c0_11], %7 {strides = array<i32>} : memref<18x18x4xf32, #tpu.memory_space<vmem>>, vector<18x18x4xf32>,
    %c0_12 = arith.constant 0 : index
    %c0_13 = arith.constant 0 : index
    %c0_14 = arith.constant 0 : index
    %c0_15 = arith.constant 0 : index
    %9 = vector.load %arg1[%c0_12, %c0_13, %c0_14, %c0_15] : memref<1x16x16x4xf32, #tpu.memory_space<vmem>>, vector<1x16x16x4xf32>
    %10 = vector.shape_cast %9 : vector<1x16x16x4xf32> to vector<16x16x4xf32>
    %c1 = arith.constant 1 : index
    %c1_16 = arith.constant 1 : index
    %c0_17 = arith.constant 0 : index
    %11 = vector.load %arg10[%c1, %c1_16, %c0_17] : memref<18x18x4xf32, #tpu.memory_space<vmem>>, vector<16x16x4xf32>
    tpu.vector_store %arg10[%c1, %c1_16, %c0_17], %10 {strides = array<i32>} : memref<18x18x4xf32, #tpu.memory_space<vmem>>, vector<16x16x4xf32>,
    %cst_18 = arith.constant 0.000000e+00 : f32
    %12 = vector.broadcast %cst_18 : f32 to vector<18x18x4xf32>
    %c0_19 = arith.constant 0 : index
    %c0_20 = arith.constant 0 : index
    %c0_21 = arith.constant 0 : index
    %13 = vector.load %arg11[%c0_19, %c0_20, %c0_21] : memref<18x18x4xf32, #tpu.memory_space<vmem>>, vector<18x18x4xf32>
    tpu.vector_store %arg11[%c0_19, %c0_20, %c0_21], %12 {strides = array<i32>} : memref<18x18x4xf32, #tpu.memory_space<vmem>>, vector<18x18x4xf32>,
    %14 = vector.shape_cast %6 : vector<16x64xf32> to vector<16x16x4xf32>
    %c1_22 = arith.constant 1 : index
    %c1_23 = arith.constant 1 : index
    %c0_24 = arith.constant 0 : index
    %15 = vector.load %arg11[%c1_22, %c1_23, %c0_24] : memref<18x18x4xf32, #tpu.memory_space<vmem>>, vector<16x16x4xf32>
    tpu.vector_store %arg11[%c1_22, %c1_23, %c0_24], %14 {strides = array<i32>} : memref<18x18x4xf32, #tpu.memory_space<vmem>>, vector<16x16x4xf32>,
    %cst_25 = arith.constant 0.000000e+00 : f32
    %16 = vector.broadcast %cst_25 : f32 to vector<256x4xf32>
    %c0_26 = arith.constant 0 : index
    %c0_27 = arith.constant 0 : index
    %c0_28 = arith.constant 0 : index
    %17 = vector.load %arg10[%c0_26, %c0_27, %c0_28] : memref<18x18x4xf32, #tpu.memory_space<vmem>>, vector<16x18x4xf32>
    %18 = vector.extract_strided_slice %17 {offsets = [0, 0, 0], sizes = [16, 16, 4], strides = [1, 1, 1]} : vector<16x18x4xf32> to vector<16x16x4xf32>
    %19 = vector.extract_strided_slice %17 {offsets = [0, 1, 0], sizes = [16, 16, 4], strides = [1, 1, 1]} : vector<16x18x4xf32> to vector<16x16x4xf32>
    %20 = vector.extract_strided_slice %17 {offsets = [0, 2, 0], sizes = [16, 16, 4], strides = [1, 1, 1]} : vector<16x18x4xf32> to vector<16x16x4xf32>
    %21 = tpu.concatenate %18, %19, %20 in 2 : vector<16x16x4xf32>, vector<16x16x4xf32>, vector<16x16x4xf32> -> vector<16x16x12xf32>
    %22 = vector.shape_cast %21 : vector<16x16x12xf32> to vector<256x12xf32>
    %c0_29 = arith.constant 0 : index
    %c0_30 = arith.constant 0 : index
    %c0_31 = arith.constant 0 : index
    %c0_32 = arith.constant 0 : index
    %23 = vector.load %arg5[%c0_29, %c0_30, %c0_31, %c0_32] : memref<3x3x4x4xf32, #tpu.memory_space<vmem>>, vector<1x3x4x4xf32>
    %24 = vector.shape_cast %23 : vector<1x3x4x4xf32> to vector<3x4x4xf32>
    %25 = vector.shape_cast %24 : vector<3x4x4xf32> to vector<12x4xf32>
    %cst_33 = arith.constant dense<0.000000e+00> : vector<256x4xf32>
    %26 = tpu.matmul %22, %25, %cst_33 {dimension_numbers = #tpu.dot_dimension_numbers<[1], [0], [0], [1], [0, 0, 1, 1], [], []>} : vector<256x12xf32>, vector<12x4xf32>, vector<256x4xf32> -> vector<256x4xf32>
    %27 = arith.addf %16, %26 : vector<256x4xf32>
    %c1_34 = arith.constant 1 : index
    %c0_35 = arith.constant 0 : index
    %c0_36 = arith.constant 0 : index
    %28 = vector.load %arg10[%c1_34, %c0_35, %c0_36] : memref<18x18x4xf32, #tpu.memory_space<vmem>>, vector<16x18x4xf32>
    %29 = vector.extract_strided_slice %28 {offsets = [0, 0, 0], sizes = [16, 16, 4], strides = [1, 1, 1]} : vector<16x18x4xf32> to vector<16x16x4xf32>
    %30 = vector.extract_strided_slice %28 {offsets = [0, 1, 0], sizes = [16, 16, 4], strides = [1, 1, 1]} : vector<16x18x4xf32> to vector<16x16x4xf32>
    %31 = vector.extract_strided_slice %28 {offsets = [0, 2, 0], sizes = [16, 16, 4], strides = [1, 1, 1]} : vector<16x18x4xf32> to vector<16x16x4xf32>
    %32 = tpu.concatenate %29, %30, %31 in 2 : vector<16x16x4xf32>, vector<16x16x4xf32>, vector<16x16x4xf32> -> vector<16x16x12xf32>
    %33 = vector.shape_cast %32 : vector<16x16x12xf32> to vector<256x12xf32>
    %c1_37 = arith.constant 1 : index
    %c0_38 = arith.constant 0 : index
    %c0_39 = arith.constant 0 : index
    %c0_40 = arith.constant 0 : index
    %34 = vector.load %arg5[%c1_37, %c0_38, %c0_39, %c0_40] : memref<3x3x4x4xf32, #tpu.memory_space<vmem>>, vector<1x3x4x4xf32>
    %35 = vector.shape_cast %34 : vector<1x3x4x4xf32> to vector<3x4x4xf32>
    %36 = vector.shape_cast %35 : vector<3x4x4xf32> to vector<12x4xf32>
    %cst_41 = arith.constant dense<0.000000e+00> : vector<256x4xf32>
    %37 = tpu.matmul %33, %36, %cst_41 {dimension_numbers = #tpu.dot_dimension_numbers<[1], [0], [0], [1], [0, 0, 1, 1], [], []>} : vector<256x12xf32>, vector<12x4xf32>, vector<256x4xf32> -> vector<256x4xf32>
    %38 = arith.addf %27, %37 : vector<256x4xf32>
    %c2 = arith.constant 2 : index
    %c0_42 = arith.constant 0 : index
    %c0_43 = arith.constant 0 : index
    %39 = vector.load %arg10[%c2, %c0_42, %c0_43] : memref<18x18x4xf32, #tpu.memory_space<vmem>>, vector<16x18x4xf32>
    %40 = vector.extract_strided_slice %39 {offsets = [0, 0, 0], sizes = [16, 16, 4], strides = [1, 1, 1]} : vector<16x18x4xf32> to vector<16x16x4xf32>
    %41 = vector.extract_strided_slice %39 {offsets = [0, 1, 0], sizes = [16, 16, 4], strides = [1, 1, 1]} : vector<16x18x4xf32> to vector<16x16x4xf32>
    %42 = vector.extract_strided_slice %39 {offsets = [0, 2, 0], sizes = [16, 16, 4], strides = [1, 1, 1]} : vector<16x18x4xf32> to vector<16x16x4xf32>
    %43 = tpu.concatenate %40, %41, %42 in 2 : vector<16x16x4xf32>, vector<16x16x4xf32>, vector<16x16x4xf32> -> vector<16x16x12xf32>
    %44 = vector.shape_cast %43 : vector<16x16x12xf32> to vector<256x12xf32>
    %c2_44 = arith.constant 2 : index
    %c0_45 = arith.constant 0 : index
    %c0_46 = arith.constant 0 : index
    %c0_47 = arith.constant 0 : index
    %45 = vector.load %arg5[%c2_44, %c0_45, %c0_46, %c0_47] : memref<3x3x4x4xf32, #tpu.memory_space<vmem>>, vector<1x3x4x4xf32>
    %46 = vector.shape_cast %45 : vector<1x3x4x4xf32> to vector<3x4x4xf32>
    %47 = vector.shape_cast %46 : vector<3x4x4xf32> to vector<12x4xf32>
    %cst_48 = arith.constant dense<0.000000e+00> : vector<256x4xf32>
    %48 = tpu.matmul %44, %47, %cst_48 {dimension_numbers = #tpu.dot_dimension_numbers<[1], [0], [0], [1], [0, 0, 1, 1], [], []>} : vector<256x12xf32>, vector<12x4xf32>, vector<256x4xf32> -> vector<256x4xf32>
    %49 = arith.addf %38, %48 : vector<256x4xf32>
    %cst_49 = arith.constant 0.000000e+00 : f32
    %50 = vector.broadcast %cst_49 : f32 to vector<256x4xf32>
    %c0_50 = arith.constant 0 : index
    %c0_51 = arith.constant 0 : index
    %c0_52 = arith.constant 0 : index
    %51 = vector.load %arg11[%c0_50, %c0_51, %c0_52] : memref<18x18x4xf32, #tpu.memory_space<vmem>>, vector<16x18x4xf32>
    %52 = vector.extract_strided_slice %51 {offsets = [0, 0, 0], sizes = [16, 16, 4], strides = [1, 1, 1]} : vector<16x18x4xf32> to vector<16x16x4xf32>
    %53 = vector.extract_strided_slice %51 {offsets = [0, 1, 0], sizes = [16, 16, 4], strides = [1, 1, 1]} : vector<16x18x4xf32> to vector<16x16x4xf32>
    %54 = vector.extract_strided_slice %51 {offsets = [0, 2, 0], sizes = [16, 16, 4], strides = [1, 1, 1]} : vector<16x18x4xf32> to vector<16x16x4xf32>
    %55 = tpu.concatenate %52, %53, %54 in 2 : vector<16x16x4xf32>, vector<16x16x4xf32>, vector<16x16x4xf32> -> vector<16x16x12xf32>
    %56 = vector.shape_cast %55 : vector<16x16x12xf32> to vector<256x12xf32>
    %c0_53 = arith.constant 0 : index
    %c0_54 = arith.constant 0 : index
    %c0_55 = arith.constant 0 : index
    %c0_56 = arith.constant 0 : index
    %57 = vector.load %arg6[%c0_53, %c0_54, %c0_55, %c0_56] : memref<3x3x4x4xf32, #tpu.memory_space<vmem>>, vector<1x3x4x4xf32>
    %58 = vector.shape_cast %57 : vector<1x3x4x4xf32> to vector<3x4x4xf32>
    %59 = vector.shape_cast %58 : vector<3x4x4xf32> to vector<12x4xf32>
    %cst_57 = arith.constant dense<0.000000e+00> : vector<256x4xf32>
    %60 = tpu.matmul %56, %59, %cst_57 {dimension_numbers = #tpu.dot_dimension_numbers<[1], [0], [0], [1], [0, 0, 1, 1], [], []>} : vector<256x12xf32>, vector<12x4xf32>, vector<256x4xf32> -> vector<256x4xf32>
    %61 = arith.addf %50, %60 : vector<256x4xf32>
    %c1_58 = arith.constant 1 : index
    %c0_59 = arith.constant 0 : index
    %c0_60 = arith.constant 0 : index
    %62 = vector.load %arg11[%c1_58, %c0_59, %c0_60] : memref<18x18x4xf32, #tpu.memory_space<vmem>>, vector<16x18x4xf32>
    %63 = vector.extract_strided_slice %62 {offsets = [0, 0, 0], sizes = [16, 16, 4], strides = [1, 1, 1]} : vector<16x18x4xf32> to vector<16x16x4xf32>
    %64 = vector.extract_strided_slice %62 {offsets = [0, 1, 0], sizes = [16, 16, 4], strides = [1, 1, 1]} : vector<16x18x4xf32> to vector<16x16x4xf32>
    %65 = vector.extract_strided_slice %62 {offsets = [0, 2, 0], sizes = [16, 16, 4], strides = [1, 1, 1]} : vector<16x18x4xf32> to vector<16x16x4xf32>
    %66 = tpu.concatenate %63, %64, %65 in 2 : vector<16x16x4xf32>, vector<16x16x4xf32>, vector<16x16x4xf32> -> vector<16x16x12xf32>
    %67 = vector.shape_cast %66 : vector<16x16x12xf32> to vector<256x12xf32>
    %c1_61 = arith.constant 1 : index
    %c0_62 = arith.constant 0 : index
    %c0_63 = arith.constant 0 : index
    %c0_64 = arith.constant 0 : index
    %68 = vector.load %arg6[%c1_61, %c0_62, %c0_63, %c0_64] : memref<3x3x4x4xf32, #tpu.memory_space<vmem>>, vector<1x3x4x4xf32>
    %69 = vector.shape_cast %68 : vector<1x3x4x4xf32> to vector<3x4x4xf32>
    %70 = vector.shape_cast %69 : vector<3x4x4xf32> to vector<12x4xf32>
    %cst_65 = arith.constant dense<0.000000e+00> : vector<256x4xf32>
    %71 = tpu.matmul %67, %70, %cst_65 {dimension_numbers = #tpu.dot_dimension_numbers<[1], [0], [0], [1], [0, 0, 1, 1], [], []>} : vector<256x12xf32>, vector<12x4xf32>, vector<256x4xf32> -> vector<256x4xf32>
    %72 = arith.addf %61, %71 : vector<256x4xf32>
    %c2_66 = arith.constant 2 : index
    %c0_67 = arith.constant 0 : index
    %c0_68 = arith.constant 0 : index
    %73 = vector.load %arg11[%c2_66, %c0_67, %c0_68] : memref<18x18x4xf32, #tpu.memory_space<vmem>>, vector<16x18x4xf32>
    %74 = vector.extract_strided_slice %73 {offsets = [0, 0, 0], sizes = [16, 16, 4], strides = [1, 1, 1]} : vector<16x18x4xf32> to vector<16x16x4xf32>
    %75 = vector.extract_strided_slice %73 {offsets = [0, 1, 0], sizes = [16, 16, 4], strides = [1, 1, 1]} : vector<16x18x4xf32> to vector<16x16x4xf32>
    %76 = vector.extract_strided_slice %73 {offsets = [0, 2, 0], sizes = [16, 16, 4], strides = [1, 1, 1]} : vector<16x18x4xf32> to vector<16x16x4xf32>
    %77 = tpu.concatenate %74, %75, %76 in 2 : vector<16x16x4xf32>, vector<16x16x4xf32>, vector<16x16x4xf32> -> vector<16x16x12xf32>
    %78 = vector.shape_cast %77 : vector<16x16x12xf32> to vector<256x12xf32>
    %c2_69 = arith.constant 2 : index
    %c0_70 = arith.constant 0 : index
    %c0_71 = arith.constant 0 : index
    %c0_72 = arith.constant 0 : index
    %79 = vector.load %arg6[%c2_69, %c0_70, %c0_71, %c0_72] : memref<3x3x4x4xf32, #tpu.memory_space<vmem>>, vector<1x3x4x4xf32>
    %80 = vector.shape_cast %79 : vector<1x3x4x4xf32> to vector<3x4x4xf32>
    %81 = vector.shape_cast %80 : vector<3x4x4xf32> to vector<12x4xf32>
    %cst_73 = arith.constant dense<0.000000e+00> : vector<256x4xf32>
    %82 = tpu.matmul %78, %81, %cst_73 {dimension_numbers = #tpu.dot_dimension_numbers<[1], [0], [0], [1], [0, 0, 1, 1], [], []>} : vector<256x12xf32>, vector<12x4xf32>, vector<256x4xf32> -> vector<256x4xf32>
    %83 = arith.addf %72, %82 : vector<256x4xf32>
    %84 = arith.addf %49, %83 : vector<256x4xf32>
    %85 = vector.shape_cast %84 : vector<256x4xf32> to vector<16x16x4xf32>
    %c0_74 = arith.constant 0 : index
    %c0_75 = arith.constant 0 : index
    %c0_76 = arith.constant 0 : index
    %c0_77 = arith.constant 0 : index
    %86 = vector.load %arg7[%c0_74, %c0_75, %c0_76, %c0_77] : memref<1x16x16x4xf32, #tpu.memory_space<vmem>>, vector<1x16x16x4xf32>
    %87 = vector.shape_cast %86 : vector<1x16x16x4xf32> to vector<16x16x4xf32>
    %88 = vector.shape_cast %85 : vector<16x16x4xf32> to vector<1x16x16x4xf32>
    tpu.vector_store %arg7[%c0_74, %c0_75, %c0_76, %c0_77], %88 {strides = array<i32>} : memref<1x16x16x4xf32, #tpu.memory_space<vmem>>, vector<1x16x16x4xf32>,
    %cst_78 = arith.constant dense<0.000000e+00> : vector<4xf32>
    %89 = vector.multi_reduction <add>, %84, %cst_78 [0] : vector<256x4xf32> to vector<4xf32>
    %90 = vector.shape_cast %89 : vector<4xf32> to vector<1x4xf32>
    %c0_79 = arith.constant 0 : index
    %c0_80 = arith.constant 0 : index
    %c0_81 = arith.constant 0 : index
    %91 = vector.load %arg8[%c0_79, %c0_80, %c0_81] : memref<1x1x4xf32, #tpu.memory_space<vmem>>, vector<1x1x4xf32>
    %92 = vector.shape_cast %91 : vector<1x1x4xf32> to vector<1x4xf32>
    %93 = vector.shape_cast %90 : vector<1x4xf32> to vector<1x1x4xf32>
    tpu.vector_store %arg8[%c0_79, %c0_80, %c0_81], %93 {strides = array<i32>} : memref<1x1x4xf32, #tpu.memory_space<vmem>>, vector<1x1x4xf32>,
    %94 = arith.mulf %84, %84 : vector<256x4xf32>
    %cst_82 = arith.constant dense<0.000000e+00> : vector<4xf32>
    %95 = vector.multi_reduction <add>, %94, %cst_82 [0] : vector<256x4xf32> to vector<4xf32>
    %96 = vector.shape_cast %95 : vector<4xf32> to vector<1x4xf32>
    %c0_83 = arith.constant 0 : index
    %c0_84 = arith.constant 0 : index
    %c0_85 = arith.constant 0 : index
    %97 = vector.load %arg9[%c0_83, %c0_84, %c0_85] : memref<1x1x4xf32, #tpu.memory_space<vmem>>, vector<1x1x4xf32>
    %98 = vector.shape_cast %97 : vector<1x1x4xf32> to vector<1x4xf32>
    %99 = vector.shape_cast %96 : vector<1x4xf32> to vector<1x1x4xf32>
    tpu.vector_store %arg9[%c0_83, %c0_84, %c0_85], %99 {strides = array<i32>} : memref<1x1x4xf32, #tpu.memory_space<vmem>>, vector<1x1x4xf32>,
    return
  }
  func.func @transform_0(%arg0: i32) -> (i32, i32, i32, i32) {
    %c0_i32 = arith.constant 0 : i32
    %c0_i32_0 = arith.constant 0 : i32
    %c0_i32_1 = arith.constant 0 : i32
    %c0_i32_2 = arith.constant 0 : i32
    return %arg0, %c0_i32, %c0_i32_0, %c0_i32_1 : i32, i32, i32, i32
  }
  func.func @transform_1(%arg0: i32) -> (i32, i32, i32, i32) {
    %c0_i32 = arith.constant 0 : i32
    %c0_i32_0 = arith.constant 0 : i32
    %c0_i32_1 = arith.constant 0 : i32
    %c0_i32_2 = arith.constant 0 : i32
    return %arg0, %c0_i32, %c0_i32_0, %c0_i32_1 : i32, i32, i32, i32
  }
  func.func @transform_2(%arg0: i32) -> (i32, i32) {
    %c0_i32 = arith.constant 0 : i32
    %c0_i32_0 = arith.constant 0 : i32
    %c0_i32_1 = arith.constant 0 : i32
    return %c0_i32, %c0_i32_0 : i32, i32
  }
  func.func @transform_3(%arg0: i32) -> (i32, i32) {
    %c0_i32 = arith.constant 0 : i32
    %c0_i32_0 = arith.constant 0 : i32
    %c0_i32_1 = arith.constant 0 : i32
    return %c0_i32, %c0_i32_0 : i32, i32
  }
  func.func @transform_4(%arg0: i32) -> (i32, i32, i32, i32) {
    %c0_i32 = arith.constant 0 : i32
    %c0_i32_0 = arith.constant 0 : i32
    %c0_i32_1 = arith.constant 0 : i32
    %c0_i32_2 = arith.constant 0 : i32
    %c0_i32_3 = arith.constant 0 : i32
    return %c0_i32, %c0_i32_0, %c0_i32_1, %c0_i32_2 : i32, i32, i32, i32
  }
  func.func @transform_5(%arg0: i32) -> (i32, i32, i32, i32) {
    %c0_i32 = arith.constant 0 : i32
    %c0_i32_0 = arith.constant 0 : i32
    %c0_i32_1 = arith.constant 0 : i32
    %c0_i32_2 = arith.constant 0 : i32
    %c0_i32_3 = arith.constant 0 : i32
    return %c0_i32, %c0_i32_0, %c0_i32_1, %c0_i32_2 : i32, i32, i32, i32
  }
  func.func @transform_6(%arg0: i32) -> (i32, i32, i32, i32) {
    %c0_i32 = arith.constant 0 : i32
    %c0_i32_0 = arith.constant 0 : i32
    %c0_i32_1 = arith.constant 0 : i32
    %c0_i32_2 = arith.constant 0 : i32
    return %arg0, %c0_i32, %c0_i32_0, %c0_i32_1 : i32, i32, i32, i32
  }
  func.func @transform_7(%arg0: i32) -> (i32, i32, i32) {
    %c0_i32 = arith.constant 0 : i32
    %c0_i32_0 = arith.constant 0 : i32
    %c0_i32_1 = arith.constant 0 : i32
    return %arg0, %c0_i32, %c0_i32_0 : i32, i32, i32
  }
  func.func @transform_8(%arg0: i32) -> (i32, i32, i32) {
    %c0_i32 = arith.constant 0 : i32
    %c0_i32_0 = arith.constant 0 : i32
    %c0_i32_1 = arith.constant 0 : i32
    return %arg0, %c0_i32, %c0_i32_0 : i32, i32, i32
  }
}

module attributes {stable_mosaic.version = 11 : i64} {
  func.func @_bn_relu_kernel(%arg0: i32, %arg1: memref<1x16x16x4xf32, #tpu.memory_space<vmem>>, %arg2: memref<2x1x4xf32, #tpu.memory_space<vmem>>, %arg3: memref<2x1x4xf32, #tpu.memory_space<vmem>>, %arg4: memref<1x4xf32, #tpu.memory_space<vmem>>, %arg5: memref<1x4xf32, #tpu.memory_space<vmem>>, %arg6: memref<1x16x16x4xf32, #tpu.memory_space<vmem>>) attributes {dimension_semantics = [#tpu.dimension_semantics<parallel>], iteration_bounds = array<i64: 2>, scalar_prefetch = 0 : i64, scratch_operands = 0 : i64, tpu.core_type = #tpu.core_type<tc>, window_params = [{transform_indices = @transform_0, window_bounds = array<i64: 1, 16, 16, 4>}, {pipeline_mode = #tpu.pipeline_mode<synchronous>, transform_indices = @transform_1, window_bounds = array<i64: 2, 1, 4>}, {pipeline_mode = #tpu.pipeline_mode<synchronous>, transform_indices = @transform_2, window_bounds = array<i64: 2, 1, 4>}, {pipeline_mode = #tpu.pipeline_mode<synchronous>, transform_indices = @transform_3, window_bounds = array<i64: 1, 4>}, {pipeline_mode = #tpu.pipeline_mode<synchronous>, transform_indices = @transform_4, window_bounds = array<i64: 1, 4>}, {transform_indices = @transform_5, window_bounds = array<i64: 1, 16, 16, 4>}]} {
    %c0 = arith.constant 0 : index
    %c0_0 = arith.constant 0 : index
    %c0_1 = arith.constant 0 : index
    %0 = vector.load %arg2[%c0, %c0_0, %c0_1] : memref<2x1x4xf32, #tpu.memory_space<vmem>>, vector<2x1x4xf32>
    %1 = vector.shape_cast %0 : vector<2x1x4xf32> to vector<2x4xf32>
    %c0_2 = arith.constant 0 : index
    %c0_3 = arith.constant 0 : index
    %c0_4 = arith.constant 0 : index
    %2 = vector.load %arg3[%c0_2, %c0_3, %c0_4] : memref<2x1x4xf32, #tpu.memory_space<vmem>>, vector<2x1x4xf32>
    %3 = vector.shape_cast %2 : vector<2x1x4xf32> to vector<2x4xf32>
    %c0_5 = arith.constant 0 : index
    %c0_6 = arith.constant 0 : index
    %4 = vector.load %arg4[%c0_5, %c0_6] : memref<1x4xf32, #tpu.memory_space<vmem>>, vector<1x4xf32>
    %c0_7 = arith.constant 0 : index
    %c0_8 = arith.constant 0 : index
    %5 = vector.load %arg5[%c0_7, %c0_8] : memref<1x4xf32, #tpu.memory_space<vmem>>, vector<1x4xf32>
    %cst = arith.constant dense<0.000000e+00> : vector<4xf32>
    %6 = vector.multi_reduction <add>, %1, %cst [0] : vector<2x4xf32> to vector<4xf32>
    %7 = vector.shape_cast %6 : vector<4xf32> to vector<1x4xf32>
    %cst_9 = arith.constant dense<0.000000e+00> : vector<4xf32>
    %8 = vector.multi_reduction <add>, %3, %cst_9 [0] : vector<2x4xf32> to vector<4xf32>
    %9 = vector.shape_cast %8 : vector<4xf32> to vector<1x4xf32>
    %cst_10 = arith.constant 5.120000e+02 : f32
    %10 = vector.broadcast %cst_10 : f32 to vector<1x4xf32>
    %11 = arith.divf %7, %10 : vector<1x4xf32>
    %cst_11 = arith.constant 5.120000e+02 : f32
    %12 = vector.broadcast %cst_11 : f32 to vector<1x4xf32>
    %13 = arith.divf %9, %12 : vector<1x4xf32>
    %14 = arith.mulf %11, %11 : vector<1x4xf32>
    %15 = arith.subf %13, %14 : vector<1x4xf32>
    %cst_12 = arith.constant 9.99999974E-6 : f32
    %16 = vector.broadcast %cst_12 : f32 to vector<1x4xf32>
    %17 = arith.addf %15, %16 : vector<1x4xf32>
    %18 = math.rsqrt %17 : vector<1x4xf32>
    %19 = arith.mulf %18, %4 : vector<1x4xf32>
    %20 = arith.mulf %11, %19 : vector<1x4xf32>
    %21 = arith.subf %5, %20 : vector<1x4xf32>
    %c0_13 = arith.constant 0 : index
    %c0_14 = arith.constant 0 : index
    %c0_15 = arith.constant 0 : index
    %c0_16 = arith.constant 0 : index
    %22 = vector.load %arg1[%c0_13, %c0_14, %c0_15, %c0_16] : memref<1x16x16x4xf32, #tpu.memory_space<vmem>>, vector<1x16x16x4xf32>
    %23 = vector.shape_cast %22 : vector<1x16x16x4xf32> to vector<16x16x4xf32>
    %24 = vector.shape_cast %23 : vector<16x16x4xf32> to vector<256x4xf32>
    %25 = vector.broadcast %19 : vector<1x4xf32> to vector<256x4xf32>
    %26 = arith.mulf %24, %25 : vector<256x4xf32>
    %27 = vector.broadcast %21 : vector<1x4xf32> to vector<256x4xf32>
    %28 = arith.addf %26, %27 : vector<256x4xf32>
    %cst_17 = arith.constant 0.000000e+00 : f32
    %29 = vector.broadcast %cst_17 : f32 to vector<256x4xf32>
    %30 = arith.maximumf %28, %29 : vector<256x4xf32>
    %31 = vector.shape_cast %30 : vector<256x4xf32> to vector<16x16x4xf32>
    %c0_18 = arith.constant 0 : index
    %c0_19 = arith.constant 0 : index
    %c0_20 = arith.constant 0 : index
    %c0_21 = arith.constant 0 : index
    %32 = vector.load %arg6[%c0_18, %c0_19, %c0_20, %c0_21] : memref<1x16x16x4xf32, #tpu.memory_space<vmem>>, vector<1x16x16x4xf32>
    %33 = vector.shape_cast %32 : vector<1x16x16x4xf32> to vector<16x16x4xf32>
    %34 = vector.shape_cast %31 : vector<16x16x4xf32> to vector<1x16x16x4xf32>
    tpu.vector_store %arg6[%c0_18, %c0_19, %c0_20, %c0_21], %34 {strides = array<i32>} : memref<1x16x16x4xf32, #tpu.memory_space<vmem>>, vector<1x16x16x4xf32>,
    return
  }
  func.func @transform_0(%arg0: i32) -> (i32, i32, i32, i32) {
    %c0_i32 = arith.constant 0 : i32
    %c0_i32_0 = arith.constant 0 : i32
    %c0_i32_1 = arith.constant 0 : i32
    %c0_i32_2 = arith.constant 0 : i32
    return %arg0, %c0_i32, %c0_i32_0, %c0_i32_1 : i32, i32, i32, i32
  }
  func.func @transform_1(%arg0: i32) -> (i32, i32, i32) {
    %c0_i32 = arith.constant 0 : i32
    %c0_i32_0 = arith.constant 0 : i32
    %c0_i32_1 = arith.constant 0 : i32
    %c0_i32_2 = arith.constant 0 : i32
    return %c0_i32, %c0_i32_0, %c0_i32_1 : i32, i32, i32
  }
  func.func @transform_2(%arg0: i32) -> (i32, i32, i32) {
    %c0_i32 = arith.constant 0 : i32
    %c0_i32_0 = arith.constant 0 : i32
    %c0_i32_1 = arith.constant 0 : i32
    %c0_i32_2 = arith.constant 0 : i32
    return %c0_i32, %c0_i32_0, %c0_i32_1 : i32, i32, i32
  }
  func.func @transform_3(%arg0: i32) -> (i32, i32) {
    %c0_i32 = arith.constant 0 : i32
    %c0_i32_0 = arith.constant 0 : i32
    %c0_i32_1 = arith.constant 0 : i32
    return %c0_i32, %c0_i32_0 : i32, i32
  }
  func.func @transform_4(%arg0: i32) -> (i32, i32) {
    %c0_i32 = arith.constant 0 : i32
    %c0_i32_0 = arith.constant 0 : i32
    %c0_i32_1 = arith.constant 0 : i32
    return %c0_i32, %c0_i32_0 : i32, i32
  }
  func.func @transform_5(%arg0: i32) -> (i32, i32, i32, i32) {
    %c0_i32 = arith.constant 0 : i32
    %c0_i32_0 = arith.constant 0 : i32
    %c0_i32_1 = arith.constant 0 : i32
    %c0_i32_2 = arith.constant 0 : i32
    return %arg0, %c0_i32, %c0_i32_0, %c0_i32_1 : i32, i32, i32, i32
  }
}

module attributes {stable_mosaic.version = 11 : i64} {
  func.func @_conv2_kernel(%arg0: i32, %arg1: memref<1x16x16x4xf32, #tpu.memory_space<vmem>>, %arg2: memref<2x1x4xf32, #tpu.memory_space<vmem>>, %arg3: memref<2x1x4xf32, #tpu.memory_space<vmem>>, %arg4: memref<1x4xf32, #tpu.memory_space<vmem>>, %arg5: memref<1x4xf32, #tpu.memory_space<vmem>>, %arg6: memref<3x3x4x4xf32, #tpu.memory_space<vmem>>, %arg7: memref<1x16x16x4xf32, #tpu.memory_space<vmem>>, %arg8: memref<1x1x4xf32, #tpu.memory_space<vmem>>, %arg9: memref<1x1x4xf32, #tpu.memory_space<vmem>>, %arg10: memref<18x18x4xf32, #tpu.memory_space<vmem>>) attributes {dimension_semantics = [#tpu.dimension_semantics<parallel>], iteration_bounds = array<i64: 2>, scalar_prefetch = 0 : i64, scratch_operands = 1 : i64, tpu.core_type = #tpu.core_type<tc>, window_params = [{transform_indices = @transform_0, window_bounds = array<i64: 1, 16, 16, 4>}, {pipeline_mode = #tpu.pipeline_mode<synchronous>, transform_indices = @transform_1, window_bounds = array<i64: 2, 1, 4>}, {pipeline_mode = #tpu.pipeline_mode<synchronous>, transform_indices = @transform_2, window_bounds = array<i64: 2, 1, 4>}, {pipeline_mode = #tpu.pipeline_mode<synchronous>, transform_indices = @transform_3, window_bounds = array<i64: 1, 4>}, {pipeline_mode = #tpu.pipeline_mode<synchronous>, transform_indices = @transform_4, window_bounds = array<i64: 1, 4>}, {pipeline_mode = #tpu.pipeline_mode<synchronous>, transform_indices = @transform_5, window_bounds = array<i64: 3, 3, 4, 4>}, {transform_indices = @transform_6, window_bounds = array<i64: 1, 16, 16, 4>}, {transform_indices = @transform_7, window_bounds = array<i64: 1, 1, 4>}, {transform_indices = @transform_8, window_bounds = array<i64: 1, 1, 4>}]} {
    %c0 = arith.constant 0 : index
    %c0_0 = arith.constant 0 : index
    %c0_1 = arith.constant 0 : index
    %0 = vector.load %arg2[%c0, %c0_0, %c0_1] : memref<2x1x4xf32, #tpu.memory_space<vmem>>, vector<2x1x4xf32>
    %1 = vector.shape_cast %0 : vector<2x1x4xf32> to vector<2x4xf32>
    %c0_2 = arith.constant 0 : index
    %c0_3 = arith.constant 0 : index
    %c0_4 = arith.constant 0 : index
    %2 = vector.load %arg3[%c0_2, %c0_3, %c0_4] : memref<2x1x4xf32, #tpu.memory_space<vmem>>, vector<2x1x4xf32>
    %3 = vector.shape_cast %2 : vector<2x1x4xf32> to vector<2x4xf32>
    %c0_5 = arith.constant 0 : index
    %c0_6 = arith.constant 0 : index
    %4 = vector.load %arg4[%c0_5, %c0_6] : memref<1x4xf32, #tpu.memory_space<vmem>>, vector<1x4xf32>
    %c0_7 = arith.constant 0 : index
    %c0_8 = arith.constant 0 : index
    %5 = vector.load %arg5[%c0_7, %c0_8] : memref<1x4xf32, #tpu.memory_space<vmem>>, vector<1x4xf32>
    %cst = arith.constant dense<0.000000e+00> : vector<4xf32>
    %6 = vector.multi_reduction <add>, %1, %cst [0] : vector<2x4xf32> to vector<4xf32>
    %7 = vector.shape_cast %6 : vector<4xf32> to vector<1x4xf32>
    %cst_9 = arith.constant dense<0.000000e+00> : vector<4xf32>
    %8 = vector.multi_reduction <add>, %3, %cst_9 [0] : vector<2x4xf32> to vector<4xf32>
    %9 = vector.shape_cast %8 : vector<4xf32> to vector<1x4xf32>
    %cst_10 = arith.constant 5.120000e+02 : f32
    %10 = vector.broadcast %cst_10 : f32 to vector<1x4xf32>
    %11 = arith.divf %7, %10 : vector<1x4xf32>
    %cst_11 = arith.constant 5.120000e+02 : f32
    %12 = vector.broadcast %cst_11 : f32 to vector<1x4xf32>
    %13 = arith.divf %9, %12 : vector<1x4xf32>
    %14 = arith.mulf %11, %11 : vector<1x4xf32>
    %15 = arith.subf %13, %14 : vector<1x4xf32>
    %cst_12 = arith.constant 9.99999974E-6 : f32
    %16 = vector.broadcast %cst_12 : f32 to vector<1x4xf32>
    %17 = arith.addf %15, %16 : vector<1x4xf32>
    %18 = math.rsqrt %17 : vector<1x4xf32>
    %19 = arith.mulf %18, %4 : vector<1x4xf32>
    %20 = arith.mulf %11, %19 : vector<1x4xf32>
    %21 = arith.subf %5, %20 : vector<1x4xf32>
    %c0_13 = arith.constant 0 : index
    %c0_14 = arith.constant 0 : index
    %c0_15 = arith.constant 0 : index
    %c0_16 = arith.constant 0 : index
    %22 = vector.load %arg1[%c0_13, %c0_14, %c0_15, %c0_16] : memref<1x16x16x4xf32, #tpu.memory_space<vmem>>, vector<1x16x16x4xf32>
    %23 = vector.shape_cast %22 : vector<1x16x16x4xf32> to vector<16x16x4xf32>
    %24 = vector.shape_cast %23 : vector<16x16x4xf32> to vector<256x4xf32>
    %25 = vector.broadcast %19 : vector<1x4xf32> to vector<256x4xf32>
    %26 = arith.mulf %24, %25 : vector<256x4xf32>
    %27 = vector.broadcast %21 : vector<1x4xf32> to vector<256x4xf32>
    %28 = arith.addf %26, %27 : vector<256x4xf32>
    %cst_17 = arith.constant 0.000000e+00 : f32
    %29 = vector.broadcast %cst_17 : f32 to vector<256x4xf32>
    %30 = arith.maximumf %28, %29 : vector<256x4xf32>
    %cst_18 = arith.constant 0.000000e+00 : f32
    %31 = vector.broadcast %cst_18 : f32 to vector<18x18x4xf32>
    %c0_19 = arith.constant 0 : index
    %c0_20 = arith.constant 0 : index
    %c0_21 = arith.constant 0 : index
    %32 = vector.load %arg10[%c0_19, %c0_20, %c0_21] : memref<18x18x4xf32, #tpu.memory_space<vmem>>, vector<18x18x4xf32>
    tpu.vector_store %arg10[%c0_19, %c0_20, %c0_21], %31 {strides = array<i32>} : memref<18x18x4xf32, #tpu.memory_space<vmem>>, vector<18x18x4xf32>,
    %33 = vector.shape_cast %30 : vector<256x4xf32> to vector<16x16x4xf32>
    %c1 = arith.constant 1 : index
    %c1_22 = arith.constant 1 : index
    %c0_23 = arith.constant 0 : index
    %34 = vector.load %arg10[%c1, %c1_22, %c0_23] : memref<18x18x4xf32, #tpu.memory_space<vmem>>, vector<16x16x4xf32>
    tpu.vector_store %arg10[%c1, %c1_22, %c0_23], %33 {strides = array<i32>} : memref<18x18x4xf32, #tpu.memory_space<vmem>>, vector<16x16x4xf32>,
    %cst_24 = arith.constant 0.000000e+00 : f32
    %35 = vector.broadcast %cst_24 : f32 to vector<256x4xf32>
    %c0_25 = arith.constant 0 : index
    %c0_26 = arith.constant 0 : index
    %c0_27 = arith.constant 0 : index
    %36 = vector.load %arg10[%c0_25, %c0_26, %c0_27] : memref<18x18x4xf32, #tpu.memory_space<vmem>>, vector<16x18x4xf32>
    %37 = vector.extract_strided_slice %36 {offsets = [0, 0, 0], sizes = [16, 16, 4], strides = [1, 1, 1]} : vector<16x18x4xf32> to vector<16x16x4xf32>
    %38 = vector.extract_strided_slice %36 {offsets = [0, 1, 0], sizes = [16, 16, 4], strides = [1, 1, 1]} : vector<16x18x4xf32> to vector<16x16x4xf32>
    %39 = vector.extract_strided_slice %36 {offsets = [0, 2, 0], sizes = [16, 16, 4], strides = [1, 1, 1]} : vector<16x18x4xf32> to vector<16x16x4xf32>
    %40 = tpu.concatenate %37, %38, %39 in 2 : vector<16x16x4xf32>, vector<16x16x4xf32>, vector<16x16x4xf32> -> vector<16x16x12xf32>
    %41 = vector.shape_cast %40 : vector<16x16x12xf32> to vector<256x12xf32>
    %c0_28 = arith.constant 0 : index
    %c0_29 = arith.constant 0 : index
    %c0_30 = arith.constant 0 : index
    %c0_31 = arith.constant 0 : index
    %42 = vector.load %arg6[%c0_28, %c0_29, %c0_30, %c0_31] : memref<3x3x4x4xf32, #tpu.memory_space<vmem>>, vector<1x3x4x4xf32>
    %43 = vector.shape_cast %42 : vector<1x3x4x4xf32> to vector<3x4x4xf32>
    %44 = vector.shape_cast %43 : vector<3x4x4xf32> to vector<12x4xf32>
    %cst_32 = arith.constant dense<0.000000e+00> : vector<256x4xf32>
    %45 = tpu.matmul %41, %44, %cst_32 {dimension_numbers = #tpu.dot_dimension_numbers<[1], [0], [0], [1], [0, 0, 1, 1], [], []>} : vector<256x12xf32>, vector<12x4xf32>, vector<256x4xf32> -> vector<256x4xf32>
    %46 = arith.addf %35, %45 : vector<256x4xf32>
    %c1_33 = arith.constant 1 : index
    %c0_34 = arith.constant 0 : index
    %c0_35 = arith.constant 0 : index
    %47 = vector.load %arg10[%c1_33, %c0_34, %c0_35] : memref<18x18x4xf32, #tpu.memory_space<vmem>>, vector<16x18x4xf32>
    %48 = vector.extract_strided_slice %47 {offsets = [0, 0, 0], sizes = [16, 16, 4], strides = [1, 1, 1]} : vector<16x18x4xf32> to vector<16x16x4xf32>
    %49 = vector.extract_strided_slice %47 {offsets = [0, 1, 0], sizes = [16, 16, 4], strides = [1, 1, 1]} : vector<16x18x4xf32> to vector<16x16x4xf32>
    %50 = vector.extract_strided_slice %47 {offsets = [0, 2, 0], sizes = [16, 16, 4], strides = [1, 1, 1]} : vector<16x18x4xf32> to vector<16x16x4xf32>
    %51 = tpu.concatenate %48, %49, %50 in 2 : vector<16x16x4xf32>, vector<16x16x4xf32>, vector<16x16x4xf32> -> vector<16x16x12xf32>
    %52 = vector.shape_cast %51 : vector<16x16x12xf32> to vector<256x12xf32>
    %c1_36 = arith.constant 1 : index
    %c0_37 = arith.constant 0 : index
    %c0_38 = arith.constant 0 : index
    %c0_39 = arith.constant 0 : index
    %53 = vector.load %arg6[%c1_36, %c0_37, %c0_38, %c0_39] : memref<3x3x4x4xf32, #tpu.memory_space<vmem>>, vector<1x3x4x4xf32>
    %54 = vector.shape_cast %53 : vector<1x3x4x4xf32> to vector<3x4x4xf32>
    %55 = vector.shape_cast %54 : vector<3x4x4xf32> to vector<12x4xf32>
    %cst_40 = arith.constant dense<0.000000e+00> : vector<256x4xf32>
    %56 = tpu.matmul %52, %55, %cst_40 {dimension_numbers = #tpu.dot_dimension_numbers<[1], [0], [0], [1], [0, 0, 1, 1], [], []>} : vector<256x12xf32>, vector<12x4xf32>, vector<256x4xf32> -> vector<256x4xf32>
    %57 = arith.addf %46, %56 : vector<256x4xf32>
    %c2 = arith.constant 2 : index
    %c0_41 = arith.constant 0 : index
    %c0_42 = arith.constant 0 : index
    %58 = vector.load %arg10[%c2, %c0_41, %c0_42] : memref<18x18x4xf32, #tpu.memory_space<vmem>>, vector<16x18x4xf32>
    %59 = vector.extract_strided_slice %58 {offsets = [0, 0, 0], sizes = [16, 16, 4], strides = [1, 1, 1]} : vector<16x18x4xf32> to vector<16x16x4xf32>
    %60 = vector.extract_strided_slice %58 {offsets = [0, 1, 0], sizes = [16, 16, 4], strides = [1, 1, 1]} : vector<16x18x4xf32> to vector<16x16x4xf32>
    %61 = vector.extract_strided_slice %58 {offsets = [0, 2, 0], sizes = [16, 16, 4], strides = [1, 1, 1]} : vector<16x18x4xf32> to vector<16x16x4xf32>
    %62 = tpu.concatenate %59, %60, %61 in 2 : vector<16x16x4xf32>, vector<16x16x4xf32>, vector<16x16x4xf32> -> vector<16x16x12xf32>
    %63 = vector.shape_cast %62 : vector<16x16x12xf32> to vector<256x12xf32>
    %c2_43 = arith.constant 2 : index
    %c0_44 = arith.constant 0 : index
    %c0_45 = arith.constant 0 : index
    %c0_46 = arith.constant 0 : index
    %64 = vector.load %arg6[%c2_43, %c0_44, %c0_45, %c0_46] : memref<3x3x4x4xf32, #tpu.memory_space<vmem>>, vector<1x3x4x4xf32>
    %65 = vector.shape_cast %64 : vector<1x3x4x4xf32> to vector<3x4x4xf32>
    %66 = vector.shape_cast %65 : vector<3x4x4xf32> to vector<12x4xf32>
    %cst_47 = arith.constant dense<0.000000e+00> : vector<256x4xf32>
    %67 = tpu.matmul %63, %66, %cst_47 {dimension_numbers = #tpu.dot_dimension_numbers<[1], [0], [0], [1], [0, 0, 1, 1], [], []>} : vector<256x12xf32>, vector<12x4xf32>, vector<256x4xf32> -> vector<256x4xf32>
    %68 = arith.addf %57, %67 : vector<256x4xf32>
    %69 = vector.shape_cast %68 : vector<256x4xf32> to vector<16x16x4xf32>
    %c0_48 = arith.constant 0 : index
    %c0_49 = arith.constant 0 : index
    %c0_50 = arith.constant 0 : index
    %c0_51 = arith.constant 0 : index
    %70 = vector.load %arg7[%c0_48, %c0_49, %c0_50, %c0_51] : memref<1x16x16x4xf32, #tpu.memory_space<vmem>>, vector<1x16x16x4xf32>
    %71 = vector.shape_cast %70 : vector<1x16x16x4xf32> to vector<16x16x4xf32>
    %72 = vector.shape_cast %69 : vector<16x16x4xf32> to vector<1x16x16x4xf32>
    tpu.vector_store %arg7[%c0_48, %c0_49, %c0_50, %c0_51], %72 {strides = array<i32>} : memref<1x16x16x4xf32, #tpu.memory_space<vmem>>, vector<1x16x16x4xf32>,
    %cst_52 = arith.constant dense<0.000000e+00> : vector<4xf32>
    %73 = vector.multi_reduction <add>, %68, %cst_52 [0] : vector<256x4xf32> to vector<4xf32>
    %74 = vector.shape_cast %73 : vector<4xf32> to vector<1x4xf32>
    %c0_53 = arith.constant 0 : index
    %c0_54 = arith.constant 0 : index
    %c0_55 = arith.constant 0 : index
    %75 = vector.load %arg8[%c0_53, %c0_54, %c0_55] : memref<1x1x4xf32, #tpu.memory_space<vmem>>, vector<1x1x4xf32>
    %76 = vector.shape_cast %75 : vector<1x1x4xf32> to vector<1x4xf32>
    %77 = vector.shape_cast %74 : vector<1x4xf32> to vector<1x1x4xf32>
    tpu.vector_store %arg8[%c0_53, %c0_54, %c0_55], %77 {strides = array<i32>} : memref<1x1x4xf32, #tpu.memory_space<vmem>>, vector<1x1x4xf32>,
    %78 = arith.mulf %68, %68 : vector<256x4xf32>
    %cst_56 = arith.constant dense<0.000000e+00> : vector<4xf32>
    %79 = vector.multi_reduction <add>, %78, %cst_56 [0] : vector<256x4xf32> to vector<4xf32>
    %80 = vector.shape_cast %79 : vector<4xf32> to vector<1x4xf32>
    %c0_57 = arith.constant 0 : index
    %c0_58 = arith.constant 0 : index
    %c0_59 = arith.constant 0 : index
    %81 = vector.load %arg9[%c0_57, %c0_58, %c0_59] : memref<1x1x4xf32, #tpu.memory_space<vmem>>, vector<1x1x4xf32>
    %82 = vector.shape_cast %81 : vector<1x1x4xf32> to vector<1x4xf32>
    %83 = vector.shape_cast %80 : vector<1x4xf32> to vector<1x1x4xf32>
    tpu.vector_store %arg9[%c0_57, %c0_58, %c0_59], %83 {strides = array<i32>} : memref<1x1x4xf32, #tpu.memory_space<vmem>>, vector<1x1x4xf32>,
    return
  }
  func.func @transform_0(%arg0: i32) -> (i32, i32, i32, i32) {
    %c0_i32 = arith.constant 0 : i32
    %c0_i32_0 = arith.constant 0 : i32
    %c0_i32_1 = arith.constant 0 : i32
    %c0_i32_2 = arith.constant 0 : i32
    return %arg0, %c0_i32, %c0_i32_0, %c0_i32_1 : i32, i32, i32, i32
  }
  func.func @transform_1(%arg0: i32) -> (i32, i32, i32) {
    %c0_i32 = arith.constant 0 : i32
    %c0_i32_0 = arith.constant 0 : i32
    %c0_i32_1 = arith.constant 0 : i32
    %c0_i32_2 = arith.constant 0 : i32
    return %c0_i32, %c0_i32_0, %c0_i32_1 : i32, i32, i32
  }
  func.func @transform_2(%arg0: i32) -> (i32, i32, i32) {
    %c0_i32 = arith.constant 0 : i32
    %c0_i32_0 = arith.constant 0 : i32
    %c0_i32_1 = arith.constant 0 : i32
    %c0_i32_2 = arith.constant 0 : i32
    return %c0_i32, %c0_i32_0, %c0_i32_1 : i32, i32, i32
  }
  func.func @transform_3(%arg0: i32) -> (i32, i32) {
    %c0_i32 = arith.constant 0 : i32
    %c0_i32_0 = arith.constant 0 : i32
    %c0_i32_1 = arith.constant 0 : i32
    return %c0_i32, %c0_i32_0 : i32, i32
  }
  func.func @transform_4(%arg0: i32) -> (i32, i32) {
    %c0_i32 = arith.constant 0 : i32
    %c0_i32_0 = arith.constant 0 : i32
    %c0_i32_1 = arith.constant 0 : i32
    return %c0_i32, %c0_i32_0 : i32, i32
  }
  func.func @transform_5(%arg0: i32) -> (i32, i32, i32, i32) {
    %c0_i32 = arith.constant 0 : i32
    %c0_i32_0 = arith.constant 0 : i32
    %c0_i32_1 = arith.constant 0 : i32
    %c0_i32_2 = arith.constant 0 : i32
    %c0_i32_3 = arith.constant 0 : i32
    return %c0_i32, %c0_i32_0, %c0_i32_1, %c0_i32_2 : i32, i32, i32, i32
  }
  func.func @transform_6(%arg0: i32) -> (i32, i32, i32, i32) {
    %c0_i32 = arith.constant 0 : i32
    %c0_i32_0 = arith.constant 0 : i32
    %c0_i32_1 = arith.constant 0 : i32
    %c0_i32_2 = arith.constant 0 : i32
    return %arg0, %c0_i32, %c0_i32_0, %c0_i32_1 : i32, i32, i32, i32
  }
  func.func @transform_7(%arg0: i32) -> (i32, i32, i32) {
    %c0_i32 = arith.constant 0 : i32
    %c0_i32_0 = arith.constant 0 : i32
    %c0_i32_1 = arith.constant 0 : i32
    return %arg0, %c0_i32, %c0_i32_0 : i32, i32, i32
  }
  func.func @transform_8(%arg0: i32) -> (i32, i32, i32) {
    %c0_i32 = arith.constant 0 : i32
    %c0_i32_0 = arith.constant 0 : i32
    %c0_i32_1 = arith.constant 0 : i32
    return %arg0, %c0_i32, %c0_i32_0 : i32, i32, i32
  }
}

</mosaic_0001>

<bundles_post_ra>
// kernel: up_forward.5
= control target key start
LH: loop header
LB: loop body
LE: loop exit
PB: predicated region body
PF: predicated region fallthrough
CT: control target
= control target key end

     0   :  { %s581_s18 = smov 0   ;;  %s799_s0 = inlined_call_operand.vmem [shape: f32[2,16,16,4], index: 0, kind: input, shape index: {}]   ;;  %s800_s1 = inlined_call_operand.vmem [shape: f32[2,1,4], index: 1, kind: input, shape index: {}]   ;;  %s801_s2 = inlined_call_operand.vmem [shape: f32[2,1,4], index: 2, kind: input, shape index: {}]   ;;  %s802_s3 = inlined_call_operand.vmem [shape: f32[1,4], index: 3, kind: input, shape index: {}]   ;;  %s803_s4 = inlined_call_operand.vmem [shape: f32[1,4], index: 4, kind: input, shape index: {}]   ;;  %s804_s5 = inlined_call_operand.vmem [shape: f32[2,16,16,4], index: 5, kind: output, shape index: {}]  }
   0x1 LB: > { %s518_s19 = sadd.s32 4294967295, %s548_s18   ;;  %p522_p0 = scmp.ge.s32.totalorder %s548_s18, 1  ;;  %s548_s18 = sphi %s581_s18, %s15_s18  }
   0x2   : > { %p187_p1 = scmp.lt.s32.totalorder %s548_s18, 3 }
   0x4   : > { %p188_p2 = pnand %p522_p0, %p187_p1 }
   0x5   : > { %p215_p3 = scmp.lt.s32.totalorder (!%p188_p2), %s518_s19, 1 }
   0x6   : > { %191 = sbr.rel (%p188_p2) target bundleno = 91 (0x5b), region = 40 }
   0xb   : > { %v237_v0 = vlaneseq  ;;  %v225_v1 = vld [vmem:[%s800_s1] sm:$0x1]  ;;  %v226_v2 = vld [vmem:[%s800_s1 + $0x1] sm:$0x1]  ;;  %v550_v5 = vmov 1966171168  }
   0xc   : > { %v227_v3 = vld [vmem:[%s801_s2] sm:$0x1]  ;;  %v228_v4 = vld [vmem:[%s801_s2 + $0x1] sm:$0x1]  ;;  %v235_v6 = vunpack.c.l.s4 %v550_v5  ;;  %v233_v8 = vcombine.low %v225_v1, %v226_v2  ;;  %vm249_vm0 = vcmask 25600   ;;  %s806_s19 = smov (!%p215_p3, %s518_s19), 1 }
   0xd   : > { %v601_v7 = vshrl.u32 %v237_v0, 7  ;;  %v259_v10 = vcombine.low %v227_v3, %v228_v4  ;;  %s529_s28 = sshll.u32 %s806_s19, 8  ;;  %v229_v35 = vld [vmem:[%s802_s3] sm:$0x1]  ;;  %vm430_vm1 = vcmask 31744  }
   0xe   : > { %v236_v9 = vunpack.c.0.s8 %v235_v6  ;;  %s616_s6 = scalar_lea.vmem %s799_s0, %s529_s28  ;;  %v230_v38 = vld [vmem:[%s803_s4] sm:$0x1]  ;;  %s666_s13 = scalar_lea.vmem %s804_s5, %s529_s28 }
   0xf   : > { %v326_v36 = vsub.s32 0, %v601_v7  ;;  %v292_v40 = vld [vmem:[%s616_s6] sm:$0xff]  ;;  %v293_v41 = vld [vmem:[%s616_s6 + $0x8] sm:$0xff]  ;;  %v294_v42 = vld [vmem:[%s616_s6 + $0x10] sm:$0xff] }
  0x10   : > { %v239_v11 = vsub.s32 %v236_v9, %v601_v7  ;;  %v295_v43 = vld [vmem:[%s616_s6 + $0x18] sm:$0xff]  ;;  %v296_v44 = vld [vmem:[%s616_s6 + $0x20] sm:$0xff]  ;;  %v297_v47 = vld [vmem:[%s616_s6 + $0x28] sm:$0xff] }
  0x11   : > { %v298_v48 = vld [vmem:[%s616_s6 + $0x30] sm:$0xff]  ;;  %v299_v49 = vld [vmem:[%s616_s6 + $0x38] sm:$0xff]  ;;  %v300_v50 = vld [vmem:[%s616_s6 + $0x40] sm:$0xff] }
  0x12   : > { %v240_v12 = vrot.slane %v233_v8, %v239_v11  ;;  %v266_v13 = vrot.slane %v259_v10, %v239_v11  ;;  %v301_v51 = vld [vmem:[%s616_s6 + $0x48] sm:$0xff]  ;;  %v302_v52 = vld [vmem:[%s616_s6 + $0x50] sm:$0xff]  ;;  %v303_v57 = vld [vmem:[%s616_s6 + $0x58] sm:$0xff] }
  0x13   : > { %v304_v58 = vld [vmem:[%s616_s6 + $0x60] sm:$0xff]  ;;  %v305_v59 = vld [vmem:[%s616_s6 + $0x68] sm:$0xff] }
  0x14   : > { %v247_v14 = vrot.slane %v240_v12, %v239_v11  ;;  %v273_v15 = vrot.slane %v266_v13, %v239_v11 }
  0x16   : > { %v250_v16 = vsel %vm249_vm0, %v247_v14, 0.0  ;;  %v275_v17 = vsel %vm249_vm0, %v273_v15, 0.0 }
  0x17   : > { %v251_v18 = vrot.slane %v250_v16, 4  ;;  %v276_v19 = vrot.slane %v275_v17, 4 }
  0x19   : > { %v252_v20 = vadd.f32 %v251_v18, %v250_v16  ;;  %v277_v21 = vadd.f32 %v276_v19, %v275_v17 }
  0x1b   : > { %v253_v22 = vrot.slane %v252_v20, 2  ;;  %v278_v23 = vrot.slane %v277_v21, 2 }
  0x1d   : > { %v254_v24 = vadd.f32 %v253_v22, %v252_v20  ;;  %v279_v25 = vadd.f32 %v278_v23, %v277_v21  ;;  %v306_v20 = vld [vmem:[%s616_s6 + $0x70] sm:$0xff]  ;;  %v307_v21 = vld [vmem:[%s616_s6 + $0x78] sm:$0xff] }
  0x1f   : > { %v255_v26 = vrot.slane %v254_v24, 1  ;;  %v280_v27 = vrot.slane %v279_v25, 1 }
  0x21   : > { %v256_v28 = vadd.f32 %v255_v26, %v254_v24  ;;  %v281_v29 = vadd.f32 %v280_v27, %v279_v25 }
  0x23   : > { %v283_v30 = vmul.f32 0.001953125, %v256_v28  ;;  %v284_v31 = vmul.f32 0.001953125, %v281_v29 }
  0x25   : > { %v285_v32 = vmul.f32 %v283_v30, %v283_v30 }
  0x27   : > { %v286_v33 = vsub.f32 %v284_v31, %v285_v32 }
  0x29   : > { %v287_v34 = vadd.f32 1e-05, %v286_v33 }
  0x2b   : > { %540 = vrsqrt.f32 %v287_v34 }
  0x38   : > { %v541_v37 = vpop.eup %540 }
  0x39   : > { %v289_v39 = vmul.f32 %v541_v37, %v229_v35  ;;  %v309_v35 = vld [vmem:[%s616_s6 + $0x88] sm:$0xff]  ;;  %v311_v37 = vld [vmem:[%s616_s6 + $0x98] sm:$0xff] }
  0x3b   : > { %v290_v45 = vmul.f32 %v289_v39, %v283_v30  ;;  %v630_v46 = vrot.slane %v289_v39, %v326_v36  ;;  %v308_v30 = vld [vmem:[%s616_s6 + $0x80] sm:$0xff] }
  0x3d   : > { %v291_v53 = vsub.f32 %v230_v38, %v290_v45  ;;  %v328_v54 = vmul.f32 %v630_v46, %v292_v40  ;;  %v329_v55 = vmul.f32 %v630_v46, %v293_v41  ;;  %v330_v56 = vmul.f32 %v630_v46, %v294_v42  ;;  %v312_v42 = vld [vmem:[%s616_s6 + $0xa0] sm:$0xff] }
  0x3e   : > { %v331_v60 = vmul.f32 %v630_v46, %v295_v43  ;;  %v332_v61 = vmul.f32 %v630_v46, %v296_v44  ;;  %v333_v62 = vmul.f32 %v630_v46, %v297_v47  ;;  %v334_v63 = vmul.f32 %v630_v46, %v298_v48  ;;  %v313_v43 = vld [vmem:[%s616_s6 + $0xa8] sm:$0xff] }
  0x3f   : > { %v648_v0 = vrot.slane %v291_v53, %v326_v36  ;;  %v335_v1 = vmul.f32 %v630_v46, %v299_v49  ;;  %v336_v2 = vmul.f32 %v630_v46, %v300_v50  ;;  %v337_v3 = vmul.f32 %v630_v46, %v301_v51  ;;  %v310_v36 = vld [vmem:[%s616_s6 + $0x90] sm:$0xff] }
  0x40   : > { %v338_v4 = vmul.f32 %v630_v46, %v302_v52  ;;  %v339_v5 = vmul.f32 %v630_v46, %v303_v57  ;;  %v340_v6 = vmul.f32 %v630_v46, %v304_v58  ;;  %v341_v7 = vmul.f32 %v630_v46, %v305_v59  ;;  %v314_v53 = vld [vmem:[%s616_s6 + $0xb0] sm:$0xff] }
  0x41   : > { %v366_v8 = vadd.f32 %v648_v0, %v328_v54  ;;  %v367_v9 = vadd.f32 %v648_v0, %v329_v55  ;;  %v368_v10 = vadd.f32 %v648_v0, %v330_v56  ;;  %v369_v11 = vadd.f32 %v648_v0, %v331_v60  ;;  %v315_v54 = vld [vmem:[%s616_s6 + $0xb8] sm:$0xff] }
  0x42   : > { %v370_v12 = vadd.f32 %v648_v0, %v332_v61  ;;  %v371_v13 = vadd.f32 %v648_v0, %v333_v62  ;;  %v372_v14 = vadd.f32 %v648_v0, %v334_v63  ;;  %v373_v15 = vadd.f32 %v648_v0, %v335_v1  ;;  %v316_v63 = vld [vmem:[%s616_s6 + $0xc0] sm:$0xff] }
  0x43   : > { %v398_v16 = vmax.f32 %v366_v8, 0.0  ;;  %v399_v17 = vmax.f32 %v367_v9, 0.0  ;;  %v400_v18 = vmax.f32 %v368_v10, 0.0  ;;  %v401_v19 = vmax.f32 %v369_v11, 0.0 }
  0x44   : > { %v402_v22 = vmax.f32 %v370_v12, 0.0  ;;  %v403_v23 = vmax.f32 %v371_v13, 0.0  ;;  %v404_v24 = vmax.f32 %v372_v14, 0.0  ;;  %v405_v25 = vmax.f32 %v373_v15, 0.0  ;;  %v320_v12 = vld [vmem:[%s616_s6 + $0xe0] sm:$0xff]  ;;  %v321_v13 = vld [vmem:[%s616_s6 + $0xe8] sm:$0xff] }
  0x45   : > { %431 = vst.msk [vmem:[%s666_s13] sm:$0xff] %vm430_vm1, %v398_v16  ;;  %432 = vst.msk [vmem:[%s666_s13 + $0x8] sm:$0xff] %vm430_vm1, %v399_v17  ;;  %v374_v26 = vadd.f32 %v648_v0, %v336_v2  ;;  %v375_v27 = vadd.f32 %v648_v0, %v337_v3  ;;  %v376_v28 = vadd.f32 %v648_v0, %v338_v4 }
  0x46   : > { %433 = vst.msk [vmem:[%s666_s13 + $0x10] sm:$0xff] %vm430_vm1, %v400_v18  ;;  %434 = vst.msk [vmem:[%s666_s13 + $0x18] sm:$0xff] %vm430_vm1, %v401_v19  ;;  %v377_v29 = vadd.f32 %v648_v0, %v339_v5  ;;  %v378_v31 = vadd.f32 %v648_v0, %v340_v6  ;;  %v379_v32 = vadd.f32 %v648_v0, %v341_v7  ;;  %v317_v5 = vld [vmem:[%s616_s6 + $0xc8] sm:$0xff]  ;;  %v318_v6 = vld [vmem:[%s616_s6 + $0xd0] sm:$0xff] }
  0x47   : > { %435 = vst.msk [vmem:[%s666_s13 + $0x20] sm:$0xff] %vm430_vm1, %v402_v22  ;;  %436 = vst.msk [vmem:[%s666_s13 + $0x28] sm:$0xff] %vm430_vm1, %v403_v23  ;;  %v342_v33 = vmul.f32 %v630_v46, %v306_v20  ;;  %v343_v34 = vmul.f32 %v630_v46, %v307_v21  ;;  %v406_v38 = vmax.f32 %v374_v26, 0.0  ;;  %v407_v39 = vmax.f32 %v375_v27, 0.0  ;;  %v319_v7 = vld [vmem:[%s616_s6 + $0xd8] sm:$0xff]  ;;  %v322_v22 = vld [vmem:[%s616_s6 + $0xf0] sm:$0xff] }
  0x48   : > { %437 = vst.msk [vmem:[%s666_s13 + $0x30] sm:$0xff] %vm430_vm1, %v404_v24  ;;  %438 = vst.msk [vmem:[%s666_s13 + $0x38] sm:$0xff] %vm430_vm1, %v405_v25  ;;  %v408_v40 = vmax.f32 %v376_v28, 0.0  ;;  %v409_v41 = vmax.f32 %v377_v29, 0.0  ;;  %v410_v44 = vmax.f32 %v378_v31, 0.0  ;;  %v411_v45 = vmax.f32 %v379_v32, 0.0 }
  0x49   : > { %v380_v47 = vadd.f32 %v648_v0, %v342_v33  ;;  %v381_v48 = vadd.f32 %v648_v0, %v343_v34  ;;  %439 = vst.msk [vmem:[%s666_s13 + $0x40] sm:$0xff] %vm430_vm1, %v406_v38  ;;  %440 = vst.msk [vmem:[%s666_s13 + $0x48] sm:$0xff] %vm430_vm1, %v407_v39  ;;  %v344_v49 = vmul.f32 %v630_v46, %v308_v30  ;;  %v323_v23 = vld [vmem:[%s616_s6 + $0xf8] sm:$0xff] }
  0x4a   : > { %441 = vst.msk [vmem:[%s666_s13 + $0x50] sm:$0xff] %vm430_vm1, %v408_v40  ;;  %442 = vst.msk [vmem:[%s666_s13 + $0x58] sm:$0xff] %vm430_vm1, %v409_v41  ;;  %v345_v50 = vmul.f32 %v630_v46, %v309_v35  ;;  %v346_v51 = vmul.f32 %v630_v46, %v310_v36  ;;  %v347_v52 = vmul.f32 %v630_v46, %v311_v37 }
  0x4b   : > { %443 = vst.msk [vmem:[%s666_s13 + $0x60] sm:$0xff] %vm430_vm1, %v410_v44  ;;  %444 = vst.msk [vmem:[%s666_s13 + $0x68] sm:$0xff] %vm430_vm1, %v411_v45  ;;  %v412_v55 = vmax.f32 %v380_v47, 0.0  ;;  %v413_v56 = vmax.f32 %v381_v48, 0.0  ;;  %v348_v57 = vmul.f32 %v630_v46, %v312_v42  ;;  %v349_v58 = vmul.f32 %v630_v46, %v313_v43 }
  0x4c   : > { %v382_v59 = vadd.f32 %v648_v0, %v344_v49  ;;  %v383_v60 = vadd.f32 %v648_v0, %v345_v50  ;;  %v384_v61 = vadd.f32 %v648_v0, %v346_v51  ;;  %v385_v62 = vadd.f32 %v648_v0, %v347_v52 }
  0x4d   : > { %445 = vst.msk [vmem:[%s666_s13 + $0x70] sm:$0xff] %vm430_vm1, %v412_v55  ;;  %446 = vst.msk [vmem:[%s666_s13 + $0x78] sm:$0xff] %vm430_vm1, %v413_v56  ;;  %v386_v1 = vadd.f32 %v648_v0, %v348_v57  ;;  %v387_v2 = vadd.f32 %v648_v0, %v349_v58  ;;  %v350_v3 = vmul.f32 %v630_v46, %v314_v53 }
  0x4e   : > { %v351_v4 = vmul.f32 %v630_v46, %v315_v54  ;;  %v414_v8 = vmax.f32 %v382_v59, 0.0  ;;  %v415_v9 = vmax.f32 %v383_v60, 0.0  ;;  %v416_v10 = vmax.f32 %v384_v61, 0.0 }
  0x4f   : > { %v417_v11 = vmax.f32 %v385_v62, 0.0  ;;  %v418_v14 = vmax.f32 %v386_v1, 0.0  ;;  %v419_v15 = vmax.f32 %v387_v2, 0.0  ;;  %v388_v16 = vadd.f32 %v648_v0, %v350_v3 }
  0x50   : > { %v389_v17 = vadd.f32 %v648_v0, %v351_v4  ;;  %447 = vst.msk [vmem:[%s666_s13 + $0x80] sm:$0xff] %vm430_vm1, %v414_v8  ;;  %448 = vst.msk [vmem:[%s666_s13 + $0x88] sm:$0xff] %vm430_vm1, %v415_v9  ;;  %v352_v18 = vmul.f32 %v630_v46, %v316_v63  ;;  %v353_v19 = vmul.f32 %v630_v46, %v317_v5 }
  0x51   : > { %449 = vst.msk [vmem:[%s666_s13 + $0x90] sm:$0xff] %vm430_vm1, %v416_v10  ;;  %450 = vst.msk [vmem:[%s666_s13 + $0x98] sm:$0xff] %vm430_vm1, %v417_v11  ;;  %v354_v20 = vmul.f32 %v630_v46, %v318_v6  ;;  %v355_v21 = vmul.f32 %v630_v46, %v319_v7  ;;  %v420_v24 = vmax.f32 %v388_v16, 0.0  ;;  %v356_v26 = vmul.f32 %v630_v46, %v320_v12 }
  0x52   : > { %451 = vst.msk [vmem:[%s666_s13 + $0xa0] sm:$0xff] %vm430_vm1, %v418_v14  ;;  %452 = vst.msk [vmem:[%s666_s13 + $0xa8] sm:$0xff] %vm430_vm1, %v419_v15  ;;  %v421_v25 = vmax.f32 %v389_v17, 0.0  ;;  %v357_v27 = vmul.f32 %v630_v46, %v321_v13  ;;  %v390_v28 = vadd.f32 %v648_v0, %v352_v18  ;;  %v391_v29 = vadd.f32 %v648_v0, %v353_v19 }
  0x53   : > { %v392_v30 = vadd.f32 %v648_v0, %v354_v20  ;;  %v393_v31 = vadd.f32 %v648_v0, %v355_v21  ;;  %453 = vst.msk [vmem:[%s666_s13 + $0xb0] sm:$0xff] %vm430_vm1, %v420_v24  ;;  %v394_v32 = vadd.f32 %v648_v0, %v356_v26  ;;  %v358_v34 = vmul.f32 %v630_v46, %v322_v22 }
  0x54   : > { %454 = vst.msk [vmem:[%s666_s13 + $0xb8] sm:$0xff] %vm430_vm1, %v421_v25  ;;  %v395_v33 = vadd.f32 %v648_v0, %v357_v27  ;;  %v359_v35 = vmul.f32 %v630_v46, %v323_v23  ;;  %v422_v36 = vmax.f32 %v390_v28, 0.0  ;;  %v423_v37 = vmax.f32 %v391_v29, 0.0 }
  0x55   : > { %v424_v38 = vmax.f32 %v392_v30, 0.0  ;;  %v425_v39 = vmax.f32 %v393_v31, 0.0  ;;  %v426_v40 = vmax.f32 %v394_v32, 0.0  ;;  %v396_v42 = vadd.f32 %v648_v0, %v358_v34 }
  0x56   : > { %v427_v41 = vmax.f32 %v395_v33, 0.0  ;;  %v397_v43 = vadd.f32 %v648_v0, %v359_v35  ;;  %455 = vst.msk [vmem:[%s666_s13 + $0xc0] sm:$0xff] %vm430_vm1, %v422_v36  ;;  %456 = vst.msk [vmem:[%s666_s13 + $0xc8] sm:$0xff] %vm430_vm1, %v423_v37 }
  0x57   : > { %457 = vst.msk [vmem:[%s666_s13 + $0xd0] sm:$0xff] %vm430_vm1, %v424_v38  ;;  %458 = vst.msk [vmem:[%s666_s13 + $0xd8] sm:$0xff] %vm430_vm1, %v425_v39  ;;  %v428_v46 = vmax.f32 %v396_v42, 0.0 }
  0x58   : > { %459 = vst.msk [vmem:[%s666_s13 + $0xe0] sm:$0xff] %vm430_vm1, %v426_v40  ;;  %460 = vst.msk [vmem:[%s666_s13 + $0xe8] sm:$0xff] %vm430_vm1, %v427_v41  ;;  %v429_v44 = vmax.f32 %v397_v43, 0.0 }
  0x59   : > { %461 = vst.msk [vmem:[%s666_s13 + $0xf0] sm:$0xff] %vm430_vm1, %v428_v46 }
  0x5a   : > { %462 = vst.msk [vmem:[%s666_s13 + $0xf8] sm:$0xff] %vm430_vm1, %v429_v44 }
  0x5b PF: > { %s15_s18 = sadd.s32 1, %s548_s18  }
  0x5c   : > { %p12_p4 = scmp.ge.s32.totalorder %s15_s18, 4  }
  0x5e   :  { %14 = sbr.rel (!%p12_p4) target bundleno = 1 (0x1), region = 70 }

// kernel: up_forward.4
= control target key start
LH: loop header
LB: loop body
LE: loop exit
PB: predicated region body
PF: predicated region fallthrough
CT: control target
= control target key end

     0   :  { %s3968_s27 = smov 0   ;;  %s5774_s0 = inlined_call_operand.vmem [shape: f32[2,16,16,4], index: 0, kind: input, shape index: {}]   ;;  %s5775_s1 = inlined_call_operand.vmem [shape: f32[2,1,4], index: 1, kind: input, shape index: {}]   ;;  %s5776_s2 = inlined_call_operand.vmem [shape: f32[2,1,4], index: 2, kind: input, shape index: {}]   ;;  %s5777_s3 = inlined_call_operand.vmem [shape: f32[1,4], index: 3, kind: input, shape index: {}]   ;;  %s5778_s4 = inlined_call_operand.vmem [shape: f32[1,4], index: 4, kind: input, shape index: {}]   ;;  %s5779_s5 = inlined_call_operand.vmem [shape: f32[3,3,4,4], index: 5, kind: input, shape index: {}]   ;;  %s5780_s6 = inlined_call_operand.vmem [shape: f32[2,16,16,4], index: 6, kind: output, shape index: {0}]   ;;  %s5781_s7 = inlined_call_operand.vmem [shape: f32[2,1,4], index: 7, kind: output, shape index: {1}]   ;;  %s5782_s8 = inlined_call_operand.vmem [shape: f32[2,1,4], index: 8, kind: output, shape index: {2}]  }
   0x1 LB: > { %s3495_s28 = sadd.s32 4294967295, %s3917_s27   ;;  %p3499_p0 = scmp.ge.s32.totalorder %s3917_s27, 1  ;;  %s3917_s27 = sphi %s3968_s27, %s19_s27  }
   0x2   : > { %p267_p1 = scmp.lt.s32.totalorder %s3917_s27, 3 }
   0x4   : > { %p268_p2 = pnand %p3499_p0, %p267_p1 }
   0x6   : > { %271 = sbr.rel (%p268_p2) target bundleno = 797 (0x31d), region = 44 }
   0xb   : > { %vm528_vm0 = vcmask 31744   ;;  %vm347_vm1 = vcmask 25600   ;;  %v3919_v0 = vmov 0.0   ;;  %v335_v1 = vlaneseq  ;;  %v323_v2 = vld [vmem:[%s5775_s1] sm:$0x1]  ;;  %s3921_s15 = smov 4  }
   0xc   : > { %529 = vst.msk [vmem:[#allocation2] sm:$0xff] %vm528_vm0, %v3919_v0  ;;  %530 = vst.msk [vmem:[#allocation2 + $0x8] sm:$0xff] %vm528_vm0, %v3919_v0  ;;  %v324_v3 = vld [vmem:[%s5775_s1 + $0x1] sm:$0x1]  ;;  %v325_v4 = vld [vmem:[%s5776_s2] sm:$0x1] }
   0xd   : > { %532 = vst.msk [vmem:[#allocation2 + $0x18] sm:$0xff] %vm528_vm0, %v3919_v0  ;;  %533 = vst.msk [vmem:[#allocation2 + $0x20] sm:$0xff] %vm528_vm0, %v3919_v0  ;;  %v326_v5 = vld [vmem:[%s5776_s2 + $0x1] sm:$0x1]  ;;  %v3920_v6 = vmov 1966171168   ;;  %v331_v9 = vcombine.low %v323_v2, %v324_v3 }
   0xe   : > { %535 = vst.msk [vmem:[#allocation2 + $0x30] sm:$0xff] %vm528_vm0, %v3919_v0  ;;  %536 = vst.msk [vmem:[#allocation2 + $0x38] sm:$0xff] %vm528_vm0, %v3919_v0  ;;  %v333_v7 = vunpack.c.l.s4 %v3920_v6  ;;  %v4042_v8 = vshrl.u32 %v335_v1, 7  ;;  %v357_v11 = vcombine.low %v325_v4, %v326_v5  ;;  %vm712_vm2 = vcmask 1046528   ;;  %p307_p3 = scmp.lt.s32.totalorder %s3495_s28, 1  ;;  %s3922_s24 = smov 8  }
   0xf   : > { %538 = vst.msk [vmem:[#allocation2 + $0x48] sm:$0xff] %vm528_vm0, %v3919_v0  ;;  %539 = vst.msk [vmem:[#allocation2 + $0x50] sm:$0xff] %vm528_vm0, %v3919_v0  ;;  %v327_v44 = vld [vmem:[%s5777_s3] sm:$0x1]  ;;  %vm889_vm3 = vcmask 1045504   ;;  %vm1752_vm4 = vcmask 1043456  }
  0x10   : > { %541 = vst.msk [vmem:[#allocation2 + $0x60] sm:$0xff] %vm528_vm0, %v3919_v0  ;;  %542 = vst.msk [vmem:[#allocation2 + $0x68] sm:$0xff] %vm528_vm0, %v3919_v0  ;;  %v334_v10 = vunpack.c.0.s8 %v333_v7  ;;  %s5853_s28 = smov (!%p307_p3, %s3495_s28), 1  ;;  %v424_v45 = vsub.s32 0, %v4042_v8  ;;  %v328_v47 = vld [vmem:[%s5778_s4] sm:$0x1] }
  0x11   : > { %544 = vst.msk [vmem:[#allocation2 + $0x78] sm:$0xff] %vm528_vm0, %v3919_v0  ;;  %545 = vst.msk [vmem:[#allocation2 + $0x80] sm:$0xff] %vm528_vm0, %v3919_v0  ;;  %s3611_s16 = sshll.u32 %s5853_s28, 8  ;;  %vm1098_vm5 = vcmask 64512   ;;  %vm1655_vm6 = vcmask 97280   ;;  %s319_s22 = scalar_lea.vmem %s5781_s7, %s5853_s28  ;;  %vm3286_vm7 = vcmask 24576  }
  0x12   : > { %547 = vst.msk [vmem:[#allocation2 + $0x90] sm:$0xff] %vm528_vm0, %v3919_v0  ;;  %548 = vst.msk [vmem:[#allocation2 + $0x98] sm:$0xff] %vm528_vm0, %v3919_v0  ;;  %v337_v15 = vsub.s32 %v334_v10, %v4042_v8  ;;  %s4066_s21 = scalar_lea.vmem %s5774_s0, %s3611_s16  ;;  %s5566_s20 = scalar_lea.vmem %s5780_s6, %s3611_s16 }
  0x13   : > { %550 = vst.msk [vmem:[#allocation2 + $0xa8] sm:$0xff] %vm528_vm0, %v3919_v0  ;;  %551 = vst.msk [vmem:[#allocation2 + $0xb0] sm:$0xff] %vm528_vm0, %v3919_v0  ;;  %v616_v12 = vld [vmem:[#allocation2] sm:$0xff]  ;;  %v617_v13 = vld [vmem:[#allocation2 + $0x8] sm:$0xff]  ;;  %s322_s25 = scalar_lea.vmem %s5782_s8, %s5853_s28 }
  0x14   : > { %553 = vst.msk [vmem:[#allocation2 + $0xc0] sm:$0xff] %vm528_vm0, %v3919_v0  ;;  %554 = vst.msk [vmem:[#allocation2 + $0xc8] sm:$0xff] %vm528_vm0, %v3919_v0  ;;  %v713_v16 = vrot.slane %v616_v12, 1  ;;  %v714_v17 = vrot.slane %v617_v13, 1  ;;  %v338_v19 = vrot.slane %v331_v9, %v337_v15  ;;  %v364_v20 = vrot.slane %v357_v11, %v337_v15  ;;  %v392_v49 = vld [vmem:[%s4066_s21 + $0x10] sm:$0xff]  ;;  %v393_v50 = vld [vmem:[%s4066_s21 + $0x18] sm:$0xff] }
  0x15   : > { %556 = vst.msk [vmem:[#allocation2 + $0xd8] sm:$0xff] %vm528_vm0, %v3919_v0  ;;  %557 = vst.msk [vmem:[#allocation2 + $0xe0] sm:$0xff] %vm528_vm0, %v3919_v0  ;;  %v390_v51 = vld [vmem:[%s4066_s21] sm:$0xff]  ;;  %v391_v52 = vld [vmem:[%s4066_s21 + $0x8] sm:$0xff] }
  0x16   : > { %559 = vst.msk [vmem:[#allocation2 + $0xf0] sm:$0xff] %vm528_vm0, %v3919_v0  ;;  %560 = vst.msk [vmem:[#allocation2 + $0xf8] sm:$0xff] %vm528_vm0, %v3919_v0  ;;  %v715_v21 = vsel %vm712_vm2, %v713_v16, %v714_v17  ;;  %v345_v22 = vrot.slane %v338_v19, %v337_v15  ;;  %v371_v23 = vrot.slane %v364_v20, %v337_v15  ;;  %v394_v53 = vld [vmem:[%s4066_s21 + $0x20] sm:$0xff]  ;;  %v395_v56 = vld [vmem:[%s4066_s21 + $0x28] sm:$0xff] }
  0x17   : > { %562 = vst.msk [vmem:[#allocation2 + $0x108] sm:$0xff] %vm528_vm0, %v3919_v0  ;;  %563 = vst.msk [vmem:[#allocation2 + $0x110] sm:$0xff] %vm528_vm0, %v3919_v0  ;;  %793 = vrot.lane.b32.xlu0 %v715_v21, %s3921_s15  ;;  %v406_v57 = vld [vmem:[%s4066_s21 + $0x80] sm:$0xff]  ;;  %v407_v58 = vld [vmem:[%s4066_s21 + $0x88] sm:$0xff] }
  0x18   : > { %565 = vst.msk [vmem:[#allocation2 + $0x120] sm:$0xff] %vm528_vm0, %v3919_v0  ;;  %566 = vst.msk [vmem:[#allocation2 + $0x128] sm:$0xff] %vm528_vm0, %v3919_v0  ;;  %v348_v25 = vsel %vm347_vm1, %v345_v22, 0.0  ;;  %v373_v26 = vsel %vm347_vm1, %v371_v23, 0.0  ;;  %v408_v59 = vld [vmem:[%s4066_s21 + $0x90] sm:$0xff]  ;;  %v409_v60 = vld [vmem:[%s4066_s21 + $0x98] sm:$0xff] }
  0x19   : > { %568 = vst.msk [vmem:[#allocation2 + $0x138] sm:$0xff] %vm528_vm0, %v3919_v0  ;;  %569 = vst.msk [vmem:[#allocation2 + $0x140] sm:$0xff] %vm528_vm0, %v3919_v0  ;;  %v349_v27 = vrot.slane %v348_v25, 4  ;;  %v374_v28 = vrot.slane %v373_v26, 4  ;;  %v410_v61 = vld [vmem:[%s4066_s21 + $0xa0] sm:$0xff]  ;;  %v411_v2 = vld [vmem:[%s4066_s21 + $0xa8] sm:$0xff] }
  0x1a   : > { %571 = vst.msk [vmem:[#allocation2 + $0x150] sm:$0xff] %vm528_vm0, %v3919_v0  ;;  %572 = vst.msk [vmem:[#allocation2 + $0x158] sm:$0xff] %vm528_vm0, %v3919_v0  ;;  %v412_v3 = vld [vmem:[%s4066_s21 + $0xb0] sm:$0xff]  ;;  %v413_v4 = vld [vmem:[%s4066_s21 + $0xb8] sm:$0xff] }
  0x1b   : > { %574 = vst.msk [vmem:[#allocation2 + $0x168] sm:$0xff] %vm528_vm0, %v3919_v0  ;;  %575 = vst.msk [vmem:[#allocation2 + $0x170] sm:$0xff] %vm528_vm0, %v3919_v0  ;;  %v350_v29 = vadd.f32 %v349_v27, %v348_v25  ;;  %v375_v30 = vadd.f32 %v374_v28, %v373_v26 }
  0x1c   : > { %577 = vst.msk [vmem:[#allocation2 + $0x180] sm:$0xff] %vm528_vm0, %v3919_v0  ;;  %578 = vst.msk [vmem:[#allocation2 + $0x188] sm:$0xff] %vm528_vm0, %v3919_v0 }
  0x1d   : > { %580 = vst.msk [vmem:[#allocation2 + $0x198] sm:$0xff] %vm528_vm0, %v3919_v0  ;;  %581 = vst.msk [vmem:[#allocation2 + $0x1a0] sm:$0xff] %vm528_vm0, %v3919_v0  ;;  %v351_v31 = vrot.slane %v350_v29, 2  ;;  %v376_v32 = vrot.slane %v375_v30, 2 }
  0x1e   : > { %531 = vst.msk [vmem:[#allocation2 + $0x10] sm:$0x3] %vm347_vm1, %v3919_v0  ;;  %534 = vst.msk [vmem:[#allocation2 + $0x28] sm:$0x3] %vm347_vm1, %v3919_v0 }
  0x1f   : > { %537 = vst.msk [vmem:[#allocation2 + $0x40] sm:$0x3] %vm347_vm1, %v3919_v0  ;;  %540 = vst.msk [vmem:[#allocation2 + $0x58] sm:$0x3] %vm347_vm1, %v3919_v0  ;;  %v352_v33 = vadd.f32 %v351_v31, %v350_v29  ;;  %v377_v34 = vadd.f32 %v376_v32, %v375_v30  ;;  %v396_v29 = vld [vmem:[%s4066_s21 + $0x30] sm:$0xff]  ;;  %v397_v30 = vld [vmem:[%s4066_s21 + $0x38] sm:$0xff] }
  0x20   : > { %543 = vst.msk [vmem:[#allocation2 + $0x70] sm:$0x3] %vm347_vm1, %v3919_v0  ;;  %546 = vst.msk [vmem:[#allocation2 + $0x88] sm:$0x3] %vm347_vm1, %v3919_v0 }
  0x21   : > { %549 = vst.msk [vmem:[#allocation2 + $0xa0] sm:$0x3] %vm347_vm1, %v3919_v0  ;;  %552 = vst.msk [vmem:[#allocation2 + $0xb8] sm:$0x3] %vm347_vm1, %v3919_v0  ;;  %v353_v35 = vrot.slane %v352_v33, 1  ;;  %v378_v36 = vrot.slane %v377_v34, 1 }
  0x22   : > { %555 = vst.msk [vmem:[#allocation2 + $0xd0] sm:$0x3] %vm347_vm1, %v3919_v0  ;;  %558 = vst.msk [vmem:[#allocation2 + $0xe8] sm:$0x3] %vm347_vm1, %v3919_v0 }
  0x23   : > { %561 = vst.msk [vmem:[#allocation2 + $0x100] sm:$0x3] %vm347_vm1, %v3919_v0  ;;  %564 = vst.msk [vmem:[#allocation2 + $0x118] sm:$0x3] %vm347_vm1, %v3919_v0  ;;  %v354_v37 = vadd.f32 %v353_v35, %v352_v33  ;;  %v379_v38 = vadd.f32 %v378_v36, %v377_v34 }
  0x24   : > { %567 = vst.msk [vmem:[#allocation2 + $0x130] sm:$0x3] %vm347_vm1, %v3919_v0  ;;  %570 = vst.msk [vmem:[#allocation2 + $0x148] sm:$0x3] %vm347_vm1, %v3919_v0 }
  0x25   : > { %573 = vst.msk [vmem:[#allocation2 + $0x160] sm:$0x3] %vm347_vm1, %v3919_v0  ;;  %576 = vst.msk [vmem:[#allocation2 + $0x178] sm:$0x3] %vm347_vm1, %v3919_v0  ;;  %v618_v14 = vld [vmem:[#allocation2 + $0x10] sm:$0x3] }
  0x26   : > { %579 = vst.msk [vmem:[#allocation2 + $0x190] sm:$0x3] %vm347_vm1, %v3919_v0  ;;  %582 = vst.msk [vmem:[#allocation2 + $0x1a8] sm:$0x3] %vm347_vm1, %v3919_v0  ;;  %v716_v18 = vrot.slane %v618_v14, 1  ;;  %v381_v39 = vmul.f32 0.001953125, %v354_v37 }
  0x27   : > { %v382_v40 = vmul.f32 0.001953125, %v379_v38 }
  0x28   : > { %v717_v24 = vsel %vm712_vm2, %v714_v17, %v716_v18  ;;  %v383_v41 = vmul.f32 %v381_v39, %v381_v39 }
  0x29   : > { %795 = vrot.lane.b32.xlu0 %v717_v24, %s3921_s15 }
  0x2a   : > { %v384_v42 = vsub.f32 %v382_v40, %v383_v41 }
  0x2c   : > { %v385_v43 = vadd.f32 1e-05, %v384_v42 }
  0x2e   : > { %3890 = vrsqrt.f32 %v385_v43 }
  0x3b   : > { %v3891_v46 = vpop.eup %3890 }
  0x3c   : > { %v387_v48 = vmul.f32 %v3891_v46, %v327_v44 }
  0x3e   : > { %v388_v54 = vmul.f32 %v387_v48, %v381_v39  ;;  %v4077_v55 = vrot.slane %v387_v48, %v424_v45 }
  0x40   : > { %v389_v62 = vsub.f32 %v328_v47, %v388_v54  ;;  %v428_v63 = vmul.f32 %v4077_v55, %v392_v49  ;;  %v429_v0 = vmul.f32 %v4077_v55, %v393_v50  ;;  %v426_v1 = vmul.f32 %v4077_v55, %v390_v51 }
  0x41   : > { %v427_v5 = vmul.f32 %v4077_v55, %v391_v52  ;;  %v430_v6 = vmul.f32 %v4077_v55, %v394_v53  ;;  %v431_v7 = vmul.f32 %v4077_v55, %v395_v56  ;;  %v442_v8 = vmul.f32 %v4077_v55, %v406_v57 }
  0x42   : > { %v4095_v9 = vrot.slane %v389_v62, %v424_v45  ;;  %v443_v10 = vmul.f32 %v4077_v55, %v407_v58  ;;  %v444_v11 = vmul.f32 %v4077_v55, %v408_v59  ;;  %v445_v12 = vmul.f32 %v4077_v55, %v409_v60 }
  0x43   : > { %v446_v13 = vmul.f32 %v4077_v55, %v410_v61  ;;  %v447_v14 = vmul.f32 %v4077_v55, %v411_v2  ;;  %v448_v15 = vmul.f32 %v4077_v55, %v412_v3  ;;  %v449_v16 = vmul.f32 %v4077_v55, %v413_v4 }
  0x44   : > { %v466_v17 = vadd.f32 %v4095_v9, %v428_v63  ;;  %v467_v18 = vadd.f32 %v4095_v9, %v429_v0  ;;  %v464_v19 = vadd.f32 %v4095_v9, %v426_v1  ;;  %v465_v20 = vadd.f32 %v4095_v9, %v427_v5 }
  0x45   : > { %v468_v21 = vadd.f32 %v4095_v9, %v430_v6  ;;  %v469_v22 = vadd.f32 %v4095_v9, %v431_v7  ;;  %v480_v23 = vadd.f32 %v4095_v9, %v442_v8  ;;  %v481_v24 = vadd.f32 %v4095_v9, %v443_v10 }
  0x46   : > { %v498_v25 = vmax.f32 %v466_v17, 0.0  ;;  %v499_v26 = vmax.f32 %v467_v18, 0.0  ;;  %v496_v27 = vmax.f32 %v464_v19, 0.0  ;;  %v497_v28 = vmax.f32 %v465_v20, 0.0  ;;  %v414_v17 = vld [vmem:[%s4066_s21 + $0xc0] sm:$0xff]  ;;  %v415_v18 = vld [vmem:[%s4066_s21 + $0xc8] sm:$0xff] }
  0x47   : > { %v500_v31 = vmax.f32 %v468_v21, 0.0  ;;  %v501_v32 = vmax.f32 %v469_v22, 0.0  ;;  %v512_v33 = vmax.f32 %v480_v23, 0.0  ;;  %v513_v34 = vmax.f32 %v481_v24, 0.0  ;;  %v398_v22 = vld [vmem:[%s4066_s21 + $0x40] sm:$0xff]  ;;  %v399_v23 = vld [vmem:[%s4066_s21 + $0x48] sm:$0xff] }
  0x48   : > { %586 = vst.msk [vmem:[#allocation2 + $0x31] sm:$0xff] %vm528_vm0, %v498_v25  ;;  %587 = vst.msk [vmem:[#allocation2 + $0x39] sm:$0xff] %vm528_vm0, %v499_v26  ;;  %v482_v35 = vadd.f32 %v4095_v9, %v444_v11  ;;  %v483_v36 = vadd.f32 %v4095_v9, %v445_v12  ;;  %v484_v37 = vadd.f32 %v4095_v9, %v446_v13  ;;  %v416_v26 = vld [vmem:[%s4066_s21 + $0xd0] sm:$0xff] }
  0x49   : > { %584 = vst.msk [vmem:[#allocation2 + $0x19] sm:$0xff] %vm528_vm0, %v496_v27  ;;  %585 = vst.msk [vmem:[#allocation2 + $0x21] sm:$0xff] %vm528_vm0, %v497_v28  ;;  %v485_v38 = vadd.f32 %v4095_v9, %v447_v14  ;;  %v486_v39 = vadd.f32 %v4095_v9, %v448_v15  ;;  %v487_v40 = vadd.f32 %v4095_v9, %v449_v16  ;;  %v417_v27 = vld [vmem:[%s4066_s21 + $0xd8] sm:$0xff] }
  0x4a   : > { %588 = vst.msk [vmem:[#allocation2 + $0x49] sm:$0xff] %vm528_vm0, %v500_v31  ;;  %589 = vst.msk [vmem:[#allocation2 + $0x51] sm:$0xff] %vm528_vm0, %v501_v32  ;;  %v432_v41 = vmul.f32 %v4077_v55, %v396_v29  ;;  %v433_v42 = vmul.f32 %v4077_v55, %v397_v30  ;;  %v514_v43 = vmax.f32 %v482_v35, 0.0  ;;  %v515_v44 = vmax.f32 %v483_v36, 0.0  ;;  %v400_v30 = vld [vmem:[%s4066_s21 + $0x50] sm:$0xff]  ;;  %v401_v31 = vld [vmem:[%s4066_s21 + $0x58] sm:$0xff] }
  0x4b   : > { %600 = vst.msk [vmem:[#allocation2 + $0xd9] sm:$0xff] %vm528_vm0, %v512_v33  ;;  %601 = vst.msk [vmem:[#allocation2 + $0xe1] sm:$0xff] %vm528_vm0, %v513_v34  ;;  %v516_v45 = vmax.f32 %v484_v37, 0.0  ;;  %v517_v46 = vmax.f32 %v485_v38, 0.0  ;;  %v518_v47 = vmax.f32 %v486_v39, 0.0  ;;  %v519_v48 = vmax.f32 %v487_v40, 0.0 }
  0x4c   : > { %v470_v49 = vadd.f32 %v4095_v9, %v432_v41  ;;  %v471_v50 = vadd.f32 %v4095_v9, %v433_v42  ;;  %602 = vst.msk [vmem:[#allocation2 + $0xf1] sm:$0xff] %vm528_vm0, %v514_v43  ;;  %603 = vst.msk [vmem:[#allocation2 + $0xf9] sm:$0xff] %vm528_vm0, %v515_v44  ;;  %v450_v24 = vmul.f32 %v4077_v55, %v414_v17 }
  0x4d   : > { %604 = vst.msk [vmem:[#allocation2 + $0x109] sm:$0xff] %vm528_vm0, %v516_v45  ;;  %605 = vst.msk [vmem:[#allocation2 + $0x111] sm:$0xff] %vm528_vm0, %v517_v46  ;;  %v451_v25 = vmul.f32 %v4077_v55, %v415_v18  ;;  %v434_v29 = vmul.f32 %v4077_v55, %v398_v22  ;;  %v435_v37 = vmul.f32 %v4077_v55, %v399_v23  ;;  %v403_v22 = vld [vmem:[%s4066_s21 + $0x68] sm:$0xff] }
  0x4e   : > { %606 = vst.msk [vmem:[#allocation2 + $0x121] sm:$0xff] %vm528_vm0, %v518_v47  ;;  %607 = vst.msk [vmem:[#allocation2 + $0x129] sm:$0xff] %vm528_vm0, %v519_v48  ;;  %v502_v51 = vmax.f32 %v470_v49, 0.0  ;;  %v503_v52 = vmax.f32 %v471_v50, 0.0  ;;  %v452_v38 = vmul.f32 %v4077_v55, %v416_v26  ;;  %v453_v39 = vmul.f32 %v4077_v55, %v417_v27 }
  0x4f   : > { %v4138_v53 = vld [vmem:[#allocation2 + $0x30] sm:$0xff]  ;;  %v4140_v54 = vld [vmem:[#allocation2 + $0x38] sm:$0xff]  ;;  %v4173_v7 = vld [vmem:[#allocation2 + $0x40] sm:$0x3]  ;;  %v488_v40 = vadd.f32 %v4095_v9, %v450_v24  ;;  %v489_v41 = vadd.f32 %v4095_v9, %v451_v25  ;;  %v436_v42 = vmul.f32 %v4077_v55, %v400_v30  ;;  %v437_v43 = vmul.f32 %v4077_v55, %v401_v31 }
  0x50   : > { %v4142_v56 = vld [vmem:[#allocation2 + $0x18] sm:$0xff]  ;;  %590 = vst.msk [vmem:[#allocation2 + $0x61] sm:$0xff] %vm528_vm0, %v502_v51  ;;  %591 = vst.msk [vmem:[#allocation2 + $0x69] sm:$0xff] %vm528_vm0, %v503_v52  ;;  %v723_v57 = vrot.slane %v4138_v53, 1  ;;  %v4148_v58 = vrot.slane %v4140_v54, 1  ;;  %v4150_v59 = vld [vmem:[#allocation2 + $0x20] sm:$0xff]  ;;  %v472_v50 = vadd.f32 %v4095_v9, %v434_v29  ;;  %v473_v51 = vadd.f32 %v4095_v9, %v435_v37 }
  0x51   : > { %v718_v60 = vrot.slane %v4142_v56, 1  ;;  %v4153_v61 = vld [vmem:[#allocation2 + $0x48] sm:$0xff]  ;;  %v4155_v62 = vld [vmem:[#allocation2 + $0x50] sm:$0xff]  ;;  %v719_v63 = vrot.slane %v4150_v59, 1  ;;  %v726_v14 = vrot.slane %v4173_v7, 1  ;;  %v418_v52 = vld [vmem:[%s4066_s21 + $0xe0] sm:$0xff]  ;;  %v439_v31 = vmul.f32 %v4077_v55, %v403_v22 }
  0x52   : > { %v728_v0 = vrot.slane %v4153_v61, 1  ;;  %v4160_v1 = vrot.slane %v4155_v62, 1  ;;  %v4162_v2 = vld [vmem:[#allocation2 + $0x28] sm:$0x3]  ;;  %v4164_v3 = vld [vmem:[#allocation2 + $0xe0] sm:$0xff]  ;;  %v4168_v4 = vsel %vm712_vm2, %v723_v57, %v4148_v58  ;;  %v4187_v15 = vld [vmem:[#allocation2 + $0xd8] sm:$0xff]  ;;  %v490_v57 = vadd.f32 %v4095_v9, %v452_v38 }
  0x53   : > { %v721_v5 = vrot.slane %v4162_v2, 1  ;;  %v4171_v6 = vld [vmem:[#allocation2 + $0xe8] sm:$0x3]  ;;  %801 = vrot.lane.b32.xlu0 %v4168_v4, %s3921_s15  ;;  %v720_v8 = vsel %vm712_vm2, %v718_v60, %v719_v63  ;;  %v1271_v11 = vrot.slane %v4164_v3, 1  ;;  %v727_v19 = vsel %vm712_vm2, %v4148_v58, %v726_v14  ;;  %v4215_v35 = vld [vmem:[#allocation2 + $0xf0] sm:$0xff]  ;;  %v4217_v36 = vld [vmem:[#allocation2 + $0xf8] sm:$0xff] }
  0x54   : > { %797 = vrot.lane.b32.xlu1 %v720_v8, %s3921_s15  ;;  %v4181_v10 = vsel %vm712_vm2, %v728_v0, %v4160_v1  ;;  %v1273_v12 = vrot.slane %v4171_v6, 1  ;;  %v1270_v20 = vrot.slane %v4187_v15, 1  ;;  %v4198_v21 = vld [vmem:[#allocation2 + $0x28] sm:$0x3]  ;;  %v1446_v33 = vrot.slane %v4187_v15, 2 }
  0x55   : > { %v722_v13 = vsel %vm712_vm2, %v719_v63, %v721_v5  ;;  %v1233_v28 = vrot.slane %v4198_v21, 1  ;;  %v1447_v34 = vrot.slane %v4164_v3, 2  ;;  %v1275_v45 = vrot.slane %v4215_v35, 1  ;;  %v4233_v49 = vld [vmem:[#allocation2 + $0x100] sm:$0x3] }
  0x56   : > { %v1274_v16 = vsel %vm712_vm2, %v1271_v11, %v1273_v12  ;;  %v1272_v32 = vsel %vm712_vm2, %v1270_v20, %v1271_v11  ;;  %v1276_v46 = vrot.slane %v4217_v36, 1  ;;  %v1449_v48 = vrot.slane %v4171_v6, 2  ;;  %v402_v20 = vld [vmem:[%s4066_s21 + $0x60] sm:$0xff] }
  0x57   : > { %805 = vrot.lane.b32.xlu0 %v4181_v10, %s3921_s15  ;;  %v1234_v44 = vsel %vm712_vm2, %v719_v63, %v1233_v28  ;;  %v1448_v47 = vsel %vm889_vm3, %v1446_v33, %v1447_v34  ;;  %v491_v60 = vadd.f32 %v4095_v9, %v453_v39  ;;  %v520_v63 = vmax.f32 %v488_v40, 0.0 }
  0x58   : > { %799 = vrot.lane.b32.xlu1 %v722_v13, %s3921_s15  ;;  %v521_v0 = vmax.f32 %v489_v41, 0.0  ;;  %v474_v5 = vadd.f32 %v4095_v9, %v436_v42  ;;  %v475_v6 = vadd.f32 %v4095_v9, %v437_v43  ;;  %v1278_v11 = vrot.slane %v4233_v49, 1  ;;  %v419_v13 = vld [vmem:[%s4066_s21 + $0xe8] sm:$0xff] }
  0x59   : > { %v1406_v12 = vrot.slane %v4142_v56, 2  ;;  %v454_v14 = vmul.f32 %v4077_v55, %v418_v52  ;;  %v4251_v17 = vrot.slane %v4150_v59, 2  ;;  %608 = vst.msk [vmem:[#allocation2 + $0x139] sm:$0xff] %vm528_vm0, %v520_v63  ;;  %v504_v18 = vmax.f32 %v472_v50, 0.0  ;;  %v420_v50 = vld [vmem:[%s4066_s21 + $0xf0] sm:$0xff] }
  0x5a   : > { %609 = vst.msk [vmem:[#allocation2 + $0x141] sm:$0xff] %vm528_vm0, %v521_v0  ;;  %v522_v23 = vmax.f32 %v490_v57, 0.0  ;;  %v523_v24 = vmax.f32 %v491_v60, 0.0  ;;  %v506_v25 = vmax.f32 %v474_v5, 0.0  ;;  %v507_v26 = vmax.f32 %v475_v6, 0.0  ;;  %v404_v6 = vld [vmem:[%s4066_s21 + $0x70] sm:$0xff] }
  0x5b   : > { %1344 = vrot.lane.b32.xlu0 %v1274_v16, %s3921_s15  ;;  %v1450_v16 = vsel %vm889_vm3, %v1447_v34, %v1449_v48  ;;  %592 = vst.msk [vmem:[#allocation2 + $0x79] sm:$0xff] %vm528_vm0, %v504_v18  ;;  %v455_v27 = vmul.f32 %v4077_v55, %v419_v13  ;;  %v1279_v28 = vsel %vm712_vm2, %v1276_v46, %v1278_v11  ;;  %v1409_v33 = vrot.slane %v4198_v21, 2  ;;  %v4273_v34 = vld [vmem:[#allocation2 + $0x40] sm:$0x3]  ;;  %v4291_v48 = vld [vmem:[#allocation2 + $0x110] sm:$0xff] }
  0x5c   : > { %803 = vrot.lane.b32.xlu1 %v727_v19, %s3921_s15  ;;  %v505_v19 = vmax.f32 %v473_v51, 0.0  ;;  %610 = vst.msk [vmem:[#allocation2 + $0x151] sm:$0xff] %vm528_vm0, %v522_v23  ;;  %611 = vst.msk [vmem:[#allocation2 + $0x159] sm:$0xff] %vm528_vm0, %v523_v24  ;;  %v492_v29 = vadd.f32 %v4095_v9, %v454_v14  ;;  %v438_v30 = vmul.f32 %v4077_v55, %v402_v20  ;;  %v1238_v21 = vrot.slane %v4273_v34, 1  ;;  %v421_v51 = vld [vmem:[%s4066_s21 + $0xf8] sm:$0xff] }
  0x5d   : > { %594 = vst.msk [vmem:[#allocation2 + $0x91] sm:$0xff] %vm528_vm0, %v506_v25  ;;  %595 = vst.msk [vmem:[#allocation2 + $0x99] sm:$0xff] %vm528_vm0, %v507_v26  ;;  %v493_v37 = vadd.f32 %v4095_v9, %v455_v27  ;;  %v477_v40 = vadd.f32 %v4095_v9, %v439_v31  ;;  %v1281_v60 = vrot.slane %v4291_v48, 1  ;;  %v1454_v0 = vrot.slane %v4233_v49, 2  ;;  %v4307_v5 = vld [vmem:[#allocation2 + $0x118] sm:$0x3] }
  0x5e   : > { %593 = vst.msk [vmem:[#allocation2 + $0x81] sm:$0xff] %vm528_vm0, %v505_v19  ;;  %v524_v38 = vmax.f32 %v492_v29, 0.0  ;;  %v476_v39 = vadd.f32 %v4095_v9, %v438_v30  ;;  %v1239_v52 = vsel %vm712_vm2, %v4148_v58, %v1238_v21  ;;  %v457_v11 = vmul.f32 %v4077_v55, %v421_v51  ;;  %v4336_v27 = vld [vmem:[#allocation2 + $0x58] sm:$0x3]  ;;  %v3506_v30 = vld [vmem:[%s5779_s5 + $0x14] sm:$0xf] }
  0x5f   : > { %1310 = vrot.lane.b32.xlu0 %v720_v8, %s3921_s15  ;;  %v1277_v8 = vsel %vm712_vm2, %v1275_v45, %v1276_v46  ;;  %v525_v41 = vmax.f32 %v493_v37, 0.0  ;;  %v509_v43 = vmax.f32 %v477_v40, 0.0  ;;  %v1451_v45 = vrot.slane %v4215_v35, 2  ;;  %v4354_v40 = vld [vmem:[#allocation2 + $0x120] sm:$0xff]  ;;  %3871 = vmatprep.subr.msk.mxu1 %vm1752_vm4, %v3506_v30 }
  0x60   : > { %1342 = vrot.lane.b32.xlu1 %v1272_v32, %s3921_s15  ;;  %v4270_v32 = vsel %vm889_vm3, %v1406_v12, %v4251_v17  ;;  %612 = vst.msk [vmem:[#allocation2 + $0x169] sm:$0xff] %vm528_vm0, %v524_v38  ;;  %v508_v42 = vmax.f32 %v476_v39, 0.0  ;;  %v1452_v46 = vrot.slane %v4217_v36, 2  ;;  %v1283_v13 = vrot.slane %v4307_v5, 1  ;;  %3715 = vmatprep.subr.msk.mxu0 %vm1752_vm4, %v3506_v30 }
  0x61   : > { %613 = vst.msk [vmem:[#allocation2 + $0x171] sm:$0xff] %vm528_vm0, %v525_v41  ;;  %597 = vst.msk [vmem:[#allocation2 + $0xb1] sm:$0xff] %vm528_vm0, %v509_v43  ;;  %v440_v14 = vmul.f32 %v4077_v55, %v404_v6  ;;  %v1411_v18 = vrot.slane %v4138_v53, 2  ;;  %v4322_v19 = vrot.slane %v4140_v54, 2  ;;  %v495_v22 = vadd.f32 %v4095_v9, %v457_v11  ;;  %v4356_v41 = vld [vmem:[#allocation2 + $0x128] sm:$0xff]  ;;  %3873 = vmatpush3.msk.msra.mxu1 %vm1752_vm4, %v3506_v30 }
  0x62   : > { %596 = vst.msk [vmem:[#allocation2 + $0xa9] sm:$0xff] %vm528_vm0, %v508_v42  ;;  %v1453_v63 = vsel %vm889_vm3, %v1451_v45, %v1452_v46  ;;  %v1284_v23 = vsel %vm712_vm2, %v1281_v60, %v1283_v13  ;;  %v1414_v26 = vrot.slane %v4273_v34, 2  ;;  %v1243_v31 = vrot.slane %v4336_v27, 1  ;;  %3716 = vmatpush3.msk.msra.mxu0 %vm1752_vm4, %v3506_v30 }
  0x63   : > { %1312 = vrot.lane.b32.xlu0 %v1234_v44, %s3921_s15  ;;  %v1410_v44 = vsel %vm889_vm3, %v4251_v17, %v1409_v33  ;;  %v478_v24 = vadd.f32 %v4095_v9, %v440_v14  ;;  %v4333_v25 = vsel %vm889_vm3, %v1411_v18, %v4322_v19  ;;  %v527_v29 = vmax.f32 %v495_v22, 0.0  ;;  %v4420_v22 = vld [vmem:[#allocation2 + $0x140] sm:$0xff] }
  0x64   : > { %1518 = vrot.lane.b32.xlu1 %v1448_v47, %s3922_s24  ;;  %v4289_v47 = vld [vmem:[#allocation2 + $0x108] sm:$0xff]  ;;  %v1415_v37 = vsel %vm889_vm3, %v4322_v19, %v1414_v26  ;;  %v1457_v39 = vrot.slane %v4291_v48, 2  ;;  %v898_v21 = vrot.slane %v4162_v2, 2  ;;  %v1244_v42 = vsel %vm712_vm2, %v4160_v1, %v1243_v31 }
  0x65   : > { %v1280_v57 = vrot.slane %v4289_v47, 1  ;;  %615 = vst.msk [vmem:[#allocation2 + $0x189] sm:$0xff] %vm528_vm0, %v527_v29  ;;  %v510_v33 = vmax.f32 %v478_v24, 0.0  ;;  %v1456_v38 = vrot.slane %v4289_v47, 2  ;;  %v1285_v43 = vrot.slane %v4354_v40, 1 }
  0x66   : > { %v1419_v11 = vrot.slane %v4336_v27, 2  ;;  %v1462_v18 = vrot.slane %v4356_v41, 2 }
  0x67   : > { %1346 = vrot.lane.b32.xlu0 %v1277_v8, %s3921_s15  ;;  %v405_v8 = vld [vmem:[%s4066_s21 + $0x78] sm:$0xff]  ;;  %v1282_v12 = vsel %vm712_vm2, %v1280_v57, %v1281_v60  ;;  %598 = vst.msk [vmem:[#allocation2 + $0xc1] sm:$0xff] %vm528_vm0, %v510_v33  ;;  %v1458_v45 = vsel %vm889_vm3, %v1456_v38, %v1457_v39  ;;  %v1416_v60 = vrot.slane %v4153_v61, 2 }
  0x68   : > { %1520 = vrot.lane.b32.xlu1 %v1450_v16, %s3922_s24  ;;  %v441_v49 = vmul.f32 %v4077_v55, %v405_v8  ;;  %v1455_v16 = vsel %vm889_vm3, %v1452_v46, %v1454_v0  ;;  %v1459_v46 = vrot.slane %v4307_v5, 2  ;;  %v4387_v0 = vld [vmem:[#allocation2 + $0x60] sm:$0xff] }
  0x69   : > { %v1245_v6 = vrot.slane %v4387_v0, 1  ;;  %v1421_v31 = vrot.slane %v4387_v0, 2 }
  0x6a   : > { %v1460_v57 = vsel %vm889_vm3, %v1457_v39, %v1459_v46 }
  0x6b   : > { %1348 = vrot.lane.b32.xlu0 %v1279_v28, %s3921_s15 }
  0x6c   : > { %1486 = vrot.lane.b32.xlu1 %v4270_v32, %s3922_s24 }
  0x6f   : > { %1314 = vrot.lane.b32.xlu0 %v4168_v4, %s3921_s15  ;;  %v456_v4 = vmul.f32 %v4077_v55, %v420_v50  ;;  %v479_v55 = vadd.f32 %v4095_v9, %v441_v49  ;;  %v1169_v50 = vld [vmem:[#allocation2 + $0x130] sm:$0x3] }
  0x70   : > { %1488 = vrot.lane.b32.xlu1 %v1410_v44, %s3922_s24  ;;  %v1286_v44 = vrot.slane %v4356_v41, 1  ;;  %v1288_v51 = vrot.slane %v1169_v50, 1  ;;  %v1464_v27 = vrot.slane %v1169_v50, 2 }
  0x71   : > { %v494_v20 = vadd.f32 %v4095_v9, %v456_v4  ;;  %v3887_v9 = vld [vmem:[%s5779_s5 + $0xc] sm:$0xff]   ;;  %v511_v34 = vmax.f32 %v479_v55, 0.0  ;;  %v1291_v55 = vrot.slane %v4420_v22, 1 }
  0x72   : > { %3872 = vmatprep.subr.mxu1 %v3887_v9  ;;  %3717 = vmatprep.subr.mxu0 %v3887_v9  ;;  %v1287_v2 = vsel %vm712_vm2, %v1285_v43, %v1286_v44  ;;  %v1289_v5 = vsel %vm712_vm2, %v1286_v44, %v1288_v51  ;;  %v1148_v44 = vld [vmem:[#allocation2 + $0x88] sm:$0x3]  ;;  %v1467_v51 = vrot.slane %v4420_v22, 2 }
  0x73   : > { %1316 = vrot.lane.b32.xlu0 %v1239_v52, %s3921_s15  ;;  %v526_v28 = vmax.f32 %v494_v20, 0.0  ;;  %599 = vst.msk [vmem:[#allocation2 + $0xc9] sm:$0xff] %vm528_vm0, %v511_v34  ;;  %3874 = vmatpush3.msra.mxu1 %v3887_v9  ;;  %v903_v52 = vrot.slane %v4173_v7, 2  ;;  %v4418_v20 = vld [vmem:[#allocation2 + $0x138] sm:$0xff]  ;;  %v1253_v46 = vrot.slane %v1148_v44, 1 }
  0x74   : > { %1522 = vrot.lane.b32.xlu1 %v1453_v63, %s3922_s24  ;;  %3718 = vmatpush3.msra.mxu0 %v3887_v9  ;;  %v4385_v63 = vrot.slane %v4155_v62, 2  ;;  %v1290_v24 = vrot.slane %v4418_v20, 1  ;;  %v1465_v9 = vsel %vm889_vm3, %v1462_v18, %v1464_v27  ;;  %v4438_v34 = vld [vmem:[#allocation2 + $0x78] sm:$0xff] }
  0x75   : > { %614 = vst.msk [vmem:[#allocation2 + $0x181] sm:$0xff] %vm528_vm0, %v526_v28  ;;  %v4400_v8 = vsel %vm889_vm3, %v4322_v19, %v903_v52  ;;  %v1172_v28 = vld [vmem:[#allocation2 + $0x148] sm:$0x3]  ;;  %v1250_v39 = vrot.slane %v4438_v34, 1  ;;  %v4464_v52 = vld [vmem:[#allocation2 + $0x150] sm:$0xff] }
  0x76   : > { %v4404_v4 = vsel %vm889_vm3, %v1416_v60, %v4385_v63  ;;  %v1420_v49 = vsel %vm889_vm3, %v4385_v63, %v1419_v11  ;;  %v1292_v29 = vsel %vm712_vm2, %v1290_v24, %v1291_v55  ;;  %v1293_v30 = vrot.slane %v1172_v28, 1 }
  0x77   : > { %1350 = vrot.lane.b32.xlu0 %v1282_v12, %s3921_s15  ;;  %v1145_v12 = vld [vmem:[#allocation2 + $0x70] sm:$0x3] }
  0x78   : > { %1524 = vrot.lane.b32.xlu1 %v1455_v16, %s3922_s24  ;;  %v1248_v14 = vrot.slane %v1145_v12, 1  ;;  %v1461_v16 = vrot.slane %v4354_v40, 2  ;;  %v1294_v38 = vsel %vm712_vm2, %v1291_v55, %v1293_v30  ;;  %v1424_v43 = vrot.slane %v1145_v12, 2  ;;  %v4484_v55 = vld [vmem:[#allocation2 + $0x90] sm:$0xff] }
  0x79   : > { %v1469_v12 = vrot.slane %v1172_v28, 2  ;;  %5805 = vst [vmem:[#allocation4_spill] sm:$0xff] %v4484_v55  ;;  %v1255_v28 = vrot.slane %v4484_v55, 1 }
  0x7a   : > { %v1463_v26 = vsel %vm889_vm3, %v1461_v16, %v1462_v18 }
  0x7b   : > { %1352 = vrot.lane.b32.xlu0 %v1284_v23, %s3921_s15  ;;  %v1470_v18 = vsel %vm889_vm3, %v1467_v51, %v1469_v12  ;;  %v1178_v12 = vld [vmem:[#allocation2 + $0x178] sm:$0x3] }
  0x7c   : > { %1490 = vrot.lane.b32.xlu1 %v4333_v25, %s3922_s24 }
  0x7f   : > { %1318 = vrot.lane.b32.xlu0 %v4181_v10, %s3921_s15  ;;  %v4376_v10 = vsel %vm889_vm3, %v4251_v17, %v898_v21  ;;  %v4389_v17 = vld [vmem:[#allocation2 + $0x68] sm:$0xff] }
  0x80   : > { %1492 = vrot.lane.b32.xlu1 %v1415_v37, %s3922_s24  ;;  %v4396_v7 = vrot.slane %v4389_v17, 1  ;;  %v4436_v33 = vrot.slane %v4389_v17, 2  ;;  %v4440_v37 = vld [vmem:[#allocation2 + $0x80] sm:$0xff] }
  0x81   : > { %v4447_v21 = vrot.slane %v4440_v37, 1  ;;  %v4482_v24 = vrot.slane %v4440_v37, 2 }
  0x82   : > { %v4412_v13 = vsel %vm712_vm2, %v1245_v6, %v4396_v7  ;;  %v1249_v23 = vsel %vm712_vm2, %v4396_v7, %v1248_v14  ;;  %v1425_v50 = vsel %vm889_vm3, %v4436_v33, %v1424_v43  ;;  %v1175_v14 = vld [vmem:[#allocation2 + $0x160] sm:$0x3] }
  0x83   : > { %1320 = vrot.lane.b32.xlu0 %v1244_v42, %s3921_s15  ;;  %v4451_v42 = vsel %vm889_vm3, %v1421_v31, %v4436_v33  ;;  %v1254_v60 = vsel %vm712_vm2, %v4447_v21, %v1253_v46  ;;  %v1298_v16 = vrot.slane %v1175_v14, 1  ;;  %v1151_v31 = vld [vmem:[#allocation2 + $0xa0] sm:$0x3]  ;;  %v1471_v46 = vrot.slane %v4464_v52, 2 }
  0x84   : > { %1526 = vrot.lane.b32.xlu1 %v1458_v45, %s3922_s24  ;;  %v4458_v45 = vsel %vm712_vm2, %v1250_v39, %v4447_v21  ;;  %v1258_v39 = vrot.slane %v1151_v31, 1 }
  0x87   : > { %1354 = vrot.lane.b32.xlu0 %v1287_v2, %s3921_s15  ;;  %v1466_v2 = vrot.slane %v4418_v20, 2 }
  0x88   : > { %1528 = vrot.lane.b32.xlu1 %v1460_v57, %s3922_s24  ;;  %v4466_v57 = vld [vmem:[#allocation2 + $0x158] sm:$0xff] }
  0x89   : > { %5804 = vst [vmem:[#allocation3_spill] sm:$0xff] %v4466_v57  ;;  %v1296_v6 = vrot.slane %v4466_v57, 1  ;;  %v1468_v11 = vsel %vm889_vm3, %v1466_v2, %v1467_v51  ;;  %v4510_v2 = vld [vmem:[#allocation2 + $0x168] sm:$0xff] }
  0x8a   : > { %5807 = vst [vmem:[#allocation6_spill] sm:$0xff] %v4510_v2 }
  0x8b   : > { %1356 = vrot.lane.b32.xlu0 %v1289_v5, %s3921_s15  ;;  %v1295_v5 = vrot.slane %v4464_v52, 1  ;;  %v1299_v27 = vsel %vm712_vm2, %v1296_v6, %v1298_v16  ;;  %v1303_v16 = vrot.slane %v1178_v12, 1 }
  0x8c   : > { %1494 = vrot.lane.b32.xlu1 %v4404_v4, %s3922_s24 }
  0x8f   : > { %1322 = vrot.lane.b32.xlu0 %v4412_v13, %s3921_s15 }
  0x90   : > { %1496 = vrot.lane.b32.xlu1 %v1420_v49, %s3922_s24  ;;  %v1297_v49 = vsel %vm712_vm2, %v1295_v5, %v1296_v6 }
  0x93   : > { %1324 = vrot.lane.b32.xlu0 %v1249_v23, %s3921_s15  ;;  %v1426_v23 = vrot.slane %v4438_v34, 2 }
  0x94   : > { %1530 = vrot.lane.b32.xlu1 %v1463_v26, %s3922_s24  ;;  %v4486_v26 = vld [vmem:[#allocation2 + $0x98] sm:$0xff] }
  0x95   : > { %5806 = vst [vmem:[#allocation5_spill] sm:$0xff] %v4486_v26  ;;  %v4497_v30 = vsel %vm889_vm3, %v1426_v23, %v4482_v24  ;;  %v1431_v23 = vrot.slane %v4484_v55, 2 }
  0x97   : > { %1358 = vrot.lane.b32.xlu0 %v1292_v29, %s3921_s15  ;;  %v4493_v29 = vrot.slane %v4486_v26, 1 }
  0x98   : > { %1532 = vrot.lane.b32.xlu1 %v1465_v9, %s3922_s24  ;;  %v1429_v9 = vrot.slane %v1148_v44, 2  ;;  %v4512_v44 = vld [vmem:[#allocation2 + $0x170] sm:$0xff] }
  0x99   : > { %5808 = vst [vmem:[#allocation7_spill] sm:$0xff] %v4512_v44  ;;  %v1259_v51 = vsel %vm712_vm2, %v4493_v29, %v1258_v39  ;;  %v1301_v5 = vrot.slane %v4512_v44, 1 }
  0x9a   : > { %v1430_v43 = vsel %vm889_vm3, %v4482_v24, %v1429_v9  ;;  %v4532_v9 = vld [vmem:[#allocation2 + $0xb0] sm:$0xff] }
  0x9b   : > { %1360 = vrot.lane.b32.xlu0 %v1294_v38, %s3921_s15  ;;  %v4504_v38 = vsel %vm712_vm2, %v1255_v28, %v4493_v29  ;;  %v4530_v28 = vld [vmem:[#allocation2 + $0xa8] sm:$0xff]  ;;  %5810 = vst [vmem:[#allocation9_spill] sm:$0xff] %v4532_v9 }
  0x9c   : > { %1498 = vrot.lane.b32.xlu1 %v4451_v42, %s3922_s24  ;;  %5809 = vst [vmem:[#allocation8_spill] sm:$0xff] %v4530_v28  ;;  %v1260_v39 = vrot.slane %v4530_v28, 1 }
  0x9f   : > { %1326 = vrot.lane.b32.xlu0 %v4458_v45, %s3921_s15 }
  0xa0   : > { %1500 = vrot.lane.b32.xlu1 %v1425_v50, %s3922_s24  ;;  %v1472_v50 = vrot.slane %v4466_v57, 2  ;;  %v4580_v57 = vrot.slane %v4532_v9, 2 }
  0xa2   : > { %v1473_v6 = vsel %vm889_vm3, %v1471_v46, %v1472_v50  ;;  %5817 = vst [vmem:[#allocation16_spill] sm:$0xff] %v4580_v57 }
  0xa3   : > { %1328 = vrot.lane.b32.xlu0 %v1254_v60, %s3921_s15  ;;  %v1300_v60 = vrot.slane %v4510_v2, 1 }
  0xa4   : > { %1534 = vrot.lane.b32.xlu1 %v1468_v11, %s3922_s24  ;;  %v1474_v11 = vrot.slane %v1175_v14, 2  ;;  %v1304_v14 = vsel %vm712_vm2, %v1301_v5, %v1303_v16  ;;  %v1477_v16 = vrot.slane %v4512_v44, 2  ;;  %v1479_v44 = vrot.slane %v1178_v12, 2  ;;  %v4584_v12 = vld [vmem:[#allocation2 + $0xc8] sm:$0xff] }
  0xa5   : > { %5819 = vst [vmem:[#allocation18_spill] sm:$0xff] %v4584_v12 }
  0xa7   : > { %1362 = vrot.lane.b32.xlu0 %v1297_v49, %s3921_s15  ;;  %v1302_v49 = vsel %vm712_vm2, %v1300_v60, %v1301_v5  ;;  %v1154_v60 = vld [vmem:[#allocation2 + $0xb8] sm:$0x3] }
  0xa8   : > { %1536 = vrot.lane.b32.xlu1 %v1470_v18, %s3922_s24  ;;  %v1475_v18 = vsel %vm889_vm3, %v1472_v50, %v1474_v11  ;;  %v4545_v50 = vpop.permute.xlu0 %793 }
  0xa9   : > { %5812 = vst [vmem:[#allocation11_spill] sm:$0xff] %v4545_v50 }
  0xab   : > { %1364 = vrot.lane.b32.xlu0 %v1299_v27, %s3921_s15  ;;  %v4528_v27 = vrot.slane %v4486_v26, 2 }
  0xac   : > { %1502 = vrot.lane.b32.xlu1 %v4497_v30, %s3922_s24 }
  0xad   : > { %v4543_v46 = vsel %vm889_vm3, %v1431_v23, %v4528_v27  ;;  %v4564_v23 = vpop.permute.xlu0 %795 }
  0xae   : > { %5815 = vst [vmem:[#allocation14_spill] sm:$0xff] %v4564_v23 }
  0xaf   : > { %1330 = vrot.lane.b32.xlu0 %v4504_v38, %s3921_s15 }
  0xb0   : > { %1504 = vrot.lane.b32.xlu1 %v1430_v43, %s3922_s24  ;;  %v4539_v43 = vrot.slane %v4532_v9, 1  ;;  %v1157_v9 = vld [vmem:[#allocation2 + $0xd0] sm:$0x3] }
  0xb2   : > { %5811 = vst [vmem:[#allocation10_spill] sm:$0xff] %v4539_v43  ;;  %v4552_v5 = vsel %vm712_vm2, %v1260_v39, %v4539_v43 }
  0xb3   : > { %1332 = vrot.lane.b32.xlu0 %v1259_v51, %s3921_s15  ;;  %v1434_v51 = vrot.slane %v1151_v31, 2  ;;  %v4560_v31 = vld [vmem:[#allocation2 + $0x188] sm:$0xff] }
  0xb4   : > { %1538 = vrot.lane.b32.xlu1 %v1473_v6, %s3922_s24  ;;  %v1263_v6 = vrot.slane %v1154_v60, 1  ;;  %5814 = vst [vmem:[#allocation13_spill] sm:$0xff] %v4560_v31 }
  0xb5   : > { %v1435_v11 = vsel %vm889_vm3, %v4528_v27, %v1434_v51  ;;  %v1306_v51 = vrot.slane %v4560_v31, 1 }
  0xb7   : > { %1366 = vrot.lane.b32.xlu0 %v1302_v49, %s3921_s15  ;;  %v1476_v49 = vrot.slane %v4510_v2, 2  ;;  %v1181_v2 = vld [vmem:[#allocation2 + $0x190] sm:$0x3] }
  0xb8   : > { %1540 = vrot.lane.b32.xlu1 %v1475_v18, %s3922_s24  ;;  %v4558_v18 = vld [vmem:[#allocation2 + $0x180] sm:$0xff]  ;;  %v1308_v23 = vrot.slane %v1181_v2, 1 }
  0xb9   : > { %5813 = vst [vmem:[#allocation12_spill] sm:$0xff] %v4558_v18  ;;  %v1305_v39 = vrot.slane %v4558_v18, 1  ;;  %v1478_v50 = vsel %vm889_vm3, %v1476_v49, %v1477_v16 }
  0xbb   : > { %1368 = vrot.lane.b32.xlu0 %v1304_v14, %s3921_s15  ;;  %v1264_v14 = vsel %vm712_vm2, %v4539_v43, %v1263_v6  ;;  %v1307_v26 = vsel %vm712_vm2, %v1305_v39, %v1306_v51  ;;  %v1436_v6 = vrot.slane %v4530_v28, 2  ;;  %v4582_v43 = vld [vmem:[#allocation2 + $0xc0] sm:$0xff] }
  0xbc   : > { %1506 = vrot.lane.b32.xlu1 %v4543_v46, %s3922_s24  ;;  %5818 = vst [vmem:[#allocation17_spill] sm:$0xff] %v4582_v43 }
  0xbd   : > { %v4599_v39 = vsel %vm889_vm3, %v1436_v6, %v4580_v57  ;;  %v1481_v6 = vrot.slane %v4558_v18, 2 }
  0xbf   : > { %1334 = vrot.lane.b32.xlu0 %v4552_v5, %s3921_s15 }
  0xc0   : > { %1508 = vrot.lane.b32.xlu1 %v1435_v11, %s3922_s24  ;;  %v1480_v11 = vsel %vm889_vm3, %v1477_v16, %v1479_v44  ;;  %v4593_v44 = vrot.slane %v4584_v12, 1 }
  0xc2   : > { %5821 = vst [vmem:[#allocation20_spill] sm:$0xff] %v4593_v44 }
  0xc3   : > { %1336 = vrot.lane.b32.xlu0 %v1264_v14, %s3921_s15  ;;  %v1265_v14 = vrot.slane %v4582_v43, 1 }
  0xc4   : > { %1542 = vrot.lane.b32.xlu1 %v1478_v50, %s3922_s24  ;;  %v1309_v50 = vsel %vm712_vm2, %v1306_v51, %v1308_v23  ;;  %v1268_v23 = vrot.slane %v1157_v9, 1 }
  0xc5   : > { %v4575_v55 = vpop.permute.xlu0 %801 }
  0xc6   : > { %5816 = vst [vmem:[#allocation15_spill] sm:$0xff] %v4575_v55  ;;  %v4586_v49 = vpop.permute.xlu1 %797  ;;  %v1439_v55 = vrot.slane %v1154_v60, 2  ;;  %v1482_v60 = vrot.slane %v4560_v31, 2 }
  0xc7   : > { %5820 = vst [vmem:[#allocation19_spill] sm:$0xff] %v4586_v49  ;;  %1370 = vrot.lane.b32.xlu0 %v1307_v26, %s3921_s15  ;;  %v4608_v26 = vsel %vm712_vm2, %v1265_v14, %v4593_v44  ;;  %v4622_v14 = vrot.slane %v4584_v12, 2  ;;  %v3893_v12 = vld [vmem:[#allocation2 + $0x10] sm:$0x3] }
  0xc8   : > { %1544 = vrot.lane.b32.xlu1 %v1480_v11, %s3922_s24  ;;  %5824 = vst [vmem:[#allocation23_spill] sm:$0xff] %v4608_v26  ;;  %v1440_v11 = vsel %vm889_vm3, %v4580_v57, %v1439_v55  ;;  %v1133_v55 = vld [vmem:[%s5779_s5 + $0x8] sm:$0xf]  ;;  %v1483_v31 = vsel %vm889_vm3, %v1481_v6, %v1482_v60  ;;  %v1441_v6 = vrot.slane %v4582_v43, 2  ;;  %v2311_v57 = vld [vmem:[#allocation2 + $0x40] sm:$0x3] }
  0xc9   : > { %v4595_v16 = vpop.permute.xlu0 %805  ;;  %3767 = vmatprep.subr.msk.mxu1 %vm1752_vm4, %v1133_v55 }
  0xca   : > { %5822 = vst [vmem:[#allocation21_spill] sm:$0xff] %v4595_v16  ;;  %v4601_v49 = vpop.permute.xlu1 %799 }
  0xcb   : > { %5823 = vst [vmem:[#allocation22_spill] sm:$0xff] %v4601_v49  ;;  %1372 = vrot.lane.b32.xlu0 %v1309_v50, %s3921_s15  ;;  %v1269_v50 = vsel %vm712_vm2, %v4593_v44, %v1268_v23  ;;  %v1444_v49 = vrot.slane %v1157_v9, 2  ;;  %v4633_v9 = vld [vmem:[#allocation2 + $0x8] sm:$0xff]  ;;  %v893_v44 = vrot.slane %v3893_v12, 2 }
  0xcc   : > { %1510 = vrot.lane.b32.xlu1 %v4599_v39, %s3922_s24  ;;  %5826 = vst [vmem:[#allocation25_spill] sm:$0xff] %v4633_v9 }
  0xcd   : > { %v1345_v51 = vpop.permute.xlu0 %1344  ;;  %v1445_v23 = vsel %vm889_vm3, %v4622_v14, %v1444_v49 }
  0xce   : > { %v4614_v16 = vpop.permute.xlu1 %803 }
  0xcf   : > { %5825 = vst [vmem:[#allocation24_spill] sm:$0xff] %v4614_v16  ;;  %1338 = vrot.lane.b32.xlu0 %v4608_v26, %s3921_s15  ;;  %v1484_v16 = vrot.slane %v1181_v2, 2 }
  0xd0   : > { %1512 = vrot.lane.b32.xlu1 %v1440_v11, %s3922_s24  ;;  %v891_v11 = vrot.slane %v4633_v9, 2  ;;  %v2408_v9 = vrot.slane %v2311_v57, 1 }
  0xd1   : > { %v1311_v18 = vpop.permute.xlu0 %1310  ;;  %v1485_v2 = vsel %vm889_vm3, %v1482_v60, %v1484_v16  ;;  %v3575_v16 = vld [vmem:[%s5779_s5 + $0x20] sm:$0xf] }
  0xd2   : > { %v1343_v28 = vpop.permute.xlu1 %1342  ;;  %v894_v12 = vsel %vm889_vm3, %v891_v11, %v893_v44  ;;  %3819 = vmatprep.subr.msk.mxu0 %vm1752_vm4, %v3575_v16 }
  0xd3   : > { %1340 = vrot.lane.b32.xlu0 %v1269_v50, %s3921_s15 }
  0xd4   : > { %1546 = vrot.lane.b32.xlu1 %v1483_v31, %s3922_s24  ;;  %v1598_v31 = vsel %vm528_vm0, %v4187_v15, %v1343_v28  ;;  %v4650_v15 = vsel %vm889_vm3, %v1441_v6, %v4622_v14  ;;  %v4652_v28 = vld [vmem:[#allocation2] sm:$0xff]  ;;  %v2409_v6 = vsel %vm712_vm2, %v4148_v58, %v2408_v9 }
  0xd5   : > { %v1313_v26 = vpop.permute.xlu0 %1312  ;;  %5827 = vst [vmem:[#allocation26_spill] sm:$0xff] %v4652_v28 }
  0xd6   : > { %v1519_v50 = vpop.permute.xlu1 %1518 }
  0xd7   : > { %1516 = vrot.lane.b32.xlu0 %v1445_v23, %s3922_s24  ;;  %v1630_v49 = vsel %vm1098_vm5, %v1598_v31, %v1519_v50  ;;  %v890_v23 = vrot.slane %v4652_v28, 2  ;;  %v4658_v31 = vld [vmem:[#allocation2 + $0x30] sm:$0xff]  ;;  %v3888_v50 = vld [vmem:[%s5779_s5] sm:$0xff]  }
  0xd8   : > { %1548 = vrot.lane.b32.xlu1 %v1485_v2, %s3922_s24  ;;  %3743 = vmatprep.mubr.msk.f32.mxu1 %vm1655_vm6, %v1630_v49  ;;  %v1599_v2 = vsel %vm528_vm0, %v4164_v3, %v1345_v51  ;;  %v2584_v3 = vrot.slane %v2311_v57, 2  ;;  %v2405_v43 = vrot.slane %v4658_v31, 1 }
  0xd9   : > { %v1347_v60 = vpop.permute.xlu0 %1346  ;;  %v892_v28 = vsel %vm889_vm3, %v890_v23, %v891_v11  ;;  %v1583_v11 = vsel %vm528_vm0, %v4150_v59, %v1313_v26 }
  0xda   : > { %v1521_v44 = vpop.permute.xlu1 %1520  ;;  %v2585_v57 = vsel %vm889_vm3, %v4322_v19, %v2584_v3  ;;  %v1600_v59 = vsel %vm528_vm0, %v4215_v35, %v1347_v60 }
  0xdb   : > { %v1631_v49 = vsel %vm1098_vm5, %v1599_v2, %v1521_v44  ;;  %972 = vrot.lane.b32.xlu0 %v894_v12, %s3922_s24  ;;  %v1582_v2 = vsel %vm528_vm0, %v4142_v56, %v1311_v18  ;;  %v2581_v56 = vrot.slane %v4658_v31, 2  ;;  %v2314_v18 = vld [vmem:[#allocation2 + $0x58] sm:$0x3] }
  0xdc   : > { %1514 = vrot.lane.b32.xlu1 %v4650_v15, %s3922_s24  ;;  %3744 = vmatmul.mubr.msk.f32.vlgmr.msra.gmra.mxu1 %vm1655_vm6, %v1631_v49 }
  0xdd   : > { %v1349_v51 = vpop.permute.xlu0 %1348  ;;  %3768 = vmatpush3.msk.msra.mxu1 %vm1752_vm4, %v1133_v55  ;;  %v2407_v55 = vsel %vm712_vm2, %v2405_v43, %v4148_v58  ;;  %v2413_v58 = vrot.slane %v2314_v18, 1  ;;  %v2583_v49 = vsel %vm889_vm3, %v2581_v56, %v4322_v19 }
  0xde   : > { %v1487_v12 = vpop.permute.xlu1 %1486  ;;  %3769 = vmatprep.subr.mxu1 %v3888_v50  ;;  %v1601_v60 = vsel %vm528_vm0, %v4217_v36, %v1349_v51  ;;  %v2317_v36 = vld [vmem:[#allocation2 + $0x70] sm:$0x3] }
  0xdf   : > { %2487 = vrot.lane.b32.xlu0 %v2409_v6, %s3921_s15  ;;  %v1614_v44 = vsel %vm1098_vm5, %v1582_v2, %v1487_v12  ;;  %3770 = vmatpush3.msra.mxu1 %v3888_v50  ;;  %v4698_v6 = vld [vmem:[#allocation2 + $0x48] sm:$0xff]  ;;  %v2414_v19 = vsel %vm712_vm2, %v4160_v1, %v2413_v58 }
  0xe0   : > { %970 = vrot.lane.b32.xlu1 %v892_v28, %s3922_s24  ;;  %3719 = vmatprep.mubr.msk.f32.mxu0 %vm1655_vm6, %v1614_v44  ;;  %v3889_v28 = vld [vmem:[%s5779_s5 + $0x18] sm:$0xff]   ;;  %v2410_v35 = vrot.slane %v4698_v6, 1  ;;  %v2586_v56 = vrot.slane %v4698_v6, 2 }
  0xe1   : > { %v1315_v9 = vpop.permute.xlu0 %1314 }
  0xe2   : > { %v1489_v23 = vpop.permute.xlu1 %1488  ;;  %v1584_v51 = vsel %vm528_vm0, %v4138_v53, %v1315_v9 }
  0xe3   : > { %v1615_v50 = vsel %vm1098_vm5, %v1583_v11, %v1489_v23  ;;  %2663 = vrot.lane.b32.xlu0 %v2585_v57, %s3922_s24 }
  0xe4   : > { %2485 = vrot.lane.b32.xlu1 %v2407_v55, %s3921_s15  ;;  %3720 = vmatmul.mubr.msk.f32.vlgmr.msra.gmra.mxu0 %vm1655_vm6, %v1615_v50  ;;  %v2412_v55 = vsel %vm712_vm2, %v2410_v35, %v4160_v1  ;;  %v627_v35 = vld [vmem:[#allocation2 + $0x58] sm:$0x3] }
  0xe5   : > { %v1317_v43 = vpop.permute.xlu0 %1316  ;;  %3820 = vmatpush3.msk.msra.mxu0 %vm1752_vm4, %v3575_v16  ;;  %v2589_v16 = vrot.slane %v2314_v18, 2 }
  0xe6   : > { %v1523_v26 = vpop.permute.xlu1 %1522  ;;  %3821 = vmatprep.subr.mxu0 %v3889_v28  ;;  %v1585_v50 = vsel %vm528_vm0, %v4140_v54, %v1317_v43 }
  0xe7   : > { %v1632_v3 = vsel %vm1098_vm5, %v1600_v59, %v1523_v26  ;;  %976 = vrot.lane.b32.xlu0 %v4376_v10, %s3922_s24  ;;  %3822 = vmatpush3.msra.mxu0 %v3889_v28  ;;  %v2590_v10 = vsel %vm889_vm3, %v4385_v63, %v2589_v16  ;;  %v2588_v28 = vsel %vm889_vm3, %v2586_v56, %v4385_v63 }
  0xe8   : > { %2661 = vrot.lane.b32.xlu1 %v2583_v49, %s3922_s24  ;;  %3746 = vmatprep.mubr.msk.f32.mxu1 %vm1655_vm6, %v1632_v3  ;;  %v2594_v49 = vrot.slane %v2317_v36, 2 }
  0xe9   : > { %v1351_v2 = vpop.permute.xlu0 %1350 }
  0xea   : > { %v1525_v12 = vpop.permute.xlu1 %1524  ;;  %v1602_v26 = vsel %vm528_vm0, %v4289_v47, %v1351_v2  ;;  %v731_v2 = vrot.slane %v627_v35, 1 }
  0xeb   : > { %v1633_v44 = vsel %vm1098_vm5, %v1601_v60, %v1525_v12  ;;  %2491 = vrot.lane.b32.xlu0 %v2414_v19, %s3921_s15 }
  0xec   : > { %974 = vrot.lane.b32.xlu1 %v4270_v32, %s3922_s24  ;;  %3747 = vmatmul.mubr.msk.f32.gmra.mxu1 %vm1655_vm6, %v1633_v44  ;;  %v2418_v32 = vrot.slane %v2317_v36, 1 }
  0xed   : > { %v1353_v57 = vpop.permute.xlu0 %1352 }
  0xee   : > { %v1491_v18 = vpop.permute.xlu1 %1490  ;;  %v2419_v9 = vsel %vm712_vm2, %v4396_v7, %v2418_v32  ;;  %v1603_v19 = vsel %vm528_vm0, %v4291_v48, %v1353_v57  ;;  %v908_v57 = vrot.slane %v627_v35, 2 }
  0xef   : > { %v1616_v11 = vsel %vm1098_vm5, %v1584_v51, %v1491_v18  ;;  %2667 = vrot.lane.b32.xlu0 %v2590_v10, %s3922_s24  ;;  %v732_v10 = vsel %vm712_vm2, %v4160_v1, %v731_v2 }
  0xf0   : > { %2489 = vrot.lane.b32.xlu1 %v2412_v55, %s3921_s15  ;;  %3722 = vmatprep.mubr.msk.f32.mxu0 %vm1655_vm6, %v1616_v11  ;;  %v2320_v55 = vld [vmem:[#allocation2 + $0x88] sm:$0x3]  ;;  %v909_v1 = vsel %vm889_vm3, %v4385_v63, %v908_v57 }
  0xf1   : > { %v1319_v23 = vpop.permute.xlu0 %1318  ;;  %v2423_v18 = vrot.slane %v2320_v55, 1 }
  0xf2   : > { %v1493_v58 = vpop.permute.xlu1 %1492  ;;  %v1586_v60 = vsel %vm528_vm0, %v4153_v61, %v1319_v23 }
  0xf3   : > { %v1617_v53 = vsel %vm1098_vm5, %v1585_v50, %v1493_v58  ;;  %980 = vrot.lane.b32.xlu0 %v4400_v8, %s3922_s24  ;;  %v2595_v8 = vsel %vm889_vm3, %v4436_v33, %v2594_v49  ;;  %v2424_v63 = vsel %vm712_vm2, %v4447_v21, %v2423_v18  ;;  %v630_v58 = vld [vmem:[#allocation2 + $0x70] sm:$0x3] }
  0xf4   : > { %2665 = vrot.lane.b32.xlu1 %v2588_v28, %s3922_s24  ;;  %3723 = vmatmul.mubr.msk.f32.gmra.mxu0 %vm1655_vm6, %v1617_v53  ;;  %v736_v49 = vrot.slane %v630_v58, 1 }
  0xf5   : > { %v1321_v59 = vpop.permute.xlu0 %1320 }
  0xf6   : > { %v1527_v3 = vpop.permute.xlu1 %1526  ;;  %v1587_v61 = vsel %vm528_vm0, %v4155_v62, %v1321_v59 }
  0xf7   : > { %v1634_v54 = vsel %vm1098_vm5, %v1602_v26, %v1527_v3  ;;  %2495 = vrot.lane.b32.xlu0 %v2419_v9, %s3921_s15 }
  0xf8   : > { %978 = vrot.lane.b32.xlu1 %v4333_v25, %s3922_s24  ;;  %3749 = vmatprep.mubr.msk.f32.mxu1 %vm1655_vm6, %v1634_v54  ;;  %v737_v54 = vsel %vm712_vm2, %v4396_v7, %v736_v49 }
  0xf9   : > { %v1355_v43 = vpop.permute.xlu0 %1354 }
  0xfa   : > { %v1529_v16 = vpop.permute.xlu1 %1528  ;;  %v1604_v11 = vsel %vm528_vm0, %v4354_v40, %v1355_v43  ;;  %v2323_v43 = vld [vmem:[#allocation2 + $0xa0] sm:$0x3] }
  0xfb   : > { %v1635_v47 = vsel %vm1098_vm5, %v1603_v19, %v1529_v16  ;;  %2671 = vrot.lane.b32.xlu0 %v2595_v8, %s3922_s24  ;;  %v913_v8 = vrot.slane %v630_v58, 2  ;;  %v2428_v35 = vrot.slane %v2323_v43, 1 }
  0xfc   : > { %2493 = vrot.lane.b32.xlu1 %v4412_v13, %s3921_s15  ;;  %3750 = vmatmul.mubr.msk.f32.gmra.mxu1 %vm1655_vm6, %v1635_v47 }
  0xfd   : > { %v1357_v25 = vpop.permute.xlu0 %1356  ;;  %v914_v7 = vsel %vm889_vm3, %v4436_v33, %v913_v8  ;;  %v2429_v33 = vsel %vm712_vm2, %v4493_v29, %v2428_v35  ;;  %v5833_v35 = vld [vmem:[#allocation23_spill] sm:$0xff] }
  0xfe   : > { %v1495_v12 = vpop.permute.xlu1 %1494  ;;  %v1605_v40 = vsel %vm528_vm0, %v4356_v41, %v1357_v25 }
  0xff   : > { %v1618_v44 = vsel %vm1098_vm5, %v1586_v60, %v1495_v12  ;;  %982 = vrot.lane.b32.xlu0 %v4404_v4, %s3922_s24  ;;  %v2599_v4 = vrot.slane %v2320_v55, 2 }
 0x100   : > { %2669 = vrot.lane.b32.xlu1 %v4451_v42, %s3922_s24  ;;  %3725 = vmatprep.mubr.msk.f32.mxu0 %vm1655_vm6, %v1618_v44  ;;  %v633_v44 = vld [vmem:[#allocation2 + $0x88] sm:$0x3] }
 0x101   : > { %v1323_v48 = vpop.permute.xlu0 %1322  ;;  %v2600_v23 = vsel %vm889_vm3, %v4482_v24, %v2599_v4  ;;  %v741_v57 = vrot.slane %v633_v44, 1  ;;  %v918_v4 = vrot.slane %v633_v44, 2  ;;  %v4891_v44 = vld [vmem:[#allocation2 + $0xd8] sm:$0xff] }
 0x102   : > { %v1497_v56 = vpop.permute.xlu1 %1496  ;;  %v1588_v59 = vsel %vm528_vm0, %v4387_v0, %v1323_v48 }
 0x103   : > { %v1619_v36 = vsel %vm1098_vm5, %v1587_v61, %v1497_v56  ;;  %2497 = vrot.lane.b32.xlu0 %v4458_v45, %s3921_s15 }
 0x104   : > { %807 = vrot.lane.b32.xlu1 %v732_v10, %s3921_s15  ;;  %3726 = vmatmul.mubr.msk.f32.gmra.mxu0 %vm1655_vm6, %v1619_v36  ;;  %v742_v36 = vsel %vm712_vm2, %v4447_v21, %v741_v57  ;;  %v919_v21 = vsel %vm889_vm3, %v4482_v24, %v918_v4 }
 0x105   : > { %v1325_v51 = vpop.permute.xlu0 %1324 }
 0x106   : > { %v1531_v62 = vpop.permute.xlu1 %1530  ;;  %v1589_v0 = vsel %vm528_vm0, %v4389_v17, %v1325_v51  ;;  %v2326_v51 = vld [vmem:[#allocation2 + $0xb8] sm:$0x3] }
 0x107   : > { %v1636_v32 = vsel %vm1098_vm5, %v1604_v11, %v1531_v62  ;;  %2673 = vrot.lane.b32.xlu0 %v4497_v30, %s3922_s24  ;;  %v2433_v11 = vrot.slane %v2326_v51, 1 }
 0x108   : > { %984 = vrot.lane.b32.xlu1 %v909_v1, %s3922_s24  ;;  %3752 = vmatprep.mubr.msk.f32.mxu1 %vm1655_vm6, %v1636_v32 }
 0x109   : > { %v1359_v28 = vpop.permute.xlu0 %1358 }
 0x10a   : > { %v1533_v50 = vpop.permute.xlu1 %1532  ;;  %v1606_v47 = vsel %vm528_vm0, %v4418_v20, %v1359_v28 }
 0x10b   : > { %v1637_v53 = vsel %vm1098_vm5, %v1605_v40, %v1533_v50  ;;  %2675 = vrot.lane.b32.xlu0 %v2600_v23, %s3922_s24  ;;  %v5828_v23 = vld [vmem:[#allocation16_spill] sm:$0xff]  ;;  %v5829_v40 = vld [vmem:[#allocation10_spill] sm:$0xff]  ;;  %v5830_v50 = vld [vmem:[#allocation3_spill] sm:$0xff] }
 0x10c   : > { %2499 = vrot.lane.b32.xlu1 %v2424_v63, %s3921_s15  ;;  %3753 = vmatmul.mubr.msk.f32.gmra.mxu1 %vm1655_vm6, %v1637_v53  ;;  %v2434_v24 = vsel %vm712_vm2, %v5829_v40, %v2433_v11  ;;  %v636_v53 = vld [vmem:[#allocation2 + $0xa0] sm:$0x3] }
 0x10d   : > { %v1361_v9 = vpop.permute.xlu0 %1360 }
 0x10e   : > { %v1499_v26 = vpop.permute.xlu1 %1498  ;;  %v1607_v20 = vsel %vm528_vm0, %v4420_v22, %v1361_v9 }
 0x10f   : > { %v1620_v3 = vsel %vm1098_vm5, %v1588_v59, %v1499_v26  ;;  %986 = vrot.lane.b32.xlu0 %v4451_v42, %s3922_s24  ;;  %v746_v59 = vrot.slane %v636_v53, 1  ;;  %v5831_v26 = vld [vmem:[#allocation4_spill] sm:$0xff] }
 0x110   : > { %809 = vrot.lane.b32.xlu1 %v4412_v13, %s3921_s15  ;;  %3728 = vmatprep.mubr.msk.f32.mxu0 %vm1655_vm6, %v1620_v3  ;;  %v2604_v13 = vrot.slane %v2323_v43, 2 }
 0x111   : > { %v1327_v41 = vpop.permute.xlu0 %1326  ;;  %v747_v43 = vsel %vm712_vm2, %v4493_v29, %v746_v59 }
 0x112   : > { %v1501_v19 = vpop.permute.xlu1 %1500  ;;  %v2605_v2 = vsel %vm889_vm3, %v4528_v27, %v2604_v13  ;;  %v1590_v55 = vsel %vm528_vm0, %v4438_v34, %v1327_v41 }
 0x113   : > { %v1621_v16 = vsel %vm1098_vm5, %v1589_v0, %v1501_v19  ;;  %2501 = vrot.lane.b32.xlu0 %v4504_v38, %s3921_s15  ;;  %v923_v0 = vrot.slane %v636_v53, 2  ;;  %v2329_v19 = vld [vmem:[#allocation2 + $0xd0] sm:$0x3] }
 0x114   : > { %811 = vrot.lane.b32.xlu1 %v737_v54, %s3921_s15  ;;  %3729 = vmatmul.mubr.msk.f32.gmra.mxu0 %vm1655_vm6, %v1621_v16  ;;  %v5832_v16 = vld [vmem:[#allocation5_spill] sm:$0xff] }
 0x115   : > { %v1329_v42 = vpop.permute.xlu0 %1328  ;;  %v924_v29 = vsel %vm889_vm3, %v4528_v27, %v923_v0 }
 0x116   : > { %v1535_v17 = vpop.permute.xlu1 %1534  ;;  %v1591_v34 = vsel %vm528_vm0, %v4440_v37, %v1329_v42 }
 0x117   : > { %v1638_v25 = vsel %vm1098_vm5, %v1606_v47, %v1535_v17  ;;  %2677 = vrot.lane.b32.xlu0 %v4543_v46, %s3922_s24  ;;  %v2438_v47 = vrot.slane %v2329_v19, 1  ;;  %v5834_v17 = vld [vmem:[#allocation6_spill] sm:$0xff] }
 0x118   : > { %988 = vrot.lane.b32.xlu1 %v914_v7, %s3922_s24  ;;  %3755 = vmatprep.mubr.msk.f32.mxu1 %vm1655_vm6, %v1638_v25 }
 0x119   : > { %v1363_v60 = vpop.permute.xlu0 %1362 }
 0x11a   : > { %v1537_v12 = vpop.permute.xlu1 %1536  ;;  %v1608_v62 = vsel %vm528_vm0, %v4464_v52, %v1363_v60 }
 0x11b   : > { %v1639_v48 = vsel %vm1098_vm5, %v1607_v20, %v1537_v12  ;;  %2679 = vrot.lane.b32.xlu0 %v2605_v2, %s3922_s24  ;;  %v5835_v12 = vld [vmem:[#allocation20_spill] sm:$0xff] }
 0x11c   : > { %2503 = vrot.lane.b32.xlu1 %v2429_v33, %s3921_s15  ;;  %3756 = vmatmul.mubr.msk.f32.gmra.mxu1 %vm1655_vm6, %v1639_v48  ;;  %v2439_v27 = vsel %vm712_vm2, %v5835_v12, %v2438_v47  ;;  %v4893_v48 = vld [vmem:[#allocation2 + $0xe0] sm:$0xff] }
 0x11d   : > { %v1365_v10 = vpop.permute.xlu0 %1364  ;;  %v4919_v11 = vrot.slane %v4893_v48, 2 }
 0x11e   : > { %v1503_v61 = vpop.permute.xlu1 %1502  ;;  %v1609_v52 = vsel %vm528_vm0, %v5830_v50, %v1365_v10  ;;  %v5836_v10 = vld [vmem:[#allocation7_spill] sm:$0xff] }
 0x11f   : > { %v1622_v56 = vsel %vm1098_vm5, %v1590_v55, %v1503_v61  ;;  %990 = vrot.lane.b32.xlu0 %v4497_v30, %s3922_s24  ;;  %v639_v61 = vld [vmem:[#allocation2 + $0xb8] sm:$0x3] }
 0x120   : > { %813 = vrot.lane.b32.xlu1 %v4458_v45, %s3921_s15  ;;  %3731 = vmatprep.mubr.msk.f32.mxu0 %vm1655_vm6, %v1622_v56  ;;  %v2609_v45 = vrot.slane %v2326_v51, 2  ;;  %v751_v51 = vrot.slane %v639_v61, 1 }
 0x121   : > { %v1331_v22 = vpop.permute.xlu0 %1330 }
 0x122   : > { %v1505_v1 = vpop.permute.xlu1 %1504  ;;  %v2610_v28 = vsel %vm889_vm3, %v5828_v23, %v2609_v45  ;;  %v1592_v3 = vsel %vm528_vm0, %v5831_v26, %v1331_v22  ;;  %v2440_v22 = vrot.slane %v4891_v44, 1 }
 0x123   : > { %v1623_v18 = vsel %vm1098_vm5, %v1591_v34, %v1505_v1  ;;  %2505 = vrot.lane.b32.xlu0 %v4552_v5, %s3921_s15  ;;  %v5837_v34 = vld [vmem:[#allocation8_spill] sm:$0xff] }
 0x124   : > { %815 = vrot.lane.b32.xlu1 %v742_v36, %s3921_s15  ;;  %3732 = vmatmul.mubr.msk.f32.gmra.mxu0 %vm1655_vm6, %v1623_v18  ;;  %v4903_v36 = vrot.slane %v4893_v48, 1 }
 0x125   : > { %v1333_v30 = vpop.permute.xlu0 %1332 }
 0x126   : > { %v1539_v37 = vpop.permute.xlu1 %1538  ;;  %v1593_v13 = vsel %vm528_vm0, %v5832_v16, %v1333_v30  ;;  %v4915_v30 = vsel %vm712_vm2, %v2440_v22, %v4903_v36  ;;  %v642_v16 = vld [vmem:[#allocation2 + $0xd0] sm:$0x3] }
 0x127   : > { %v1640_v32 = vsel %vm1098_vm5, %v1608_v62, %v1539_v37  ;;  %2681 = vrot.lane.b32.xlu0 %v4599_v39, %s3922_s24  ;;  %v752_v37 = vsel %vm712_vm2, %v5829_v40, %v751_v51  ;;  %v756_v47 = vrot.slane %v642_v16, 1  ;;  %v5845_v51 = vld [vmem:[#allocation14_spill] sm:$0xff] }
 0x128   : > { %992 = vrot.lane.b32.xlu1 %v919_v21, %s3922_s24  ;;  %3758 = vmatprep.mubr.msk.f32.mxu1 %vm1655_vm6, %v1640_v32  ;;  %v2616_v21 = vrot.slane %v4891_v44, 2  ;;  %v928_v32 = vrot.slane %v639_v61, 2  ;;  %v2335_v61 = vld [vmem:[#allocation2 + $0x100] sm:$0x3] }
 0x129   : > { %v1367_v63 = vpop.permute.xlu0 %1366 }
 0x12a   : > { %v1541_v58 = vpop.permute.xlu1 %1540  ;;  %v1610_v25 = vsel %vm528_vm0, %v5834_v17, %v1367_v63  ;;  %v4932_v50 = vsel %vm889_vm3, %v2616_v21, %v4919_v11  ;;  %v5842_v17 = vld [vmem:[#allocation17_spill] sm:$0xff]  ;;  %v2624_v21 = vrot.slane %v2335_v61, 2 }
 0x12b   : > { %v1641_v9 = vsel %vm1098_vm5, %v1609_v52, %v1541_v58  ;;  %2683 = vrot.lane.b32.xlu0 %v2610_v28, %s3922_s24  ;;  %v5838_v28 = vld [vmem:[#allocation9_spill] sm:$0xff]  ;;  %v929_v58 = vsel %vm889_vm3, %v5828_v23, %v928_v32  ;;  %v2448_v32 = vrot.slane %v2335_v61, 1 }
 0x12c   : > { %2507 = vrot.lane.b32.xlu1 %v2434_v24, %s3921_s15  ;;  %3759 = vmatmul.mubr.msk.f32.gmra.mxu1 %vm1655_vm6, %v1641_v9  ;;  %v5839_v9 = vld [vmem:[#allocation12_spill] sm:$0xff] }
 0x12d   : > { %v1369_v49 = vpop.permute.xlu0 %1368 }
 0x12e   : > { %v1507_v41 = vpop.permute.xlu1 %1506  ;;  %v1611_v57 = vsel %vm528_vm0, %v5836_v10, %v1369_v49 }
 0x12f   : > { %v1624_v54 = vsel %vm1098_vm5, %v1592_v3, %v1507_v41  ;;  %994 = vrot.lane.b32.xlu0 %v4543_v46, %s3922_s24 }
 0x130   : > { %817 = vrot.lane.b32.xlu1 %v4504_v38, %s3921_s15  ;;  %3734 = vmatprep.mubr.msk.f32.mxu0 %vm1655_vm6, %v1624_v54  ;;  %v2614_v38 = vrot.slane %v2329_v19, 2  ;;  %v4947_v54 = vld [vmem:[#allocation2 + $0xf0] sm:$0xff] }
 0x131   : > { %v1335_v8 = vpop.permute.xlu0 %1334 }
 0x132   : > { %v1509_v42 = vpop.permute.xlu1 %1508  ;;  %v2615_v33 = vsel %vm889_vm3, %v4622_v14, %v2614_v38  ;;  %v1594_v1 = vsel %vm528_vm0, %v5837_v34, %v1335_v8  ;;  %v4949_v8 = vld [vmem:[#allocation2 + $0xf8] sm:$0xff]  ;;  %v2445_v38 = vrot.slane %v4947_v54, 1  ;;  %v5846_v34 = vld [vmem:[#allocation25_spill] sm:$0xff] }
 0x133   : > { %v1625_v7 = vsel %vm1098_vm5, %v1593_v13, %v1509_v42  ;;  %2509 = vrot.lane.b32.xlu0 %v5833_v35, %s3921_s15  ;;  %v5841_v13 = vld [vmem:[#allocation18_spill] sm:$0xff]  ;;  %v4978_v10 = vrot.slane %v4949_v8, 2 }
 0x134   : > { %819 = vrot.lane.b32.xlu1 %v747_v43, %s3921_s15  ;;  %3735 = vmatmul.mubr.msk.f32.gmra.mxu0 %vm1655_vm6, %v1625_v7  ;;  %v5840_v43 = vld [vmem:[#allocation13_spill] sm:$0xff] }
 0x135   : > { %v1337_v46 = vpop.permute.xlu0 %1336 }
 0x136   : > { %v1543_v2 = vpop.permute.xlu1 %1542 }
 0x137   : > { %v1642_v60 = vsel %vm1098_vm5, %v1610_v25, %v1543_v2  ;;  %2685 = vrot.lane.b32.xlu0 %v4650_v15, %s3922_s24 }
 0x138   : > { %996 = vrot.lane.b32.xlu1 %v924_v29, %s3922_s24  ;;  %3761 = vmatprep.mubr.msk.f32.mxu1 %vm1655_vm6, %v1642_v60 }
 0x139   : > { %v1371_v20 = vpop.permute.xlu0 %1370 }
 0x13a   : > { %v1545_v55 = vpop.permute.xlu1 %1544  ;;  %v1612_v49 = vsel %vm528_vm0, %v5839_v9, %v1371_v20 }
 0x13b   : > { %v1643_v56 = vsel %vm1098_vm5, %v1611_v57, %v1545_v55  ;;  %2687 = vrot.lane.b32.xlu0 %v2615_v33, %s3922_s24  ;;  %v933_v55 = vrot.slane %v642_v16, 2  ;;  %v3897_v16 = vld [vmem:[#allocation2 + $0x20] sm:$0xff] }
 0x13c   : > { %2511 = vrot.lane.b32.xlu1 %v2439_v27, %s3921_s15  ;;  %3762 = vmatmul.mubr.msk.f32.gmra.mxu1 %vm1655_vm6, %v1643_v56  ;;  %v2621_v27 = vrot.slane %v4947_v54, 2  ;;  %v5844_v56 = vld [vmem:[#allocation26_spill] sm:$0xff] }
 0x13d   : > { %v1373_v4 = vpop.permute.xlu0 %1372 }
 0x13e   : > { %v1511_v18 = vpop.permute.xlu1 %1510  ;;  %v1613_v0 = vsel %vm528_vm0, %v5840_v43, %v1373_v4  ;;  %v5847_v43 = vld [vmem:[#allocation19_spill] sm:$0xff] }
 0x13f   : > { %v1626_v45 = vsel %vm1098_vm5, %v1594_v1, %v1511_v18  ;;  %998 = vrot.lane.b32.xlu0 %v4599_v39, %s3922_s24  ;;  %v2332_v39 = vld [vmem:[#allocation2 + $0xe8] sm:$0x3]  ;;  %v1067_v1 = vsel %vm528_vm0, %v5846_v34, %v5845_v51 }
 0x140   : > { %821 = vrot.lane.b32.xlu1 %v4552_v5, %s3921_s15  ;;  %3737 = vmatprep.mubr.msk.f32.mxu0 %vm1655_vm6, %v1626_v45  ;;  %v1595_v5 = vsel %vm528_vm0, %v5838_v28, %v1337_v46  ;;  %v2619_v40 = vrot.slane %v2332_v39, 2  ;;  %v2443_v53 = vrot.slane %v2332_v39, 1  ;;  %v4961_v46 = vrot.slane %v4949_v8, 1  ;;  %v5002_v28 = vld [vmem:[#allocation2 + $0x38] sm:$0xff] }
 0x141   : > { %v1339_v62 = vpop.permute.xlu0 %1338 }
 0x142   : > { %v1513_v63 = vpop.permute.xlu1 %1512  ;;  %v2620_v3 = vsel %vm889_vm3, %v4919_v11, %v2619_v40  ;;  %v2444_v23 = vsel %vm712_vm2, %v4903_v36, %v2443_v53  ;;  %v1596_v25 = vsel %vm528_vm0, %v5842_v17, %v1339_v62  ;;  %v4974_v20 = vsel %vm712_vm2, %v2445_v38, %v4961_v46 }
 0x143   : > { %v1627_v24 = vsel %vm1098_vm5, %v1595_v5, %v1513_v63  ;;  %2513 = vrot.lane.b32.xlu0 %v4915_v30, %s3921_s15  ;;  %v2625_v63 = vsel %vm889_vm3, %v4978_v10, %v2624_v21  ;;  %v2449_v40 = vsel %vm712_vm2, %v4961_v46, %v2448_v32  ;;  %v5850_v32 = vld [vmem:[#allocation24_spill] sm:$0xff] }
 0x144   : > { %823 = vrot.lane.b32.xlu1 %v752_v37, %s3921_s15  ;;  %3738 = vmatmul.mubr.msk.f32.gmra.mxu0 %vm1655_vm6, %v1627_v24  ;;  %v934_v37 = vsel %vm889_vm3, %v4622_v14, %v933_v55  ;;  %v5013_v14 = vld [vmem:[#allocation2 + $0x108] sm:$0xff] }
 0x145   : > { %v1341_v52 = vpop.permute.xlu0 %1340 }
 0x146   : > { %v1547_v59 = vpop.permute.xlu1 %1546  ;;  %v1597_v42 = vsel %vm528_vm0, %v5841_v13, %v1341_v52  ;;  %v5015_v52 = vld [vmem:[#allocation2 + $0x110] sm:$0xff]  ;;  %v5848_v13 = vld [vmem:[#allocation22_spill] sm:$0xff] }
 0x147   : > { %v1644_v26 = vsel %vm1098_vm5, %v1612_v49, %v1547_v59  ;;  %2689 = vrot.lane.b32.xlu0 %v4932_v50, %s3922_s24  ;;  %v645_v49 = vld [vmem:[#allocation2 + $0xe8] sm:$0x3]  ;;  %v5046_v17 = vrot.slane %v5015_v52, 2 }
 0x148   : > { %1000 = vrot.lane.b32.xlu1 %v929_v58, %s3922_s24  ;;  %3764 = vmatprep.mubr.msk.f32.mxu1 %vm1655_vm6, %v1644_v26  ;;  %v2450_v26 = vrot.slane %v5013_v14, 1 }
 0x149   : > { %v1517_v41 = vpop.permute.xlu0 %1516 }
 0x14a   : > { %v1549_v19 = vpop.permute.xlu1 %1548  ;;  %v1629_v2 = vsel %vm1098_vm5, %v1597_v42, %v1517_v41  ;;  %v1069_v42 = vsel %vm528_vm0, %v3897_v16, %v5848_v13  ;;  %v2341_v16 = vld [vmem:[#allocation2 + $0x130] sm:$0x3]  ;;  %v3902_v13 = vld [vmem:[#allocation2 + $0x60] sm:$0xff] }
 0x14b   : > { %v1645_v7 = vsel %vm1098_vm5, %v1613_v0, %v1549_v19  ;;  %2691 = vrot.lane.b32.xlu0 %v2620_v3, %s3922_s24  ;;  %v5026_v3 = vrot.slane %v5015_v52, 1 }
 0x14c   : > { %2515 = vrot.lane.b32.xlu1 %v2444_v23, %s3921_s15  ;;  %3765 = vmatmul.mubr.msk.f32.gmra.mxu1 %vm1655_vm6, %v1645_v7  ;;  %v761_v23 = vrot.slane %v645_v49, 1 }
 0x14d   : > { %v973_v29 = vpop.permute.xlu0 %972 }
 0x14e   : > { %v1515_v60 = vpop.permute.xlu1 %1514  ;;  %v1100_v45 = vsel %vm1098_vm5, %v1067_v1, %v973_v29  ;;  %v5042_v29 = vsel %vm712_vm2, %v2450_v26, %v5026_v3  ;;  %v5079_v1 = vld [vmem:[#allocation2 + $0x128] sm:$0xff] }
 0x14f   : > { %v1628_v33 = vsel %vm1098_vm5, %v1596_v25, %v1515_v60  ;;  %1002 = vrot.lane.b32.xlu0 %v4650_v15, %s3922_s24  ;;  %v757_v15 = vsel %vm712_vm2, %v5835_v12, %v756_v47  ;;  %v4997_v12 = vsel %vm889_vm3, %v2621_v27, %v4978_v10  ;;  %v2626_v47 = vrot.slane %v5013_v14, 2  ;;  %v2338_v60 = vld [vmem:[#allocation2 + $0x118] sm:$0x3] }
 0x150   : > { %825 = vrot.lane.b32.xlu1 %v5833_v35, %s3921_s15  ;;  %3740 = vmatprep.mubr.msk.f32.mxu0 %vm1655_vm6, %v1628_v33  ;;  %v5843_v35 = vld [vmem:[#allocation11_spill] sm:$0xff]  ;;  %v2453_v61 = vrot.slane %v2338_v60, 1 }
 0x151   : > { %3741 = vmatmul.mubr.msk.f32.gmra.mxu0 %vm1655_vm6, %v1629_v2  ;;  %v2488_v57 = vpop.permute.xlu0 %2487  ;;  %v1066_v22 = vsel %vm528_vm0, %v5844_v56, %v5843_v35  ;;  %v938_v2 = vrot.slane %v645_v49, 2  ;;  %v5051_v33 = vld [vmem:[#allocation2 + $0x50] sm:$0xff] }
 0x152   : > { %v971_v4 = vpop.permute.xlu1 %970  ;;  %v2758_v5 = vsel %vm528_vm0, %v5002_v28, %v2488_v57  ;;  %v5060_v57 = vsel %vm889_vm3, %v2626_v47, %v5046_v17  ;;  %v2454_v34 = vsel %vm712_vm2, %v5026_v3, %v2453_v61 }
 0x153   : > { %v1099_v18 = vsel %vm1098_vm5, %v1066_v22, %v971_v4  ;;  %2517 = vrot.lane.b32.xlu0 %v4974_v20, %s3921_s15 }
 0x154   : > { %827 = vrot.lane.b32.xlu1 %v757_v15, %s3921_s15  ;;  %3771 = vmatprep.mubr.msk.f32.mxu1 %vm1655_vm6, %v1099_v18  ;;  %v2629_v15 = vrot.slane %v2338_v60, 2  ;;  %v3899_v18 = vld [vmem:[#allocation2 + $0x30] sm:$0xff]  ;;  %v2458_v60 = vrot.slane %v2341_v16, 1 }
 0x155   : > { %3772 = vmatmul.mubr.msk.f32.vlgmr.msra.gmra.mxu1 %vm1655_vm6, %v1100_v45  ;;  %v2664_v62 = vpop.permute.xlu0 %2663  ;;  %v5849_v45 = vld [vmem:[#allocation15_spill] sm:$0xff] }
 0x156   : > { %v2486_v39 = vpop.permute.xlu1 %2485  ;;  %v2790_v58 = vsel %vm1098_vm5, %v2758_v5, %v2664_v62  ;;  %v2630_v51 = vsel %vm889_vm3, %v5046_v17, %v2629_v15  ;;  %v1070_v21 = vsel %vm528_vm0, %v3899_v18, %v5849_v45 }
 0x157   : > { %2693 = vrot.lane.b32.xlu0 %v4997_v12, %s3922_s24  ;;  %v2757_v53 = vsel %vm528_vm0, %v4658_v31, %v2486_v39  ;;  %v3896_v31 = vld [vmem:[#allocation2 + $0x18] sm:$0xff]  ;;  %v1071_v39 = vsel %vm528_vm0, %v5002_v28, %v5850_v32 }
 0x158   : > { %1004 = vrot.lane.b32.xlu1 %v934_v37, %s3922_s24  ;;  %v1068_v0 = vsel %vm528_vm0, %v3896_v31, %v5847_v43  ;;  %v648_v37 = vld [vmem:[#allocation2 + $0x100] sm:$0x3] }
 0x159   : > { %v977_v24 = vpop.permute.xlu0 %976  ;;  %v5851_v31 = vld [vmem:[#allocation21_spill] sm:$0xff] }
 0x15a   : > { %v2662_v9 = vpop.permute.xlu1 %2661  ;;  %v1102_v38 = vsel %vm1098_vm5, %v1069_v42, %v977_v24 }
 0x15b   : > { %v2789_v59 = vsel %vm1098_vm5, %v2757_v53, %v2662_v9  ;;  %2695 = vrot.lane.b32.xlu0 %v2625_v63, %s3922_s24  ;;  %v766_v53 = vrot.slane %v648_v37, 1  ;;  %v5096_v9 = vld [vmem:[#allocation2 + $0x68] sm:$0xff] }
 0x15c   : > { %2519 = vrot.lane.b32.xlu1 %v2449_v40, %s3921_s15  ;;  %3823 = vmatprep.mubr.msk.f32.mxu0 %vm1655_vm6, %v2789_v59  ;;  %v5093_v40 = vrot.slane %v5079_v1, 1 }
 0x15d   : > { %3824 = vmatmul.mubr.msk.f32.vlgmr.msra.gmra.mxu0 %vm1655_vm6, %v2790_v58  ;;  %v2492_v41 = vpop.permute.xlu0 %2491 }
 0x15e   : > { %v975_v19 = vpop.permute.xlu1 %974  ;;  %v2760_v27 = vsel %vm528_vm0, %v5051_v33, %v2492_v41  ;;  %v5110_v41 = vrot.slane %v5079_v1, 2  ;;  %v2459_v61 = vsel %vm712_vm2, %v5093_v40, %v2458_v60 }
 0x15f   : > { %v1101_v7 = vsel %vm1098_vm5, %v1068_v0, %v975_v19  ;;  %1006 = vrot.lane.b32.xlu0 %v4932_v50, %s3922_s24  ;;  %v762_v50 = vsel %vm712_vm2, %v4903_v36, %v761_v23  ;;  %v939_v36 = vsel %vm889_vm3, %v4919_v11, %v938_v2  ;;  %v3901_v23 = vld [vmem:[#allocation2 + $0x48] sm:$0xff]  ;;  %v943_v19 = vrot.slane %v648_v37, 2 }
 0x160   : > { %829 = vrot.lane.b32.xlu1 %v4915_v30, %s3921_s15  ;;  %3774 = vmatprep.mubr.msk.f32.mxu1 %vm1655_vm6, %v1101_v7  ;;  %v1072_v43 = vsel %vm528_vm0, %v3901_v23, %v5851_v31 }
 0x161   : > { %3775 = vmatmul.mubr.msk.f32.gmra.mxu1 %vm1655_vm6, %v1102_v38  ;;  %v2668_v25 = vpop.permute.xlu0 %2667  ;;  %v944_v2 = vsel %vm889_vm3, %v4978_v10, %v943_v19  ;;  %v5143_v10 = vld [vmem:[#allocation2 + $0x138] sm:$0xff] }
 0x162   : > { %v2490_v30 = vpop.permute.xlu1 %2489  ;;  %v2792_v35 = vsel %vm1098_vm5, %v2760_v27, %v2668_v25  ;;  %v2634_v25 = vrot.slane %v2341_v16, 2  ;;  %v5132_v27 = vld [vmem:[#allocation2 + $0x78] sm:$0xff] }
 0x163   : > { %2521 = vrot.lane.b32.xlu0 %v5042_v29, %s3921_s15  ;;  %v2759_v56 = vsel %vm528_vm0, %v4698_v6, %v2490_v30  ;;  %v5077_v6 = vld [vmem:[#allocation2 + $0x120] sm:$0xff] }
 0x164   : > { %831 = vrot.lane.b32.xlu1 %v762_v50, %s3921_s15  ;;  %v2455_v24 = vrot.slane %v5077_v6, 1  ;;  %v2631_v26 = vrot.slane %v5077_v6, 2 }
 0x165   : > { %v981_v55 = vpop.permute.xlu0 %980 }
 0x166   : > { %v2666_v22 = vpop.permute.xlu1 %2665  ;;  %v1104_v63 = vsel %vm1098_vm5, %v1071_v39, %v981_v55  ;;  %v5106_v59 = vsel %vm712_vm2, %v2455_v24, %v5093_v40  ;;  %v2635_v55 = vsel %vm889_vm3, %v5110_v41, %v2634_v25  ;;  %v654_v25 = vld [vmem:[#allocation2 + $0x130] sm:$0x3] }
 0x167   : > { %v2791_v4 = vsel %vm1098_vm5, %v2759_v56, %v2666_v22  ;;  %2697 = vrot.lane.b32.xlu0 %v5060_v57, %s3922_s24 }
 0x168   : > { %1008 = vrot.lane.b32.xlu1 %v939_v36, %s3922_s24  ;;  %3826 = vmatprep.mubr.msk.f32.mxu0 %vm1655_vm6, %v2791_v4 }
 0x169   : > { %3827 = vmatmul.mubr.msk.f32.gmra.mxu0 %vm1655_vm6, %v2792_v35  ;;  %v2496_v11 = vpop.permute.xlu0 %2495  ;;  %v5145_v35 = vld [vmem:[#allocation2 + $0x140] sm:$0xff] }
 0x16a   : > { %v979_v62 = vpop.permute.xlu1 %978  ;;  %v2762_v49 = vsel %vm528_vm0, %v5096_v9, %v2496_v11  ;;  %v5157_v18 = vrot.slane %v5145_v35, 1 }
 0x16b   : > { %v1103_v5 = vsel %vm1098_vm5, %v1070_v21, %v979_v62  ;;  %2699 = vrot.lane.b32.xlu0 %v2630_v51, %s3922_s24  ;;  %v651_v51 = vld [vmem:[#allocation2 + $0x118] sm:$0x3]  ;;  %v5159_v62 = vld [vmem:[#allocation2 + $0x80] sm:$0xff] }
 0x16c   : > { %2523 = vrot.lane.b32.xlu1 %v2454_v34, %s3921_s15  ;;  %3777 = vmatprep.mubr.msk.f32.mxu1 %vm1655_vm6, %v1103_v5  ;;  %v2460_v34 = vrot.slane %v5143_v10, 1  ;;  %v771_v45 = vrot.slane %v651_v51, 1  ;;  %v2636_v5 = vrot.slane %v5143_v10, 2 }
 0x16d   : > { %3778 = vmatmul.mubr.msk.f32.gmra.mxu1 %vm1655_vm6, %v1104_v63  ;;  %v2672_v58 = vpop.permute.xlu0 %2671  ;;  %v5174_v63 = vrot.slane %v5145_v35, 2 }
 0x16e   : > { %v2494_v28 = vpop.permute.xlu1 %2493  ;;  %v5170_v39 = vsel %vm712_vm2, %v2460_v34, %v5157_v18  ;;  %v2347_v34 = vld [vmem:[#allocation2 + $0x160] sm:$0x3] }
 0x16f   : > { %1010 = vrot.lane.b32.xlu0 %v4997_v12, %s3922_s24  ;;  %v767_v12 = vsel %vm712_vm2, %v4961_v46, %v766_v53  ;;  %v2761_v42 = vsel %vm528_vm0, %v3902_v13, %v2494_v28  ;;  %v5127_v46 = vsel %vm889_vm3, %v2631_v26, %v5110_v41  ;;  %v2344_v53 = vld [vmem:[#allocation2 + $0x148] sm:$0x3]  ;;  %v5186_v26 = vsel %vm889_vm3, %v2636_v5, %v5174_v63 }
 0x170   : > { %833 = vrot.lane.b32.xlu1 %v4974_v20, %s3921_s15  ;;  %v2794_v20 = vsel %vm1098_vm5, %v2762_v49, %v2672_v58  ;;  %v948_v58 = vrot.slane %v651_v51, 2  ;;  %v2639_v23 = vrot.slane %v2344_v53, 2  ;;  %v2468_v5 = vrot.slane %v2347_v34, 1 }
 0x171   : > { %v983_v0 = vpop.permute.xlu0 %982 }
 0x172   : > { %v1105_v7 = vsel %vm1098_vm5, %v1072_v43, %v983_v0  ;;  %v2670_v38 = vpop.permute.xlu1 %2669  ;;  %v949_v31 = vsel %vm889_vm3, %v5046_v17, %v948_v58  ;;  %v2463_v43 = vrot.slane %v2344_v53, 1  ;;  %v2640_v16 = vsel %vm889_vm3, %v5174_v63, %v2639_v23  ;;  %v5202_v17 = vld [vmem:[#allocation2 + $0x150] sm:$0xff] }
 0x173   : > { %v2793_v47 = vsel %vm1098_vm5, %v2761_v42, %v2670_v38  ;;  %3780 = vmatprep.mubr.msk.f32.mxu1 %vm1655_vm6, %v1105_v7  ;;  %2525 = vrot.lane.b32.xlu0 %v5106_v59, %s3921_s15  ;;  %v5204_v42 = vld [vmem:[#allocation2 + $0x158] sm:$0xff] }
 0x174   : > { %835 = vrot.lane.b32.xlu1 %v767_v12, %s3921_s15  ;;  %3829 = vmatprep.mubr.msk.f32.mxu0 %vm1655_vm6, %v2793_v47  ;;  %v5191_v12 = vld [vmem:[#allocation2 + $0x90] sm:$0xff]  ;;  %v5216_v60 = vrot.slane %v5204_v42, 1 }
 0x175   : > { %3830 = vmatmul.mubr.msk.f32.gmra.mxu0 %vm1655_vm6, %v2794_v20  ;;  %v2498_v50 = vpop.permute.xlu0 %2497 }
 0x176   : > { %v808_v30 = vpop.permute.xlu1 %807  ;;  %v2763_v15 = vsel %vm528_vm0, %v5132_v27, %v2498_v50 }
 0x177   : > { %2701 = vrot.lane.b32.xlu0 %v5127_v46, %s3922_s24  ;;  %v1073_v56 = vsel %vm528_vm0, %v5051_v33, %v808_v30  ;;  %v776_v30 = vrot.slane %v654_v25, 1 }
 0x178   : > { %1012 = vrot.lane.b32.xlu1 %v944_v2, %s3922_s24  ;;  %v2465_v2 = vrot.slane %v5202_v17, 1 }
 0x179   : > { %v2674_v36 = vpop.permute.xlu0 %2673 }
 0x17a   : > { %v985_v22 = vpop.permute.xlu1 %984  ;;  %v2795_v4 = vsel %vm1098_vm5, %v2763_v15, %v2674_v36 }
 0x17b   : > { %v1106_v11 = vsel %vm1098_vm5, %v1073_v56, %v985_v22  ;;  %2703 = vrot.lane.b32.xlu0 %v2635_v55, %s3922_s24  ;;  %3832 = vmatprep.mubr.msk.f32.mxu0 %vm1655_vm6, %v2795_v4  ;;  %v5218_v55 = vld [vmem:[#allocation2 + $0x98] sm:$0xff]  ;;  %v5229_v56 = vsel %vm712_vm2, %v2465_v2, %v5216_v60  ;;  %v2641_v22 = vrot.slane %v5202_v17, 2  ;;  %v5233_v4 = vrot.slane %v5204_v42, 2 }
 0x17c   : > { %2527 = vrot.lane.b32.xlu1 %v2459_v61, %s3921_s15  ;;  %3781 = vmatmul.mubr.msk.f32.gmra.mxu1 %vm1655_vm6, %v1106_v11  ;;  %v953_v11 = vrot.slane %v654_v25, 2 }
 0x17d   : > { %v2676_v33 = vpop.permute.xlu0 %2675 }
 0x17e   : > { %v2500_v21 = vpop.permute.xlu1 %2499 }
 0x17f   : > { %v2764_v37 = vsel %vm528_vm0, %v5159_v62, %v2500_v21  ;;  %1014 = vrot.lane.b32.xlu0 %v5060_v57, %s3922_s24  ;;  %v772_v57 = vsel %vm712_vm2, %v5026_v3, %v771_v45  ;;  %v5246_v21 = vsel %vm889_vm3, %v2641_v22, %v5233_v4 }
 0x180   : > { %v2796_v32 = vsel %vm1098_vm5, %v2764_v37, %v2676_v33  ;;  %837 = vrot.lane.b32.xlu1 %v5042_v29, %s3921_s15  ;;  %v2644_v37 = vrot.slane %v2347_v34, 2 }
 0x181   : > { %3833 = vmatmul.mubr.msk.f32.gmra.mxu0 %vm1655_vm6, %v2796_v32  ;;  %v987_v24 = vpop.permute.xlu0 %986  ;;  %v954_v32 = vsel %vm889_vm3, %v5110_v41, %v953_v11  ;;  %v5262_v41 = vld [vmem:[#allocation2 + $0x168] sm:$0xff]  ;;  %v5311_v11 = vld [vmem:[#allocation2 + $0xc0] sm:$0xff] }
 0x182   : > { %v810_v28 = vpop.permute.xlu1 %809  ;;  %v2645_v58 = vsel %vm889_vm3, %v5233_v4, %v2644_v37  ;;  %v2646_v25 = vrot.slane %v5262_v41, 2  ;;  %v5324_v37 = vld [vmem:[#allocation2 + $0x188] sm:$0xff] }
 0x183   : > { %v1074_v29 = vsel %vm528_vm0, %v3902_v13, %v810_v28  ;;  %2529 = vrot.lane.b32.xlu0 %v5170_v39, %s3921_s15  ;;  %v2464_v13 = vsel %vm712_vm2, %v5157_v18, %v2463_v43  ;;  %v2469_v28 = vsel %vm712_vm2, %v5216_v60, %v2468_v5 }
 0x184   : > { %v1107_v49 = vsel %vm1098_vm5, %v1074_v29, %v987_v24  ;;  %839 = vrot.lane.b32.xlu1 %v772_v57, %s3921_s15  ;;  %v5251_v24 = vld [vmem:[#allocation2 + $0xa8] sm:$0xff]  ;;  %v5264_v29 = vld [vmem:[#allocation2 + $0x170] sm:$0xff] }
 0x185   : > { %3783 = vmatprep.mubr.msk.f32.mxu1 %vm1655_vm6, %v1107_v49  ;;  %v2502_v3 = vpop.permute.xlu0 %2501 }
 0x186   : > { %v812_v0 = vpop.permute.xlu1 %811  ;;  %v2765_v19 = vsel %vm528_vm0, %v5191_v12, %v2502_v3 }
 0x187   : > { %2705 = vrot.lane.b32.xlu0 %v5186_v26, %s3922_s24  ;;  %v1075_v7 = vsel %vm528_vm0, %v5096_v9, %v812_v0  ;;  %v2470_v0 = vrot.slane %v5262_v41, 1 }
 0x188   : > { %1016 = vrot.lane.b32.xlu1 %v949_v31, %s3922_s24  ;;  %v657_v31 = vld [vmem:[#allocation2 + $0x148] sm:$0x3] }
 0x189   : > { %v2678_v20 = vpop.permute.xlu0 %2677 }
 0x18a   : > { %v989_v38 = vpop.permute.xlu1 %988  ;;  %v2797_v47 = vsel %vm1098_vm5, %v2765_v19, %v2678_v20  ;;  %v5276_v19 = vrot.slane %v5264_v29, 1 }
 0x18b   : > { %v1108_v50 = vsel %vm1098_vm5, %v1075_v7, %v989_v38  ;;  %2707 = vrot.lane.b32.xlu0 %v2640_v16, %s3922_s24  ;;  %3835 = vmatprep.mubr.msk.f32.mxu0 %vm1655_vm6, %v2797_v47  ;;  %v781_v16 = vrot.slane %v657_v31, 1 }
 0x18c   : > { %2531 = vrot.lane.b32.xlu1 %v2464_v13, %s3921_s15  ;;  %3784 = vmatmul.mubr.msk.f32.gmra.mxu1 %vm1655_vm6, %v1108_v50  ;;  %v5278_v13 = vld [vmem:[#allocation2 + $0xb0] sm:$0xff]  ;;  %v5289_v47 = vsel %vm712_vm2, %v2470_v0, %v5276_v19  ;;  %v5293_v50 = vrot.slane %v5264_v29, 2 }
 0x18d   : > { %v2680_v9 = vpop.permute.xlu0 %2679 }
 0x18e   : > { %v2504_v15 = vpop.permute.xlu1 %2503 }
 0x18f   : > { %v2766_v36 = vsel %vm528_vm0, %v5218_v55, %v2504_v15  ;;  %1018 = vrot.lane.b32.xlu0 %v5127_v46, %s3922_s24  ;;  %v777_v46 = vsel %vm712_vm2, %v5093_v40, %v776_v30  ;;  %v2350_v30 = vld [vmem:[#allocation2 + $0x178] sm:$0x3] }
 0x190   : > { %v2798_v61 = vsel %vm1098_vm5, %v2766_v36, %v2680_v9  ;;  %841 = vrot.lane.b32.xlu1 %v5106_v59, %s3921_s15  ;;  %v958_v9 = vrot.slane %v657_v31, 2  ;;  %v2649_v22 = vrot.slane %v2350_v30, 2 }
 0x191   : > { %3836 = vmatmul.mubr.msk.f32.gmra.mxu0 %vm1655_vm6, %v2798_v61  ;;  %v991_v51 = vpop.permute.xlu0 %990  ;;  %v5306_v61 = vsel %vm889_vm3, %v2646_v25, %v5293_v50 }
 0x192   : > { %v814_v33 = vpop.permute.xlu1 %813 }
 0x193   : > { %v1076_v59 = vsel %vm528_vm0, %v5132_v27, %v814_v33  ;;  %2533 = vrot.lane.b32.xlu0 %v5229_v56, %s3921_s15  ;;  %v2650_v33 = vsel %vm889_vm3, %v5293_v50, %v2649_v22 }
 0x194   : > { %v1109_v45 = vsel %vm1098_vm5, %v1076_v59, %v991_v51  ;;  %843 = vrot.lane.b32.xlu1 %v777_v46, %s3921_s15  ;;  %v959_v51 = vsel %vm889_vm3, %v5174_v63, %v958_v9  ;;  %v2473_v46 = vrot.slane %v2350_v30, 1  ;;  %v5322_v63 = vld [vmem:[#allocation2 + $0x180] sm:$0xff] }
 0x195   : > { %3786 = vmatprep.mubr.msk.f32.mxu1 %vm1655_vm6, %v1109_v45  ;;  %v2506_v40 = vpop.permute.xlu0 %2505  ;;  %v2651_v0 = vrot.slane %v5322_v63, 2 }
 0x196   : > { %v816_v27 = vpop.permute.xlu1 %815  ;;  %v2767_v57 = vsel %vm528_vm0, %v5251_v24, %v2506_v40  ;;  %v2474_v45 = vsel %vm712_vm2, %v5276_v19, %v2473_v46 }
 0x197   : > { %2709 = vrot.lane.b32.xlu0 %v5246_v21, %s3922_s24  ;;  %v1077_v49 = vsel %vm528_vm0, %v5159_v62, %v816_v27  ;;  %v660_v27 = vld [vmem:[#allocation2 + $0x160] sm:$0x3] }
 0x198   : > { %1020 = vrot.lane.b32.xlu1 %v954_v32, %s3922_s24 }
 0x199   : > { %v2682_v53 = vpop.permute.xlu0 %2681 }
 0x19a   : > { %v993_v23 = vpop.permute.xlu1 %992  ;;  %v2799_v3 = vsel %vm1098_vm5, %v2767_v57, %v2682_v53  ;;  %v2476_v53 = vrot.slane %v5324_v37, 1 }
 0x19b   : > { %v1110_v43 = vsel %vm1098_vm5, %v1077_v49, %v993_v23  ;;  %2711 = vrot.lane.b32.xlu0 %v2645_v58, %s3922_s24  ;;  %3838 = vmatprep.mubr.msk.f32.mxu0 %vm1655_vm6, %v2799_v3  ;;  %v2475_v58 = vrot.slane %v5322_v63, 1  ;;  %v5336_v23 = vld [vmem:[#allocation2 + $0xc8] sm:$0xff] }
 0x19c   : > { %2535 = vrot.lane.b32.xlu1 %v2469_v28, %s3921_s15  ;;  %3787 = vmatmul.mubr.msk.f32.gmra.mxu1 %vm1655_vm6, %v1110_v43 }
 0x19d   : > { %v2684_v62 = vpop.permute.xlu0 %2683  ;;  %v2477_v43 = vsel %vm712_vm2, %v2475_v58, %v2476_v53 }
 0x19e   : > { %v2508_v20 = vpop.permute.xlu1 %2507 }
 0x19f   : > { %v2768_v7 = vsel %vm528_vm0, %v5278_v13, %v2508_v20  ;;  %1022 = vrot.lane.b32.xlu0 %v5186_v26, %s3922_s24  ;;  %v782_v26 = vsel %vm712_vm2, %v5157_v18, %v781_v16 }
 0x1a0   : > { %v2800_v38 = vsel %vm1098_vm5, %v2768_v7, %v2684_v62  ;;  %845 = vrot.lane.b32.xlu1 %v5170_v39, %s3921_s15  ;;  %v2652_v62 = vrot.slane %v5324_v37, 2  ;;  %v963_v7 = vrot.slane %v660_v27, 2 }
 0x1a1   : > { %3839 = vmatmul.mubr.msk.f32.gmra.mxu0 %vm1655_vm6, %v2800_v38  ;;  %v995_v2 = vpop.permute.xlu0 %994  ;;  %v2353_v38 = vld [vmem:[#allocation2 + $0x190] sm:$0x3] }
 0x1a2   : > { %v818_v15 = vpop.permute.xlu1 %817  ;;  %v2478_v30 = vrot.slane %v2353_v38, 1 }
 0x1a3   : > { %v1078_v39 = vsel %vm528_vm0, %v5191_v12, %v818_v15  ;;  %2537 = vrot.lane.b32.xlu0 %v5289_v47, %s3921_s15 }
 0x1a4   : > { %v1111_v36 = vsel %vm1098_vm5, %v1078_v39, %v995_v2  ;;  %847 = vrot.lane.b32.xlu1 %v782_v26, %s3921_s15  ;;  %v2653_v2 = vsel %vm889_vm3, %v2651_v0, %v2652_v62  ;;  %v2654_v26 = vrot.slane %v2353_v38, 2  ;;  %v2479_v22 = vsel %vm712_vm2, %v2476_v53, %v2478_v30 }
 0x1a5   : > { %3789 = vmatprep.mubr.msk.f32.mxu1 %vm1655_vm6, %v1111_v36  ;;  %v2510_v18 = vpop.permute.xlu0 %2509 }
 0x1a6   : > { %v820_v12 = vpop.permute.xlu1 %819  ;;  %v2769_v34 = vsel %vm528_vm0, %v5311_v11, %v2510_v18  ;;  %v2655_v39 = vsel %vm889_vm3, %v2652_v62, %v2654_v26  ;;  %v5366_v18 = vld [vmem:[#allocation2 + $0x198] sm:$0xff] }
 0x1a7   : > { %2713 = vrot.lane.b32.xlu0 %v5306_v61, %s3922_s24  ;;  %v1079_v40 = vsel %vm528_vm0, %v5218_v55, %v820_v12  ;;  %v786_v55 = vrot.slane %v660_v27, 1  ;;  %v2656_v58 = vrot.slane %v5366_v18, 2 }
 0x1a8   : > { %1024 = vrot.lane.b32.xlu1 %v959_v51, %s3922_s24  ;;  %v5368_v51 = vld [vmem:[#allocation2 + $0x1a0] sm:$0xff] }
 0x1a9   : > { %v2686_v59 = vpop.permute.xlu0 %2685  ;;  %v787_v20 = vsel %vm712_vm2, %v5216_v60, %v786_v55  ;;  %v964_v60 = vsel %vm889_vm3, %v5233_v4, %v963_v7  ;;  %v2657_v53 = vrot.slane %v5368_v51, 2 }
 0x1aa   : > { %v997_v32 = vpop.permute.xlu1 %996  ;;  %v2801_v5 = vsel %vm1098_vm5, %v2769_v34, %v2686_v59  ;;  %v663_v34 = vld [vmem:[#allocation2 + $0x178] sm:$0x3]  ;;  %v2480_v59 = vrot.slane %v5366_v18, 1 }
 0x1ab   : > { %v1112_v57 = vsel %vm1098_vm5, %v1079_v40, %v997_v32  ;;  %2715 = vrot.lane.b32.xlu0 %v2650_v33, %s3922_s24  ;;  %3841 = vmatprep.mubr.msk.f32.mxu0 %vm1655_vm6, %v2801_v5 }
 0x1ac   : > { %2539 = vrot.lane.b32.xlu1 %v2474_v45, %s3921_s15  ;;  %3790 = vmatmul.mubr.msk.f32.gmra.mxu1 %vm1655_vm6, %v1112_v57  ;;  %v2481_v45 = vrot.slane %v5368_v51, 1 }
 0x1ad   : > { %v2688_v28 = vpop.permute.xlu0 %2687 }
 0x1ae   : > { %v2512_v49 = vpop.permute.xlu1 %2511  ;;  %v2482_v57 = vsel %vm712_vm2, %v2480_v59, %v2481_v45 }
 0x1af   : > { %v2770_v3 = vsel %vm528_vm0, %v5336_v23, %v2512_v49  ;;  %1026 = vrot.lane.b32.xlu0 %v5246_v21, %s3922_s24  ;;  %v968_v49 = vrot.slane %v663_v34, 2 }
 0x1b0   : > { %v2802_v31 = vsel %vm1098_vm5, %v2770_v3, %v2688_v28  ;;  %849 = vrot.lane.b32.xlu1 %v5229_v56, %s3921_s15 }
 0x1b1   : > { %3842 = vmatmul.mubr.msk.f32.gmra.mxu0 %vm1655_vm6, %v2802_v31  ;;  %v999_v16 = vpop.permute.xlu0 %998 }
 0x1b2   : > { %v822_v21 = vpop.permute.xlu1 %821 }
 0x1b3   : > { %v1080_v25 = vsel %vm528_vm0, %v5251_v24, %v822_v21  ;;  %2541 = vrot.lane.b32.xlu0 %v2477_v43, %s3921_s15  ;;  %v2658_v43 = vsel %vm889_vm3, %v2656_v58, %v2657_v53 }
 0x1b4   : > { %v1113_v56 = vsel %vm1098_vm5, %v1080_v25, %v999_v16  ;;  %851 = vrot.lane.b32.xlu1 %v787_v20, %s3921_s15 }
 0x1b5   : > { %3792 = vmatprep.mubr.msk.f32.mxu1 %vm1655_vm6, %v1113_v56  ;;  %v2514_v9 = vpop.permute.xlu0 %2513 }
 0x1b6   : > { %v824_v15 = vpop.permute.xlu1 %823  ;;  %v2771_v24 = vsel %vm528_vm0, %v4891_v44, %v2514_v9 }
 0x1b7   : > { %2717 = vrot.lane.b32.xlu0 %v2653_v2, %s3922_s24  ;;  %v1081_v4 = vsel %vm528_vm0, %v5278_v13, %v824_v15  ;;  %v791_v13 = vrot.slane %v663_v34, 1 }
 0x1b8   : > { %1028 = vrot.lane.b32.xlu1 %v964_v60, %s3922_s24 }
 0x1b9   : > { %v2690_v36 = vpop.permute.xlu0 %2689  ;;  %v792_v55 = vsel %vm712_vm2, %v5276_v19, %v791_v13  ;;  %v969_v19 = vsel %vm889_vm3, %v5293_v50, %v968_v49 }
 0x1ba   : > { %v1001_v46 = vpop.permute.xlu1 %1000  ;;  %v2803_v12 = vsel %vm1098_vm5, %v2771_v24, %v2690_v36 }
 0x1bb   : > { %v1114_v33 = vsel %vm1098_vm5, %v1081_v4, %v1001_v46  ;;  %2719 = vrot.lane.b32.xlu0 %v2655_v39, %s3922_s24  ;;  %3844 = vmatprep.mubr.msk.f32.mxu0 %vm1655_vm6, %v2803_v12 }
 0x1bc   : > { %2543 = vrot.lane.b32.xlu1 %v2479_v22, %s3921_s15  ;;  %3793 = vmatmul.mubr.msk.f32.gmra.mxu1 %vm1655_vm6, %v1114_v33 }
 0x1bd   : > { %v2692_v40 = vpop.permute.xlu0 %2691 }
 0x1be   : > { %v2516_v32 = vpop.permute.xlu1 %2515 }
 0x1bf   : > { %v2772_v5 = vsel %vm528_vm0, %v4893_v48, %v2516_v32  ;;  %1030 = vrot.lane.b32.xlu0 %v5306_v61, %s3922_s24  ;;  %v2356_v61 = vld [vmem:[#allocation2 + $0x1a8] sm:$0x3] }
 0x1c0   : > { %v2804_v27 = vsel %vm1098_vm5, %v2772_v5, %v2692_v40  ;;  %853 = vrot.lane.b32.xlu1 %v5289_v47, %s3921_s15  ;;  %v2483_v62 = vrot.slane %v2356_v61, 1  ;;  %v2659_v38 = vrot.slane %v2356_v61, 2 }
 0x1c1   : > { %3845 = vmatmul.mubr.msk.f32.gmra.mxu0 %vm1655_vm6, %v2804_v27  ;;  %v1003_v28 = vpop.permute.xlu0 %1002 }
 0x1c2   : > { %v826_v3 = vpop.permute.xlu1 %825  ;;  %v2484_v7 = vsel %vm712_vm2, %v2481_v45, %v2483_v62  ;;  %v2660_v26 = vsel %vm889_vm3, %v2657_v53, %v2659_v38  ;;  %v5440_v53 = vpop.f32.mrf.mxu1 }
 0x1c3   : > { %v1082_v31 = vsel %vm528_vm0, %v5311_v11, %v826_v3  ;;  %2545 = vrot.lane.b32.xlu0 %v2482_v57, %s3921_s15 }
 0x1c4   : > { %v1115_v47 = vsel %vm1098_vm5, %v1082_v31, %v1003_v28  ;;  %855 = vrot.lane.b32.xlu1 %v792_v55, %s3921_s15  ;;  %v5447_v31 = vpop.f32.mrf.mxu1 }
 0x1c5   : > { %3795 = vmatprep.mubr.msk.f32.mxu1 %vm1655_vm6, %v1115_v47  ;;  %v2518_v0 = vpop.permute.xlu0 %2517  ;;  %v5451_v47 = vpop.f32.mrf.mxu0 }
 0x1c6   : > { %v828_v16 = vpop.permute.xlu1 %827  ;;  %v2773_v20 = vsel %vm528_vm0, %v4947_v54, %v2518_v0 }
 0x1c7   : > { %2721 = vrot.lane.b32.xlu0 %v2658_v43, %s3922_s24  ;;  %v1083_v21 = vsel %vm528_vm0, %v5336_v23, %v828_v16  ;;  %v5454_v43 = vpop.f32.mrf.mxu1  ;;  %v5458_v62 = vpop.f32.mrf.mxu0 }
 0x1c8   : > { %1032 = vrot.lane.b32.xlu1 %v969_v19, %s3922_s24 }
 0x1c9   : > { %v2694_v11 = vpop.permute.xlu0 %2693 }
 0x1ca   : > { %v1005_v25 = vpop.permute.xlu1 %1004  ;;  %v2805_v56 = vsel %vm1098_vm5, %v2773_v20, %v2694_v11  ;;  %v5461_v20 = vpop.f32.mrf.mxu1 }
 0x1cb   : > { %v1116_v50 = vsel %vm1098_vm5, %v1083_v21, %v1005_v25  ;;  %3847 = vmatprep.mubr.msk.f32.mxu0 %vm1655_vm6, %v2805_v56 }
 0x1cc   : > { %2547 = vrot.lane.b32.xlu1 %v2484_v7, %s3921_s15  ;;  %3796 = vmatmul.mubr.msk.f32.gmra.mxu1 %vm1655_vm6, %v1116_v50  ;;  %v5464_v7 = vpop.f32.mrf.mxu0  ;;  %v5466_v21 = vpop.f32.mrf.mxu1 }
 0x1cd   : > { %v2696_v2 = vpop.permute.xlu0 %2695 }
 0x1ce   : > { %v2520_v9 = vpop.permute.xlu1 %2519 }
 0x1cf   : > { %v2774_v60 = vsel %vm528_vm0, %v4949_v8, %v2520_v9  ;;  %v5474_v9 = vpop.f32.mrf.mxu1 }
 0x1d0   : > { %v2806_v23 = vsel %vm1098_vm5, %v2774_v60, %v2696_v2  ;;  %2723 = vrot.lane.b32.xlu1 %v2660_v26, %s3922_s24  ;;  %v5472_v2 = vpop.f32.mrf.mxu0 }
 0x1d1   : > { %3848 = vmatmul.mubr.msk.f32.gmra.mxu0 %vm1655_vm6, %v2806_v23  ;;  %v1007_v30 = vpop.permute.xlu0 %1006 }
 0x1d2   : > { %v830_v15 = vpop.permute.xlu1 %829  ;;  %v5478_v23 = vpop.f32.mrf.mxu0 }
 0x1d3   : > { %v1084_v24 = vsel %vm528_vm0, %v4891_v44, %v830_v15 }
 0x1d4   : > { %v1117_v39 = vsel %vm1098_vm5, %v1084_v24, %v1007_v30  ;;  %v5480_v30 = vpop.f32.mrf.mxu1 }
 0x1d5   : > { %3798 = vmatprep.mubr.msk.f32.mxu1 %vm1655_vm6, %v1117_v39  ;;  %v2522_v36 = vpop.permute.xlu0 %2521 }
 0x1d6   : > { %v832_v22 = vpop.permute.xlu1 %831  ;;  %v2775_v4 = vsel %vm528_vm0, %v5013_v14, %v2522_v36 }
 0x1d7   : > { %v1085_v12 = vsel %vm528_vm0, %v4893_v48, %v832_v22  ;;  %v5487_v22 = vpop.f32.mrf.mxu0 }
 0x1d9   : > { %v2698_v46 = vpop.permute.xlu0 %2697 }
 0x1da   : > { %v1009_v34 = vpop.permute.xlu1 %1008  ;;  %v2807_v33 = vsel %vm1098_vm5, %v2775_v4, %v2698_v46  ;;  %v5490_v4 = vpop.f32.mrf.mxu1 }
 0x1db   : > { %v1118_v59 = vsel %vm1098_vm5, %v1085_v12, %v1009_v34  ;;  %3850 = vmatprep.mubr.msk.f32.mxu0 %vm1655_vm6, %v2807_v33  ;;  %v5492_v12 = vpop.f32.mrf.mxu0 }
 0x1dc   : > { %3799 = vmatmul.mubr.msk.f32.gmra.mxu1 %vm1655_vm6, %v1118_v59  ;;  %v5494_v33 = vpop.f32.mrf.mxu1 }
 0x1dd   : > { %v2700_v44 = vpop.permute.xlu0 %2699 }
 0x1de   : > { %v2524_v45 = vpop.permute.xlu1 %2523 }
 0x1df   : > { %v2776_v40 = vsel %vm528_vm0, %v5015_v52, %v2524_v45  ;;  %v5500_v45 = vpop.f32.mrf.mxu0 }
 0x1e0   : > { %v2808_v13 = vsel %vm1098_vm5, %v2776_v40, %v2700_v44 }
 0x1e1   : > { %3851 = vmatmul.mubr.msk.f32.gmra.mxu0 %vm1655_vm6, %v2808_v13  ;;  %v1011_v32 = vpop.permute.xlu0 %1010  ;;  %v5502_v13 = vpop.f32.mrf.mxu1 }
 0x1e2   : > { %v834_v48 = vpop.permute.xlu1 %833 }
 0x1e3   : > { %v1086_v5 = vsel %vm528_vm0, %v4947_v54, %v834_v48 }
 0x1e4   : > { %v1119_v27 = vsel %vm1098_vm5, %v1086_v5, %v1011_v32  ;;  %v5506_v48 = vpop.f32.mrf.mxu0 }
 0x1e5   : > { %3801 = vmatprep.mubr.msk.f32.mxu1 %vm1655_vm6, %v1119_v27  ;;  %v2526_v57 = vpop.permute.xlu0 %2525 }
 0x1e6   : > { %v836_v58 = vpop.permute.xlu1 %835  ;;  %v2777_v28 = vsel %vm528_vm0, %v5077_v6, %v2526_v57 }
 0x1e7   : > { %v1087_v49 = vsel %vm528_vm0, %v4949_v8, %v836_v58 }
 0x1e9   : > { %v2702_v55 = vpop.permute.xlu0 %2701 }
 0x1ea   : > { %v1013_v3 = vpop.permute.xlu1 %1012  ;;  %v2809_v61 = vsel %vm1098_vm5, %v2777_v28, %v2702_v55  ;;  %v5514_v55 = vpop.f32.mrf.mxu0 }
 0x1eb   : > { %v1120_v54 = vsel %vm1098_vm5, %v1087_v49, %v1013_v3  ;;  %3853 = vmatprep.mubr.msk.f32.mxu0 %vm1655_vm6, %v2809_v61 }
 0x1ec   : > { %3802 = vmatmul.mubr.msk.f32.gmra.mxu1 %vm1655_vm6, %v1120_v54  ;;  %v5509_v27 = vpop.f32.mrf.mxu1 }
 0x1ed   : > { %v2704_v0 = vpop.permute.xlu0 %2703 }
 0x1ee   : > { %v2528_v19 = vpop.permute.xlu1 %2527  ;;  %v5516_v49 = vpop.f32.mrf.mxu1 }
 0x1ef   : > { %v2778_v8 = vsel %vm528_vm0, %v5079_v1, %v2528_v19 }
 0x1f0   : > { %v2810_v16 = vsel %vm1098_vm5, %v2778_v8, %v2704_v0 }
 0x1f1   : > { %3854 = vmatmul.mubr.msk.f32.gmra.mxu0 %vm1655_vm6, %v2810_v16  ;;  %v1015_v11 = vpop.permute.xlu0 %1014 }
 0x1f2   : > { %v838_v38 = vpop.permute.xlu1 %837 }
 0x1f3   : > { %v1088_v25 = vsel %vm528_vm0, %v5013_v14, %v838_v38 }
 0x1f4   : > { %v1121_v56 = vsel %vm1098_vm5, %v1088_v25, %v1015_v11  ;;  %v5518_v61 = vpop.f32.mrf.mxu0 }
 0x1f5   : > { %3804 = vmatprep.mubr.msk.f32.mxu1 %vm1655_vm6, %v1121_v56  ;;  %v2530_v50 = vpop.permute.xlu0 %2529 }
 0x1f6   : > { %v840_v26 = vpop.permute.xlu1 %839  ;;  %v2779_v60 = vsel %vm528_vm0, %v5143_v10, %v2530_v50  ;;  %v5528_v11 = vpop.f32.mrf.mxu0 }
 0x1f7   : > { %v1089_v14 = vsel %vm528_vm0, %v5015_v52, %v840_v26 }
 0x1f9   : > { %v2706_v15 = vpop.permute.xlu0 %2705 }
 0x1fa   : > { %v1017_v24 = vpop.permute.xlu1 %1016  ;;  %v2811_v39 = vsel %vm1098_vm5, %v2779_v60, %v2706_v15 }
 0x1fb   : > { %v1122_v36 = vsel %vm1098_vm5, %v1089_v14, %v1017_v24  ;;  %3856 = vmatprep.mubr.msk.f32.mxu0 %vm1655_vm6, %v2811_v39 }
 0x1fc   : > { %3805 = vmatmul.mubr.msk.f32.gmra.mxu1 %vm1655_vm6, %v1122_v36  ;;  %v5523_v19 = vpop.f32.mrf.mxu1 }
 0x1fd   : > { %v2708_v46 = vpop.permute.xlu0 %2707 }
 0x1fe   : > { %v2532_v34 = vpop.permute.xlu1 %2531  ;;  %v5530_v25 = vpop.f32.mrf.mxu1 }
 0x1ff   : > { %v2780_v52 = vsel %vm528_vm0, %v5145_v35, %v2532_v34 }
 0x200   : > { %v2812_v59 = vsel %vm1098_vm5, %v2780_v52, %v2708_v46 }
 0x201   : > { %3857 = vmatmul.mubr.msk.f32.gmra.mxu0 %vm1655_vm6, %v2812_v59  ;;  %v1019_v44 = vpop.permute.xlu0 %1018 }
 0x202   : > { %v842_v40 = vpop.permute.xlu1 %841 }
 0x203   : > { %v1090_v32 = vsel %vm528_vm0, %v5077_v6, %v842_v40 }
 0x204   : > { %v1123_v5 = vsel %vm1098_vm5, %v1090_v32, %v1019_v44  ;;  %v5534_v56 = vpop.f32.mrf.mxu0 }
 0x205   : > { %3807 = vmatprep.mubr.msk.f32.mxu1 %vm1655_vm6, %v1123_v5  ;;  %v2534_v57 = vpop.permute.xlu0 %2533 }
 0x206   : > { %v844_v58 = vpop.permute.xlu1 %843  ;;  %v2781_v28 = vsel %vm528_vm0, %v5202_v17, %v2534_v57  ;;  %v5542_v24 = vpop.f32.mrf.mxu0 }
 0x207   : > { %v1091_v6 = vsel %vm528_vm0, %v5079_v1, %v844_v58 }
 0x209   : > { %v2710_v3 = vpop.permute.xlu0 %2709 }
 0x20a   : > { %v1021_v54 = vpop.permute.xlu1 %1020  ;;  %v2813_v0 = vsel %vm1098_vm5, %v2781_v28, %v2710_v3 }
 0x20b   : > { %v1124_v8 = vsel %vm1098_vm5, %v1091_v6, %v1021_v54  ;;  %3859 = vmatprep.mubr.msk.f32.mxu0 %vm1655_vm6, %v2813_v0 }
 0x20c   : > { %3808 = vmatmul.mubr.msk.f32.gmra.mxu1 %vm1655_vm6, %v1124_v8  ;;  %v5537_v26 = vpop.f32.mrf.mxu1 }
 0x20d   : > { %v2712_v16 = vpop.permute.xlu0 %2711 }
 0x20e   : > { %v2536_v38 = vpop.permute.xlu1 %2535  ;;  %v5545_v36 = vpop.f32.mrf.mxu1 }
 0x20f   : > { %v2782_v1 = vsel %vm528_vm0, %v5204_v42, %v2536_v38 }
 0x210   : > { %v2814_v50 = vsel %vm1098_vm5, %v2782_v1, %v2712_v16 }
 0x211   : > { %3860 = vmatmul.mubr.msk.f32.gmra.mxu0 %vm1655_vm6, %v2814_v50  ;;  %v1023_v60 = vpop.permute.xlu0 %1022  ;;  %v5548_v52 = vpop.f32.mrf.mxu0 }
 0x212   : > { %v846_v15 = vpop.permute.xlu1 %845 }
 0x213   : > { %v1092_v14 = vsel %vm528_vm0, %v5143_v10, %v846_v15  ;;  %v5555_v57 = vpop.f32.mrf.mxu0 }
 0x214   : > { %v1125_v39 = vsel %vm1098_vm5, %v1092_v14, %v1023_v60 }
 0x215   : > { %3810 = vmatprep.mubr.msk.f32.mxu1 %vm1655_vm6, %v1125_v39  ;;  %v2538_v46 = vpop.permute.xlu0 %2537  ;;  %v3773_v59 = vpop.f32.mrf.mxu1 }
 0x216   : > { %v848_v34 = vpop.permute.xlu1 %847  ;;  %v2783_v44 = vsel %vm528_vm0, %v5262_v41, %v2538_v46  ;;  %v2155_v3 = vadd.f32 %v3773_v59, %v5451_v47 }
 0x217   : > { %v1093_v10 = vsel %vm528_vm0, %v5145_v35, %v848_v34  ;;  %v2149_v58 = vpop.f32.mrf.mxu1 }
 0x218   : > { %v2150_v54 = vadd.f32 %v2149_v58, %v5458_v62 }
 0x219   : > { %v2714_v40 = vpop.permute.xlu0 %2713 }
 0x21a   : > { %v1025_v32 = vpop.permute.xlu1 %1024  ;;  %v2815_v5 = vsel %vm1098_vm5, %v2783_v44, %v2714_v40 }
 0x21b   : > { %v1126_v28 = vsel %vm1098_vm5, %v1093_v10, %v1025_v32  ;;  %3862 = vmatprep.mubr.msk.f32.mxu0 %vm1655_vm6, %v2815_v5 }
 0x21c   : > { %3811 = vmatmul.mubr.msk.f32.gmra.mxu1 %vm1655_vm6, %v1126_v28 }
 0x21d   : > { %v3825_v35 = vpop.f32.mrf.mxu0  ;;  %v2716_v6 = vpop.permute.xlu0 %2715 }
 0x21e   : > { %v3154_v0 = vadd.f32 %v3825_v35, %v2155_v3  ;;  %v2540_v8 = vpop.permute.xlu1 %2539 }
 0x21f   : > { %v2784_v16 = vsel %vm528_vm0, %v5264_v29, %v2540_v8  ;;  %v2994_v47 = vpop.f32.mrf.mxu0 }
 0x220   : > { %3186 = vst.msk [vmem:[%s5566_s20 + $0x8] sm:$0xff] %vm528_vm0, %v3154_v0  ;;  %v3289_v38 = vmul.f32 %v3154_v0, %v3154_v0  ;;  %v2816_v1 = vsel %vm1098_vm5, %v2784_v16, %v2716_v6  ;;  %v3153_v50 = vadd.f32 %v2994_v47, %v2150_v54  ;;  %v3218_v15 = vsel %vm528_vm0, %v3154_v0, 0.0 }
 0x221   : > { %3863 = vmatmul.mubr.msk.f32.gmra.mxu0 %vm1655_vm6, %v2816_v1  ;;  %v1027_v60 = vpop.permute.xlu0 %1026  ;;  %v3776_v34 = vpop.f32.mrf.mxu1 }
 0x222   : > { %3185 = vst.msk [vmem:[%s5566_s20] sm:$0xff] %vm528_vm0, %v3153_v50  ;;  %v3217_v62 = vsel %vm528_vm0, %v3153_v50, 0.0  ;;  %v3288_v14 = vmul.f32 %v3153_v50, %v3153_v50  ;;  %v850_v39 = vpop.permute.xlu1 %849  ;;  %v3321_v44 = vsel %vm528_vm0, %v3289_v38, 0.0  ;;  %v2165_v35 = vadd.f32 %v3776_v34, %v5464_v7 }
 0x223   : > { %v3219_v46 = vadd.f32 %v3218_v15, %v3217_v62  ;;  %v1094_v59 = vsel %vm528_vm0, %v5202_v17, %v850_v39  ;;  %v2159_v28 = vpop.f32.mrf.mxu1 }
 0x224   : > { %v3320_v40 = vsel %vm528_vm0, %v3288_v14, 0.0  ;;  %v1127_v10 = vsel %vm1098_vm5, %v1094_v59, %v1027_v60  ;;  %v2160_v54 = vadd.f32 %v2159_v28, %v5472_v2 }
 0x225   : > { %v3322_v32 = vadd.f32 %v3321_v44, %v3320_v40  ;;  %3813 = vmatprep.mubr.msk.f32.mxu1 %vm1655_vm6, %v1127_v10  ;;  %v2542_v5 = vpop.permute.xlu0 %2541 }
 0x226   : > { %v852_v58 = vpop.permute.xlu1 %851  ;;  %v2785_v3 = vsel %vm528_vm0, %v5322_v63, %v2542_v5 }
 0x227   : > { %v1095_v0 = vsel %vm528_vm0, %v5204_v42, %v852_v58 }
 0x229   : > { %v3828_v17 = vpop.f32.mrf.mxu0  ;;  %v2718_v6 = vpop.permute.xlu0 %2717 }
 0x22a   : > { %v3156_v8 = vadd.f32 %v3828_v17, %v2165_v35  ;;  %v1029_v16 = vpop.permute.xlu1 %1028  ;;  %v2817_v47 = vsel %vm1098_vm5, %v2785_v3, %v2718_v6 }
 0x22b   : > { %v1128_v38 = vsel %vm1098_vm5, %v1095_v0, %v1029_v16  ;;  %v3004_v1 = vpop.f32.mrf.mxu0  ;;  %3865 = vmatprep.mubr.msk.f32.mxu0 %vm1655_vm6, %v2817_v47 }
 0x22c   : > { %3188 = vst.msk [vmem:[%s5566_s20 + $0x18] sm:$0xff] %vm528_vm0, %v3156_v8  ;;  %v3155_v63 = vadd.f32 %v3004_v1, %v2160_v54  ;;  %3814 = vmatmul.mubr.msk.f32.gmra.mxu1 %vm1655_vm6, %v1128_v38  ;;  %v3291_v50 = vmul.f32 %v3156_v8, %v3156_v8  ;;  %v3222_v39 = vsel %vm528_vm0, %v3156_v8, 0.0 }
 0x22d   : > { %v2720_v7 = vpop.permute.xlu0 %2719  ;;  %v3779_v62 = vpop.f32.mrf.mxu1 }
 0x22e   : > { %3187 = vst.msk [vmem:[%s5566_s20 + $0x10] sm:$0xff] %vm528_vm0, %v3155_v63  ;;  %v3220_v42 = vsel %vm528_vm0, %v3155_v63, 0.0  ;;  %v3290_v2 = vmul.f32 %v3155_v63, %v3155_v63  ;;  %v2544_v60 = vpop.permute.xlu1 %2543  ;;  %v3325_v5 = vsel %vm528_vm0, %v3291_v50, 0.0  ;;  %v2175_v3 = vadd.f32 %v3779_v62, %v5478_v23 }
 0x22f   : > { %v3221_v15 = vadd.f32 %v3220_v42, %v3219_v46  ;;  %v2786_v14 = vsel %vm528_vm0, %v5324_v37, %v2544_v60  ;;  %v2169_v46 = vpop.f32.mrf.mxu1 }
 0x230   : > { %v3323_v34 = vsel %vm528_vm0, %v3290_v2, 0.0  ;;  %v2818_v59 = vsel %vm1098_vm5, %v2786_v14, %v2720_v7  ;;  %v2170_v6 = vadd.f32 %v2169_v46, %v5487_v22 }
 0x231   : > { %v3324_v44 = vadd.f32 %v3323_v34, %v3322_v32  ;;  %3866 = vmatmul.mubr.msk.f32.gmra.mxu0 %vm1655_vm6, %v2818_v59  ;;  %v1031_v40 = vpop.permute.xlu0 %1030  ;;  %v3223_v10 = vadd.f32 %v3222_v39, %v3221_v15 }
 0x232   : > { %v854_v58 = vpop.permute.xlu1 %853 }
 0x233   : > { %v1096_v28 = vsel %vm528_vm0, %v5262_v41, %v854_v58  ;;  %v3326_v37 = vadd.f32 %v3325_v5, %v3324_v44 }
 0x234   : > { %v1129_v35 = vsel %vm1098_vm5, %v1096_v28, %v1031_v40 }
 0x235   : > { %3816 = vmatprep.mubr.msk.f32.mxu1 %vm1655_vm6, %v1129_v35  ;;  %v3831_v32 = vpop.f32.mrf.mxu0  ;;  %v2546_v17 = vpop.permute.xlu0 %2545 }
 0x236   : > { %v3158_v54 = vadd.f32 %v3831_v32, %v2175_v3  ;;  %v856_v0 = vpop.permute.xlu1 %855  ;;  %v2787_v16 = vsel %vm528_vm0, %v5366_v18, %v2546_v17 }
 0x237   : > { %v3014_v8 = vpop.f32.mrf.mxu0  ;;  %v1097_v23 = vsel %vm528_vm0, %v5264_v29, %v856_v0 }
 0x238   : > { %3190 = vst.msk [vmem:[%s5566_s20 + $0x28] sm:$0xff] %vm528_vm0, %v3158_v54  ;;  %v3157_v41 = vadd.f32 %v3014_v8, %v2170_v6  ;;  %v3293_v38 = vmul.f32 %v3158_v54, %v3158_v54  ;;  %v3226_v18 = vsel %vm528_vm0, %v3158_v54, 0.0 }
 0x239   : > { %v2722_v47 = vpop.permute.xlu0 %2721 }
 0x23a   : > { %3189 = vst.msk [vmem:[%s5566_s20 + $0x20] sm:$0xff] %vm528_vm0, %v3157_v41  ;;  %v3224_v1 = vsel %vm528_vm0, %v3157_v41, 0.0  ;;  %v3292_v63 = vmul.f32 %v3157_v41, %v3157_v41  ;;  %v1033_v22 = vpop.permute.xlu1 %1032  ;;  %v2819_v7 = vsel %vm1098_vm5, %v2787_v16, %v2722_v47  ;;  %v3329_v62 = vsel %vm528_vm0, %v3293_v38, 0.0 }
 0x23b   : > { %v3225_v50 = vadd.f32 %v3224_v1, %v3223_v10  ;;  %v1130_v42 = vsel %vm1098_vm5, %v1097_v23, %v1033_v22  ;;  %3868 = vmatprep.mubr.msk.f32.mxu0 %vm1655_vm6, %v2819_v7 }
 0x23c   : > { %v3327_v2 = vsel %vm528_vm0, %v3292_v63, 0.0  ;;  %v3782_v29 = vpop.f32.mrf.mxu1  ;;  %3817 = vmatmul.mubr.msk.f32.gmra.mxu1 %vm1655_vm6, %v1130_v42 }
 0x23d   : > { %v3328_v60 = vadd.f32 %v3327_v2, %v3326_v37  ;;  %v3227_v15 = vadd.f32 %v3226_v18, %v3225_v50  ;;  %v2185_v59 = vadd.f32 %v3782_v29, %v5492_v12 }
 0x23e   : > { %v2548_v14 = vpop.permute.xlu1 %2547  ;;  %v2179_v39 = vpop.f32.mrf.mxu1 }
 0x23f   : > { %v3330_v34 = vadd.f32 %v3329_v62, %v3328_v60  ;;  %v2180_v40 = vadd.f32 %v2179_v39, %v5500_v45  ;;  %v2788_v10 = vsel %vm528_vm0, %v5368_v51, %v2548_v14 }
 0x241   : > { %v3834_v44 = vpop.f32.mrf.mxu0 }
 0x242   : > { %v3160_v5 = vadd.f32 %v3834_v44, %v2185_v59  ;;  %v2724_v58 = vpop.permute.xlu1 %2723 }
 0x243   : > { %v2820_v46 = vsel %vm1098_vm5, %v2788_v10, %v2724_v58  ;;  %v3024_v28 = vpop.f32.mrf.mxu0 }
 0x244   : > { %3192 = vst.msk [vmem:[%s5566_s20 + $0x38] sm:$0xff] %vm528_vm0, %v3160_v5  ;;  %v3159_v37 = vadd.f32 %v3024_v28, %v2180_v40  ;;  %3869 = vmatmul.mubr.msk.f32.gmra.mxu0 %vm1655_vm6, %v2820_v46  ;;  %v3295_v3 = vmul.f32 %v3160_v5, %v3160_v5  ;;  %v3230_v51 = vsel %vm528_vm0, %v3160_v5, 0.0 }
 0x246   : > { %3191 = vst.msk [vmem:[%s5566_s20 + $0x30] sm:$0xff] %vm528_vm0, %v3159_v37  ;;  %v3228_v12 = vsel %vm528_vm0, %v3159_v37, 0.0  ;;  %v3294_v45 = vmul.f32 %v3159_v37, %v3159_v37  ;;  %v3333_v54 = vsel %vm528_vm0, %v3295_v3, 0.0 }
 0x247   : > { %v3229_v35 = vadd.f32 %v3228_v12, %v3227_v15 }
 0x248   : > { %v3331_v32 = vsel %vm528_vm0, %v3294_v45, 0.0 }
 0x249   : > { %v3332_v17 = vadd.f32 %v3331_v32, %v3330_v34  ;;  %v3231_v6 = vadd.f32 %v3230_v51, %v3229_v35 }
 0x24b   : > { %v3334_v0 = vadd.f32 %v3333_v54, %v3332_v17 }
 0x24c   : > { %v3785_v8 = vpop.f32.mrf.mxu1 }
 0x24d   : > { %v2195_v41 = vadd.f32 %v3785_v8, %v5506_v48 }
 0x24e   : > { %v2189_v16 = vpop.f32.mrf.mxu1 }
 0x24f   : > { %v2190_v47 = vadd.f32 %v2189_v16, %v5514_v55 }
 0x251   : > { %v3837_v23 = vpop.f32.mrf.mxu0 }
 0x252   : > { %v3162_v38 = vadd.f32 %v3837_v23, %v2195_v41 }
 0x253   : > { %v3034_v1 = vpop.f32.mrf.mxu0 }
 0x254   : > { %3194 = vst.msk [vmem:[%s5566_s20 + $0x48] sm:$0xff] %vm528_vm0, %v3162_v38  ;;  %v3161_v63 = vadd.f32 %v3034_v1, %v2190_v47  ;;  %v3297_v22 = vmul.f32 %v3162_v38, %v3162_v38  ;;  %v3234_v18 = vsel %vm528_vm0, %v3162_v38, 0.0 }
 0x256   : > { %3193 = vst.msk [vmem:[%s5566_s20 + $0x40] sm:$0xff] %vm528_vm0, %v3161_v63  ;;  %v3232_v7 = vsel %vm528_vm0, %v3161_v63, 0.0  ;;  %v3296_v50 = vmul.f32 %v3161_v63, %v3161_v63  ;;  %v3337_v29 = vsel %vm528_vm0, %v3297_v22, 0.0 }
 0x257   : > { %v3233_v42 = vadd.f32 %v3232_v7, %v3231_v6 }
 0x258   : > { %v3335_v48 = vsel %vm528_vm0, %v3296_v50, 0.0 }
 0x259   : > { %v3336_v2 = vadd.f32 %v3335_v48, %v3334_v0  ;;  %v3235_v55 = vadd.f32 %v3234_v18, %v3233_v42 }
 0x25b   : > { %v3338_v60 = vadd.f32 %v3337_v29, %v3336_v2 }
 0x25c   : > { %v3788_v15 = vpop.f32.mrf.mxu1 }
 0x25d   : > { %v2205_v14 = vadd.f32 %v3788_v15, %v5518_v61 }
 0x25e   : > { %v2199_v62 = vpop.f32.mrf.mxu1 }
 0x25f   : > { %v2200_v34 = vadd.f32 %v2199_v62, %v5528_v11 }
 0x261   : > { %v3840_v39 = vpop.f32.mrf.mxu0 }
 0x262   : > { %v3164_v59 = vadd.f32 %v3840_v39, %v2205_v14 }
 0x263   : > { %v3044_v44 = vpop.f32.mrf.mxu0 }
 0x264   : > { %3196 = vst.msk [vmem:[%s5566_s20 + $0x58] sm:$0xff] %vm528_vm0, %v3164_v59  ;;  %v3163_v40 = vadd.f32 %v3044_v44, %v2200_v34  ;;  %v3299_v10 = vmul.f32 %v3164_v59, %v3164_v59  ;;  %v3238_v28 = vsel %vm528_vm0, %v3164_v59, 0.0 }
 0x266   : > { %3195 = vst.msk [vmem:[%s5566_s20 + $0x50] sm:$0xff] %vm528_vm0, %v3163_v40  ;;  %v3236_v5 = vsel %vm528_vm0, %v3163_v40, 0.0  ;;  %v3298_v58 = vmul.f32 %v3163_v40, %v3163_v40  ;;  %v3341_v3 = vsel %vm528_vm0, %v3299_v10, 0.0 }
 0x267   : > { %v3237_v46 = vadd.f32 %v3236_v5, %v3235_v55 }
 0x268   : > { %v3339_v61 = vsel %vm528_vm0, %v3298_v58, 0.0 }
 0x269   : > { %v3340_v37 = vadd.f32 %v3339_v61, %v3338_v60  ;;  %v3239_v11 = vadd.f32 %v3238_v28, %v3237_v46 }
 0x26b   : > { %v3342_v12 = vadd.f32 %v3341_v3, %v3340_v37 }
 0x26c   : > { %v3791_v45 = vpop.f32.mrf.mxu1 }
 0x26d   : > { %v2215_v51 = vadd.f32 %v3791_v45, %v5534_v56 }
 0x26e   : > { %v2209_v35 = vpop.f32.mrf.mxu1 }
 0x26f   : > { %v2210_v17 = vadd.f32 %v2209_v35, %v5542_v24 }
 0x271   : > { %v3843_v32 = vpop.f32.mrf.mxu0 }
 0x272   : > { %v3166_v6 = vadd.f32 %v3843_v32, %v2215_v51 }
 0x273   : > { %v3054_v54 = vpop.f32.mrf.mxu0 }
 0x274   : > { %3198 = vst.msk [vmem:[%s5566_s20 + $0x68] sm:$0xff] %vm528_vm0, %v3166_v6  ;;  %v3165_v0 = vadd.f32 %v3054_v54, %v2210_v17  ;;  %v3301_v8 = vmul.f32 %v3166_v6, %v3166_v6  ;;  %v3242_v47 = vsel %vm528_vm0, %v3166_v6, 0.0 }
 0x276   : > { %3197 = vst.msk [vmem:[%s5566_s20 + $0x60] sm:$0xff] %vm528_vm0, %v3165_v0  ;;  %v3240_v16 = vsel %vm528_vm0, %v3165_v0, 0.0  ;;  %v3300_v41 = vmul.f32 %v3165_v0, %v3165_v0  ;;  %v3345_v1 = vsel %vm528_vm0, %v3301_v8, 0.0 }
 0x277   : > { %v3241_v23 = vadd.f32 %v3240_v16, %v3239_v11 }
 0x278   : > { %v3343_v56 = vsel %vm528_vm0, %v3300_v41, 0.0 }
 0x279   : > { %v3344_v38 = vadd.f32 %v3343_v56, %v3342_v12  ;;  %v3243_v24 = vadd.f32 %v3242_v47, %v3241_v23 }
 0x27b   : > { %v3346_v63 = vadd.f32 %v3345_v1, %v3344_v38 }
 0x27c   : > { %v3794_v22 = vpop.f32.mrf.mxu1 }
 0x27d   : > { %v2225_v50 = vadd.f32 %v3794_v22, %v5548_v52 }
 0x27e   : > { %v2219_v7 = vpop.f32.mrf.mxu1 }
 0x27f   : > { %v2220_v18 = vadd.f32 %v2219_v7, %v5555_v57 }
 0x281   : > { %v3846_v42 = vpop.f32.mrf.mxu0 }
 0x282   : > { %v3168_v48 = vadd.f32 %v3846_v42, %v2225_v50 }
 0x283   : > { %v3064_v2 = vpop.f32.mrf.mxu0 }
 0x284   : > { %3200 = vst.msk [vmem:[%s5566_s20 + $0x78] sm:$0xff] %vm528_vm0, %v3168_v48  ;;  %v3167_v55 = vadd.f32 %v3064_v2, %v2220_v18  ;;  %v3303_v29 = vmul.f32 %v3168_v48, %v3168_v48  ;;  %v3246_v14 = vsel %vm528_vm0, %v3168_v48, 0.0 }
 0x286   : > { %3199 = vst.msk [vmem:[%s5566_s20 + $0x70] sm:$0xff] %vm528_vm0, %v3167_v55  ;;  %v3244_v60 = vsel %vm528_vm0, %v3167_v55, 0.0  ;;  %v3302_v15 = vmul.f32 %v3167_v55, %v3167_v55  ;;  %v3349_v34 = vsel %vm528_vm0, %v3303_v29, 0.0 }
 0x287   : > { %v3245_v62 = vadd.f32 %v3244_v60, %v3243_v24 }
 0x288   : > { %v3347_v52 = vsel %vm528_vm0, %v3302_v15, 0.0 }
 0x289   : > { %v3348_v39 = vadd.f32 %v3347_v52, %v3346_v63  ;;  %v3247_v57 = vadd.f32 %v3246_v14, %v3245_v62 }
 0x28b   : > { %v3350_v59 = vadd.f32 %v3349_v34, %v3348_v39 }
 0x28c   : > { %v3797_v44 = vpop.f32.mrf.mxu1 }
 0x28d   : > { %v2235_v10 = vadd.f32 %v3797_v44, %v5440_v53 }
 0x28e   : > { %v2229_v40 = vpop.f32.mrf.mxu1 }
 0x28f   : > { %v2230_v58 = vadd.f32 %v2229_v40, %v5447_v31 }
 0x291   : > { %v3849_v5 = vpop.f32.mrf.mxu0 }
 0x292   : > { %v3170_v46 = vadd.f32 %v3849_v5, %v2235_v10 }
 0x293   : > { %v3074_v28 = vpop.f32.mrf.mxu0 }
 0x294   : > { %3202 = vst.msk [vmem:[%s5566_s20 + $0x88] sm:$0xff] %vm528_vm0, %v3170_v46  ;;  %v3169_v61 = vadd.f32 %v3074_v28, %v2230_v58  ;;  %v3305_v37 = vmul.f32 %v3170_v46, %v3170_v46  ;;  %v3250_v45 = vsel %vm528_vm0, %v3170_v46, 0.0 }
 0x296   : > { %3201 = vst.msk [vmem:[%s5566_s20 + $0x80] sm:$0xff] %vm528_vm0, %v3169_v61  ;;  %v3248_v11 = vsel %vm528_vm0, %v3169_v61, 0.0  ;;  %v3304_v3 = vmul.f32 %v3169_v61, %v3169_v61  ;;  %v3353_v51 = vsel %vm528_vm0, %v3305_v37, 0.0 }
 0x297   : > { %v3249_v12 = vadd.f32 %v3248_v11, %v3247_v57 }
 0x298   : > { %v3351_v53 = vsel %vm528_vm0, %v3304_v3, 0.0 }
 0x299   : > { %v3352_v35 = vadd.f32 %v3351_v53, %v3350_v59  ;;  %v3251_v31 = vadd.f32 %v3250_v45, %v3249_v12 }
 0x29b   : > { %v3354_v32 = vadd.f32 %v3353_v51, %v3352_v35 }
 0x29c   : > { %v3800_v17 = vpop.f32.mrf.mxu1 }
 0x29d   : > { %v2245_v54 = vadd.f32 %v3800_v17, %v5454_v43 }
 0x29e   : > { %v2239_v6 = vpop.f32.mrf.mxu1 }
 0x29f   : > { %v2240_v8 = vadd.f32 %v2239_v6, %v5461_v20 }
 0x2a1   : > { %v3852_v0 = vpop.f32.mrf.mxu0 }
 0x2a2   : > { %v3172_v16 = vadd.f32 %v3852_v0, %v2245_v54 }
 0x2a3   : > { %v3084_v41 = vpop.f32.mrf.mxu0 }
 0x2a4   : > { %3204 = vst.msk [vmem:[%s5566_s20 + $0x98] sm:$0xff] %vm528_vm0, %v3172_v16  ;;  %v3171_v23 = vadd.f32 %v3084_v41, %v2240_v8  ;;  %v3307_v47 = vmul.f32 %v3172_v16, %v3172_v16  ;;  %v3254_v1 = vsel %vm528_vm0, %v3172_v16, 0.0 }
 0x2a6   : > { %3203 = vst.msk [vmem:[%s5566_s20 + $0x90] sm:$0xff] %vm528_vm0, %v3171_v23  ;;  %v3252_v56 = vsel %vm528_vm0, %v3171_v23, 0.0  ;;  %v3306_v38 = vmul.f32 %v3171_v23, %v3171_v23  ;;  %v3357_v22 = vsel %vm528_vm0, %v3307_v47, 0.0 }
 0x2a7   : > { %v3253_v24 = vadd.f32 %v3252_v56, %v3251_v31 }
 0x2a8   : > { %v3355_v43 = vsel %vm528_vm0, %v3306_v38, 0.0 }
 0x2a9   : > { %v3356_v63 = vadd.f32 %v3355_v43, %v3354_v32  ;;  %v3255_v20 = vadd.f32 %v3254_v1, %v3253_v24 }
 0x2ab   : > { %v3358_v7 = vadd.f32 %v3357_v22, %v3356_v63 }
 0x2ac   : > { %v3803_v50 = vpop.f32.mrf.mxu1 }
 0x2ad   : > { %v2255_v18 = vadd.f32 %v3803_v50, %v5466_v21 }
 0x2ae   : > { %v2249_v42 = vpop.f32.mrf.mxu1 }
 0x2af   : > { %v2250_v2 = vadd.f32 %v2249_v42, %v5474_v9 }
 0x2b1   : > { %v3855_v48 = vpop.f32.mrf.mxu0 }
 0x2b2   : > { %v3174_v55 = vadd.f32 %v3855_v48, %v2255_v18 }
 0x2b3   : > { %v3094_v29 = vpop.f32.mrf.mxu0 }
 0x2b4   : > { %3206 = vst.msk [vmem:[%s5566_s20 + $0xa8] sm:$0xff] %vm528_vm0, %v3174_v55  ;;  %v3173_v60 = vadd.f32 %v3094_v29, %v2250_v2  ;;  %v3309_v15 = vmul.f32 %v3174_v55, %v3174_v55  ;;  %v3258_v39 = vsel %vm528_vm0, %v3174_v55, 0.0 }
 0x2b6   : > { %3205 = vst.msk [vmem:[%s5566_s20 + $0xa0] sm:$0xff] %vm528_vm0, %v3173_v60  ;;  %v3256_v62 = vsel %vm528_vm0, %v3173_v60, 0.0  ;;  %v3308_v14 = vmul.f32 %v3173_v60, %v3173_v60  ;;  %v3361_v34 = vsel %vm528_vm0, %v3309_v15, 0.0 }
 0x2b7   : > { %v3257_v52 = vadd.f32 %v3256_v62, %v3255_v20 }
 0x2b8   : > { %v3359_v21 = vsel %vm528_vm0, %v3308_v14, 0.0 }
 0x2b9   : > { %v3360_v57 = vadd.f32 %v3359_v21, %v3358_v7  ;;  %v3259_v9 = vadd.f32 %v3258_v39, %v3257_v52 }
 0x2bb   : > { %v3362_v59 = vadd.f32 %v3361_v34, %v3360_v57 }
 0x2bc   : > { %v3806_v44 = vpop.f32.mrf.mxu1 }
 0x2bd   : > { %v2265_v10 = vadd.f32 %v3806_v44, %v5480_v30 }
 0x2be   : > { %v2259_v40 = vpop.f32.mrf.mxu1 }
 0x2bf   : > { %v2260_v58 = vadd.f32 %v2259_v40, %v5490_v4 }
 0x2c1   : > { %v3858_v5 = vpop.f32.mrf.mxu0 }
 0x2c2   : > { %v3176_v46 = vadd.f32 %v3858_v5, %v2265_v10 }
 0x2c3   : > { %v3104_v28 = vpop.f32.mrf.mxu0 }
 0x2c4   : > { %3208 = vst.msk [vmem:[%s5566_s20 + $0xb8] sm:$0xff] %vm528_vm0, %v3176_v46  ;;  %v3175_v61 = vadd.f32 %v3104_v28, %v2260_v58  ;;  %v3311_v38 = vmul.f32 %v3176_v46, %v3176_v46  ;;  %v3262_v20 = vsel %vm528_vm0, %v3176_v46, 0.0 }
 0x2c6   : > { %3207 = vst.msk [vmem:[%s5566_s20 + $0xb0] sm:$0xff] %vm528_vm0, %v3175_v61  ;;  %v3310_v0 = vmul.f32 %v3175_v61, %v3175_v61  ;;  %v3260_v8 = vsel %vm528_vm0, %v3175_v61, 0.0 }
 0x2cc   : > { %v3809_v37 = vpop.f32.mrf.mxu1 }
 0x2cd   : > { %v2275_v3 = vadd.f32 %v3809_v37, %v5494_v33 }
 0x2ce   : > { %v2269_v11 = vpop.f32.mrf.mxu1 }
 0x2cf   : > { %v2270_v30 = vadd.f32 %v2269_v11, %v5502_v13 }
 0x2d1   : > { %v3861_v12 = vpop.f32.mrf.mxu0 }
 0x2d2   : > { %v3178_v45 = vadd.f32 %v3861_v12, %v2275_v3 }
 0x2d3   : > { %v3114_v53 = vpop.f32.mrf.mxu0 }
 0x2d4   : > { %3210 = vst.msk [vmem:[%s5566_s20 + $0xc8] sm:$0xff] %vm528_vm0, %v3178_v45  ;;  %v3177_v4 = vadd.f32 %v3114_v53, %v2270_v30  ;;  %v3313_v18 = vmul.f32 %v3178_v45, %v3178_v45  ;;  %v3266_v55 = vsel %vm528_vm0, %v3178_v45, 0.0 }
 0x2d6   : > { %3209 = vst.msk [vmem:[%s5566_s20 + $0xc0] sm:$0xff] %vm528_vm0, %v3177_v4  ;;  %v3312_v24 = vmul.f32 %v3177_v4, %v3177_v4  ;;  %v3264_v22 = vsel %vm528_vm0, %v3177_v4, 0.0  ;;  %v3369_v15 = vsel %vm528_vm0, %v3313_v18, 0.0 }
 0x2d8   : > { %v3367_v50 = vsel %vm528_vm0, %v3312_v24, 0.0 }
 0x2dc   : > { %v3812_v35 = vpop.f32.mrf.mxu1 }
 0x2dd   : > { %v2285_v51 = vadd.f32 %v3812_v35, %v5509_v27  ;;  %v3363_v27 = vsel %vm528_vm0, %v3310_v0, 0.0 }
 0x2de   : > { %v2279_v31 = vpop.f32.mrf.mxu1  ;;  %v3364_v43 = vadd.f32 %v3363_v27, %v3362_v59 }
 0x2df   : > { %v2280_v17 = vadd.f32 %v2279_v31, %v5516_v49  ;;  %v3261_v49 = vadd.f32 %v3260_v8, %v3259_v9 }
 0x2e1   : > { %v3864_v32 = vpop.f32.mrf.mxu0  ;;  %v3263_v7 = vadd.f32 %v3262_v20, %v3261_v49 }
 0x2e2   : > { %v3180_v6 = vadd.f32 %v3864_v32, %v2285_v51 }
 0x2e3   : > { %v3124_v33 = vpop.f32.mrf.mxu0 }
 0x2e4   : > { %3212 = vst.msk [vmem:[%s5566_s20 + $0xd8] sm:$0xff] %vm528_vm0, %v3180_v6  ;;  %v3179_v54 = vadd.f32 %v3124_v33, %v2280_v17  ;;  %v3315_v21 = vmul.f32 %v3180_v6, %v3180_v6  ;;  %v3270_v34 = vsel %vm528_vm0, %v3180_v6, 0.0 }
 0x2e6   : > { %3211 = vst.msk [vmem:[%s5566_s20 + $0xd0] sm:$0xff] %vm528_vm0, %v3179_v54  ;;  %v3314_v48 = vmul.f32 %v3179_v54, %v3179_v54  ;;  %v3268_v29 = vsel %vm528_vm0, %v3179_v54, 0.0  ;;  %v3373_v10 = vsel %vm528_vm0, %v3315_v21, 0.0 }
 0x2e8   : > { %v3371_v62 = vsel %vm528_vm0, %v3314_v48, 0.0 }
 0x2ec   : > { %v3815_v13 = vpop.f32.mrf.mxu1 }
 0x2ed   : > { %v2295_v41 = vadd.f32 %v3815_v13, %v5523_v19  ;;  %v3365_v19 = vsel %vm528_vm0, %v3311_v38, 0.0 }
 0x2ee   : > { %v2289_v16 = vpop.f32.mrf.mxu1  ;;  %v3366_v42 = vadd.f32 %v3365_v19, %v3364_v43 }
 0x2ef   : > { %v2290_v47 = vadd.f32 %v2289_v16, %v5530_v25  ;;  %v3265_v25 = vadd.f32 %v3264_v22, %v3263_v7 }
 0x2f0   : > { %v3368_v2 = vadd.f32 %v3367_v50, %v3366_v42 }
 0x2f1   : > { %v3867_v23 = vpop.f32.mrf.mxu0  ;;  %v3267_v60 = vadd.f32 %v3266_v55, %v3265_v25 }
 0x2f2   : > { %v3182_v56 = vadd.f32 %v3867_v23, %v2295_v41  ;;  %v3370_v52 = vadd.f32 %v3369_v15, %v3368_v2 }
 0x2f3   : > { %v3134_v1 = vpop.f32.mrf.mxu0  ;;  %v3269_v14 = vadd.f32 %v3268_v29, %v3267_v60 }
 0x2f4   : > { %3214 = vst.msk [vmem:[%s5566_s20 + $0xe8] sm:$0xff] %vm528_vm0, %v3182_v56  ;;  %v3181_v63 = vadd.f32 %v3134_v1, %v2290_v47  ;;  %v3372_v9 = vadd.f32 %v3371_v62, %v3370_v52  ;;  %v3317_v37 = vmul.f32 %v3182_v56, %v3182_v56  ;;  %v3274_v45 = vsel %vm528_vm0, %v3182_v56, 0.0 }
 0x2f5   : > { %v3271_v44 = vadd.f32 %v3270_v34, %v3269_v14 }
 0x2f6   : > { %3213 = vst.msk [vmem:[%s5566_s20 + $0xe0] sm:$0xff] %vm528_vm0, %v3181_v63  ;;  %v3316_v57 = vmul.f32 %v3181_v63, %v3181_v63  ;;  %v3272_v59 = vsel %vm528_vm0, %v3181_v63, 0.0  ;;  %v3374_v28 = vadd.f32 %v3373_v10, %v3372_v9  ;;  %v3377_v35 = vsel %vm528_vm0, %v3317_v37, 0.0 }
 0x2f7   : > { %v3273_v46 = vadd.f32 %v3272_v59, %v3271_v44 }
 0x2f8   : > { %v3375_v5 = vsel %vm528_vm0, %v3316_v57, 0.0 }
 0x2f9   : > { %v3376_v12 = vadd.f32 %v3375_v5, %v3374_v28  ;;  %v3275_v4 = vadd.f32 %v3274_v45, %v3273_v46 }
 0x2fb   : > { %v3378_v17 = vadd.f32 %v3377_v35, %v3376_v12 }
 0x2fc   : > { %v3818_v39 = vpop.f32.mrf.mxu1 }
 0x2fd   : > { %v2305_v58 = vadd.f32 %v3818_v39, %v5537_v26 }
 0x2fe   : > { %v2299_v40 = vpop.f32.mrf.mxu1 }
 0x2ff   : > { %v2300_v11 = vadd.f32 %v2299_v40, %v5545_v36 }
 0x304   : > { %v3870_v61 = vpop.f32.mrf.mxu0 }
 0x305   : > { %v3184_v3 = vadd.f32 %v3870_v61, %v2305_v58 }
 0x306   : > { %v3144_v30 = vpop.f32.mrf.mxu0 }
 0x307   : > { %3216 = vst.msk [vmem:[%s5566_s20 + $0xf8] sm:$0xff] %vm528_vm0, %v3184_v3  ;;  %v3183_v53 = vadd.f32 %v3144_v30, %v2300_v11  ;;  %v3319_v31 = vmul.f32 %v3184_v3, %v3184_v3  ;;  %v3278_v36 = vsel %vm528_vm0, %v3184_v3, 0.0 }
 0x309   : > { %3215 = vst.msk [vmem:[%s5566_s20 + $0xf0] sm:$0xff] %vm528_vm0, %v3183_v53  ;;  %v3276_v26 = vsel %vm528_vm0, %v3183_v53, 0.0  ;;  %v3318_v51 = vmul.f32 %v3183_v53, %v3183_v53  ;;  %v3381_v13 = vsel %vm528_vm0, %v3319_v31, 0.0 }
 0x30a   : > { %v3277_v32 = vadd.f32 %v3276_v26, %v3275_v4 }
 0x30b   : > { %v3379_v6 = vsel %vm528_vm0, %v3318_v51, 0.0 }
 0x30c   : > { %v3279_v33 = vadd.f32 %v3278_v36, %v3277_v32  ;;  %v3380_v54 = vadd.f32 %v3379_v6, %v3378_v17 }
 0x30e   : > { %v3280_v0 = vrot.slane %v3279_v33, 4  ;;  %v3382_v8 = vadd.f32 %v3381_v13, %v3380_v54 }
 0x310   : > { %v3281_v16 = vadd.f32 %v3280_v0, %v3279_v33  ;;  %v3383_v41 = vrot.slane %v3382_v8, 4 }
 0x312   : > { %v3282_v27 = vrot.slane %v3281_v16, 2  ;;  %v3384_v23 = vadd.f32 %v3383_v41, %v3382_v8 }
 0x314   : > { %v3283_v49 = vadd.f32 %v3282_v27, %v3281_v16  ;;  %v3385_v47 = vrot.slane %v3384_v23, 2 }
 0x316   : > { %v3284_v56 = vrot.slane %v3283_v49, 1  ;;  %v3386_v38 = vadd.f32 %v3385_v47, %v3384_v23 }
 0x318   : > { %v3285_v24 = vadd.f32 %v3284_v56, %v3283_v49  ;;  %v3387_v1 = vrot.slane %v3386_v38, 1 }
 0x31a   : > { %3287 = vst.msk [vmem:[%s319_s22] sm:$0x1] %vm3286_vm7, %v3285_v24  ;;  %v3388_v43 = vadd.f32 %v3387_v1, %v3386_v38 }
 0x31c   : > { %3389 = vst.msk [vmem:[%s322_s25] sm:$0x1] %vm3286_vm7, %v3388_v43 }
 0x31d PF: > { %s19_s27 = sadd.s32 1, %s3917_s27  }
 0x31e   : > { %p16_p4 = scmp.ge.s32.totalorder %s19_s27, 4  }
 0x320   :  { %18 = sbr.rel (!%p16_p4) target bundleno = 1 (0x1), region = 102 }

// kernel: up_forward.3
= control target key start
LH: loop header
LB: loop body
LE: loop exit
PB: predicated region body
PF: predicated region fallthrough
CT: control target
= control target key end

     0   :  { %s7981_s27 = smov 0   ;;  %s12156_s0 = inlined_call_operand.vmem [shape: f32[2,16,16,4], index: 0, kind: input, shape index: {}]   ;;  %s12157_s1 = inlined_call_operand.vmem [shape: f32[2,8,8,4], index: 1, kind: input, shape index: {}]   ;;  %s12158_s2 = inlined_call_operand.vmem [shape: f32[32,64], index: 2, kind: input, shape index: {}]   ;;  %s12159_s3 = inlined_call_operand.vmem [shape: f32[16,8], index: 3, kind: input, shape index: {}]   ;;  %s12160_s4 = inlined_call_operand.vmem [shape: f32[3,3,4,4], index: 4, kind: input, shape index: {}]   ;;  %s12161_s5 = inlined_call_operand.vmem [shape: f32[3,3,4,4], index: 5, kind: input, shape index: {}]   ;;  %s12162_s6 = inlined_call_operand.vmem [shape: f32[2,16,16,4], index: 6, kind: output, shape index: {0}]   ;;  %s12163_s7 = inlined_call_operand.vmem [shape: f32[2,1,4], index: 7, kind: output, shape index: {1}]   ;;  %s12164_s8 = inlined_call_operand.vmem [shape: f32[2,1,4], index: 8, kind: output, shape index: {2}]  }
   0x1 LB: > { %s7018_s28 = sadd.s32 4294967295, %s7908_s27   ;;  %p7022_p0 = scmp.ge.s32.totalorder %s7908_s27, 1  ;;  %s7908_s27 = sphi %s7981_s27, %s19_s27  }
   0x2   : > { %p277_p1 = scmp.lt.s32.totalorder %s7908_s27, 3 }
   0x4   : > { %p278_p2 = pnand %p7022_p0, %p277_p1 }
   0x6   : > { %281 = sbr.rel (%p278_p2) target bundleno = 1481 (0x5c9), region = 44 }
   0xb   : > { %vm515_vm0 = vcmask 31744   ;;  %vm692_vm1 = vcmask 25600   ;;  %p7991_p3 = scmp.lt.s32.totalorder %s7018_s28, 1  ;;  %v7910_v0 = vmov 0.0   ;;  %v356_v1 = vlaneseq  ;;  %s7913_s16 = smov 4  }
   0xc   : > { %691 = vst.msk [vmem:[#allocation2 + $0x8] sm:$0xff] %vm515_vm0, %v7910_v0  ;;  %690 = vst.msk [vmem:[#allocation2] sm:$0xff] %vm515_vm0, %v7910_v0  ;;  %7459 = vmatprep.subr.mxu0 %v7910_v0  ;;  %v7911_v2 = vmov 1983009808   ;;  %v7912_v5 = vmov 1934713408  }
   0xd   : > { %693 = vst.msk [vmem:[#allocation2 + $0x10] sm:$0x3] %vm692_vm1, %v7910_v0  ;;  %696 = vst.msk [vmem:[#allocation2 + $0x28] sm:$0x3] %vm692_vm1, %v7910_v0  ;;  %s12657_s28 = smov (!%p7991_p3, %s7018_s28), 1  ;;  %v354_v3 = vunpack.c.l.s4 %v7911_v2  ;;  %v357_v4 = vshrl.u32 %v356_v1, 7  ;;  %v418_v6 = vunpack.c.l.s4 %v7912_v5 }
   0xe   : > { %694 = vst.msk [vmem:[#allocation2 + $0x18] sm:$0xff] %vm515_vm0, %v7910_v0  ;;  %695 = vst.msk [vmem:[#allocation2 + $0x20] sm:$0xff] %vm515_vm0, %v7910_v0  ;;  %s7245_s30 = sshll.u32 %s12657_s28, 6  ;;  %s7244_s9 = sshll.u32 %s12657_s28, 8  ;;  %vm1629_vm2 = vcmask 1046528   ;;  %vm7920_vm3 = vmmov 0  }
   0xf   : > { %697 = vst.msk [vmem:[#allocation2 + $0x30] sm:$0xff] %vm515_vm0, %v7910_v0  ;;  %698 = vst.msk [vmem:[#allocation2 + $0x38] sm:$0xff] %vm515_vm0, %v7910_v0  ;;  %v355_v7 = vunpack.c.0.s8 %v354_v3  ;;  %s331_s12 = scalar_lea.vmem %s12157_s1, %s7245_s30  ;;  %s8228_s15 = scalar_lea.vmem %s12156_s0, %s7244_s9  ;;  %v419_v8 = vunpack.c.0.s8 %v418_v6  ;;  %7467 = vmatprep.mubr.msk.f32.mxu0 %vm7920_vm3, %v7910_v0  ;;  %vm2667_vm4 = vcmask 1043456   ;;  %vm1806_vm5 = vcmask 1045504  }
  0x10   : > { %699 = vst.msk [vmem:[#allocation2 + $0x40] sm:$0x3] %vm692_vm1, %v7910_v0  ;;  %702 = vst.msk [vmem:[#allocation2 + $0x58] sm:$0x3] %vm692_vm1, %v7910_v0  ;;  %v745_v16 = vld [vmem:[%s8228_s15] sm:$0xff]  ;;  %v746_v34 = vld [vmem:[%s8228_s15 + $0x8] sm:$0xff] }
  0x11   : > { %700 = vst.msk [vmem:[#allocation2 + $0x48] sm:$0xff] %vm515_vm0, %v7910_v0  ;;  %701 = vst.msk [vmem:[#allocation2 + $0x50] sm:$0xff] %vm515_vm0, %v7910_v0  ;;  %v8236_v12 = vsub.s32 %v355_v7, %v357_v4  ;;  %v7821_v17 = vld [vmem:[%s331_s12] ss:$16 sps:$4 sm:$0xff]   ;;  %v7823_v18 = vld [vmem:[%s331_s12 + $0x8] ss:$16 sps:$4 sm:$0xff]   ;;  %v8245_v23 = vsub.s32 %v419_v8, %v357_v4 }
  0x12   : > { %703 = vst.msk [vmem:[#allocation2 + $0x60] sm:$0xff] %vm515_vm0, %v7910_v0  ;;  %704 = vst.msk [vmem:[#allocation2 + $0x68] sm:$0xff] %vm515_vm0, %v7910_v0  ;;  %v7825_v19 = vld [vmem:[%s331_s12 + $0x20] ss:$16 sps:$4 sm:$0xff]   ;;  %v7827_v22 = vld [vmem:[%s331_s12 + $0x28] ss:$16 sps:$4 sm:$0xff]  }
  0x13   : > { %705 = vst.msk [vmem:[#allocation2 + $0x70] sm:$0x3] %vm692_vm1, %v7910_v0  ;;  %708 = vst.msk [vmem:[#allocation2 + $0x88] sm:$0x3] %vm692_vm1, %v7910_v0  ;;  %v8230_v9 = vld [vmem:[#allocation2 + $0x8] sm:$0xff]  ;;  %v8234_v11 = vld [vmem:[#allocation2] sm:$0xff]  ;;  %v359_v26 = vrot.slane %v7821_v17, %v8236_v12  ;;  %v375_v27 = vrot.slane %v7823_v18, %v8236_v12  ;;  %v391_v28 = vrot.slane %v7825_v19, %v8236_v12 }
  0x14   : > { %706 = vst.msk [vmem:[#allocation2 + $0x78] sm:$0xff] %vm515_vm0, %v7910_v0  ;;  %707 = vst.msk [vmem:[#allocation2 + $0x80] sm:$0xff] %vm515_vm0, %v7910_v0  ;;  %v8232_v10 = vld [vmem:[#allocation2 + $0x10] sm:$0x3]  ;;  %v1631_v13 = vrot.slane %v8230_v9, 1  ;;  %v1630_v15 = vrot.slane %v8234_v11, 1  ;;  %v407_v31 = vrot.slane %v7827_v22, %v8236_v12 }
  0x15   : > { %709 = vst.msk [vmem:[#allocation2 + $0x90] sm:$0xff] %vm515_vm0, %v7910_v0  ;;  %710 = vst.msk [vmem:[#allocation2 + $0x98] sm:$0xff] %vm515_vm0, %v7910_v0  ;;  %v1633_v14 = vrot.slane %v8232_v10, 1  ;;  %v7829_v24 = vld [vmem:[%s331_s12 + $0x4] ss:$16 sps:$4 sm:$0xff]   ;;  %v748_v36 = vld [vmem:[%s8228_s15 + $0x18] sm:$0xff]  ;;  %v416_v37 = vcombine.high %v359_v26, %v375_v27  ;;  %v415_v38 = vcombine.low %v359_v26, %v375_v27 }
  0x16   : > { %711 = vst.msk [vmem:[#allocation2 + $0xa0] sm:$0x3] %vm692_vm1, %v7910_v0  ;;  %714 = vst.msk [vmem:[#allocation2 + $0xb8] sm:$0x3] %vm692_vm1, %v7910_v0  ;;  %v1632_v21 = vsel %vm1629_vm2, %v1630_v15, %v1631_v13  ;;  %v7830_v25 = vld [vmem:[%s331_s12 + $0xc] ss:$16 sps:$4 sm:$0xff]   ;;  %v366_v32 = vrot.slane %v7829_v24, %v8236_v12  ;;  %v448_v44 = vcombine.high %v391_v28, %v407_v31 }
  0x17   : > { %712 = vst.msk [vmem:[#allocation2 + $0xa8] sm:$0xff] %vm515_vm0, %v7910_v0  ;;  %713 = vst.msk [vmem:[#allocation2 + $0xb0] sm:$0xff] %vm515_vm0, %v7910_v0  ;;  %v1634_v20 = vsel %vm1629_vm2, %v1631_v13, %v1633_v14  ;;  %1710 = vrot.lane.b32.xlu1 %v1632_v21, %s7913_s16  ;;  %v7831_v29 = vld [vmem:[%s331_s12 + $0x24] ss:$16 sps:$4 sm:$0xff]   ;;  %v7832_v30 = vld [vmem:[%s331_s12 + $0x2c] ss:$16 sps:$4 sm:$0xff]   ;;  %v382_v33 = vrot.slane %v7830_v25, %v8236_v12  ;;  %v447_v45 = vcombine.low %v391_v28, %v407_v31 }
  0x18   : > { %715 = vst.msk [vmem:[#allocation2 + $0xc0] sm:$0xff] %vm515_vm0, %v7910_v0  ;;  %716 = vst.msk [vmem:[#allocation2 + $0xc8] sm:$0xff] %vm515_vm0, %v7910_v0  ;;  %1712 = vrot.lane.b32.xlu0 %v1634_v20, %s7913_s16  ;;  %v747_v35 = vld [vmem:[%s8228_s15 + $0x10] sm:$0xff]  ;;  %v398_v39 = vrot.slane %v7831_v29, %v8236_v12  ;;  %v414_v40 = vrot.slane %v7832_v30, %v8236_v12  ;;  %v749_v41 = vld [vmem:[%s8228_s15 + $0x20] sm:$0xff]  ;;  %v430_v51 = vrot.slane %v416_v37, %v8245_v23  ;;  %s7914_s17 = smov 12   ;;  %s7915_s18 = smov 16  }
  0x19   : > { %717 = vst.msk [vmem:[#allocation2 + $0xd0] sm:$0x3] %vm692_vm1, %v7910_v0  ;;  %720 = vst.msk [vmem:[#allocation2 + $0xe8] sm:$0x3] %vm692_vm1, %v7910_v0  ;;  %v750_v42 = vld [vmem:[%s8228_s15 + $0x28] sm:$0xff]  ;;  %v751_v43 = vld [vmem:[%s8228_s15 + $0x30] sm:$0xff]  ;;  %v431_v46 = vcombine.low %v366_v32, %v382_v33  ;;  %v432_v47 = vcombine.high %v366_v32, %v382_v33  ;;  %v8274_v52 = vrot.slane %v415_v38, %v8245_v23 }
  0x1a   : > { %718 = vst.msk [vmem:[#allocation2 + $0xd8] sm:$0xff] %vm515_vm0, %v7910_v0  ;;  %719 = vst.msk [vmem:[#allocation2 + $0xe0] sm:$0xff] %vm515_vm0, %v7910_v0  ;;  %v752_v48 = vld [vmem:[%s8228_s15 + $0x38] sm:$0xff]  ;;  %v753_v49 = vld [vmem:[%s8228_s15 + $0x40] sm:$0xff]  ;;  %v463_v53 = vcombine.low %v398_v39, %v414_v40  ;;  %v464_v54 = vcombine.high %v398_v39, %v414_v40  ;;  %v462_v58 = vrot.slane %v448_v44, %v8245_v23  ;;  %s7916_s19 = smov 8   ;;  %s7917_s20 = smov 24  }
  0x1b   : > { %721 = vst.msk [vmem:[#allocation2 + $0xf0] sm:$0xff] %vm515_vm0, %v7910_v0  ;;  %722 = vst.msk [vmem:[#allocation2 + $0xf8] sm:$0xff] %vm515_vm0, %v7910_v0  ;;  %v754_v50 = vld [vmem:[%s8228_s15 + $0x48] sm:$0xff]  ;;  %v755_v55 = vld [vmem:[%s8228_s15 + $0x50] sm:$0xff]  ;;  %v8284_v59 = vrot.slane %v447_v45, %v8245_v23  ;;  %v439_v60 = vrot.slane %v431_v46, %v8245_v23  ;;  %v446_v13 = vrot.slane %v432_v47, %v8245_v23  ;;  %s7918_s21 = smov 20   ;;  %s7919_s22 = smov 28  }
  0x1c   : > { %723 = vst.msk [vmem:[#allocation2 + $0x100] sm:$0x3] %vm692_vm1, %v7910_v0  ;;  %726 = vst.msk [vmem:[#allocation2 + $0x118] sm:$0x3] %vm692_vm1, %v7910_v0  ;;  %v756_v56 = vld [vmem:[%s8228_s15 + $0x58] sm:$0xff]  ;;  %v757_v57 = vld [vmem:[%s8228_s15 + $0x60] sm:$0xff]  ;;  %v471_v63 = vrot.slane %v463_v53, %v8245_v23  ;;  %v482_v4 = vcombine.high %v430_v51, %v462_v58  ;;  %v478_v14 = vrot.slane %v464_v54, %v8245_v23 }
  0x1d   : > { %724 = vst.msk [vmem:[#allocation2 + $0x108] sm:$0xff] %vm515_vm0, %v7910_v0  ;;  %725 = vst.msk [vmem:[#allocation2 + $0x110] sm:$0xff] %vm515_vm0, %v7910_v0  ;;  %v758_v61 = vld [vmem:[%s8228_s15 + $0x68] sm:$0xff]  ;;  %v759_v62 = vld [vmem:[%s8228_s15 + $0x70] sm:$0xff]  ;;  %v480_v5 = vcombine.high %v8274_v52, %v8284_v59  ;;  %v481_v19 = vcombine.low %v430_v51, %v462_v58  ;;  %vm517_vm6 = vcmask 64512   ;;  %vm519_vm7 = vcmask 97280  }
  0x1e   : > { %727 = vst.msk [vmem:[#allocation2 + $0x120] sm:$0xff] %vm515_vm0, %v7910_v0  ;;  %728 = vst.msk [vmem:[#allocation2 + $0x128] sm:$0xff] %vm515_vm0, %v7910_v0  ;;  %v760_v1 = vld [vmem:[%s8228_s15 + $0x78] sm:$0xff]  ;;  %v761_v2 = vld [vmem:[%s8228_s15 + $0x80] sm:$0xff]  ;;  %496 = vrot.lane.b32.xlu1 %v482_v4, %s7914_s17  ;;  %v483_v18 = vcombine.low %v439_v60, %v471_v63  ;;  %v485_v24 = vcombine.low %v446_v13, %v478_v14  ;;  %v484_v25 = vcombine.high %v439_v60, %v471_v63  ;;  %vm521_vm8 = vcmask 130048   ;;  %s7922_s17 = smov 120  }
  0x1f   : > { %729 = vst.msk [vmem:[#allocation2 + $0x130] sm:$0x3] %vm692_vm1, %v7910_v0  ;;  %732 = vst.msk [vmem:[#allocation2 + $0x148] sm:$0x3] %vm692_vm1, %v7910_v0  ;;  %v762_v3 = vld [vmem:[%s8228_s15 + $0x88] sm:$0xff]  ;;  %v763_v6 = vld [vmem:[%s8228_s15 + $0x90] sm:$0xff]  ;;  %488 = vrot.lane.b32.xlu0 %v480_v5, %s7913_s16  ;;  %v486_v31 = vcombine.high %v446_v13, %v478_v14 }
  0x20   : > { %730 = vst.msk [vmem:[#allocation2 + $0x138] sm:$0xff] %vm515_vm0, %v7910_v0  ;;  %731 = vst.msk [vmem:[#allocation2 + $0x140] sm:$0xff] %vm515_vm0, %v7910_v0  ;;  %v764_v7 = vld [vmem:[%s8228_s15 + $0x98] sm:$0xff]  ;;  %v765_v8 = vld [vmem:[%s8228_s15 + $0xa0] sm:$0xff]  ;;  %vm523_vm9 = vcmask 162816   ;;  %vm525_vm10 = vcmask 195584  }
  0x21   : > { %733 = vst.msk [vmem:[#allocation2 + $0x150] sm:$0xff] %vm515_vm0, %v7910_v0  ;;  %734 = vst.msk [vmem:[#allocation2 + $0x158] sm:$0xff] %vm515_vm0, %v7910_v0  ;;  %v766_v15 = vld [vmem:[%s8228_s15 + $0xa8] sm:$0xff]  ;;  %v768_v17 = vld [vmem:[%s8228_s15 + $0xb8] sm:$0xff]  ;;  %vm527_vm11 = vcmask 228352   ;;  %vm533_vm12 = vcmask 261120  }
  0x22   : > { %735 = vst.msk [vmem:[#allocation2 + $0x160] sm:$0x3] %vm692_vm1, %v7910_v0  ;;  %738 = vst.msk [vmem:[#allocation2 + $0x178] sm:$0x3] %vm692_vm1, %v7910_v0  ;;  %500 = vrot.lane.b32.xlu1 %v483_v18, %s7915_s18  ;;  %v769_v47 = vld [vmem:[%s8228_s15 + $0xc0] sm:$0xff]  ;;  %v774_v53 = vld [vmem:[%s8228_s15 + $0xe8] sm:$0xff] }
  0x23   : > { %736 = vst.msk [vmem:[#allocation2 + $0x168] sm:$0xff] %vm515_vm0, %v7910_v0  ;;  %737 = vst.msk [vmem:[#allocation2 + $0x170] sm:$0xff] %vm515_vm0, %v7910_v0  ;;  %492 = vrot.lane.b32.xlu0 %v481_v19, %s7916_s19  ;;  %v773_v51 = vld [vmem:[%s8228_s15 + $0xe0] sm:$0xff]  ;;  %v532_v54 = vld [vmem:[%s12158_s2 + $0x18] sm:$0xff]  ;;  %s7923_s18 = smov 116   ;;  %s7927_s23 = smov 100  }
  0x24   : > { %739 = vst.msk [vmem:[#allocation2 + $0x180] sm:$0xff] %vm515_vm0, %v7910_v0  ;;  %740 = vst.msk [vmem:[#allocation2 + $0x188] sm:$0xff] %vm515_vm0, %v7910_v0  ;;  %7460 = vmatpush3.msra.mxu0 %v532_v54  ;;  %s7928_s24 = smov 96   ;;  %s7929_s25 = smov 92   ;;  %vm6797_vm13 = vcmask 24576  }
  0x25   : > { %741 = vst.msk [vmem:[#allocation2 + $0x190] sm:$0x3] %vm692_vm1, %v7910_v0  ;;  %744 = vst.msk [vmem:[#allocation2 + $0x1a8] sm:$0x3] %vm692_vm1, %v7910_v0  ;;  %7461 = vmatprep.subr.mxu0 %v7910_v0  ;;  %s7930_s26 = smov 88   ;;  %s7931_s29 = smov 84  }
  0x26   : > { %742 = vst.msk [vmem:[#allocation2 + $0x198] sm:$0xff] %vm515_vm0, %v7910_v0  ;;  %743 = vst.msk [vmem:[#allocation2 + $0x1a0] sm:$0xff] %vm515_vm0, %v7910_v0  ;;  %508 = vrot.lane.b32.xlu1 %v485_v24, %s7917_s20  ;;  %s7924_s20 = smov 112   ;;  %s7932_s30 = smov 80  }
  0x27   : > { %810 = vst.msk [vmem:[#allocation3] sm:$0xff] %vm515_vm0, %v7910_v0  ;;  %811 = vst.msk [vmem:[#allocation3 + $0x8] sm:$0xff] %vm515_vm0, %v7910_v0  ;;  %504 = vrot.lane.b32.xlu0 %v484_v25, %s7918_s21  ;;  %s7925_s21 = smov 108   ;;  %s7933_s10 = smov 76  }
  0x28   : > { %812 = vst.msk [vmem:[#allocation3 + $0x10] sm:$0x3] %vm692_vm1, %v7910_v0  ;;  %815 = vst.msk [vmem:[#allocation3 + $0x28] sm:$0x3] %vm692_vm1, %v7910_v0  ;;  %s7934_s11 = smov 72   ;;  %s7935_s12 = smov 68  }
  0x29   : > { %813 = vst.msk [vmem:[#allocation3 + $0x18] sm:$0xff] %vm515_vm0, %v7910_v0  ;;  %814 = vst.msk [vmem:[#allocation3 + $0x20] sm:$0xff] %vm515_vm0, %v7910_v0 }
  0x2a   : > { %816 = vst.msk [vmem:[#allocation3 + $0x30] sm:$0xff] %vm515_vm0, %v7910_v0  ;;  %817 = vst.msk [vmem:[#allocation3 + $0x38] sm:$0xff] %vm515_vm0, %v7910_v0 }
  0x2b   : > { %818 = vst.msk [vmem:[#allocation3 + $0x40] sm:$0x3] %vm692_vm1, %v7910_v0  ;;  %821 = vst.msk [vmem:[#allocation3 + $0x58] sm:$0x3] %vm692_vm1, %v7910_v0  ;;  %512 = vrot.lane.b32.xlu0 %v486_v31, %s7919_s22  ;;  %s7926_s22 = smov 104  }
  0x2c   : > { %819 = vst.msk [vmem:[#allocation3 + $0x48] sm:$0xff] %vm515_vm0, %v7910_v0  ;;  %820 = vst.msk [vmem:[#allocation3 + $0x50] sm:$0xff] %vm515_vm0, %v7910_v0 }
  0x2d   : > { %822 = vst.msk [vmem:[#allocation3 + $0x60] sm:$0xff] %vm515_vm0, %v7910_v0  ;;  %823 = vst.msk [vmem:[#allocation3 + $0x68] sm:$0xff] %vm515_vm0, %v7910_v0 }
  0x2e   : > { %824 = vst.msk [vmem:[#allocation3 + $0x70] sm:$0x3] %vm692_vm1, %v7910_v0  ;;  %827 = vst.msk [vmem:[#allocation3 + $0x88] sm:$0x3] %vm692_vm1, %v7910_v0 }
  0x2f   : > { %825 = vst.msk [vmem:[#allocation3 + $0x78] sm:$0xff] %vm515_vm0, %v7910_v0  ;;  %826 = vst.msk [vmem:[#allocation3 + $0x80] sm:$0xff] %vm515_vm0, %v7910_v0 }
  0x30   : > { %828 = vst.msk [vmem:[#allocation3 + $0x90] sm:$0xff] %vm515_vm0, %v7910_v0  ;;  %829 = vst.msk [vmem:[#allocation3 + $0x98] sm:$0xff] %vm515_vm0, %v7910_v0 }
  0x31   : > { %830 = vst.msk [vmem:[#allocation3 + $0xa0] sm:$0x3] %vm692_vm1, %v7910_v0  ;;  %833 = vst.msk [vmem:[#allocation3 + $0xb8] sm:$0x3] %vm692_vm1, %v7910_v0 }
  0x32   : > { %831 = vst.msk [vmem:[#allocation3 + $0xa8] sm:$0xff] %vm515_vm0, %v7910_v0  ;;  %832 = vst.msk [vmem:[#allocation3 + $0xb0] sm:$0xff] %vm515_vm0, %v7910_v0 }
  0x33   : > { %834 = vst.msk [vmem:[#allocation3 + $0xc0] sm:$0xff] %vm515_vm0, %v7910_v0  ;;  %835 = vst.msk [vmem:[#allocation3 + $0xc8] sm:$0xff] %vm515_vm0, %v7910_v0 }
  0x34   : > { %836 = vst.msk [vmem:[#allocation3 + $0xd0] sm:$0x3] %vm692_vm1, %v7910_v0  ;;  %839 = vst.msk [vmem:[#allocation3 + $0xe8] sm:$0x3] %vm692_vm1, %v7910_v0 }
  0x35   : > { %837 = vst.msk [vmem:[#allocation3 + $0xd8] sm:$0xff] %vm515_vm0, %v7910_v0  ;;  %838 = vst.msk [vmem:[#allocation3 + $0xe0] sm:$0xff] %vm515_vm0, %v7910_v0 }
  0x36   : > { %840 = vst.msk [vmem:[#allocation3 + $0xf0] sm:$0xff] %vm515_vm0, %v7910_v0  ;;  %841 = vst.msk [vmem:[#allocation3 + $0xf8] sm:$0xff] %vm515_vm0, %v7910_v0 }
  0x37   : > { %842 = vst.msk [vmem:[#allocation3 + $0x100] sm:$0x3] %vm692_vm1, %v7910_v0  ;;  %845 = vst.msk [vmem:[#allocation3 + $0x118] sm:$0x3] %vm692_vm1, %v7910_v0 }
  0x38   : > { %843 = vst.msk [vmem:[#allocation3 + $0x108] sm:$0xff] %vm515_vm0, %v7910_v0  ;;  %844 = vst.msk [vmem:[#allocation3 + $0x110] sm:$0xff] %vm515_vm0, %v7910_v0 }
  0x39   : > { %846 = vst.msk [vmem:[#allocation3 + $0x120] sm:$0xff] %vm515_vm0, %v7910_v0  ;;  %847 = vst.msk [vmem:[#allocation3 + $0x128] sm:$0xff] %vm515_vm0, %v7910_v0 }
  0x3a   : > { %848 = vst.msk [vmem:[#allocation3 + $0x130] sm:$0x3] %vm692_vm1, %v7910_v0  ;;  %851 = vst.msk [vmem:[#allocation3 + $0x148] sm:$0x3] %vm692_vm1, %v7910_v0 }
  0x3b   : > { %849 = vst.msk [vmem:[#allocation3 + $0x138] sm:$0xff] %vm515_vm0, %v7910_v0  ;;  %850 = vst.msk [vmem:[#allocation3 + $0x140] sm:$0xff] %vm515_vm0, %v7910_v0 }
  0x3c   : > { %852 = vst.msk [vmem:[#allocation3 + $0x150] sm:$0xff] %vm515_vm0, %v7910_v0  ;;  %853 = vst.msk [vmem:[#allocation3 + $0x158] sm:$0xff] %vm515_vm0, %v7910_v0 }
  0x3d   : > { %854 = vst.msk [vmem:[#allocation3 + $0x160] sm:$0x3] %vm692_vm1, %v7910_v0  ;;  %857 = vst.msk [vmem:[#allocation3 + $0x178] sm:$0x3] %vm692_vm1, %v7910_v0 }
  0x3e   : > { %855 = vst.msk [vmem:[#allocation3 + $0x168] sm:$0xff] %vm515_vm0, %v7910_v0  ;;  %856 = vst.msk [vmem:[#allocation3 + $0x170] sm:$0xff] %vm515_vm0, %v7910_v0 }
  0x3f   : > { %858 = vst.msk [vmem:[#allocation3 + $0x180] sm:$0xff] %vm515_vm0, %v7910_v0  ;;  %859 = vst.msk [vmem:[#allocation3 + $0x188] sm:$0xff] %vm515_vm0, %v7910_v0 }
  0x40   : > { %860 = vst.msk [vmem:[#allocation3 + $0x190] sm:$0x3] %vm692_vm1, %v7910_v0  ;;  %863 = vst.msk [vmem:[#allocation3 + $0x1a8] sm:$0x3] %vm692_vm1, %v7910_v0 }
  0x41   : > { %861 = vst.msk [vmem:[#allocation3 + $0x198] sm:$0xff] %vm515_vm0, %v7910_v0  ;;  %862 = vst.msk [vmem:[#allocation3 + $0x1a0] sm:$0xff] %vm515_vm0, %v7910_v0 }
  0x42   : > { %12281 = vst [vmem:[#allocation4_spill] sm:$0xff] %v8236_v12  ;;  %778 = vst.msk [vmem:[#allocation2 + $0x19] sm:$0xff] %vm515_vm0, %v745_v16  ;;  %v767_v16 = vld [vmem:[%s8228_s15 + $0xb0] sm:$0xff] }
  0x43   : > { %12282 = vst [vmem:[#allocation5_spill] sm:$0xff] %v8245_v23  ;;  %779 = vst.msk [vmem:[#allocation2 + $0x21] sm:$0xff] %vm515_vm0, %v746_v34 }
  0x44   : > { %780 = vst.msk [vmem:[#allocation2 + $0x31] sm:$0xff] %vm515_vm0, %v747_v35  ;;  %781 = vst.msk [vmem:[#allocation2 + $0x39] sm:$0xff] %vm515_vm0, %v748_v36 }
  0x45   : > { %782 = vst.msk [vmem:[#allocation2 + $0x49] sm:$0xff] %vm515_vm0, %v749_v41  ;;  %783 = vst.msk [vmem:[#allocation2 + $0x51] sm:$0xff] %vm515_vm0, %v750_v42 }
  0x46   : > { %784 = vst.msk [vmem:[#allocation2 + $0x61] sm:$0xff] %vm515_vm0, %v751_v43  ;;  %785 = vst.msk [vmem:[#allocation2 + $0x69] sm:$0xff] %vm515_vm0, %v752_v48  ;;  %v770_v48 = vld [vmem:[%s8228_s15 + $0xc8] sm:$0xff] }
  0x47   : > { %786 = vst.msk [vmem:[#allocation2 + $0x79] sm:$0xff] %vm515_vm0, %v753_v49  ;;  %787 = vst.msk [vmem:[#allocation2 + $0x81] sm:$0xff] %vm515_vm0, %v754_v50  ;;  %v771_v49 = vld [vmem:[%s8228_s15 + $0xd0] sm:$0xff]  ;;  %v772_v50 = vld [vmem:[%s8228_s15 + $0xd8] sm:$0xff] }
  0x48   : > { %788 = vst.msk [vmem:[#allocation2 + $0x91] sm:$0xff] %vm515_vm0, %v755_v55  ;;  %789 = vst.msk [vmem:[#allocation2 + $0x99] sm:$0xff] %vm515_vm0, %v756_v56  ;;  %v531_v56 = vld [vmem:[%s12158_s2 + $0x10] sm:$0xff] }
  0x49   : > { %790 = vst.msk [vmem:[#allocation2 + $0xa9] sm:$0xff] %vm515_vm0, %v757_v57  ;;  %791 = vst.msk [vmem:[#allocation2 + $0xb1] sm:$0xff] %vm515_vm0, %v758_v61  ;;  %v8320_v21 = vld [vmem:[#allocation2 + $0x18] sm:$0xff]  ;;  %7462 = vmatpush3.msra.mxu0 %v531_v56 }
  0x4a   : > { %792 = vst.msk [vmem:[#allocation2 + $0xc1] sm:$0xff] %vm515_vm0, %v759_v62  ;;  %793 = vst.msk [vmem:[#allocation2 + $0xc9] sm:$0xff] %vm515_vm0, %v760_v1  ;;  %v8322_v22 = vld [vmem:[#allocation2 + $0x20] sm:$0xff]  ;;  %v1635_v26 = vrot.slane %v8320_v21, 1  ;;  %v8329_v28 = vld [vmem:[#allocation2 + $0x28] sm:$0x3]  ;;  %7463 = vmatprep.subr.mxu0 %v7910_v0 }
  0x4b   : > { %794 = vst.msk [vmem:[#allocation2 + $0xd9] sm:$0xff] %vm515_vm0, %v761_v2  ;;  %795 = vst.msk [vmem:[#allocation2 + $0xe1] sm:$0xff] %vm515_vm0, %v762_v3  ;;  %v8327_v27 = vrot.slane %v8322_v22, 1  ;;  %v8331_v29 = vld [vmem:[#allocation2 + $0x30] sm:$0xff]  ;;  %v8333_v30 = vld [vmem:[#allocation2 + $0x38] sm:$0xff]  ;;  %v1638_v33 = vrot.slane %v8329_v28, 1 }
  0x4c   : > { %796 = vst.msk [vmem:[#allocation2 + $0xf1] sm:$0xff] %vm515_vm0, %v763_v6  ;;  %797 = vst.msk [vmem:[#allocation2 + $0xf9] sm:$0xff] %vm515_vm0, %v764_v7  ;;  %v1640_v34 = vrot.slane %v8331_v29, 1  ;;  %v8342_v35 = vrot.slane %v8333_v30, 1  ;;  %v8344_v36 = vld [vmem:[#allocation2 + $0x40] sm:$0x3] }
  0x4d   : > { %798 = vst.msk [vmem:[#allocation2 + $0x109] sm:$0xff] %vm515_vm0, %v765_v8  ;;  %799 = vst.msk [vmem:[#allocation2 + $0x111] sm:$0xff] %vm515_vm0, %v766_v15  ;;  %v8337_v32 = vsel %vm1629_vm2, %v1635_v26, %v8327_v27  ;;  %v8346_v37 = vld [vmem:[#allocation2 + $0x48] sm:$0xff]  ;;  %v8348_v38 = vld [vmem:[#allocation2 + $0x50] sm:$0xff]  ;;  %v1643_v39 = vrot.slane %v8344_v36, 1  ;;  %v1639_v43 = vsel %vm1629_vm2, %v8327_v27, %v1638_v33 }
  0x4e   : > { %800 = vst.msk [vmem:[#allocation2 + $0x121] sm:$0xff] %vm515_vm0, %v767_v16  ;;  %801 = vst.msk [vmem:[#allocation2 + $0x129] sm:$0xff] %vm515_vm0, %v768_v17  ;;  %1714 = vrot.lane.b32.xlu1 %v8337_v32, %s7913_s16  ;;  %v8353_v40 = vld [vmem:[#allocation2 + $0x58] sm:$0x3]  ;;  %v8355_v41 = vld [vmem:[#allocation2 + $0x60] sm:$0xff]  ;;  %v8363_v44 = vsel %vm1629_vm2, %v1640_v34, %v8342_v35  ;;  %v1645_v45 = vrot.slane %v8346_v37, 1  ;;  %1716 = vrot.lane.b32.xlu0 %v1639_v43, %s7913_s16 }
  0x4f   : > { %12283 = vst [vmem:[#allocation6_spill] sm:$0xff] %v8322_v22  ;;  %12284 = vst [vmem:[#allocation7_spill] sm:$0xff] %v8342_v35  ;;  %v8357_v42 = vld [vmem:[#allocation2 + $0x68] sm:$0xff]  ;;  %v8367_v46 = vrot.slane %v8348_v38, 1  ;;  %v1644_v55 = vsel %vm1629_vm2, %v8342_v35, %v1643_v39  ;;  %v1648_v58 = vrot.slane %v8353_v40, 1  ;;  %v1650_v60 = vrot.slane %v8355_v41, 1 }
  0x50   : > { %12285 = vst [vmem:[#allocation8_spill] sm:$0xff] %v8363_v44  ;;  %802 = vst.msk [vmem:[#allocation2 + $0x139] sm:$0xff] %vm515_vm0, %v769_v47  ;;  %v8399_v61 = vrot.slane %v8357_v42, 1  ;;  %v8401_v62 = vld [vmem:[#allocation2 + $0x70] sm:$0x3]  ;;  %v8403_v63 = vld [vmem:[#allocation2 + $0x78] sm:$0xff] }
  0x51   : > { %12286 = vst [vmem:[#allocation9_spill] sm:$0xff] %v8367_v46  ;;  %803 = vst.msk [vmem:[#allocation2 + $0x141] sm:$0xff] %vm515_vm0, %v770_v48  ;;  %v8394_v57 = vsel %vm1629_vm2, %v1645_v45, %v8367_v46  ;;  %v8405_v1 = vld [vmem:[#allocation2 + $0x80] sm:$0xff]  ;;  %v530_v2 = vld [vmem:[%s12158_s2 + $0x8] sm:$0xff]  ;;  %v1653_v3 = vrot.slane %v8401_v62, 1  ;;  %v1649_v4 = vsel %vm1629_vm2, %v8367_v46, %v1648_v58  ;;  %v1655_v6 = vrot.slane %v8403_v63, 1 }
  0x52   : > { %804 = vst.msk [vmem:[#allocation2 + $0x151] sm:$0xff] %vm515_vm0, %v771_v49  ;;  %805 = vst.msk [vmem:[#allocation2 + $0x159] sm:$0xff] %vm515_vm0, %v772_v50  ;;  %1718 = vrot.lane.b32.xlu1 %v8363_v44, %s7913_s16  ;;  %1720 = vrot.lane.b32.xlu0 %v1644_v55, %s7913_s16  ;;  %v8419_v5 = vsel %vm1629_vm2, %v1650_v60, %v8399_v61  ;;  %v8423_v7 = vrot.slane %v8405_v1, 1  ;;  %v8425_v8 = vld [vmem:[#allocation2 + $0x88] sm:$0x3]  ;;  %v8428_v13 = vld [vmem:[#allocation2 + $0x90] sm:$0xff] }
  0x53   : > { %806 = vst.msk [vmem:[#allocation2 + $0x169] sm:$0xff] %vm515_vm0, %v773_v51  ;;  %807 = vst.msk [vmem:[#allocation2 + $0x171] sm:$0xff] %vm515_vm0, %v774_v53  ;;  %v8430_v14 = vld [vmem:[#allocation2 + $0x98] sm:$0xff]  ;;  %7464 = vmatpush3.msra.mxu0 %v530_v2  ;;  %v529_v15 = vld [vmem:[%s12158_s2] sm:$0xff]  ;;  %v1658_v16 = vrot.slane %v8425_v8, 1  ;;  %v1654_v17 = vsel %vm1629_vm2, %v8399_v61, %v1653_v3  ;;  %v1660_v19 = vrot.slane %v8428_v13, 1 }
  0x54   : > { %12287 = vst [vmem:[#allocation10_spill] sm:$0xff] %v8394_v57  ;;  %12288 = vst [vmem:[#allocation11_spill] sm:$0xff] %v8399_v61  ;;  %7465 = vmatprep.subr.mxu0 %v7910_v0  ;;  %v8444_v18 = vsel %vm1629_vm2, %v1655_v6, %v8423_v7  ;;  %v8448_v24 = vrot.slane %v8430_v14, 1  ;;  %v8450_v25 = vld [vmem:[#allocation2 + $0xa0] sm:$0x3]  ;;  %v8452_v26 = vld [vmem:[#allocation2 + $0xa8] sm:$0xff] }
  0x55   : > { %12289 = vst [vmem:[#allocation12_spill] sm:$0xff] %v8419_v5  ;;  %12290 = vst [vmem:[#allocation13_spill] sm:$0xff] %v8423_v7  ;;  %7466 = vmatpush3.msra.mxu0 %v529_v15  ;;  %v8454_v31 = vld [vmem:[#allocation2 + $0xb0] sm:$0xff]  ;;  %v1663_v33 = vrot.slane %v8450_v25, 1  ;;  %v1659_v34 = vsel %vm1629_vm2, %v8423_v7, %v1658_v16  ;;  %v1665_v43 = vrot.slane %v8452_v26, 1  ;;  %v8472_v48 = vld [vmem:[#allocation2 + $0xc0] sm:$0xff] }
  0x56   : > { %1722 = vrot.lane.b32.xlu1 %v8394_v57, %s7913_s16  ;;  %1724 = vrot.lane.b32.xlu0 %v1649_v4, %s7913_s16  ;;  %12291 = vst [vmem:[#allocation14_spill] sm:$0xff] %v8444_v18  ;;  %12292 = vst [vmem:[#allocation15_spill] sm:$0xff] %v8448_v24  ;;  %v8464_v39 = vsel %vm1629_vm2, %v1660_v19, %v8448_v24  ;;  %v8468_v45 = vrot.slane %v8454_v31, 1  ;;  %v8470_v47 = vld [vmem:[#allocation2 + $0xb8] sm:$0x3]  ;;  %v8474_v49 = vld [vmem:[#allocation2 + $0xc8] sm:$0xff] }
  0x57   : > { %12293 = vst [vmem:[#allocation16_spill] sm:$0xff] %v8464_v39  ;;  %v1664_v50 = vsel %vm1629_vm2, %v8448_v24, %v1663_v33  ;;  %v1668_v53 = vrot.slane %v8470_v47, 1  ;;  %v1670_v54 = vrot.slane %v8472_v48, 1  ;;  %v8488_v55 = vrot.slane %v8474_v49, 1  ;;  %v8490_v56 = vld [vmem:[#allocation2 + $0xd0] sm:$0x3] }
  0x58   : > { %12294 = vst [vmem:[#allocation17_spill] sm:$0xff] %v8468_v45  ;;  %v8483_v51 = vsel %vm1629_vm2, %v1665_v43, %v8468_v45  ;;  %v8492_v58 = vld [vmem:[#allocation2 + $0xd8] sm:$0xff]  ;;  %v8494_v60 = vld [vmem:[#allocation2 + $0xe0] sm:$0xff]  ;;  %v1673_v2 = vrot.slane %v8490_v56, 1  ;;  %v8510_v16 = vld [vmem:[#allocation2 + $0xe8] sm:$0x3] }
  0x59   : > { %12295 = vst [vmem:[#allocation18_spill] sm:$0xff] %v8483_v51  ;;  %12296 = vst [vmem:[#allocation19_spill] sm:$0xff] %v8488_v55  ;;  %v1669_v3 = vsel %vm1629_vm2, %v8468_v45, %v1668_v53  ;;  %v8504_v4 = vsel %vm1629_vm2, %v1670_v54, %v8488_v55  ;;  %v1675_v6 = vrot.slane %v8492_v58, 1  ;;  %v8508_v15 = vrot.slane %v8494_v60, 1  ;;  %v8515_v19 = vld [vmem:[#allocation2 + $0xf8] sm:$0xff]  ;;  %v8533_v54 = vld [vmem:[#allocation2 + $0x108] sm:$0xff] }
  0x5a   : > { %1726 = vrot.lane.b32.xlu1 %v8419_v5, %s7913_s16  ;;  %1728 = vrot.lane.b32.xlu0 %v1654_v17, %s7913_s16  ;;  %12297 = vst [vmem:[#allocation20_spill] sm:$0xff] %v8504_v4  ;;  %v8513_v17 = vld [vmem:[#allocation2 + $0xf0] sm:$0xff]  ;;  %12300 = vst [vmem:[#allocation23_spill] sm:$0xff] %v8515_v19  ;;  %v1678_v33 = vrot.slane %v8510_v16, 1  ;;  %v8531_v53 = vld [vmem:[#allocation2 + $0x100] sm:$0x3] }
  0x5b   : > { %12298 = vst [vmem:[#allocation21_spill] sm:$0xff] %v8508_v15  ;;  %12299 = vst [vmem:[#allocation22_spill] sm:$0xff] %v8513_v17  ;;  %v8525_v43 = vsel %vm1629_vm2, %v1675_v6, %v8508_v15  ;;  %v1680_v0 = vrot.slane %v8513_v17, 1  ;;  %v1685_v23 = vrot.slane %v8533_v54, 1  ;;  %v8575_v24 = vld [vmem:[#allocation2 + $0x140] sm:$0xff]  ;;  %v8611_v5 = vld [vmem:[#allocation2 + $0x168] sm:$0xff] }
  0x5c   : > { %12301 = vst [vmem:[#allocation24_spill] sm:$0xff] %v8525_v43  ;;  %12303 = vst [vmem:[#allocation26_spill] sm:$0xff] %v8533_v54  ;;  %v1679_v6 = vsel %vm1629_vm2, %v8508_v15, %v1678_v33  ;;  %v8591_v7 = vld [vmem:[#allocation2 + $0x148] sm:$0x3]  ;;  %v8615_v46 = vld [vmem:[#allocation2 + $0x170] sm:$0xff] }
  0x5d   : > { %12312 = vst [vmem:[#allocation35_spill] sm:$0xff] %v8575_v24  ;;  %12319 = vst [vmem:[#allocation42_spill] sm:$0xff] %v8611_v5 }
  0x5e   : > { %1730 = vrot.lane.b32.xlu1 %v8444_v18, %s7913_s16  ;;  %1732 = vrot.lane.b32.xlu0 %v1659_v34, %s7913_s16  ;;  %v1674_v34 = vsel %vm1629_vm2, %v8488_v55, %v1673_v2  ;;  %v1683_v2 = vrot.slane %v8531_v53, 1  ;;  %v8551_v55 = vld [vmem:[#allocation2 + $0x118] sm:$0x3]  ;;  %12320 = vst [vmem:[#allocation43_spill] sm:$0xff] %v8615_v46 }
  0x5f   : > { %v1688_v15 = vrot.slane %v8551_v55, 1 }
  0x62   : > { %1734 = vrot.lane.b32.xlu1 %v8464_v39, %s7913_s16  ;;  %1736 = vrot.lane.b32.xlu0 %v1664_v50, %s7913_s16  ;;  %v8529_v50 = vrot.slane %v8515_v19, 1  ;;  %v8589_v39 = vrot.slane %v8575_v24, 1 }
  0x64   : > { %12302 = vst [vmem:[#allocation25_spill] sm:$0xff] %v8529_v50  ;;  %v8545_v20 = vsel %vm1629_vm2, %v1680_v0, %v8529_v50  ;;  %v1684_v33 = vsel %vm1629_vm2, %v8529_v50, %v1683_v2  ;;  %12314 = vst [vmem:[#allocation37_spill] sm:$0xff] %v8589_v39 }
  0x65   : > { %12305 = vst [vmem:[#allocation28_spill] sm:$0xff] %v8545_v20 }
  0x66   : > { %1738 = vrot.lane.b32.xlu1 %v8483_v51, %s7913_s16  ;;  %1740 = vrot.lane.b32.xlu0 %v1669_v3, %s7913_s16  ;;  %v8535_v3 = vld [vmem:[#allocation2 + $0x110] sm:$0xff] }
  0x67   : > { %12304 = vst [vmem:[#allocation27_spill] sm:$0xff] %v8535_v3  ;;  %v8549_v12 = vrot.slane %v8535_v3, 1  ;;  %v8571_v51 = vld [vmem:[#allocation2 + $0x130] sm:$0x3] }
  0x69   : > { %12306 = vst [vmem:[#allocation29_spill] sm:$0xff] %v8549_v12  ;;  %v8564_v0 = vsel %vm1629_vm2, %v1685_v23, %v8549_v12  ;;  %v1693_v23 = vrot.slane %v8571_v51, 1  ;;  %v1689_v2 = vsel %vm1629_vm2, %v8549_v12, %v1688_v15  ;;  %v1698_v12 = vrot.slane %v8591_v7, 1 }
  0x6a   : > { %1742 = vrot.lane.b32.xlu1 %v8504_v4, %s7913_s16  ;;  %1744 = vrot.lane.b32.xlu0 %v1674_v34, %s7913_s16  ;;  %v8553_v34 = vld [vmem:[#allocation2 + $0x120] sm:$0xff]  ;;  %v8555_v4 = vld [vmem:[#allocation2 + $0x128] sm:$0xff]  ;;  %12309 = vst [vmem:[#allocation32_spill] sm:$0xff] %v8564_v0 }
  0x6b   : > { %12307 = vst [vmem:[#allocation30_spill] sm:$0xff] %v8553_v34  ;;  %12308 = vst [vmem:[#allocation31_spill] sm:$0xff] %v8555_v4  ;;  %v8569_v45 = vrot.slane %v8555_v4, 1  ;;  %v1699_v57 = vsel %vm1629_vm2, %v8589_v39, %v1698_v12  ;;  %v1807_v12 = vrot.slane %v8234_v11, 2 }
  0x6d   : > { %12310 = vst [vmem:[#allocation33_spill] sm:$0xff] %v8569_v45  ;;  %v1694_v15 = vsel %vm1629_vm2, %v8569_v45, %v1693_v23  ;;  %v8620_v23 = vld [vmem:[%s12160_s4 + $0x8] sm:$0xf] }
  0x6e   : > { %1746 = vrot.lane.b32.xlu1 %v8525_v43, %s7913_s16  ;;  %1748 = vrot.lane.b32.xlu0 %v1679_v6, %s7913_s16  ;;  %v1690_v43 = vrot.slane %v8553_v34, 1  ;;  %v8573_v6 = vld [vmem:[#allocation2 + $0x138] sm:$0xff] }
  0x6f   : > { %12311 = vst [vmem:[#allocation34_spill] sm:$0xff] %v8573_v6  ;;  %7527 = vmatprep.subr.msk.mxu0 %vm2667_vm4, %v8620_v23 }
  0x70   : > { %v8585_v50 = vsel %vm1629_vm2, %v1690_v43, %v8569_v45  ;;  %v776_v45 = vld [vmem:[%s8228_s15 + $0xf8] sm:$0xff] }
  0x71   : > { %12313 = vst [vmem:[#allocation36_spill] sm:$0xff] %v8585_v50  ;;  %809 = vst.msk [vmem:[#allocation2 + $0x189] sm:$0xff] %vm515_vm0, %v776_v45 }
  0x72   : > { %1750 = vrot.lane.b32.xlu1 %v8545_v20, %s7913_s16  ;;  %1752 = vrot.lane.b32.xlu0 %v1684_v33, %s7913_s16  ;;  %v1695_v20 = vrot.slane %v8573_v6, 1  ;;  %v8593_v33 = vld [vmem:[#allocation2 + $0x150] sm:$0xff] }
  0x73   : > { %12315 = vst [vmem:[#allocation38_spill] sm:$0xff] %v8593_v33  ;;  %v1700_v18 = vrot.slane %v8593_v33, 1 }
  0x74   : > { %v8604_v43 = vsel %vm1629_vm2, %v1695_v20, %v8589_v39  ;;  %v775_v20 = vld [vmem:[%s8228_s15 + $0xf0] sm:$0xff]  ;;  %v1808_v39 = vrot.slane %v8230_v9, 2  ;;  %s7921_s15 = smov 124  }
  0x75   : > { %12317 = vst [vmem:[#allocation40_spill] sm:$0xff] %v8604_v43  ;;  %808 = vst.msk [vmem:[#allocation2 + $0x181] sm:$0xff] %vm515_vm0, %v775_v20 }
  0x76   : > { %1754 = vrot.lane.b32.xlu1 %v8564_v0, %s7913_s16  ;;  %v8595_v0 = vld [vmem:[#allocation2 + $0x158] sm:$0xff]  ;;  %1756 = vrot.lane.b32.xlu0 %v1689_v2, %s7913_s16  ;;  %v8613_v2 = vld [vmem:[#allocation2 + $0x160] sm:$0x3] }
  0x77   : > { %12316 = vst [vmem:[#allocation39_spill] sm:$0xff] %v8595_v0  ;;  %v8609_v61 = vrot.slane %v8595_v0, 1  ;;  %v1703_v44 = vrot.slane %v8613_v2, 1 }
  0x79   : > { %12318 = vst [vmem:[#allocation41_spill] sm:$0xff] %v8609_v61  ;;  %v8634_v35 = vsel %vm1629_vm2, %v1700_v18, %v8609_v61  ;;  %v1704_v18 = vsel %vm1629_vm2, %v8609_v61, %v1703_v44  ;;  %v1809_v44 = vsel %vm1806_vm5, %v1807_v12, %v1808_v39  ;;  %v1813_v61 = vrot.slane %v8322_v22, 2 }
  0x7a   : > { %1758 = vrot.lane.b32.xlu1 %v8585_v50, %s7913_s16  ;;  %1760 = vrot.lane.b32.xlu0 %v1694_v15, %s7913_s16  ;;  %v1705_v50 = vrot.slane %v8611_v5, 1  ;;  %v8638_v15 = vrot.slane %v8615_v46, 1  ;;  %v1818_v12 = vrot.slane %v8333_v30, 2 }
  0x7c   : > { %12321 = vst [vmem:[#allocation44_spill] sm:$0xff] %v8638_v15  ;;  %v8652_v45 = vsel %vm1629_vm2, %v1705_v50, %v8638_v15  ;;  %v1812_v50 = vrot.slane %v8320_v21, 2 }
  0x7d   : > { %12322 = vst [vmem:[#allocation45_spill] sm:$0xff] %v8652_v45 }
  0x7e   : > { %1762 = vrot.lane.b32.xlu1 %v8604_v43, %s7913_s16  ;;  %v8642_v43 = vld [vmem:[#allocation2 + $0x178] sm:$0x3]  ;;  %1764 = vrot.lane.b32.xlu0 %v1699_v57, %s7913_s16  ;;  %v1810_v57 = vrot.slane %v8232_v10, 2  ;;  %v8672_v10 = vsel %vm1806_vm5, %v1812_v50, %v1813_v61  ;;  %v1823_v50 = vrot.slane %v8348_v38, 2 }
  0x7f   : > { %v1708_v20 = vrot.slane %v8642_v43, 1  ;;  %12323 = vst [vmem:[#allocation46_spill] sm:$0xff] %v8672_v10 }
  0x80   : > { %v1811_v9 = vsel %vm1806_vm5, %v1808_v39, %v1810_v57  ;;  %v1820_v39 = vrot.slane %v8344_v36, 2  ;;  %v8685_v57 = vld [vmem:[#allocation2 + $0x40] sm:$0x3] }
  0x81   : > { %v1709_v11 = vsel %vm1629_vm2, %v8638_v15, %v1708_v20  ;;  %v1817_v20 = vrot.slane %v8331_v29, 2 }
  0x82   : > { %1766 = vrot.lane.b32.xlu1 %v8634_v35, %s7913_s16  ;;  %1768 = vrot.lane.b32.xlu0 %v1704_v18, %s7913_s16  ;;  %v1815_v18 = vrot.slane %v8329_v28, 2  ;;  %v1821_v36 = vsel %vm1806_vm5, %v1818_v12, %v1820_v39 }
  0x84   : > { %v1816_v28 = vsel %vm1806_vm5, %v1813_v61, %v1815_v18  ;;  %v8701_v18 = vld [vmem:[#allocation2 + $0x58] sm:$0x3] }
  0x86   : > { %1770 = vrot.lane.b32.xlu1 %v8652_v45, %s7913_s16  ;;  %1772 = vrot.lane.b32.xlu0 %v1709_v11, %s7913_s16  ;;  %v8669_v45 = vld [vmem:[#allocation2 + $0x28] sm:$0x3]  ;;  %v8688_v11 = vsel %vm1806_vm5, %v1817_v20, %v1818_v12 }
  0x87   : > { %v2325_v15 = vrot.slane %v8669_v45, 2 }
  0x89   : > { %v8678_v22 = vsel %vm1806_vm5, %v1813_v61, %v2325_v15  ;;  %v2330_v15 = vrot.slane %v8685_v57, 2  ;;  %v1825_v61 = vrot.slane %v8353_v40, 2  ;;  %v1830_v40 = vrot.slane %v8401_v62, 2 }
  0x8a   : > { %1887 = vrot.lane.b32.xlu1 %v1809_v44, %s7916_s19  ;;  %12324 = vst [vmem:[#allocation47_spill] sm:$0xff] %v8678_v22  ;;  %1889 = vrot.lane.b32.xlu0 %v1811_v9, %s7916_s19  ;;  %v1822_v44 = vrot.slane %v8346_v37, 2  ;;  %v1827_v22 = vrot.slane %v8355_v41, 2 }
  0x8b   : > { %v8694_v9 = vsel %vm1806_vm5, %v1818_v12, %v2330_v15  ;;  %v2335_v15 = vrot.slane %v8701_v18, 2  ;;  %v1826_v12 = vsel %vm1806_vm5, %v1823_v50, %v1825_v61  ;;  %v8739_v61 = vrot.slane %v8430_v14, 2 }
  0x8c   : > { %12325 = vst [vmem:[#allocation48_spill] sm:$0xff] %v8694_v9  ;;  %v8704_v20 = vsel %vm1806_vm5, %v1822_v44, %v1823_v50  ;;  %v1832_v44 = vrot.slane %v8403_v63, 2  ;;  %v8725_v9 = vrot.slane %v8405_v1, 2 }
  0x8d   : > { %12327 = vst [vmem:[#allocation50_spill] sm:$0xff] %v8739_v61 }
  0x8e   : > { %1891 = vrot.lane.b32.xlu1 %v8672_v10, %s7916_s19  ;;  %1893 = vrot.lane.b32.xlu0 %v1816_v28, %s7916_s19  ;;  %v8708_v10 = vrot.slane %v8357_v42, 2  ;;  %v8712_v28 = vsel %vm1806_vm5, %v1823_v50, %v2335_v15  ;;  %12326 = vst [vmem:[#allocation49_spill] sm:$0xff] %v8725_v9  ;;  %v8735_v50 = vsel %vm1806_vm5, %v1832_v44, %v8725_v9  ;;  %v8753_v44 = vrot.slane %v8454_v31, 2 }
  0x90   : > { %v8721_v39 = vsel %vm1806_vm5, %v1827_v22, %v8708_v10  ;;  %v1831_v62 = vsel %vm1806_vm5, %v8708_v10, %v1830_v40  ;;  %v1837_v22 = vrot.slane %v8428_v13, 2  ;;  %v1840_v40 = vrot.slane %v8450_v25, 2  ;;  %12328 = vst [vmem:[#allocation51_spill] sm:$0xff] %v8753_v44 }
  0x91   : > { %v1847_v25 = vrot.slane %v8472_v48, 2 }
  0x92   : > { %1895 = vrot.lane.b32.xlu1 %v8688_v11, %s7916_s19  ;;  %1897 = vrot.lane.b32.xlu0 %v1821_v36, %s7916_s19  ;;  %v1835_v36 = vrot.slane %v8425_v8, 2  ;;  %v8748_v15 = vsel %vm1806_vm5, %v1837_v22, %v8739_v61 }
  0x94   : > { %v1836_v8 = vsel %vm1806_vm5, %v8725_v9, %v1835_v36  ;;  %v1841_v36 = vsel %vm1806_vm5, %v8739_v61, %v1840_v40  ;;  %v8767_v9 = vrot.slane %v8474_v49, 2  ;;  %v8781_v61 = vrot.slane %v8494_v60, 2 }
  0x96   : > { %1899 = vrot.lane.b32.xlu1 %v8704_v20, %s7916_s19  ;;  %1901 = vrot.lane.b32.xlu0 %v1826_v12, %s7916_s19  ;;  %v1842_v12 = vrot.slane %v8452_v26, 2  ;;  %12330 = vst [vmem:[#allocation53_spill] sm:$0xff] %v8767_v9  ;;  %v8777_v40 = vsel %vm1806_vm5, %v1847_v25, %v8767_v9  ;;  %12332 = vst [vmem:[#allocation55_spill] sm:$0xff] %v8781_v61  ;;  %v1857_v25 = vrot.slane %v8513_v17, 2  ;;  %v9065_v17 = vld [vmem:[#allocation2 + $0x188] sm:$0xff] }
  0x97   : > { %12331 = vst [vmem:[#allocation54_spill] sm:$0xff] %v8777_v40 }
  0x98   : > { %v8763_v22 = vsel %vm1806_vm5, %v1842_v12, %v8753_v44  ;;  %v1852_v12 = vrot.slane %v8492_v58, 2 }
  0x99   : > { %12329 = vst [vmem:[#allocation52_spill] sm:$0xff] %v8763_v22 }
  0x9a   : > { %1903 = vrot.lane.b32.xlu1 %v8721_v39, %s7916_s19  ;;  %1905 = vrot.lane.b32.xlu0 %v1831_v62, %s7916_s19  ;;  %v1845_v62 = vrot.slane %v8470_v47, 2 }
  0x9c   : > { %v1846_v47 = vsel %vm1806_vm5, %v8753_v44, %v1845_v62  ;;  %v8790_v62 = vsel %vm1806_vm5, %v1852_v12, %v8781_v61  ;;  %v8795_v44 = vrot.slane %v8515_v19, 2 }
  0x9d   : > { %12333 = vst [vmem:[#allocation56_spill] sm:$0xff] %v8790_v62 }
  0x9e   : > { %1907 = vrot.lane.b32.xlu1 %v8735_v50, %s7916_s19  ;;  %1909 = vrot.lane.b32.xlu0 %v1836_v8, %s7916_s19  ;;  %v1850_v8 = vrot.slane %v8490_v56, 2  ;;  %12334 = vst [vmem:[#allocation57_spill] sm:$0xff] %v8795_v44 }
  0xa0   : > { %v1851_v56 = vsel %vm1806_vm5, %v8767_v9, %v1850_v8  ;;  %v1860_v8 = vrot.slane %v8531_v53, 2  ;;  %v1862_v9 = vrot.slane %v8533_v54, 2  ;;  %v12366_v54 = vld [vmem:[#allocation24_spill] sm:$0xff] }
  0xa2   : > { %1911 = vrot.lane.b32.xlu1 %v8748_v15, %s7916_s19  ;;  %1913 = vrot.lane.b32.xlu0 %v1841_v36, %s7916_s19  ;;  %v1855_v36 = vrot.slane %v8510_v16, 2  ;;  %v8809_v16 = vsel %vm1806_vm5, %v1857_v25, %v8795_v44  ;;  %v1861_v53 = vsel %vm1806_vm5, %v8795_v44, %v1860_v8  ;;  %v1867_v25 = vrot.slane %v8553_v34, 2 }
  0xa3   : > { %12335 = vst [vmem:[#allocation58_spill] sm:$0xff] %v8809_v16  ;;  %v1870_v8 = vrot.slane %v8571_v51, 2  ;;  %v8841_v44 = vrot.slane %v8575_v24, 2  ;;  %v12361_v24 = vld [vmem:[#allocation20_spill] sm:$0xff] }
  0xa4   : > { %v1856_v12 = vsel %vm1806_vm5, %v8781_v61, %v1855_v36  ;;  %v8827_v61 = vrot.slane %v8555_v4, 2 }
  0xa5   : > { %12340 = vst [vmem:[#allocation63_spill] sm:$0xff] %v8841_v44 }
  0xa6   : > { %1915 = vrot.lane.b32.xlu1 %v8763_v22, %s7916_s19  ;;  %1917 = vrot.lane.b32.xlu0 %v1846_v47, %s7916_s19  ;;  %v8798_v47 = vpop.permute.xlu0 %1712  ;;  %v8800_v22 = vpop.permute.xlu1 %1710  ;;  %12338 = vst [vmem:[#allocation61_spill] sm:$0xff] %v8827_v61 }
  0xaa   : > { %1919 = vrot.lane.b32.xlu1 %v8777_v40, %s7916_s19  ;;  %1921 = vrot.lane.b32.xlu0 %v1851_v56, %s7916_s19  ;;  %v8813_v56 = vrot.slane %v8535_v3, 2  ;;  %v497_v3 = vpop.permute.xlu1 %496  ;;  %v489_v40 = vpop.permute.xlu0 %488 }
  0xac   : > { %12336 = vst [vmem:[#allocation59_spill] sm:$0xff] %v8813_v56  ;;  %v8823_v36 = vsel %vm1806_vm5, %v1862_v9, %v8813_v56  ;;  %v8836_v9 = vsel %vm1806_vm5, %v1867_v25, %v8827_v61 }
  0xad   : > { %12337 = vst [vmem:[#allocation60_spill] sm:$0xff] %v8823_v36  ;;  %12339 = vst [vmem:[#allocation62_spill] sm:$0xff] %v8836_v9 }
  0xae   : > { %1923 = vrot.lane.b32.xlu1 %v8790_v62, %s7916_s19  ;;  %1925 = vrot.lane.b32.xlu0 %v1856_v12, %s7916_s19  ;;  %v1865_v62 = vrot.slane %v8551_v55, 2  ;;  %v1872_v12 = vrot.slane %v8573_v6, 2  ;;  %v493_v4 = vpop.permute.xlu0 %492 }
  0xb0   : > { %v1866_v55 = vsel %vm1806_vm5, %v8813_v56, %v1865_v62  ;;  %v1871_v56 = vsel %vm1806_vm5, %v8827_v61, %v1870_v8 }
  0xb2   : > { %1927 = vrot.lane.b32.xlu1 %v8809_v16, %s7916_s19  ;;  %1929 = vrot.lane.b32.xlu0 %v1861_v53, %s7916_s19  ;;  %v12341_v53 = vcombine.low %v8274_v52, %v8284_v59  ;;  %v8856_v52 = vsel %vm1806_vm5, %v1872_v12, %v8841_v44  ;;  %v1875_v59 = vrot.slane %v8591_v7, 2  ;;  %v1880_v7 = vrot.slane %v8613_v2, 2 }
  0xb3   : > { %12342 = vst [vmem:[#allocation64_spill] sm:$0xff] %v8856_v52 }
  0xb4   : > { %v516_v16 = vsel %vm515_vm0, %v12341_v53, %v489_v40 }
  0xb5   : > { %v518_v62 = vsel %vm517_vm6, %v516_v16, %v493_v4  ;;  %v505_v4 = vpop.permute.xlu0 %504  ;;  %v8861_v16 = vrot.slane %v8595_v0, 2 }
  0xb6   : > { %1931 = vrot.lane.b32.xlu1 %v8823_v36, %s7916_s19  ;;  %v501_v36 = vpop.permute.xlu1 %500  ;;  %v520_v25 = vsel %vm519_vm7, %v518_v62, %v497_v3  ;;  %1933 = vrot.lane.b32.xlu0 %v1866_v55, %s7916_s19  ;;  %v1877_v3 = vrot.slane %v8593_v33, 2 }
  0xb7   : > { %v522_v51 = vsel %vm521_vm8, %v520_v25, %v501_v36  ;;  %12343 = vst [vmem:[#allocation65_spill] sm:$0xff] %v8861_v16  ;;  %v1876_v36 = vsel %vm1806_vm5, %v8841_v44, %v1875_v59  ;;  %v8877_v25 = vrot.slane %v8615_v46, 2  ;;  %v1881_v2 = vsel %vm1806_vm5, %v8861_v16, %v1880_v7  ;;  %v12355_v46 = vld [vmem:[#allocation16_spill] sm:$0xff] }
  0xb8   : > { %v524_v55 = vsel %vm523_vm9, %v522_v51, %v505_v4  ;;  %v8873_v62 = vsel %vm1806_vm5, %v1877_v3, %v8861_v16  ;;  %v7833_v51 = vld [vmem:[%s12160_s4] sm:$0xff]  }
  0xb9   : > { %v513_v8 = vpop.permute.xlu0 %512  ;;  %12344 = vst [vmem:[#allocation66_spill] sm:$0xff] %v8873_v62  ;;  %12345 = vst [vmem:[#allocation67_spill] sm:$0xff] %v8877_v25 }
  0xba   : > { %1935 = vrot.lane.b32.xlu1 %v8836_v9, %s7916_s19  ;;  %v509_v40 = vpop.permute.xlu1 %508  ;;  %1937 = vrot.lane.b32.xlu0 %v1871_v56, %s7916_s19  ;;  %v1882_v56 = vrot.slane %v8611_v5, 2  ;;  %v12358_v5 = vld [vmem:[#allocation18_spill] sm:$0xff] }
  0xbb   : > { %v526_v12 = vsel %vm525_vm10, %v524_v55, %v509_v40  ;;  %v1885_v40 = vrot.slane %v8642_v43, 2 }
  0xbc   : > { %v528_v59 = vsel %vm527_vm11, %v526_v12, %v513_v8  ;;  %v8896_v55 = vsel %vm1806_vm5, %v1882_v56, %v8877_v25  ;;  %v2154_v12 = vrot.slane %v8685_v57, 1  ;;  %v12349_v57 = vld [vmem:[#allocation10_spill] sm:$0xff] }
  0xbd   : > { %7468 = vmatmul.mubr.msk.f32.vlgmr.msra.gmra.mxu0 %vm533_vm12, %v528_v59  ;;  %12346 = vst [vmem:[#allocation68_spill] sm:$0xff] %v8896_v55  ;;  %v1886_v43 = vsel %vm1806_vm5, %v8877_v25, %v1885_v40  ;;  %v12348_v59 = vld [vmem:[#allocation7_spill] sm:$0xff]  ;;  %v2159_v40 = vrot.slane %v8701_v18, 1  ;;  %v8940_v18 = vld [vmem:[#allocation2 + $0x88] sm:$0x3] }
  0xbe   : > { %1939 = vrot.lane.b32.xlu1 %v8856_v52, %s7916_s19  ;;  %1941 = vrot.lane.b32.xlu0 %v1876_v36, %s7916_s19 }
  0xbf   : > { %7528 = vmatpush3.msk.msra.mxu0 %vm2667_vm4, %v8620_v23  ;;  %v2149_v23 = vrot.slane %v8669_v45, 1  ;;  %v12347_v45 = vld [vmem:[#allocation8_spill] sm:$0xff] }
  0xc0   : > { %v8869_v53 = vpop.permute.xlu1 %1714  ;;  %v8890_v4 = vpop.permute.xlu0 %1716  ;;  %7529 = vmatprep.subr.mxu0 %v7833_v51 }
  0xc1   : > { %7530 = vmatpush3.msra.mxu0 %v7833_v51  ;;  %v2150_v8 = vsel %vm1629_vm2, %v8327_v27, %v2149_v23  ;;  %v8928_v27 = vld [vmem:[#allocation2 + $0x70] sm:$0x3]  ;;  %v12350_v23 = vld [vmem:[#allocation9_spill] sm:$0xff] }
  0xc2   : > { %1943 = vrot.lane.b32.xlu1 %v8873_v62, %s7916_s19  ;;  %1945 = vrot.lane.b32.xlu0 %v1881_v2, %s7916_s19  ;;  %v2155_v2 = vsel %vm1629_vm2, %v12348_v59, %v2154_v12  ;;  %v12351_v59 = vld [vmem:[#allocation12_spill] sm:$0xff]  ;;  %v12353_v62 = vld [vmem:[#allocation14_spill] sm:$0xff] }
  0xc4   : > { %v8892_v3 = vpop.permute.xlu1 %1718  ;;  %v8904_v36 = vpop.permute.xlu0 %1720 }
  0xc6   : > { %1947 = vrot.lane.b32.xlu1 %v8896_v55, %s7916_s19  ;;  %1949 = vrot.lane.b32.xlu0 %v1886_v43, %s7916_s19 }
  0xc8   : > { %v8906_v7 = vpop.permute.xlu1 %1722  ;;  %v8914_v56 = vpop.permute.xlu0 %1724 }
  0xca   : > { %2226 = vrot.lane.b32.xlu1 %v8337_v32, %s7913_s16  ;;  %2228 = vrot.lane.b32.xlu0 %v2150_v8, %s7913_s16  ;;  %v2160_v8 = vsel %vm1629_vm2, %v12350_v23, %v2159_v40  ;;  %v8952_v23 = vld [vmem:[#allocation2 + $0xa0] sm:$0x3] }
  0xcc   : > { %v8916_v51 = vpop.permute.xlu1 %1726  ;;  %v8924_v32 = vpop.permute.xlu0 %1728 }
  0xce   : > { %2230 = vrot.lane.b32.xlu1 %v12347_v45, %s7913_s16  ;;  %2232 = vrot.lane.b32.xlu0 %v2155_v2, %s7913_s16  ;;  %v2164_v45 = vrot.slane %v8928_v27, 1  ;;  %v12352_v2 = vld [vmem:[#allocation11_spill] sm:$0xff] }
  0xd0   : > { %v8926_v43 = vpop.permute.xlu1 %1730  ;;  %v8936_v25 = vpop.permute.xlu0 %1732  ;;  %v2165_v55 = vsel %vm1629_vm2, %v12352_v2, %v2164_v45  ;;  %v8964_v2 = vld [vmem:[#allocation2 + $0xb8] sm:$0x3] }
  0xd2   : > { %2234 = vrot.lane.b32.xlu1 %v12349_v57, %s7913_s16  ;;  %2236 = vrot.lane.b32.xlu0 %v2160_v8, %s7913_s16  ;;  %v2169_v57 = vrot.slane %v8940_v18, 1  ;;  %v12354_v8 = vld [vmem:[#allocation13_spill] sm:$0xff] }
  0xd4   : > { %v8938_v12 = vpop.permute.xlu1 %1734  ;;  %v8948_v16 = vpop.permute.xlu0 %1736  ;;  %v2170_v44 = vsel %vm1629_vm2, %v12354_v8, %v2169_v57  ;;  %v8976_v8 = vld [vmem:[#allocation2 + $0xd0] sm:$0x3] }
  0xd5   : > { %12357 = vst [vmem:[#allocation8_spill] sm:$0xff] %v8976_v8 }
  0xd6   : > { %2238 = vrot.lane.b32.xlu1 %v12351_v59, %s7913_s16  ;;  %2240 = vrot.lane.b32.xlu0 %v2165_v55, %s7913_s16  ;;  %v2174_v59 = vrot.slane %v8952_v23, 1  ;;  %v12356_v55 = vld [vmem:[#allocation15_spill] sm:$0xff] }
  0xd8   : > { %v8950_v40 = vpop.permute.xlu1 %1738  ;;  %v8960_v52 = vpop.permute.xlu0 %1740  ;;  %v2175_v61 = vsel %vm1629_vm2, %v12356_v55, %v2174_v59  ;;  %v8988_v55 = vld [vmem:[#allocation2 + $0xe8] sm:$0x3] }
  0xd9   : > { %12360 = vst [vmem:[#allocation7_spill] sm:$0xff] %v8988_v55 }
  0xda   : > { %2242 = vrot.lane.b32.xlu1 %v12353_v62, %s7913_s16  ;;  %2244 = vrot.lane.b32.xlu0 %v2170_v44, %s7913_s16  ;;  %v2179_v62 = vrot.slane %v8964_v2, 1  ;;  %v12359_v44 = vld [vmem:[#allocation17_spill] sm:$0xff] }
  0xdc   : > { %v8962_v45 = vpop.permute.xlu1 %1742  ;;  %v8972_v9 = vpop.permute.xlu0 %1744  ;;  %v2180_v0 = vsel %vm1629_vm2, %v12359_v44, %v2179_v62  ;;  %v9000_v44 = vld [vmem:[#allocation2 + $0x100] sm:$0x3] }
  0xdd   : > { %12365 = vst [vmem:[#allocation12_spill] sm:$0xff] %v9000_v44 }
  0xde   : > { %2246 = vrot.lane.b32.xlu1 %v12355_v46, %s7913_s16  ;;  %2248 = vrot.lane.b32.xlu0 %v2175_v61, %s7913_s16  ;;  %v2184_v46 = vrot.slane %v8976_v8, 1  ;;  %v12362_v61 = vld [vmem:[#allocation19_spill] sm:$0xff] }
  0xe0   : > { %v8974_v57 = vpop.permute.xlu1 %1746  ;;  %v8984_v33 = vpop.permute.xlu0 %1748  ;;  %v2185_v6 = vsel %vm1629_vm2, %v12362_v61, %v2184_v46  ;;  %v9012_v61 = vld [vmem:[#allocation2 + $0x118] sm:$0x3] }
  0xe1   : > { %12370 = vst [vmem:[#allocation13_spill] sm:$0xff] %v9012_v61 }
  0xe2   : > { %2250 = vrot.lane.b32.xlu1 %v12358_v5, %s7913_s16  ;;  %2252 = vrot.lane.b32.xlu0 %v2180_v0, %s7913_s16  ;;  %v2189_v5 = vrot.slane %v8988_v55, 1  ;;  %v12367_v0 = vld [vmem:[#allocation21_spill] sm:$0xff]  ;;  %v12371_v55 = vld [vmem:[#allocation28_spill] sm:$0xff] }
  0xe4   : > { %v8986_v59 = vpop.permute.xlu1 %1750  ;;  %v8996_v34 = vpop.permute.xlu0 %1752  ;;  %v2190_v19 = vsel %vm1629_vm2, %v12367_v0, %v2189_v5  ;;  %v9024_v0 = vld [vmem:[#allocation2 + $0x130] sm:$0x3] }
  0xe5   : > { %12363 = vst [vmem:[#allocation10_spill] sm:$0xff] %v8996_v34  ;;  %12375 = vst [vmem:[#allocation18_spill] sm:$0xff] %v9024_v0 }
  0xe6   : > { %2254 = vrot.lane.b32.xlu1 %v12361_v24, %s7913_s16  ;;  %2256 = vrot.lane.b32.xlu0 %v2185_v6, %s7913_s16  ;;  %v2194_v24 = vrot.slane %v9000_v44, 1  ;;  %v12372_v6 = vld [vmem:[#allocation25_spill] sm:$0xff]  ;;  %v12376_v44 = vld [vmem:[#allocation32_spill] sm:$0xff] }
  0xe7   : > { %12388 = vst [vmem:[#allocation25_spill] sm:$0xff] %v9065_v17 }
  0xe8   : > { %v8998_v62 = vpop.permute.xlu1 %1754  ;;  %v9008_v8 = vpop.permute.xlu0 %1756 }
  0xe9   : > { %12364 = vst [vmem:[#allocation9_spill] sm:$0xff] %v8998_v62  ;;  %12368 = vst [vmem:[#allocation11_spill] sm:$0xff] %v9008_v8  ;;  %v2195_v62 = vsel %vm1629_vm2, %v12372_v6, %v2194_v24  ;;  %v9036_v6 = vld [vmem:[#allocation2 + $0x148] sm:$0x3] }
  0xea   : > { %2258 = vrot.lane.b32.xlu1 %v12366_v54, %s7913_s16  ;;  %2260 = vrot.lane.b32.xlu0 %v2190_v19, %s7913_s16  ;;  %v2199_v54 = vrot.slane %v9012_v61, 1  ;;  %v12377_v19 = vld [vmem:[#allocation29_spill] sm:$0xff]  ;;  %12380 = vst [vmem:[#allocation19_spill] sm:$0xff] %v9036_v6  ;;  %v12381_v61 = vld [vmem:[#allocation36_spill] sm:$0xff] }
  0xec   : > { %v9010_v46 = vpop.permute.xlu1 %1758  ;;  %v9020_v34 = vpop.permute.xlu0 %1760 }
  0xed   : > { %12369 = vst [vmem:[#allocation14_spill] sm:$0xff] %v9010_v46  ;;  %12373 = vst [vmem:[#allocation16_spill] sm:$0xff] %v9020_v34  ;;  %v2200_v46 = vsel %vm1629_vm2, %v12377_v19, %v2199_v54  ;;  %v9048_v19 = vld [vmem:[#allocation2 + $0x160] sm:$0x3] }
  0xee   : > { %2262 = vrot.lane.b32.xlu1 %v12371_v55, %s7913_s16  ;;  %2264 = vrot.lane.b32.xlu0 %v2195_v62, %s7913_s16  ;;  %v2204_v55 = vrot.slane %v9024_v0, 1  ;;  %v12382_v62 = vld [vmem:[#allocation33_spill] sm:$0xff]  ;;  %12385 = vst [vmem:[#allocation28_spill] sm:$0xff] %v9048_v19  ;;  %v12386_v0 = vld [vmem:[#allocation40_spill] sm:$0xff] }
  0xf0   : > { %v9022_v5 = vpop.permute.xlu1 %1762  ;;  %v9032_v8 = vpop.permute.xlu0 %1764 }
  0xf1   : > { %12374 = vst [vmem:[#allocation15_spill] sm:$0xff] %v9022_v5  ;;  %12378 = vst [vmem:[#allocation17_spill] sm:$0xff] %v9032_v8  ;;  %v2205_v5 = vsel %vm1629_vm2, %v12382_v62, %v2204_v55  ;;  %v7839_v8 = vld [vmem:[#allocation2] sm:$0xff] }
  0xf2   : > { %2266 = vrot.lane.b32.xlu1 %v12376_v44, %s7913_s16  ;;  %2268 = vrot.lane.b32.xlu0 %v2200_v46, %s7913_s16  ;;  %v2209_v44 = vrot.slane %v9036_v6, 1  ;;  %v12387_v46 = vld [vmem:[#allocation37_spill] sm:$0xff]  ;;  %v1983_v55 = vsel %vm515_vm0, %v7839_v8, %v8800_v22 }
  0xf3   : > { %v12389_v22 = vld [vmem:[#allocation41_spill] sm:$0xff] }
  0xf4   : > { %v9034_v24 = vpop.permute.xlu1 %1766  ;;  %v9044_v34 = vpop.permute.xlu0 %1768 }
  0xf5   : > { %12379 = vst [vmem:[#allocation20_spill] sm:$0xff] %v9034_v24  ;;  %12383 = vst [vmem:[#allocation24_spill] sm:$0xff] %v9044_v34  ;;  %v2210_v24 = vsel %vm1629_vm2, %v12387_v46, %v2209_v44  ;;  %v7840_v44 = vld [vmem:[#allocation2 + $0x8] sm:$0xff] }
  0xf6   : > { %2270 = vrot.lane.b32.xlu1 %v12381_v61, %s7913_s16  ;;  %2272 = vrot.lane.b32.xlu0 %v2205_v5, %s7913_s16  ;;  %v2214_v61 = vrot.slane %v9048_v19, 1  ;;  %v9063_v5 = vld [vmem:[#allocation2 + $0x180] sm:$0xff]  ;;  %v1984_v46 = vsel %vm515_vm0, %v7840_v44, %v8798_v47  ;;  %v1987_v47 = vsel %vm515_vm0, %v8331_v29, %v8892_v3  ;;  %v12391_v44 = vld [vmem:[#allocation45_spill] sm:$0xff] }
  0xf8   : > { %v9046_v54 = vpop.permute.xlu1 %1770  ;;  %v9058_v62 = vpop.permute.xlu0 %1772  ;;  %v2215_v8 = vsel %vm1629_vm2, %v12389_v22, %v2214_v61  ;;  %v12390_v61 = vld [vmem:[#allocation6_spill] sm:$0xff] }
  0xf9   : > { %12384 = vst [vmem:[#allocation21_spill] sm:$0xff] %v9046_v54  ;;  %v9060_v54 = vld [vmem:[#allocation2 + $0x178] sm:$0x3]  ;;  %v1986_v22 = vsel %vm515_vm0, %v12390_v61, %v8890_v4  ;;  %v607_v4 = vld [vmem:[%s12159_s3] sm:$0xff]  ;;  %v12393_v61 = vld [vmem:[#allocation46_spill] sm:$0xff] }
  0xfa   : > { %2274 = vrot.lane.b32.xlu1 %v12386_v0, %s7913_s16  ;;  %v1985_v0 = vsel %vm515_vm0, %v8320_v21, %v8869_v53  ;;  %2276 = vrot.lane.b32.xlu0 %v2210_v24, %s7913_s16  ;;  %v2221_v21 = vrot.slane %v9063_v5, 1  ;;  %v9081_v53 = vrot.slane %v9065_v17, 1  ;;  %v12392_v17 = vld [vmem:[#allocation44_spill] sm:$0xff] }
  0xfb   : > { %7472 = vmatprep.mubr.msk.f32.mxu1 %vm517_vm6, %v607_v4 }
  0xfc   : > { %v1888_v6 = vpop.permute.xlu1 %1887  ;;  %v9106_v3 = vsel %vm1629_vm2, %v2221_v21, %v9081_v53 }
  0xfd   : > { %v2015_v34 = vsel %vm517_vm6, %v1983_v55, %v1888_v6  ;;  %v2219_v6 = vrot.slane %v9060_v54, 1  ;;  %v1890_v55 = vpop.permute.xlu0 %1889 }
  0xfe   : > { %7531 = vmatprep.mubr.msk.f32.mxu0 %vm519_vm7, %v2015_v34  ;;  %2278 = vrot.lane.b32.xlu1 %v8634_v35, %s7913_s16  ;;  %v9083_v34 = vld [vmem:[#allocation2 + $0x190] sm:$0x3]  ;;  %v2016_v35 = vsel %vm517_vm6, %v1984_v46, %v1890_v55  ;;  %v1989_v55 = vsel %vm515_vm0, %v8346_v37, %v8906_v7  ;;  %v1990_v37 = vsel %vm515_vm0, %v8348_v38, %v8914_v56  ;;  %v12394_v56 = vld [vmem:[#allocation47_spill] sm:$0xff] }
  0xff   : > { %2280 = vrot.lane.b32.xlu0 %v2215_v8, %s7913_s16  ;;  %7532 = vmatmul.mubr.msk.f32.vlgmr.msra.gmra.mxu0 %vm519_vm7, %v2016_v35  ;;  %v2220_v46 = vsel %vm1629_vm2, %v12392_v17, %v2219_v6  ;;  %v1988_v6 = vsel %vm515_vm0, %v8333_v30, %v8904_v36  ;;  %v1991_v7 = vsel %vm515_vm0, %v8355_v41, %v8916_v51 }
 0x100   : > { %v1892_v19 = vpop.permute.xlu1 %1891  ;;  %v1992_v38 = vsel %vm515_vm0, %v8357_v42, %v8924_v32  ;;  %v1993_v41 = vsel %vm515_vm0, %v8403_v63, %v8926_v43  ;;  %v1994_v63 = vsel %vm515_vm0, %v8405_v1, %v8936_v25  ;;  %v1995_v32 = vsel %vm515_vm0, %v8428_v13, %v8938_v12  ;;  %v12395_v43 = vld [vmem:[#allocation48_spill] sm:$0xff] }
 0x101   : > { %v2017_v24 = vsel %vm517_vm6, %v1985_v0, %v1892_v19  ;;  %v2224_v19 = vrot.slane %v9083_v34, 1  ;;  %v1894_v0 = vpop.permute.xlu0 %1893  ;;  %v1996_v13 = vsel %vm515_vm0, %v8430_v14, %v8948_v16  ;;  %v1997_v12 = vsel %vm515_vm0, %v8452_v26, %v8950_v40 }
 0x102   : > { %2282 = vrot.lane.b32.xlu1 %v12391_v44, %s7913_s16  ;;  %7534 = vmatprep.mubr.msk.f32.mxu0 %vm519_vm7, %v2017_v24  ;;  %v2018_v8 = vsel %vm517_vm6, %v1986_v22, %v1894_v0  ;;  %v2350_v40 = vrot.slane %v8952_v23, 2  ;;  %v12397_v23 = vld [vmem:[#allocation50_spill] sm:$0xff] }
 0x103   : > { %2284 = vrot.lane.b32.xlu0 %v2220_v46, %s7913_s16  ;;  %7535 = vmatmul.mubr.msk.f32.gmra.mxu0 %vm519_vm7, %v2018_v8  ;;  %v2225_v21 = vsel %vm1629_vm2, %v9081_v53, %v2224_v19 }
 0x104   : > { %v1896_v29 = vpop.permute.xlu1 %1895 }
 0x105   : > { %v2019_v17 = vsel %vm517_vm6, %v1987_v47, %v1896_v29  ;;  %v1898_v35 = vpop.permute.xlu0 %1897 }
 0x106   : > { %2286 = vrot.lane.b32.xlu1 %v9106_v3, %s7913_s16  ;;  %7537 = vmatprep.mubr.msk.f32.mxu0 %vm519_vm7, %v2019_v17  ;;  %v2020_v30 = vsel %vm517_vm6, %v1988_v6, %v1898_v35  ;;  %v2351_v6 = vsel %vm1806_vm5, %v12397_v23, %v2350_v40  ;;  %v12398_v35 = vld [vmem:[#allocation22_spill] sm:$0xff]  ;;  %v12422_v23 = vld [vmem:[#allocation13_spill] sm:$0xff] }
 0x107   : > { %2288 = vrot.lane.b32.xlu0 %v2225_v21, %s7913_s16  ;;  %7538 = vmatmul.mubr.msk.f32.gmra.mxu0 %vm519_vm7, %v2020_v30 }
 0x108   : > { %v1900_v24 = vpop.permute.xlu1 %1899 }
 0x109   : > { %v2021_v36 = vsel %vm517_vm6, %v1989_v55, %v1900_v24  ;;  %v1902_v22 = vpop.permute.xlu0 %1901  ;;  %v2355_v55 = vrot.slane %v8964_v2, 2  ;;  %v12399_v2 = vld [vmem:[#allocation52_spill] sm:$0xff]  ;;  %v12400_v24 = vld [vmem:[#allocation51_spill] sm:$0xff] }
 0x10a   : > { %2402 = vrot.lane.b32.xlu1 %v12393_v61, %s7916_s19  ;;  %7540 = vmatprep.mubr.msk.f32.mxu0 %vm519_vm7, %v2021_v36  ;;  %v2022_v44 = vsel %vm517_vm6, %v1990_v37, %v1902_v22  ;;  %v12401_v36 = vld [vmem:[#allocation8_spill] sm:$0xff]  ;;  %v12402_v61 = vld [vmem:[#allocation10_spill] sm:$0xff]  ;;  %v12403_v22 = vld [vmem:[#allocation23_spill] sm:$0xff] }
 0x10b   : > { %2404 = vrot.lane.b32.xlu0 %v12394_v56, %s7916_s19  ;;  %7541 = vmatmul.mubr.msk.f32.gmra.mxu0 %vm519_vm7, %v2022_v44  ;;  %v2356_v30 = vsel %vm1806_vm5, %v12400_v24, %v2355_v55  ;;  %v2360_v37 = vrot.slane %v12401_v36, 2  ;;  %v12404_v44 = vld [vmem:[#allocation9_spill] sm:$0xff]  ;;  %v12428_v36 = vld [vmem:[#allocation59_spill] sm:$0xff] }
 0x10c   : > { %v1904_v47 = vpop.permute.xlu1 %1903  ;;  %v12407_v56 = vld [vmem:[#allocation53_spill] sm:$0xff] }
 0x10d   : > { %v2023_v46 = vsel %vm517_vm6, %v1991_v7, %v1904_v47  ;;  %v1906_v51 = vpop.permute.xlu0 %1905  ;;  %v2004_v47 = vsel %vm515_vm0, %v12403_v22, %v12402_v61  ;;  %v12430_v22 = vld [vmem:[#allocation24_spill] sm:$0xff] }
 0x10e   : > { %2406 = vrot.lane.b32.xlu1 %v8688_v11, %s7916_s19  ;;  %7543 = vmatprep.mubr.msk.f32.mxu0 %vm519_vm7, %v2023_v46  ;;  %v2024_v4 = vsel %vm517_vm6, %v1992_v38, %v1906_v51  ;;  %v2340_v11 = vrot.slane %v8928_v27, 2  ;;  %v2345_v27 = vrot.slane %v8940_v18, 2  ;;  %v12405_v46 = vld [vmem:[#allocation26_spill] sm:$0xff]  ;;  %v2361_v51 = vsel %vm1806_vm5, %v12407_v56, %v2360_v37 }
 0x10f   : > { %2408 = vrot.lane.b32.xlu0 %v12395_v43, %s7916_s19  ;;  %7544 = vmatmul.mubr.msk.f32.gmra.mxu0 %vm519_vm7, %v2024_v4  ;;  %v2005_v38 = vsel %vm515_vm0, %v12405_v46, %v12404_v44 }
 0x110   : > { %v1908_v19 = vpop.permute.xlu1 %1907 }
 0x111   : > { %v2025_v42 = vsel %vm517_vm6, %v1993_v41, %v1908_v19  ;;  %v1910_v0 = vpop.permute.xlu0 %1909  ;;  %v12406_v41 = vld [vmem:[#allocation54_spill] sm:$0xff]  ;;  %v12408_v19 = vld [vmem:[#allocation7_spill] sm:$0xff] }
 0x112   : > { %2410 = vrot.lane.b32.xlu1 %v8704_v20, %s7916_s19  ;;  %7546 = vmatprep.mubr.msk.f32.mxu0 %vm519_vm7, %v2025_v42  ;;  %v2026_v1 = vsel %vm517_vm6, %v1994_v63, %v1910_v0  ;;  %v2341_v20 = vsel %vm1806_vm5, %v8708_v10, %v2340_v11  ;;  %v12396_v10 = vld [vmem:[#allocation49_spill] sm:$0xff]  ;;  %v2365_v4 = vrot.slane %v12408_v19, 2  ;;  %v12409_v11 = vld [vmem:[#allocation11_spill] sm:$0xff] }
 0x113   : > { %2412 = vrot.lane.b32.xlu0 %v8712_v28, %s7916_s19  ;;  %7547 = vmatmul.mubr.msk.f32.gmra.mxu0 %vm519_vm7, %v2026_v1  ;;  %v1998_v28 = vsel %vm515_vm0, %v8454_v31, %v8960_v52  ;;  %v2346_v18 = vsel %vm1806_vm5, %v12396_v10, %v2345_v27  ;;  %v12410_v0 = vld [vmem:[#allocation27_spill] sm:$0xff]  ;;  %v12411_v1 = vld [vmem:[#allocation14_spill] sm:$0xff]  ;;  %v12416_v10 = vld [vmem:[#allocation16_spill] sm:$0xff] }
 0x114   : > { %v1912_v29 = vpop.permute.xlu1 %1911  ;;  %v12435_v19 = vld [vmem:[#allocation61_spill] sm:$0xff] }
 0x115   : > { %v2027_v25 = vsel %vm517_vm6, %v1995_v32, %v1912_v29  ;;  %v1914_v14 = vpop.permute.xlu0 %1913  ;;  %v2006_v29 = vsel %vm515_vm0, %v12410_v0, %v12409_v11  ;;  %v12437_v0 = vld [vmem:[#allocation43_spill] sm:$0xff] }
 0x116   : > { %2414 = vrot.lane.b32.xlu1 %v8721_v39, %s7916_s19  ;;  %7549 = vmatprep.mubr.msk.f32.mxu0 %vm519_vm7, %v2027_v25  ;;  %v2028_v8 = vsel %vm517_vm6, %v1996_v13, %v1914_v14  ;;  %v1999_v39 = vsel %vm515_vm0, %v8472_v48, %v8962_v45  ;;  %v2000_v45 = vsel %vm515_vm0, %v8474_v49, %v8972_v9  ;;  %v12412_v25 = vld [vmem:[#allocation30_spill] sm:$0xff]  ;;  %v12415_v14 = vld [vmem:[#allocation12_spill] sm:$0xff] }
 0x117   : > { %2416 = vrot.lane.b32.xlu0 %v2341_v20, %s7916_s19  ;;  %7550 = vmatmul.mubr.msk.f32.gmra.mxu0 %vm519_vm7, %v2028_v8  ;;  %v2007_v13 = vsel %vm515_vm0, %v12412_v25, %v12411_v1  ;;  %v12414_v20 = vld [vmem:[#allocation55_spill] sm:$0xff]  ;;  %v12438_v25 = vld [vmem:[#allocation64_spill] sm:$0xff] }
 0x118   : > { %v1916_v16 = vpop.permute.xlu1 %1915  ;;  %v2366_v27 = vsel %vm1806_vm5, %v12414_v20, %v2365_v4  ;;  %v12440_v20 = vld [vmem:[#allocation28_spill] sm:$0xff] }
 0x119   : > { %v2029_v26 = vsel %vm517_vm6, %v1997_v12, %v1916_v16  ;;  %v1918_v17 = vpop.permute.xlu0 %1917  ;;  %v12413_v12 = vld [vmem:[#allocation56_spill] sm:$0xff]  ;;  %v2370_v16 = vrot.slane %v12415_v14, 2 }
 0x11a   : > { %2418 = vrot.lane.b32.xlu1 %v8735_v50, %s7916_s19  ;;  %7552 = vmatprep.mubr.msk.f32.mxu0 %vm519_vm7, %v2029_v26  ;;  %v2030_v52 = vsel %vm517_vm6, %v1998_v28, %v1918_v17  ;;  %v2001_v50 = vsel %vm515_vm0, %v8492_v58, %v8974_v57  ;;  %v2002_v57 = vsel %vm515_vm0, %v8494_v60, %v8984_v33  ;;  %v12418_v17 = vld [vmem:[#allocation15_spill] sm:$0xff] }
 0x11b   : > { %2420 = vrot.lane.b32.xlu0 %v2346_v18, %s7916_s19  ;;  %7553 = vmatmul.mubr.msk.f32.gmra.mxu0 %vm519_vm7, %v2030_v52  ;;  %v12417_v18 = vld [vmem:[#allocation31_spill] sm:$0xff] }
 0x11c   : > { %v1920_v31 = vpop.permute.xlu1 %1919  ;;  %v2008_v40 = vsel %vm515_vm0, %v12417_v18, %v12416_v10  ;;  %v2397_v18 = vrot.slane %v9063_v5, 2 }
 0x11d   : > { %v2031_v48 = vsel %vm517_vm6, %v1999_v39, %v1920_v31  ;;  %v1922_v21 = vpop.permute.xlu0 %1921  ;;  %v12419_v31 = vld [vmem:[#allocation34_spill] sm:$0xff] }
 0x11e   : > { %2422 = vrot.lane.b32.xlu1 %v8748_v15, %s7916_s19  ;;  %7555 = vmatprep.mubr.msk.f32.mxu0 %vm519_vm7, %v2031_v48  ;;  %v2032_v9 = vsel %vm517_vm6, %v2000_v45, %v1922_v21  ;;  %v2003_v15 = vsel %vm515_vm0, %v12398_v35, %v8986_v59  ;;  %v2009_v52 = vsel %vm515_vm0, %v12419_v31, %v12418_v17  ;;  %v12420_v48 = vld [vmem:[#allocation58_spill] sm:$0xff]  ;;  %v12421_v45 = vld [vmem:[#allocation57_spill] sm:$0xff] }
 0x11f   : > { %2424 = vrot.lane.b32.xlu0 %v2351_v6, %s7916_s19  ;;  %7556 = vmatmul.mubr.msk.f32.gmra.mxu0 %vm519_vm7, %v2032_v9  ;;  %v2375_v6 = vrot.slane %v12422_v23, 2  ;;  %v2400_v23 = vrot.slane %v9083_v34, 2 }
 0x120   : > { %v1924_v49 = vpop.permute.xlu1 %1923 }
 0x121   : > { %v2033_v58 = vsel %vm517_vm6, %v2001_v50, %v1924_v49  ;;  %v1926_v7 = vpop.permute.xlu0 %1925  ;;  %v2371_v50 = vsel %vm1806_vm5, %v12421_v45, %v2370_v16  ;;  %v2376_v37 = vsel %vm1806_vm5, %v12428_v36, %v2375_v6  ;;  %v12445_v45 = vld [vmem:[#allocation68_spill] sm:$0xff]  ;;  %v9379_v36 = vld [vmem:[#allocation2 + $0x58] sm:$0x3] }
 0x122   : > { %2426 = vrot.lane.b32.xlu1 %v12399_v2, %s7916_s19  ;;  %7558 = vmatprep.mubr.msk.f32.mxu0 %vm519_vm7, %v2033_v58  ;;  %v2034_v33 = vsel %vm517_vm6, %v2002_v57, %v1926_v7  ;;  %v12423_v58 = vld [vmem:[#allocation17_spill] sm:$0xff]  ;;  %v12424_v57 = vld [vmem:[#allocation35_spill] sm:$0xff]  ;;  %v12426_v2 = vld [vmem:[#allocation38_spill] sm:$0xff] }
 0x123   : > { %2428 = vrot.lane.b32.xlu0 %v2356_v30, %s7916_s19  ;;  %7559 = vmatmul.mubr.msk.f32.gmra.mxu0 %vm519_vm7, %v2034_v33  ;;  %v2010_v35 = vsel %vm515_vm0, %v12424_v57, %v12423_v58  ;;  %v12427_v30 = vld [vmem:[#allocation60_spill] sm:$0xff]  ;;  %v12429_v7 = vld [vmem:[#allocation18_spill] sm:$0xff]  ;;  %v9364_v58 = vld [vmem:[#allocation2 + $0x48] sm:$0xff] }
 0x124   : > { %v1928_v60 = vpop.permute.xlu1 %1927  ;;  %v9366_v57 = vld [vmem:[#allocation2 + $0x50] sm:$0xff] }
 0x125   : > { %v2035_v59 = vsel %vm517_vm6, %v2003_v15, %v1928_v60  ;;  %v1930_v42 = vpop.permute.xlu0 %1929  ;;  %v12425_v15 = vld [vmem:[#allocation20_spill] sm:$0xff]  ;;  %v2380_v60 = vrot.slane %v12429_v7, 2 }
 0x126   : > { %2430 = vrot.lane.b32.xlu1 %v12406_v41, %s7916_s19  ;;  %7561 = vmatprep.mubr.msk.f32.mxu0 %vm519_vm7, %v2035_v59  ;;  %v2036_v32 = vsel %vm517_vm6, %v2004_v47, %v1930_v42  ;;  %v2011_v24 = vsel %vm515_vm0, %v12426_v2, %v12425_v15  ;;  %v12431_v47 = vld [vmem:[#allocation39_spill] sm:$0xff]  ;;  %v12433_v41 = vld [vmem:[#allocation42_spill] sm:$0xff]  ;;  %v9383_v7 = vld [vmem:[#allocation2 + $0x60] sm:$0xff] }
 0x127   : > { %2432 = vrot.lane.b32.xlu0 %v2361_v51, %s7916_s19  ;;  %7562 = vmatmul.mubr.msk.f32.gmra.mxu0 %vm519_vm7, %v2036_v32  ;;  %v2012_v44 = vsel %vm515_vm0, %v12431_v47, %v12430_v22  ;;  %v12434_v51 = vld [vmem:[#allocation62_spill] sm:$0xff]  ;;  %v2381_v4 = vsel %vm1806_vm5, %v12435_v19, %v2380_v60  ;;  %v12436_v42 = vld [vmem:[#allocation19_spill] sm:$0xff]  ;;  %v9385_v60 = vld [vmem:[#allocation2 + $0x68] sm:$0xff]  ;;  %v3330_v47 = vrot.slane %v9383_v7, 1 }
 0x128   : > { %v1932_v63 = vpop.permute.xlu1 %1931 }
 0x129   : > { %v2037_v43 = vsel %vm517_vm6, %v2005_v38, %v1932_v63  ;;  %v1934_v8 = vpop.permute.xlu0 %1933  ;;  %v12432_v38 = vld [vmem:[#allocation21_spill] sm:$0xff]  ;;  %v2385_v63 = vrot.slane %v12436_v42, 2 }
 0x12a   : > { %2434 = vrot.lane.b32.xlu1 %v12413_v12, %s7916_s19  ;;  %7564 = vmatprep.mubr.msk.f32.mxu0 %vm519_vm7, %v2037_v43  ;;  %v2038_v28 = vsel %vm517_vm6, %v2006_v29, %v1934_v8  ;;  %v2013_v56 = vsel %vm515_vm0, %v12433_v41, %v12432_v38  ;;  %v2014_v29 = vsel %vm515_vm0, %v12437_v0, %v9058_v62  ;;  %v12441_v8 = vld [vmem:[#allocation66_spill] sm:$0xff]  ;;  %v9400_v41 = vld [vmem:[#allocation2 + $0x78] sm:$0xff] }
 0x12b   : > { %2436 = vrot.lane.b32.xlu0 %v2366_v27, %s7916_s19  ;;  %7565 = vmatmul.mubr.msk.f32.gmra.mxu0 %vm519_vm7, %v2038_v28  ;;  %v2390_v27 = vrot.slane %v12440_v20, 2  ;;  %v9417_v0 = vld [vmem:[#allocation2 + $0x90] sm:$0xff] }
 0x12c   : > { %v1936_v26 = vpop.permute.xlu1 %1935  ;;  %v3340_v20 = vrot.slane %v9417_v0, 1 }
 0x12d   : > { %v2039_v39 = vsel %vm517_vm6, %v2007_v13, %v1936_v26  ;;  %v1938_v55 = vpop.permute.xlu0 %1937  ;;  %v12439_v13 = vld [vmem:[#allocation63_spill] sm:$0xff]  ;;  %v12442_v26 = vld [vmem:[#allocation65_spill] sm:$0xff] }
 0x12e   : > { %2438 = vrot.lane.b32.xlu1 %v12420_v48, %s7916_s19  ;;  %7567 = vmatprep.mubr.msk.f32.mxu0 %vm519_vm7, %v2039_v39  ;;  %v2040_v49 = vsel %vm517_vm6, %v2008_v40, %v1938_v55  ;;  %v2386_v12 = vsel %vm1806_vm5, %v12439_v13, %v2385_v63  ;;  %v2391_v28 = vsel %vm1806_vm5, %v12442_v26, %v2390_v27  ;;  %v2395_v39 = vrot.slane %v9060_v54, 2  ;;  %v12443_v40 = vld [vmem:[#allocation25_spill] sm:$0xff]  ;;  %v9344_v48 = vld [vmem:[#allocation2 + $0x38] sm:$0xff]  ;;  %v9436_v26 = vld [vmem:[#allocation2 + $0xb0] sm:$0xff] }
 0x12f   : > { %2440 = vrot.lane.b32.xlu0 %v2371_v50, %s7916_s19  ;;  %7568 = vmatmul.mubr.msk.f32.gmra.mxu0 %vm519_vm7, %v2040_v49  ;;  %v9338_v17 = vrot.slane %v12443_v40, 2  ;;  %v12446_v50 = vld [vmem:[#allocation67_spill] sm:$0xff]  ;;  %v9360_v49 = vld [vmem:[#allocation2 + $0x40] sm:$0x3]  ;;  %v3335_v63 = vrot.slane %v9400_v41, 1 }
 0x130   : > { %v1940_v21 = vpop.permute.xlu1 %1939  ;;  %v2396_v54 = vsel %vm1806_vm5, %v12446_v50, %v2395_v39  ;;  %v3346_v50 = vrot.slane %v9436_v26, 1 }
 0x131   : > { %v2041_v9 = vsel %vm517_vm6, %v2009_v52, %v1940_v21  ;;  %v1942_v33 = vpop.permute.xlu0 %1941  ;;  %12444 = vst [vmem:[#allocation32_spill] sm:$0xff] %v9338_v17  ;;  %v9342_v52 = vld [vmem:[#allocation2 + $0x30] sm:$0xff]  ;;  %v9356_v6 = vsel %vm1806_vm5, %v2397_v18, %v9338_v17  ;;  %v3321_v21 = vrot.slane %v9344_v48, 1  ;;  %v2401_v34 = vsel %vm1806_vm5, %v9338_v17, %v2400_v23 }
 0x132   : > { %2442 = vrot.lane.b32.xlu1 %v12427_v30, %s7916_s19  ;;  %7570 = vmatprep.mubr.msk.f32.mxu0 %vm519_vm7, %v2041_v9  ;;  %v2042_v59 = vsel %vm517_vm6, %v2010_v35, %v1942_v33  ;;  %12447 = vst [vmem:[#allocation29_spill] sm:$0xff] %v9356_v6  ;;  %v3320_v55 = vrot.slane %v9342_v52, 1  ;;  %v3323_v35 = vrot.slane %v9360_v49, 1  ;;  %v3326_v30 = vrot.slane %v9366_v57, 1 }
 0x133   : > { %2444 = vrot.lane.b32.xlu0 %v2376_v37, %s7916_s19  ;;  %7571 = vmatmul.mubr.msk.f32.gmra.mxu0 %vm519_vm7, %v2042_v59  ;;  %v3328_v59 = vrot.slane %v9379_v36, 1 }
 0x134   : > { %v1944_v61 = vpop.permute.xlu1 %1943  ;;  %v3322_v2 = vsel %vm1629_vm2, %v3320_v55, %v3321_v21  ;;  %v3324_v33 = vsel %vm1629_vm2, %v3321_v21, %v3323_v35  ;;  %v9451_v55 = vld [vmem:[#allocation2 + $0xc0] sm:$0xff]  ;;  %v9453_v21 = vld [vmem:[#allocation2 + $0xc8] sm:$0xff] }
 0x135   : > { %v2043_v46 = vsel %vm517_vm6, %v2011_v24, %v1944_v61  ;;  %v1946_v32 = vpop.permute.xlu0 %1945  ;;  %v3325_v24 = vrot.slane %v9364_v58, 1 }
 0x136   : > { %2446 = vrot.lane.b32.xlu1 %v12434_v51, %s7916_s19  ;;  %7573 = vmatprep.mubr.msk.f32.mxu0 %vm519_vm7, %v2043_v46  ;;  %v2044_v43 = vsel %vm517_vm6, %v2012_v44, %v1946_v32  ;;  %v3331_v44 = vrot.slane %v9385_v60, 1  ;;  %v9396_v46 = vld [vmem:[#allocation2 + $0x70] sm:$0x3]  ;;  %v3329_v51 = vsel %vm1629_vm2, %v3326_v30, %v3328_v59 }
 0x137   : > { %2448 = vrot.lane.b32.xlu0 %v2381_v4, %s7916_s19  ;;  %7574 = vmatmul.mubr.msk.f32.gmra.mxu0 %vm519_vm7, %v2044_v43  ;;  %v3327_v22 = vsel %vm1629_vm2, %v3325_v24, %v3326_v30  ;;  %v3333_v19 = vrot.slane %v9396_v46, 1  ;;  %v9413_v43 = vld [vmem:[#allocation2 + $0x88] sm:$0x3]  ;;  %v3350_v30 = vrot.slane %v9451_v55, 1  ;;  %v9464_v59 = vld [vmem:[#allocation2 + $0xd0] sm:$0x3] }
 0x138   : > { %v1948_v11 = vpop.permute.xlu1 %1947  ;;  %v3332_v42 = vsel %vm1629_vm2, %v3330_v47, %v3331_v44  ;;  %v9468_v47 = vld [vmem:[#allocation2 + $0xd8] sm:$0xff] }
 0x139   : > { %v2045_v1 = vsel %vm517_vm6, %v2013_v56, %v1948_v11  ;;  %v1950_v14 = vpop.permute.xlu0 %1949  ;;  %v9402_v56 = vld [vmem:[#allocation2 + $0x80] sm:$0xff] }
 0x13a   : > { %2450 = vrot.lane.b32.xlu1 %v12438_v25, %s7916_s19  ;;  %7576 = vmatprep.mubr.msk.f32.mxu0 %vm519_vm7, %v2045_v1  ;;  %v2046_v16 = vsel %vm517_vm6, %v2014_v29, %v1950_v14  ;;  %v3336_v32 = vrot.slane %v9402_v56, 1  ;;  %v9419_v29 = vld [vmem:[#allocation2 + $0x98] sm:$0xff]  ;;  %v3334_v1 = vsel %vm1629_vm2, %v3331_v44, %v3333_v19  ;;  %v3338_v25 = vrot.slane %v9413_v43, 1  ;;  %v9430_v14 = vld [vmem:[#allocation2 + $0xa0] sm:$0x3] }
 0x13b   : > { %2452 = vrot.lane.b32.xlu0 %v2386_v12, %s7916_s19  ;;  %7577 = vmatmul.mubr.msk.f32.gmra.mxu0 %vm519_vm7, %v2046_v16  ;;  %v3341_v27 = vrot.slane %v9419_v29, 1  ;;  %v3343_v39 = vrot.slane %v9430_v14, 1  ;;  %v9470_v44 = vld [vmem:[#allocation2 + $0xe0] sm:$0xff]  ;;  %v3353_v19 = vrot.slane %v9464_v59, 1 }
 0x13c   : > { %v9325_v62 = vpop.permute.xlu1 %2226  ;;  %v3337_v12 = vsel %vm1629_vm2, %v3335_v63, %v3336_v32 }
 0x13d   : > { %v9334_v10 = vpop.permute.xlu0 %2228  ;;  %v3342_v40 = vsel %vm1629_vm2, %v3340_v20, %v3341_v27  ;;  %v9485_v20 = vld [vmem:[#allocation2 + $0xf0] sm:$0xff] }
 0x13e   : > { %2454 = vrot.lane.b32.xlu1 %v12441_v8, %s7916_s19  ;;  %v9434_v8 = vld [vmem:[#allocation2 + $0xa8] sm:$0xff]  ;;  %12448 = vst [vmem:[#allocation36_spill] sm:$0xff] %v9485_v20 }
 0x13f   : > { %2456 = vrot.lane.b32.xlu0 %v2391_v28, %s7916_s19  ;;  %v3339_v28 = vsel %vm1629_vm2, %v3336_v32, %v3338_v25  ;;  %v3355_v32 = vrot.slane %v9468_v47, 1  ;;  %v9481_v25 = vld [vmem:[#allocation2 + $0xe8] sm:$0x3] }
 0x140   : > { %v9340_v31 = vpop.permute.xlu1 %2230 }
 0x141   : > { %v9352_v5 = vpop.permute.xlu0 %2232 }
 0x142   : > { %2458 = vrot.lane.b32.xlu1 %v12445_v45, %s7916_s19  ;;  %v3345_v45 = vrot.slane %v9434_v8, 1 }
 0x143   : > { %2460 = vrot.lane.b32.xlu0 %v2396_v54, %s7916_s19  ;;  %v9447_v54 = vld [vmem:[#allocation2 + $0xb8] sm:$0x3] }
 0x144   : > { %v9362_v9 = vpop.permute.xlu1 %2234  ;;  %v3348_v35 = vrot.slane %v9447_v54, 1  ;;  %v3347_v24 = vsel %vm1629_vm2, %v3345_v45, %v3346_v50 }
 0x145   : > { %v9374_v15 = vpop.permute.xlu0 %2236 }
 0x146   : > { %2462 = vrot.lane.b32.xlu1 %v9356_v6, %s7916_s19 }
 0x147   : > { %2464 = vrot.lane.b32.xlu0 %v2401_v34, %s7916_s19  ;;  %v3344_v34 = vsel %vm1629_vm2, %v3341_v27, %v3343_v39  ;;  %v9487_v27 = vld [vmem:[#allocation2 + $0xf8] sm:$0xff]  ;;  %v3358_v39 = vrot.slane %v9481_v25, 1 }
 0x148   : > { %v9381_v37 = vpop.permute.xlu1 %2238  ;;  %12449 = vst [vmem:[#allocation33_spill] sm:$0xff] %v9487_v27 }
 0x149   : > { %v9391_v61 = vpop.permute.xlu0 %2240 }
 0x14a   : > { %3400 = vrot.lane.b32.xlu1 %v3322_v2, %s7913_s16 }
 0x14b   : > { %3402 = vrot.lane.b32.xlu0 %v3324_v33, %s7913_s16  ;;  %v3351_v33 = vrot.slane %v9453_v21, 1 }
 0x14c   : > { %v9398_v38 = vpop.permute.xlu1 %2242 }
 0x14d   : > { %v9408_v4 = vpop.permute.xlu0 %2244  ;;  %v3352_v63 = vsel %vm1629_vm2, %v3350_v30, %v3351_v33  ;;  %v9502_v30 = vld [vmem:[#allocation2 + $0x108] sm:$0xff] }
 0x14e   : > { %3404 = vrot.lane.b32.xlu1 %v3327_v22, %s7913_s16  ;;  %12453 = vst [vmem:[#allocation6_spill] sm:$0xff] %v9502_v30  ;;  %v3365_v6 = vrot.slane %v9502_v30, 1 }
 0x14f   : > { %3406 = vrot.lane.b32.xlu0 %v3329_v51, %s7913_s16  ;;  %v3349_v51 = vsel %vm1629_vm2, %v3346_v50, %v3348_v35  ;;  %v3360_v50 = vrot.slane %v9485_v20, 1  ;;  %v9498_v35 = vld [vmem:[#allocation2 + $0x100] sm:$0x3] }
 0x150   : > { %v9415_v11 = vpop.permute.xlu1 %2246  ;;  %12451 = vst [vmem:[#allocation37_spill] sm:$0xff] %v9498_v35 }
 0x151   : > { %v9425_v13 = vpop.permute.xlu0 %2248 }
 0x152   : > { %3408 = vrot.lane.b32.xlu1 %v3332_v42, %s7913_s16 }
 0x153   : > { %3410 = vrot.lane.b32.xlu0 %v3334_v1, %s7913_s16  ;;  %v3356_v1 = vrot.slane %v9470_v44, 1 }
 0x154   : > { %v9432_v16 = vpop.permute.xlu1 %2250 }
 0x155   : > { %v9442_v18 = vpop.permute.xlu0 %2252  ;;  %v3357_v45 = vsel %vm1629_vm2, %v3355_v32, %v3356_v1 }
 0x156   : > { %3412 = vrot.lane.b32.xlu1 %v3337_v12, %s7913_s16 }
 0x157   : > { %3414 = vrot.lane.b32.xlu0 %v3339_v28, %s7913_s16  ;;  %v3354_v28 = vsel %vm1629_vm2, %v3351_v33, %v3353_v19  ;;  %v3359_v33 = vsel %vm1629_vm2, %v3356_v1, %v3358_v39  ;;  %v3363_v19 = vrot.slane %v9498_v35, 1  ;;  %v9536_v35 = vld [vmem:[#allocation2 + $0x138] sm:$0xff] }
 0x158   : > { %v9449_v23 = vpop.permute.xlu1 %2254  ;;  %12463 = vst [vmem:[#allocation51_spill] sm:$0xff] %v9536_v35 }
 0x159   : > { %v9459_v2 = vpop.permute.xlu0 %2256 }
 0x15a   : > { %3416 = vrot.lane.b32.xlu1 %v3342_v40, %s7913_s16 }
 0x15b   : > { %3418 = vrot.lane.b32.xlu0 %v3344_v34, %s7913_s16  ;;  %v3361_v34 = vrot.slane %v9487_v27, 1  ;;  %v9519_v27 = vld [vmem:[#allocation2 + $0x120] sm:$0xff] }
 0x15c   : > { %v9466_v22 = vpop.permute.xlu1 %2258  ;;  %12458 = vst [vmem:[#allocation48_spill] sm:$0xff] %v9519_v27 }
 0x15d   : > { %v9476_v42 = vpop.permute.xlu0 %2260  ;;  %v3362_v32 = vsel %vm1629_vm2, %v3360_v50, %v3361_v34  ;;  %v3364_v1 = vsel %vm1629_vm2, %v3361_v34, %v3363_v19 }
 0x15e   : > { %3420 = vrot.lane.b32.xlu1 %v3347_v24, %s7913_s16 }
 0x15f   : > { %3422 = vrot.lane.b32.xlu0 %v3349_v51, %s7913_s16  ;;  %v9504_v51 = vld [vmem:[#allocation2 + $0x110] sm:$0xff] }
 0x160   : > { %v9483_v12 = vpop.permute.xlu1 %2262  ;;  %12454 = vst [vmem:[#allocation45_spill] sm:$0xff] %v9504_v51  ;;  %v3366_v17 = vrot.slane %v9504_v51, 1  ;;  %v9532_v51 = vld [vmem:[#allocation2 + $0x130] sm:$0x3] }
 0x161   : > { %v9493_v40 = vpop.permute.xlu0 %2264  ;;  %12461 = vst [vmem:[#allocation22_spill] sm:$0xff] %v9532_v51 }
 0x162   : > { %3424 = vrot.lane.b32.xlu1 %v3352_v63, %s7913_s16  ;;  %12450 = vst [vmem:[#allocation40_spill] sm:$0xff] %v9493_v40  ;;  %v3367_v50 = vsel %vm1629_vm2, %v3365_v6, %v3366_v17  ;;  %v3373_v6 = vrot.slane %v9532_v51, 1  ;;  %v9570_v51 = vld [vmem:[#allocation2 + $0x168] sm:$0xff] }
 0x163   : > { %3426 = vrot.lane.b32.xlu0 %v3354_v28, %s7913_s16  ;;  %v9521_v28 = vld [vmem:[#allocation2 + $0x128] sm:$0xff]  ;;  %12473 = vst [vmem:[#allocation27_spill] sm:$0xff] %v9570_v51 }
 0x164   : > { %v9500_v24 = vpop.permute.xlu1 %2266  ;;  %12459 = vst [vmem:[#allocation49_spill] sm:$0xff] %v9521_v28 }
 0x165   : > { %12452 = vst [vmem:[#allocation41_spill] sm:$0xff] %v9500_v24  ;;  %v9510_v63 = vpop.permute.xlu0 %2268  ;;  %v9515_v24 = vld [vmem:[#allocation2 + $0x118] sm:$0x3] }
 0x166   : > { %3428 = vrot.lane.b32.xlu1 %v3357_v45, %s7913_s16  ;;  %12455 = vst [vmem:[#allocation44_spill] sm:$0xff] %v9510_v63  ;;  %12456 = vst [vmem:[#allocation46_spill] sm:$0xff] %v9515_v24  ;;  %v3368_v39 = vrot.slane %v9515_v24, 1  ;;  %v3370_v63 = vrot.slane %v9519_v27, 1  ;;  %v9553_v24 = vld [vmem:[#allocation2 + $0x150] sm:$0xff] }
 0x167   : > { %3430 = vrot.lane.b32.xlu0 %v3359_v33, %s7913_s16  ;;  %v9538_v33 = vld [vmem:[#allocation2 + $0x140] sm:$0xff]  ;;  %12468 = vst [vmem:[#allocation26_spill] sm:$0xff] %v9553_v24 }
 0x168   : > { %v9517_v40 = vpop.permute.xlu1 %2270  ;;  %12464 = vst [vmem:[#allocation8_spill] sm:$0xff] %v9538_v33  ;;  %v3369_v34 = vsel %vm1629_vm2, %v3366_v17, %v3368_v39 }
 0x169   : > { %12457 = vst [vmem:[#allocation47_spill] sm:$0xff] %v9517_v40  ;;  %v9527_v45 = vpop.permute.xlu0 %2272  ;;  %v3371_v40 = vrot.slane %v9521_v28, 1  ;;  %v9549_v28 = vld [vmem:[#allocation2 + $0x148] sm:$0x3] }
 0x16a   : > { %3432 = vrot.lane.b32.xlu1 %v3362_v32, %s7913_s16  ;;  %12460 = vst [vmem:[#allocation50_spill] sm:$0xff] %v9527_v45  ;;  %v3375_v45 = vrot.slane %v9536_v35, 1  ;;  %12466 = vst [vmem:[#allocation23_spill] sm:$0xff] %v9549_v28 }
 0x16b   : > { %3434 = vrot.lane.b32.xlu0 %v3364_v1, %s7913_s16  ;;  %v3372_v32 = vsel %vm1629_vm2, %v3370_v63, %v3371_v40  ;;  %v9555_v1 = vld [vmem:[#allocation2 + $0x158] sm:$0xff]  ;;  %v3374_v17 = vsel %vm1629_vm2, %v3371_v40, %v3373_v6  ;;  %v3378_v63 = vrot.slane %v9549_v28, 1 }
 0x16c   : > { %v9534_v30 = vpop.permute.xlu1 %2274  ;;  %12469 = vst [vmem:[#allocation54_spill] sm:$0xff] %v9555_v1 }
 0x16d   : > { %12462 = vst [vmem:[#allocation52_spill] sm:$0xff] %v9534_v30  ;;  %v9544_v19 = vpop.permute.xlu0 %2276  ;;  %v3376_v30 = vrot.slane %v9538_v33, 1  ;;  %v9566_v33 = vld [vmem:[#allocation2 + $0x160] sm:$0x3] }
 0x16e   : > { %3436 = vrot.lane.b32.xlu1 %v3367_v50, %s7913_s16  ;;  %12465 = vst [vmem:[#allocation10_spill] sm:$0xff] %v9544_v19  ;;  %v3380_v19 = vrot.slane %v9553_v24, 1  ;;  %12471 = vst [vmem:[#allocation7_spill] sm:$0xff] %v9566_v33 }
 0x16f   : > { %3438 = vrot.lane.b32.xlu0 %v3369_v34, %s7913_s16  ;;  %v3377_v50 = vsel %vm1629_vm2, %v3375_v45, %v3376_v30  ;;  %v9572_v34 = vld [vmem:[#allocation2 + $0x170] sm:$0xff]  ;;  %v3379_v40 = vsel %vm1629_vm2, %v3376_v30, %v3378_v63  ;;  %v3383_v45 = vrot.slane %v9566_v33, 1 }
 0x170   : > { %v9551_v27 = vpop.permute.xlu1 %2278  ;;  %12474 = vst [vmem:[#allocation14_spill] sm:$0xff] %v9572_v34 }
 0x171   : > { %12467 = vst [vmem:[#allocation9_spill] sm:$0xff] %v9551_v27  ;;  %v9561_v39 = vpop.permute.xlu0 %2280  ;;  %v3381_v27 = vrot.slane %v9555_v1, 1  ;;  %v9583_v1 = vld [vmem:[#allocation2 + $0x178] sm:$0x3] }
 0x172   : > { %3440 = vrot.lane.b32.xlu1 %v3372_v32, %s7913_s16  ;;  %12470 = vst [vmem:[#allocation53_spill] sm:$0xff] %v9561_v39  ;;  %v3385_v39 = vrot.slane %v9570_v51, 1  ;;  %12476 = vst [vmem:[#allocation56_spill] sm:$0xff] %v9583_v1 }
 0x173   : > { %3442 = vrot.lane.b32.xlu0 %v3374_v17, %s7913_s16  ;;  %v3382_v32 = vsel %vm1629_vm2, %v3380_v19, %v3381_v27  ;;  %v3384_v30 = vsel %vm1629_vm2, %v3381_v27, %v3383_v45  ;;  %v3388_v17 = vrot.slane %v9583_v1, 1 }
 0x174   : > { %v9568_v35 = vpop.permute.xlu1 %2282 }
 0x175   : > { %12472 = vst [vmem:[#allocation11_spill] sm:$0xff] %v9568_v35  ;;  %v9578_v6 = vpop.permute.xlu0 %2284  ;;  %v3386_v35 = vrot.slane %v9572_v34, 1  ;;  %v9597_v34 = vld [vmem:[#allocation2 + $0x198] sm:$0xff] }
 0x176   : > { %3444 = vrot.lane.b32.xlu1 %v3377_v50, %s7913_s16  ;;  %12475 = vst [vmem:[#allocation30_spill] sm:$0xff] %v9578_v6  ;;  %v9594_v50 = vld [vmem:[#allocation2 + $0x190] sm:$0x3]  ;;  %12480 = vst [vmem:[#allocation31_spill] sm:$0xff] %v9597_v34 }
 0x177   : > { %3446 = vrot.lane.b32.xlu0 %v3379_v40, %s7913_s16  ;;  %v3387_v19 = vsel %vm1629_vm2, %v3385_v39, %v3386_v35  ;;  %12479 = vst [vmem:[#allocation16_spill] sm:$0xff] %v9594_v50  ;;  %v3389_v40 = vsel %vm1629_vm2, %v3386_v35, %v3388_v17  ;;  %v3393_v27 = vrot.slane %v9594_v50, 1  ;;  %v608_v35 = vld [vmem:[%s12159_s3 + $0x8] sm:$0xff]  ;;  %v7034_v17 = vld [vmem:[%s12160_s4 + $0x14] sm:$0xf] }
 0x178   : > { %v9585_v24 = vpop.permute.xlu1 %2286 }
 0x179   : > { %12477 = vst [vmem:[#allocation55_spill] sm:$0xff] %v9585_v24  ;;  %v9591_v63 = vpop.permute.xlu0 %2288  ;;  %v9599_v24 = vld [vmem:[#allocation2 + $0x1a0] sm:$0xff] }
 0x17a   : > { %3448 = vrot.lane.b32.xlu1 %v3382_v32, %s7913_s16  ;;  %12478 = vst [vmem:[#allocation12_spill] sm:$0xff] %v9591_v63  ;;  %12481 = vst [vmem:[#allocation15_spill] sm:$0xff] %v9599_v24  ;;  %v9604_v32 = vld [vmem:[#allocation2 + $0x1a8] sm:$0x3]  ;;  %v7841_v63 = vld [vmem:[#allocation2 + $0x18] sm:$0xff]  ;;  %v3396_v51 = vrot.slane %v9599_v24, 1 }
 0x17b   : > { %3450 = vrot.lane.b32.xlu0 %v3384_v30, %s7913_s16  ;;  %12482 = vst [vmem:[#allocation34_spill] sm:$0xff] %v9604_v32  ;;  %v2498_v39 = vsel %vm515_vm0, %v7841_v63, %v9325_v62  ;;  %v3395_v30 = vrot.slane %v9597_v34, 1  ;;  %v3394_v63 = vsel %vm1629_vm2, %v9081_v53, %v3393_v27  ;;  %v3398_v24 = vrot.slane %v9604_v32, 1  ;;  %v7843_v34 = vld [vmem:[#allocation2 + $0x30] sm:$0xff] }
 0x17c   : > { %v2403_v6 = vpop.permute.xlu1 %2402  ;;  %v2500_v50 = vsel %vm515_vm0, %v7843_v34, %v9340_v31  ;;  %v3496_v27 = vrot.slane %v9342_v52, 2  ;;  %v3497_v32 = vrot.slane %v9344_v48, 2  ;;  %v7103_v31 = vld [vmem:[%s12160_s4 + $0x20] sm:$0xf] }
 0x17d   : > { %v2405_v45 = vpop.permute.xlu0 %2404  ;;  %v603_v33 = vpop.f32.mrf.mxu0  ;;  %v2530_v28 = vsel %vm517_vm6, %v2498_v39, %v2403_v6  ;;  %v3399_v39 = vsel %vm1629_vm2, %v3396_v51, %v3398_v24  ;;  %v3501_v24 = vrot.slane %v9364_v58, 2 }
 0x17e   : > { %3452 = vrot.lane.b32.xlu1 %v3387_v19, %s7913_s16  ;;  %v7842_v19 = vld [vmem:[#allocation2 + $0x20] sm:$0xff]  ;;  %7470 = vmatprep.subr.mxu1 %v603_v33 }
 0x17f   : > { %3454 = vrot.lane.b32.xlu0 %v3389_v40, %s7913_s16  ;;  %v2499_v62 = vsel %vm515_vm0, %v7842_v19, %v9334_v10  ;;  %v7834_v40 = vld [vmem:[%s12160_s4 + $0xc] sm:$0xff]   ;;  %v7469_v10 = vpop.f32.mrf.mxu0  ;;  %7471 = vmatpush3.msra.mxu1 %v603_v33  ;;  %v7844_v33 = vld [vmem:[#allocation2 + $0x38] sm:$0xff] }
 0x180   : > { %v2407_v1 = vpop.permute.xlu1 %2406  ;;  %7473 = vmatmul.mubr.msk.f32.vlgmr.msra.gmra.mxu1 %vm517_vm6, %v608_v35  ;;  %7475 = vmatprep.subr.msk.mxu1 %vm2667_vm4, %v7034_v17  ;;  %v2531_v20 = vsel %vm517_vm6, %v2499_v62, %v2405_v45  ;;  %v2501_v34 = vsel %vm515_vm0, %v7844_v33, %v9352_v5  ;;  %v3499_v45 = vrot.slane %v9360_v49, 2  ;;  %v7835_v5 = vld [vmem:[%s12160_s4 + $0x18] sm:$0xff]   ;;  %v3502_v49 = vrot.slane %v9366_v57, 2 }
 0x181   : > { %v2409_v19 = vpop.permute.xlu0 %2408  ;;  %7476 = vmatpush3.msk.msra.mxu1 %vm2667_vm4, %v7034_v17  ;;  %v2532_v6 = vsel %vm517_vm6, %v2500_v50, %v2407_v1  ;;  %7479 = vmatprep.mubr.msk.f32.mxu1 %vm519_vm7, %v2530_v28  ;;  %v3498_v28 = vsel %vm1806_vm5, %v3496_v27, %v3497_v32 }
 0x182   : > { %3456 = vrot.lane.b32.xlu1 %v9106_v3, %s7913_s16  ;;  %v3397_v3 = vsel %vm1629_vm2, %v3395_v30, %v3396_v51  ;;  %7477 = vmatprep.subr.mxu1 %v7834_v40  ;;  %v7845_v30 = vld [vmem:[#allocation2 + $0x48] sm:$0xff]  ;;  %v7846_v51 = vld [vmem:[#allocation2 + $0x50] sm:$0xff]  ;;  %v3500_v62 = vsel %vm1806_vm5, %v3497_v32, %v3499_v45  ;;  %v3507_v32 = vrot.slane %v9385_v60, 2 }
 0x183   : > { %3458 = vrot.lane.b32.xlu0 %v3394_v63, %s7913_s16  ;;  %v2502_v35 = vsel %vm515_vm0, %v7845_v30, %v9362_v9  ;;  %7478 = vmatpush3.msra.mxu1 %v7834_v40  ;;  %v2533_v9 = vsel %vm517_vm6, %v2501_v34, %v2409_v19  ;;  %v2503_v50 = vsel %vm515_vm0, %v7846_v51, %v9374_v15  ;;  %v3504_v63 = vrot.slane %v9379_v36, 2  ;;  %v7847_v40 = vld [vmem:[#allocation2 + $0x60] sm:$0xff] }
 0x184   : > { %v2411_v53 = vpop.permute.xlu1 %2410  ;;  %7480 = vmatmul.mubr.msk.f32.vlgmr.msra.gmra.mxu1 %vm519_vm7, %v2531_v20  ;;  %7579 = vmatprep.subr.msk.mxu1 %vm2667_vm4, %v7103_v31  ;;  %v2504_v10 = vsel %vm515_vm0, %v7847_v40, %v9381_v37  ;;  %v3503_v15 = vsel %vm1806_vm5, %v3501_v24, %v3502_v49  ;;  %v7848_v37 = vld [vmem:[#allocation2 + $0x68] sm:$0xff]  ;;  %v3509_v34 = vrot.slane %v9396_v46, 2  ;;  %v7850_v46 = vld [vmem:[#allocation2 + $0x80] sm:$0xff]  ;;  %v3514_v24 = vrot.slane %v9413_v43, 2  ;;  %v7852_v43 = vld [vmem:[#allocation2 + $0x98] sm:$0xff] }
 0x185   : > { %v2413_v17 = vpop.permute.xlu0 %2412  ;;  %7482 = vmatprep.mubr.msk.f32.mxu1 %vm519_vm7, %v2532_v6  ;;  %v2534_v20 = vsel %vm517_vm6, %v2502_v35, %v2411_v53  ;;  %7580 = vmatpush3.msk.msra.mxu1 %vm2667_vm4, %v7103_v31  ;;  %v3506_v53 = vrot.slane %v9383_v7, 2  ;;  %v2505_v27 = vsel %vm515_vm0, %v7848_v37, %v9391_v61  ;;  %v3505_v33 = vsel %vm1806_vm5, %v3502_v49, %v3504_v63  ;;  %v7849_v6 = vld [vmem:[#allocation2 + $0x78] sm:$0xff]  ;;  %v7851_v49 = vld [vmem:[#allocation2 + $0x90] sm:$0xff] }
 0x186   : > { %3460 = vrot.lane.b32.xlu1 %v3397_v3, %s7913_s16  ;;  %7581 = vmatprep.subr.mxu1 %v7835_v5  ;;  %v2535_v36 = vsel %vm517_vm6, %v2503_v50, %v2413_v17  ;;  %v3511_v61 = vrot.slane %v9400_v41, 2  ;;  %v3512_v17 = vrot.slane %v9402_v56, 2  ;;  %v3522_v37 = vrot.slane %v9436_v26, 2 }
 0x187   : > { %3462 = vrot.lane.b32.xlu0 %v3399_v39, %s7913_s16  ;;  %7582 = vmatpush3.msra.mxu1 %v7835_v5  ;;  %v2506_v39 = vsel %vm515_vm0, %v7849_v6, %v9398_v38  ;;  %v3508_v35 = vsel %vm1806_vm5, %v3506_v53, %v3507_v32  ;;  %v2507_v38 = vsel %vm515_vm0, %v7850_v46, %v9408_v4  ;;  %v3516_v4 = vrot.slane %v9417_v0, 2  ;;  %v7855_v6 = vld [vmem:[#allocation2 + $0xc0] sm:$0xff] }
 0x188   : > { %v2415_v1 = vpop.permute.xlu1 %2414  ;;  %7483 = vmatmul.mubr.msk.f32.gmra.mxu1 %vm519_vm7, %v2533_v9  ;;  %v2508_v9 = vsel %vm515_vm0, %v7851_v49, %v9415_v11  ;;  %v2509_v11 = vsel %vm515_vm0, %v7852_v43, %v9425_v13  ;;  %v3521_v13 = vrot.slane %v9434_v8, 2 }
 0x189   : > { %v2417_v19 = vpop.permute.xlu0 %2416  ;;  %7485 = vmatprep.mubr.msk.f32.mxu1 %vm519_vm7, %v2534_v20  ;;  %v2536_v31 = vsel %vm517_vm6, %v2504_v10, %v2415_v1  ;;  %v3513_v20 = vsel %vm1806_vm5, %v3511_v61, %v3512_v17  ;;  %v3515_v10 = vsel %vm1806_vm5, %v3512_v17, %v3514_v24  ;;  %v3527_v61 = vrot.slane %v9453_v21, 2 }
 0x18a   : > { %3576 = vrot.lane.b32.xlu1 %v3498_v28, %s7916_s19  ;;  %v2537_v1 = vsel %vm517_vm6, %v2505_v27, %v2417_v19  ;;  %v3510_v28 = vsel %vm1806_vm5, %v3507_v32, %v3509_v34  ;;  %v3519_v19 = vrot.slane %v9430_v14, 2  ;;  %v7854_v14 = vld [vmem:[#allocation2 + $0xb0] sm:$0xff]  ;;  %v3524_v34 = vrot.slane %v9447_v54, 2  ;;  %v7856_v54 = vld [vmem:[#allocation2 + $0xc8] sm:$0xff] }
 0x18b   : > { %3578 = vrot.lane.b32.xlu0 %v3500_v62, %s7916_s19  ;;  %v3517_v62 = vrot.slane %v9419_v29, 2 }
 0x18c   : > { %v2419_v3 = vpop.permute.xlu1 %2418  ;;  %7486 = vmatmul.mubr.msk.f32.gmra.mxu1 %vm519_vm7, %v2535_v36  ;;  %v3525_v46 = vsel %vm1806_vm5, %v3522_v37, %v3524_v34 }
 0x18d   : > { %v2421_v45 = vpop.permute.xlu0 %2420  ;;  %7488 = vmatprep.mubr.msk.f32.mxu1 %vm519_vm7, %v2536_v31  ;;  %v2538_v5 = vsel %vm517_vm6, %v2506_v39, %v2419_v3  ;;  %v7853_v3 = vld [vmem:[#allocation2 + $0xa8] sm:$0xff]  ;;  %v3518_v36 = vsel %vm1806_vm5, %v3516_v4, %v3517_v62  ;;  %v2512_v39 = vsel %vm515_vm0, %v7855_v6, %v9449_v23  ;;  %v2513_v23 = vsel %vm515_vm0, %v7856_v54, %v9459_v2 }
 0x18e   : > { %3580 = vrot.lane.b32.xlu1 %v3503_v15, %s7916_s19  ;;  %v2539_v63 = vsel %vm517_vm6, %v2507_v38, %v2421_v45  ;;  %v2510_v15 = vsel %vm515_vm0, %v7853_v3, %v9432_v16  ;;  %v2511_v16 = vsel %vm515_vm0, %v7854_v14, %v9442_v18  ;;  %v3526_v18 = vrot.slane %v9451_v55, 2  ;;  %v12484_v3 = vld [vmem:[#allocation33_spill] sm:$0xff] }
 0x18f   : > { %3582 = vrot.lane.b32.xlu0 %v3505_v33, %s7916_s19  ;;  %v3520_v33 = vsel %vm1806_vm5, %v3517_v62, %v3519_v19  ;;  %v3529_v38 = vrot.slane %v9464_v59, 2  ;;  %v3531_v2 = vrot.slane %v9468_v47, 2  ;;  %v7858_v59 = vld [vmem:[#allocation2 + $0xe0] sm:$0xff]  ;;  %v3534_v62 = vrot.slane %v9481_v25, 2  ;;  %v7860_v25 = vld [vmem:[#allocation2 + $0xf8] sm:$0xff]  ;;  %v7861_v14 = vld [vmem:[#allocation2 + $0x108] sm:$0xff] }
 0x190   : > { %v2423_v30 = vpop.permute.xlu1 %2422  ;;  %7489 = vmatmul.mubr.msk.f32.gmra.mxu1 %vm519_vm7, %v2537_v1  ;;  %v12483_v19 = vld [vmem:[#allocation36_spill] sm:$0xff] }
 0x191   : > { %v2425_v51 = vpop.permute.xlu0 %2424  ;;  %7491 = vmatprep.mubr.msk.f32.mxu1 %vm519_vm7, %v2538_v5  ;;  %v2540_v40 = vsel %vm517_vm6, %v2508_v9, %v2423_v30  ;;  %v7857_v5 = vld [vmem:[#allocation2 + $0xd8] sm:$0xff]  ;;  %v3528_v9 = vsel %vm1806_vm5, %v3526_v18, %v3527_v61  ;;  %v3530_v4 = vsel %vm1806_vm5, %v3527_v61, %v3529_v38  ;;  %v7862_v61 = vld [vmem:[#allocation2 + $0x110] sm:$0xff] }
 0x192   : > { %3584 = vrot.lane.b32.xlu1 %v3508_v35, %s7916_s19  ;;  %v2541_v27 = vsel %vm517_vm6, %v2509_v11, %v2425_v51  ;;  %v3523_v35 = vsel %vm1806_vm5, %v3521_v13, %v3522_v37  ;;  %v3532_v51 = vrot.slane %v9470_v44, 2  ;;  %v12486_v37 = vld [vmem:[#allocation37_spill] sm:$0xff] }
 0x193   : > { %3586 = vrot.lane.b32.xlu0 %v3510_v28, %s7916_s19  ;;  %v2514_v28 = vsel %vm515_vm0, %v7857_v5, %v9466_v22  ;;  %v2515_v22 = vsel %vm515_vm0, %v7858_v59, %v9476_v42  ;;  %v3536_v42 = vrot.slane %v12483_v19, 2  ;;  %v7863_v5 = vld [vmem:[#allocation2 + $0x120] sm:$0xff]  ;;  %v12494_v59 = vld [vmem:[#allocation49_spill] sm:$0xff] }
 0x194   : > { %v2427_v50 = vpop.permute.xlu1 %2426  ;;  %7492 = vmatmul.mubr.msk.f32.gmra.mxu1 %vm519_vm7, %v2539_v63  ;;  %v7859_v63 = vld [vmem:[#allocation2 + $0xf0] sm:$0xff]  ;;  %v3535_v13 = vsel %vm1806_vm5, %v3532_v51, %v3534_v62 }
 0x195   : > { %v2429_v53 = vpop.permute.xlu0 %2428  ;;  %7494 = vmatprep.mubr.msk.f32.mxu1 %vm519_vm7, %v2540_v40  ;;  %v2542_v31 = vsel %vm517_vm6, %v2510_v15, %v2427_v50  ;;  %v2516_v43 = vsel %vm515_vm0, %v7859_v63, %v9483_v12  ;;  %v3537_v15 = vrot.slane %v12484_v3, 2  ;;  %v12485_v12 = vld [vmem:[#allocation40_spill] sm:$0xff]  ;;  %v12495_v62 = vld [vmem:[#allocation50_spill] sm:$0xff] }
 0x196   : > { %3588 = vrot.lane.b32.xlu1 %v3513_v20, %s7916_s19  ;;  %v2543_v17 = vsel %vm517_vm6, %v2511_v16, %v2429_v53  ;;  %v12487_v16 = vld [vmem:[#allocation41_spill] sm:$0xff] }
 0x197   : > { %3590 = vrot.lane.b32.xlu0 %v3515_v10, %s7916_s19  ;;  %v3533_v10 = vsel %vm1806_vm5, %v3531_v2, %v3532_v51  ;;  %v3538_v6 = vsel %vm1806_vm5, %v3536_v42, %v3537_v15  ;;  %v12493_v51 = vld [vmem:[#allocation48_spill] sm:$0xff]  ;;  %v7865_v42 = vld [vmem:[#allocation2 + $0x138] sm:$0xff] }
 0x198   : > { %v2431_v32 = vpop.permute.xlu1 %2430  ;;  %7495 = vmatmul.mubr.msk.f32.gmra.mxu1 %vm519_vm7, %v2541_v27  ;;  %v3539_v27 = vrot.slane %v12486_v37, 2  ;;  %v12499_v37 = vld [vmem:[#allocation8_spill] sm:$0xff] }
 0x199   : > { %v2433_v45 = vpop.permute.xlu0 %2432  ;;  %7497 = vmatprep.mubr.msk.f32.mxu1 %vm519_vm7, %v2542_v31  ;;  %v2544_v1 = vsel %vm517_vm6, %v2512_v39, %v2431_v32  ;;  %v2517_v32 = vsel %vm515_vm0, %v7860_v25, %v12485_v12  ;;  %v2518_v31 = vsel %vm515_vm0, %v7861_v14, %v12487_v16  ;;  %v12488_v39 = vld [vmem:[#allocation6_spill] sm:$0xff]  ;;  %v7866_v16 = vld [vmem:[#allocation2 + $0x140] sm:$0xff] }
 0x19a   : > { %3592 = vrot.lane.b32.xlu1 %v3518_v36, %s7916_s19  ;;  %v2545_v50 = vsel %vm517_vm6, %v2513_v23, %v2433_v45  ;;  %v3541_v45 = vrot.slane %v12488_v39, 2 }
 0x19b   : > { %3594 = vrot.lane.b32.xlu0 %v3520_v33, %s7916_s19 }
 0x19c   : > { %v2435_v30 = vpop.permute.xlu1 %2434  ;;  %7498 = vmatmul.mubr.msk.f32.gmra.mxu1 %vm519_vm7, %v2543_v17  ;;  %v12490_v17 = vld [vmem:[#allocation44_spill] sm:$0xff] }
 0x19d   : > { %v2437_v24 = vpop.permute.xlu0 %2436  ;;  %7500 = vmatprep.mubr.msk.f32.mxu1 %vm519_vm7, %v2544_v1  ;;  %v2546_v20 = vsel %vm517_vm6, %v2514_v28, %v2435_v30  ;;  %v12489_v30 = vld [vmem:[#allocation45_spill] sm:$0xff]  ;;  %v2519_v54 = vsel %vm515_vm0, %v7862_v61, %v12490_v17  ;;  %v3540_v1 = vsel %vm1806_vm5, %v3537_v15, %v3539_v27  ;;  %v12492_v28 = vld [vmem:[#allocation47_spill] sm:$0xff]  ;;  %v12497_v15 = vld [vmem:[#allocation52_spill] sm:$0xff]  ;;  %v3552_v27 = vrot.slane %v12499_v37, 2 }
 0x19e   : > { %3596 = vrot.lane.b32.xlu1 %v3523_v35, %s7916_s19  ;;  %v2547_v53 = vsel %vm517_vm6, %v2515_v22, %v2437_v24  ;;  %v3542_v35 = vrot.slane %v12489_v30, 2  ;;  %v2520_v24 = vsel %vm515_vm0, %v7863_v5, %v12492_v28  ;;  %v3547_v22 = vrot.slane %v12494_v59, 2  ;;  %v12502_v61 = vld [vmem:[#allocation9_spill] sm:$0xff]  ;;  %v12504_v5 = vld [vmem:[#allocation54_spill] sm:$0xff] }
 0x19f   : > { %3598 = vrot.lane.b32.xlu0 %v3525_v46, %s7916_s19  ;;  %v12491_v46 = vld [vmem:[#allocation46_spill] sm:$0xff]  ;;  %v3557_v28 = vrot.slane %v12504_v5, 2 }
 0x1a0   : > { %v2439_v49 = vpop.permute.xlu1 %2438  ;;  %7501 = vmatmul.mubr.msk.f32.gmra.mxu1 %vm519_vm7, %v2545_v50  ;;  %v3544_v38 = vrot.slane %v12491_v46, 2  ;;  %v3543_v2 = vsel %vm1806_vm5, %v3541_v45, %v3542_v35  ;;  %v3546_v50 = vrot.slane %v12493_v51, 2  ;;  %v12501_v45 = vld [vmem:[#allocation23_spill] sm:$0xff]  ;;  %v12503_v46 = vld [vmem:[#allocation26_spill] sm:$0xff] }
 0x1a1   : > { %v2441_v11 = vpop.permute.xlu0 %2440  ;;  %7503 = vmatprep.mubr.msk.f32.mxu1 %vm519_vm7, %v2546_v20  ;;  %v2548_v36 = vsel %vm517_vm6, %v2516_v43, %v2439_v49 }
 0x1a2   : > { %3600 = vrot.lane.b32.xlu1 %v3528_v9, %s7916_s19  ;;  %v2549_v18 = vsel %vm517_vm6, %v2517_v32, %v2441_v11  ;;  %v3545_v11 = vsel %vm1806_vm5, %v3542_v35, %v3544_v38  ;;  %v3548_v32 = vsel %vm1806_vm5, %v3546_v50, %v3547_v22  ;;  %v3554_v35 = vrot.slane %v12501_v45, 2 }
 0x1a3   : > { %3602 = vrot.lane.b32.xlu0 %v3530_v4, %s7916_s19  ;;  %v7864_v4 = vld [vmem:[#allocation2 + $0x128] sm:$0xff]  ;;  %v3556_v38 = vrot.slane %v12503_v46, 2 }
 0x1a4   : > { %v2443_v40 = vpop.permute.xlu1 %2442  ;;  %7504 = vmatmul.mubr.msk.f32.gmra.mxu1 %vm519_vm7, %v2547_v53  ;;  %v2521_v63 = vsel %vm515_vm0, %v7864_v4, %v12495_v62  ;;  %v2522_v53 = vsel %vm515_vm0, %v7865_v42, %v12497_v15  ;;  %v7869_v62 = vld [vmem:[#allocation2 + $0x168] sm:$0xff]  ;;  %v12508_v42 = vld [vmem:[#allocation27_spill] sm:$0xff] }
 0x1a5   : > { %v2445_v33 = vpop.permute.xlu0 %2444  ;;  %7506 = vmatprep.mubr.msk.f32.mxu1 %vm519_vm7, %v2548_v36  ;;  %v2550_v23 = vsel %vm517_vm6, %v2518_v31, %v2443_v40  ;;  %v12496_v40 = vld [vmem:[#allocation22_spill] sm:$0xff]  ;;  %v12498_v36 = vld [vmem:[#allocation51_spill] sm:$0xff]  ;;  %v3561_v15 = vrot.slane %v12508_v42, 2 }
 0x1a6   : > { %3604 = vrot.lane.b32.xlu1 %v3533_v10, %s7916_s19  ;;  %v2551_v20 = vsel %vm517_vm6, %v2519_v54, %v2445_v33  ;;  %v3549_v10 = vrot.slane %v12496_v40, 2  ;;  %v12500_v31 = vld [vmem:[#allocation10_spill] sm:$0xff] }
 0x1a7   : > { %3606 = vrot.lane.b32.xlu0 %v3535_v13, %s7916_s19  ;;  %v3551_v13 = vrot.slane %v12498_v36, 2  ;;  %v2523_v33 = vsel %vm515_vm0, %v7866_v16, %v12500_v31  ;;  %v12511_v31 = vld [vmem:[#allocation56_spill] sm:$0xff] }
 0x1a8   : > { %v2447_v34 = vpop.permute.xlu1 %2446  ;;  %7507 = vmatmul.mubr.msk.f32.gmra.mxu1 %vm519_vm7, %v2549_v18  ;;  %v7867_v18 = vld [vmem:[#allocation2 + $0x150] sm:$0xff] }
 0x1a9   : > { %v2449_v49 = vpop.permute.xlu0 %2448  ;;  %7509 = vmatprep.mubr.msk.f32.mxu1 %vm519_vm7, %v2550_v23  ;;  %v2552_v43 = vsel %vm517_vm6, %v2520_v24, %v2447_v34  ;;  %v2524_v17 = vsel %vm515_vm0, %v7867_v18, %v12502_v61 }
 0x1aa   : > { %3608 = vrot.lane.b32.xlu1 %v3538_v6, %s7916_s19  ;;  %v2553_v14 = vsel %vm517_vm6, %v2521_v63, %v2449_v49  ;;  %v3550_v6 = vsel %vm1806_vm5, %v3547_v22, %v3549_v10  ;;  %v7868_v49 = vld [vmem:[#allocation2 + $0x158] sm:$0xff]  ;;  %v3555_v22 = vsel %vm1806_vm5, %v3552_v27, %v3554_v35  ;;  %v3558_v10 = vsel %vm1806_vm5, %v3556_v38, %v3557_v28 }
 0x1ab   : > { %3610 = vrot.lane.b32.xlu0 %v3540_v1, %s7916_s19  ;;  %v3553_v1 = vsel %vm1806_vm5, %v3551_v13, %v3552_v27  ;;  %v12507_v63 = vld [vmem:[#allocation11_spill] sm:$0xff]  ;;  %v12510_v13 = vld [vmem:[#allocation30_spill] sm:$0xff] }
 0x1ac   : > { %v2451_v9 = vpop.permute.xlu1 %2450  ;;  %7510 = vmatmul.mubr.msk.f32.gmra.mxu1 %vm519_vm7, %v2551_v20  ;;  %v12506_v20 = vld [vmem:[#allocation7_spill] sm:$0xff] }
 0x1ad   : > { %v2453_v25 = vpop.permute.xlu0 %2452  ;;  %7512 = vmatprep.mubr.msk.f32.mxu1 %vm519_vm7, %v2552_v43  ;;  %v2554_v34 = vsel %vm517_vm6, %v2522_v53, %v2451_v9  ;;  %v12505_v9 = vld [vmem:[#allocation53_spill] sm:$0xff]  ;;  %v3559_v4 = vrot.slane %v12506_v20, 2  ;;  %v2526_v43 = vsel %vm515_vm0, %v7869_v62, %v12507_v63  ;;  %v12509_v53 = vld [vmem:[#allocation14_spill] sm:$0xff]  ;;  %v12518_v20 = vld [vmem:[#allocation15_spill] sm:$0xff] }
 0x1ae   : > { %3612 = vrot.lane.b32.xlu1 %v3543_v2, %s7916_s19  ;;  %v2555_v24 = vsel %vm517_vm6, %v2523_v33, %v2453_v25  ;;  %v2525_v2 = vsel %vm515_vm0, %v7868_v49, %v12505_v9  ;;  %v3562_v25 = vrot.slane %v12509_v53, 2  ;;  %v3564_v33 = vrot.slane %v12511_v31, 2  ;;  %v12519_v63 = vld [vmem:[#allocation32_spill] sm:$0xff] }
 0x1af   : > { %3614 = vrot.lane.b32.xlu0 %v3545_v11, %s7916_s19  ;;  %v3560_v16 = vsel %vm1806_vm5, %v3557_v28, %v3559_v4  ;;  %v3572_v4 = vrot.slane %v12518_v20, 2 }
 0x1b0   : > { %v2455_v12 = vpop.permute.xlu1 %2454  ;;  %7513 = vmatmul.mubr.msk.f32.gmra.mxu1 %vm519_vm7, %v2553_v14  ;;  %v3563_v61 = vsel %vm1806_vm5, %v3561_v15, %v3562_v25  ;;  %v3565_v28 = vsel %vm1806_vm5, %v3562_v25, %v3564_v33  ;;  %v12521_v15 = vld [vmem:[#allocation29_spill] sm:$0xff]  ;;  %v9884_v25 = vld [vmem:[#allocation3] sm:$0xff] }
 0x1b1   : > { %v2457_v54 = vpop.permute.xlu0 %2456  ;;  %7515 = vmatprep.mubr.msk.f32.mxu1 %vm519_vm7, %v2554_v34  ;;  %v2556_v50 = vsel %vm517_vm6, %v2524_v17, %v2455_v12  ;;  %v9847_v34 = vld [vmem:[#allocation2 + $0x180] sm:$0xff]  ;;  %12522 = vst [vmem:[#allocation13_spill] sm:$0xff] %v9884_v25  ;;  %v4196_v31 = vrot.slane %v9884_v25, 1 }
 0x1b2   : > { %3616 = vrot.lane.b32.xlu1 %v3548_v32, %s7916_s19  ;;  %v2557_v12 = vsel %vm517_vm6, %v2525_v2, %v2457_v54  ;;  %v7870_v32 = vld [vmem:[#allocation2 + $0x170] sm:$0xff]  ;;  %12512 = vst [vmem:[#allocation58_spill] sm:$0xff] %v9847_v34  ;;  %v9860_v54 = vld [vmem:[#allocation2 + $0x188] sm:$0xff] }
 0x1b3   : > { %3618 = vrot.lane.b32.xlu0 %v3550_v6, %s7916_s19  ;;  %v2527_v27 = vsel %vm515_vm0, %v7870_v32, %v12510_v13  ;;  %v12513_v6 = vld [vmem:[#allocation55_spill] sm:$0xff]  ;;  %12514 = vst [vmem:[#allocation57_spill] sm:$0xff] %v9860_v54 }
 0x1b4   : > { %v2459_v23 = vpop.permute.xlu1 %2458  ;;  %7516 = vmatmul.mubr.msk.f32.gmra.mxu1 %vm519_vm7, %v2555_v24  ;;  %v2528_v45 = vsel %vm515_vm0, %v9847_v34, %v12513_v6  ;;  %v12516_v24 = vld [vmem:[#allocation16_spill] sm:$0xff] }
 0x1b5   : > { %v2461_v11 = vpop.permute.xlu0 %2460  ;;  %7518 = vmatprep.mubr.msk.f32.mxu1 %vm519_vm7, %v2556_v50  ;;  %v2558_v14 = vsel %vm517_vm6, %v2526_v43, %v2459_v23  ;;  %v12515_v23 = vld [vmem:[#allocation12_spill] sm:$0xff]  ;;  %v3569_v49 = vrot.slane %v12516_v24, 2  ;;  %v12517_v50 = vld [vmem:[#allocation31_spill] sm:$0xff] }
 0x1b6   : > { %3620 = vrot.lane.b32.xlu1 %v3553_v1, %s7916_s19  ;;  %v2559_v17 = vsel %vm517_vm6, %v2527_v27, %v2461_v11  ;;  %v2529_v1 = vsel %vm515_vm0, %v9860_v54, %v12515_v23  ;;  %v12520_v11 = vld [vmem:[#allocation34_spill] sm:$0xff]  ;;  %v4372_v27 = vrot.slane %v9884_v25, 2 }
 0x1b7   : > { %3622 = vrot.lane.b32.xlu0 %v3555_v22, %s7916_s19  ;;  %v3571_v22 = vrot.slane %v12517_v50, 2  ;;  %v3570_v43 = vsel %vm1806_vm5, %v12519_v63, %v3569_v49 }
 0x1b8   : > { %v2463_v40 = vpop.permute.xlu1 %2462  ;;  %7519 = vmatmul.mubr.msk.f32.gmra.mxu1 %vm519_vm7, %v2557_v12  ;;  %v9886_v12 = vld [vmem:[#allocation3 + $0x8] sm:$0xff] }
 0x1b9   : > { %v2465_v35 = vpop.permute.xlu0 %2464  ;;  %7521 = vmatprep.mubr.msk.f32.mxu1 %vm519_vm7, %v2558_v14  ;;  %v2560_v38 = vsel %vm517_vm6, %v2528_v45, %v2463_v40  ;;  %v3574_v40 = vrot.slane %v12520_v11, 2  ;;  %12523 = vst [vmem:[#allocation17_spill] sm:$0xff] %v9886_v12  ;;  %v3573_v13 = vsel %vm1806_vm5, %v3571_v22, %v3572_v4  ;;  %v4373_v14 = vrot.slane %v9886_v12, 2  ;;  %v4102_v45 = vld [vmem:[#allocation3 + $0x10] sm:$0x3] }
 0x1ba   : > { %3624 = vrot.lane.b32.xlu1 %v3558_v10, %s7916_s19  ;;  %v2561_v62 = vsel %vm517_vm6, %v2529_v1, %v2465_v35  ;;  %v4197_v33 = vrot.slane %v9886_v12, 1  ;;  %v4199_v23 = vrot.slane %v4102_v45, 1  ;;  %v4375_v24 = vrot.slane %v4102_v45, 2 }
 0x1bb   : > { %3626 = vrot.lane.b32.xlu0 %v3560_v16, %s7916_s19  ;;  %v3575_v16 = vsel %vm1806_vm5, %v3572_v4, %v3574_v40 }
 0x1bc   : > { %v9854_v18 = vpop.permute.xlu1 %3400  ;;  %7522 = vmatmul.mubr.msk.f32.gmra.mxu1 %vm519_vm7, %v2559_v17  ;;  %v4198_v17 = vsel %vm1629_vm2, %v4196_v31, %v4197_v33  ;;  %v4376_v4 = vsel %vm1806_vm5, %v4373_v14, %v4375_v24 }
 0x1bd   : > { %v9868_v9 = vpop.permute.xlu0 %3402  ;;  %7524 = vmatprep.mubr.msk.f32.mxu1 %vm519_vm7, %v2560_v38  ;;  %v3672_v25 = vsel %vm515_vm0, %v9342_v52, %v9854_v18 }
 0x1be   : > { %3628 = vrot.lane.b32.xlu1 %v3563_v61, %s7916_s19  ;;  %v4374_v61 = vsel %vm1806_vm5, %v4372_v27, %v4373_v14  ;;  %v3673_v50 = vsel %vm515_vm0, %v9344_v48, %v9868_v9 }
 0x1bf   : > { %3630 = vrot.lane.b32.xlu0 %v3565_v28, %s7916_s19  ;;  %v4200_v28 = vsel %vm1629_vm2, %v4197_v33, %v4199_v23 }
 0x1c0   : > { %v9872_v2 = vpop.permute.xlu1 %3404  ;;  %7525 = vmatmul.mubr.msk.f32.gmra.mxu1 %vm519_vm7, %v2561_v62 }
 0x1c1   : > { %v3407_v10 = vpop.permute.xlu0 %3406 }
 0x1c2   : > { %3632 = vrot.lane.b32.xlu1 %v12521_v15, %s7916_s19  ;;  %v3675_v52 = vsel %vm515_vm0, %v9366_v57, %v3407_v10 }
 0x1c3   : > { %3634 = vrot.lane.b32.xlu0 %v3570_v43, %s7916_s19 }
 0x1c4   : > { %v3409_v32 = vpop.permute.xlu1 %3408 }
 0x1c5   : > { %v3411_v6 = vpop.permute.xlu0 %3410 }
 0x1c6   : > { %3636 = vrot.lane.b32.xlu1 %v3573_v13, %s7916_s19 }
 0x1c7   : > { %3638 = vrot.lane.b32.xlu0 %v3575_v16, %s7916_s19 }
 0x1c8   : > { %v3413_v35 = vpop.permute.xlu1 %3412 }
 0x1c9   : > { %v3415_v1 = vpop.permute.xlu0 %3414 }
 0x1ca   : > { %4452 = vrot.lane.b32.xlu1 %v4374_v61, %s7916_s19 }
 0x1cb   : > { %4276 = vrot.lane.b32.xlu0 %v4198_v17, %s7913_s16 }
 0x1cc   : > { %v9901_v38 = vpop.permute.xlu1 %3416 }
 0x1cd   : > { %v9905_v49 = vpop.permute.xlu0 %3418 }
 0x1cf   : > { %4278 = vrot.lane.b32.xlu0 %v4200_v28, %s7913_s16 }
 0x1d0   : > { %v9907_v22 = vpop.permute.xlu1 %3420 }
 0x1d1   : > { %v9911_v62 = vpop.permute.xlu0 %3422 }
 0x1d3   : > { %4454 = vrot.lane.b32.xlu0 %v4376_v4, %s7916_s19 }
 0x1d4   : > { %v9913_v63 = vpop.permute.xlu1 %3424 }
 0x1d5   : > { %v9916_v43 = vpop.permute.xlu0 %3426 }
 0x1d8   : > { %v9918_v11 = vpop.permute.xlu1 %3428 }
 0x1d9   : > { %v9920_v40 = vpop.permute.xlu0 %3430 }
 0x1dc   : > { %v9922_v15 = vpop.permute.xlu1 %3432 }
 0x1dd   : > { %v9924_v13 = vpop.permute.xlu0 %3434 }
 0x1e0   : > { %v9926_v27 = vpop.permute.xlu1 %3436 }
 0x1e1   : > { %v9928_v16 = vpop.permute.xlu0 %3438 }
 0x1e4   : > { %v9930_v14 = vpop.permute.xlu1 %3440 }
 0x1e5   : > { %v9932_v31 = vpop.permute.xlu0 %3442 }
 0x1e8   : > { %v9934_v33 = vpop.permute.xlu1 %3444 }
 0x1e9   : > { %v9936_v45 = vpop.permute.xlu0 %3446 }
 0x1ec   : > { %v9938_v61 = vpop.permute.xlu1 %3448 }
 0x1ed   : > { %v9940_v17 = vpop.permute.xlu0 %3450 }
 0x1f0   : > { %v9942_v23 = vpop.permute.xlu1 %3452 }
 0x1f1   : > { %v9944_v28 = vpop.permute.xlu0 %3454 }
 0x1f4   : > { %v9946_v24 = vpop.permute.xlu1 %3456 }
 0x1f5   : > { %12524 = vst [vmem:[#allocation35_spill] sm:$0xff] %v9946_v24  ;;  %v9948_v4 = vpop.permute.xlu0 %3458  ;;  %v3674_v24 = vsel %vm515_vm0, %v9364_v58, %v9872_v2 }
 0x1f6   : > { %12525 = vst [vmem:[#allocation20_spill] sm:$0xff] %v9948_v4 }
 0x1f8   : > { %v9950_v12 = vpop.permute.xlu1 %3460 }
 0x1f9   : > { %12526 = vst [vmem:[#allocation38_spill] sm:$0xff] %v9950_v12  ;;  %v9955_v20 = vpop.permute.xlu0 %3462 }
 0x1fc   : > { %v3577_v54 = vpop.permute.xlu1 %3576 }
 0x1fd   : > { %v3704_v34 = vsel %vm517_vm6, %v3672_v25, %v3577_v54  ;;  %v3579_v4 = vpop.permute.xlu0 %3578  ;;  %v3676_v54 = vsel %vm515_vm0, %v9383_v7, %v3409_v32  ;;  %v4614_v7 = vld [vmem:[%s12161_s5 + $0x8] sm:$0xf]  ;;  %v7836_v25 = vld [vmem:[%s12161_s5] sm:$0xff]  }
 0x1fe   : > { %7583 = vmatprep.mubr.msk.f32.mxu1 %vm519_vm7, %v3704_v34  ;;  %v3705_v12 = vsel %vm517_vm6, %v3673_v50, %v3579_v4  ;;  %v3677_v34 = vsel %vm515_vm0, %v9385_v60, %v3411_v6  ;;  %v3678_v50 = vsel %vm515_vm0, %v9400_v41, %v3413_v35  ;;  %7683 = vmatprep.subr.msk.mxu1 %vm2667_vm4, %v4614_v7 }
 0x1ff   : > { %7584 = vmatmul.mubr.msk.f32.vlgmr.msra.gmra.mxu1 %vm519_vm7, %v3705_v12  ;;  %v3679_v12 = vsel %vm515_vm0, %v9402_v56, %v3415_v1  ;;  %v3680_v6 = vsel %vm515_vm0, %v9417_v0, %v9901_v38  ;;  %v3681_v56 = vsel %vm515_vm0, %v9419_v29, %v9905_v49  ;;  %v3682_v0 = vsel %vm515_vm0, %v9434_v8, %v9907_v22 }
 0x200   : > { %v3581_v18 = vpop.permute.xlu1 %3580  ;;  %7684 = vmatpush3.msk.msra.mxu1 %vm2667_vm4, %v4614_v7  ;;  %v3685_v22 = vsel %vm515_vm0, %v9453_v21, %v9916_v43 }
 0x201   : > { %v3706_v48 = vsel %vm517_vm6, %v3674_v24, %v3581_v18  ;;  %v3583_v9 = vpop.permute.xlu0 %3582  ;;  %7685 = vmatprep.subr.mxu1 %v7836_v25  ;;  %v3683_v18 = vsel %vm515_vm0, %v9436_v26, %v9911_v62 }
 0x202   : > { %7586 = vmatprep.mubr.msk.f32.mxu1 %vm519_vm7, %v3706_v48  ;;  %v3707_v58 = vsel %vm517_vm6, %v3675_v52, %v3583_v9  ;;  %7686 = vmatpush3.msra.mxu1 %v7836_v25  ;;  %v3684_v48 = vsel %vm515_vm0, %v9451_v55, %v9913_v63  ;;  %v3686_v9 = vsel %vm515_vm0, %v9468_v47, %v9918_v11 }
 0x203   : > { %7587 = vmatmul.mubr.msk.f32.gmra.mxu1 %vm519_vm7, %v3707_v58  ;;  %v3687_v63 = vsel %vm515_vm0, %v9470_v44, %v9920_v40  ;;  %v3689_v11 = vsel %vm515_vm0, %v12484_v3, %v9924_v13  ;;  %v3694_v25 = vsel %vm515_vm0, %v12498_v36, %v9934_v33  ;;  %v3697_v33 = vsel %vm515_vm0, %v12504_v5, %v9940_v17 }
 0x204   : > { %v3585_v2 = vpop.permute.xlu1 %3584 }
 0x205   : > { %v3708_v57 = vsel %vm517_vm6, %v3676_v54, %v3585_v2  ;;  %v3587_v10 = vpop.permute.xlu0 %3586 }
 0x206   : > { %7589 = vmatprep.mubr.msk.f32.mxu1 %vm519_vm7, %v3708_v57  ;;  %v3709_v60 = vsel %vm517_vm6, %v3677_v34, %v3587_v10  ;;  %v3688_v34 = vsel %vm515_vm0, %v12483_v19, %v9922_v15  ;;  %v3690_v57 = vsel %vm515_vm0, %v12488_v39, %v9926_v27  ;;  %v3691_v15 = vsel %vm515_vm0, %v12489_v30, %v9928_v16 }
 0x207   : > { %7590 = vmatmul.mubr.msk.f32.gmra.mxu1 %vm519_vm7, %v3709_v60  ;;  %v3692_v10 = vsel %vm515_vm0, %v12493_v51, %v9930_v14  ;;  %v3693_v27 = vsel %vm515_vm0, %v12494_v59, %v9932_v31  ;;  %v3695_v14 = vsel %vm515_vm0, %v12499_v37, %v9936_v45 }
 0x208   : > { %v3589_v41 = vpop.permute.xlu1 %3588 }
 0x209   : > { %v3710_v32 = vsel %vm517_vm6, %v3678_v50, %v3589_v41  ;;  %v3591_v35 = vpop.permute.xlu0 %3590 }
 0x20a   : > { %7592 = vmatprep.mubr.msk.f32.mxu1 %vm519_vm7, %v3710_v32  ;;  %v3711_v24 = vsel %vm517_vm6, %v3679_v12, %v3591_v35  ;;  %v3696_v12 = vsel %vm515_vm0, %v12503_v46, %v9938_v61  ;;  %v3698_v32 = vsel %vm515_vm0, %v12508_v42, %v9942_v23  ;;  %v3699_v61 = vsel %vm515_vm0, %v12509_v53, %v9944_v28  ;;  %v12527_v35 = vld [vmem:[#allocation35_spill] sm:$0xff]  ;;  %v12529_v23 = vld [vmem:[#allocation20_spill] sm:$0xff] }
 0x20b   : > { %7593 = vmatmul.mubr.msk.f32.gmra.mxu1 %vm519_vm7, %v3711_v24  ;;  %v12528_v24 = vld [vmem:[#allocation58_spill] sm:$0xff] }
 0x20c   : > { %v3593_v1 = vpop.permute.xlu1 %3592 }
 0x20d   : > { %v3712_v4 = vsel %vm517_vm6, %v3680_v6, %v3593_v1  ;;  %v3595_v38 = vpop.permute.xlu0 %3594 }
 0x20e   : > { %7595 = vmatprep.mubr.msk.f32.mxu1 %vm519_vm7, %v3712_v4  ;;  %v3713_v52 = vsel %vm517_vm6, %v3681_v56, %v3595_v38  ;;  %v3700_v56 = vsel %vm515_vm0, %v12528_v24, %v12527_v35  ;;  %v12530_v4 = vld [vmem:[#allocation57_spill] sm:$0xff]  ;;  %v12531_v38 = vld [vmem:[#allocation38_spill] sm:$0xff] }
 0x20f   : > { %7596 = vmatmul.mubr.msk.f32.gmra.mxu1 %vm519_vm7, %v3713_v52  ;;  %v12532_v52 = vld [vmem:[#allocation31_spill] sm:$0xff] }
 0x210   : > { %v3597_v29 = vpop.permute.xlu1 %3596 }
 0x211   : > { %v3714_v49 = vsel %vm517_vm6, %v3682_v0, %v3597_v29  ;;  %v3599_v54 = vpop.permute.xlu0 %3598  ;;  %v3701_v0 = vsel %vm515_vm0, %v12530_v4, %v12529_v23 }
 0x212   : > { %7598 = vmatprep.mubr.msk.f32.mxu1 %vm519_vm7, %v3714_v49  ;;  %v3715_v8 = vsel %vm517_vm6, %v3683_v18, %v3599_v54  ;;  %v3702_v18 = vsel %vm515_vm0, %v12532_v52, %v12531_v38 }
 0x213   : > { %7599 = vmatmul.mubr.msk.f32.gmra.mxu1 %vm519_vm7, %v3715_v8 }
 0x214   : > { %v3601_v26 = vpop.permute.xlu1 %3600 }
 0x215   : > { %v3716_v62 = vsel %vm517_vm6, %v3684_v48, %v3601_v26  ;;  %v3603_v58 = vpop.permute.xlu0 %3602  ;;  %v12533_v48 = vld [vmem:[#allocation15_spill] sm:$0xff] }
 0x216   : > { %7601 = vmatprep.mubr.msk.f32.mxu1 %vm519_vm7, %v3716_v62  ;;  %v3717_v55 = vsel %vm517_vm6, %v3685_v22, %v3603_v58  ;;  %v3703_v54 = vsel %vm515_vm0, %v12533_v48, %v9955_v20 }
 0x217   : > { %7602 = vmatmul.mubr.msk.f32.gmra.mxu1 %vm519_vm7, %v3717_v55  ;;  %v12534_v55 = vld [vmem:[#allocation13_spill] sm:$0xff] }
 0x218   : > { %v3605_v21 = vpop.permute.xlu1 %3604 }
 0x219   : > { %v3718_v43 = vsel %vm517_vm6, %v3686_v9, %v3605_v21  ;;  %v3607_v2 = vpop.permute.xlu0 %3606 }
 0x21a   : > { %7604 = vmatprep.mubr.msk.f32.mxu1 %vm519_vm7, %v3718_v43  ;;  %v3719_v47 = vsel %vm517_vm6, %v3687_v63, %v3607_v2 }
 0x21b   : > { %7605 = vmatmul.mubr.msk.f32.gmra.mxu1 %vm519_vm7, %v3719_v47 }
 0x21c   : > { %v3609_v44 = vpop.permute.xlu1 %3608 }
 0x21d   : > { %v3720_v40 = vsel %vm517_vm6, %v3688_v34, %v3609_v44  ;;  %v3611_v50 = vpop.permute.xlu0 %3610  ;;  %v12535_v34 = vld [vmem:[#allocation17_spill] sm:$0xff] }
 0x21e   : > { %7607 = vmatprep.mubr.msk.f32.mxu1 %vm519_vm7, %v3720_v40  ;;  %v3721_v19 = vsel %vm517_vm6, %v3689_v11, %v3611_v50 }
 0x21f   : > { %7608 = vmatmul.mubr.msk.f32.gmra.mxu1 %vm519_vm7, %v3721_v19 }
 0x220   : > { %v3613_v3 = vpop.permute.xlu1 %3612 }
 0x221   : > { %v3722_v13 = vsel %vm517_vm6, %v3690_v57, %v3613_v3  ;;  %v3615_v7 = vpop.permute.xlu0 %3614 }
 0x222   : > { %7610 = vmatprep.mubr.msk.f32.mxu1 %vm519_vm7, %v3722_v13  ;;  %v3723_v39 = vsel %vm517_vm6, %v3691_v15, %v3615_v7 }
 0x223   : > { %7611 = vmatmul.mubr.msk.f32.gmra.mxu1 %vm519_vm7, %v3723_v39 }
 0x224   : > { %v3617_v30 = vpop.permute.xlu1 %3616 }
 0x225   : > { %v3724_v16 = vsel %vm517_vm6, %v3692_v10, %v3617_v30  ;;  %v3619_v60 = vpop.permute.xlu0 %3618 }
 0x226   : > { %7613 = vmatprep.mubr.msk.f32.mxu1 %vm519_vm7, %v3724_v16  ;;  %v3725_v51 = vsel %vm517_vm6, %v3693_v27, %v3619_v60 }
 0x227   : > { %7614 = vmatmul.mubr.msk.f32.gmra.mxu1 %vm519_vm7, %v3725_v51 }
 0x228   : > { %v3621_v59 = vpop.permute.xlu1 %3620 }
 0x229   : > { %v3726_v31 = vsel %vm517_vm6, %v3694_v25, %v3621_v59  ;;  %v3623_v41 = vpop.permute.xlu0 %3622  ;;  %v7533_v25 = vpop.f32.mrf.mxu0 }
 0x22a   : > { %7616 = vmatprep.mubr.msk.f32.mxu1 %vm519_vm7, %v3726_v31  ;;  %v3727_v36 = vsel %vm517_vm6, %v3695_v14, %v3623_v41 }
 0x22b   : > { %7617 = vmatmul.mubr.msk.f32.gmra.mxu1 %vm519_vm7, %v3727_v36  ;;  %v3064_v51 = vpop.f32.mrf.mxu0 }
 0x22c   : > { %v3625_v37 = vpop.permute.xlu1 %3624 }
 0x22d   : > { %v3728_v45 = vsel %vm517_vm6, %v3696_v12, %v3625_v37  ;;  %v3627_v6 = vpop.permute.xlu0 %3626  ;;  %v7536_v14 = vpop.f32.mrf.mxu0 }
 0x22e   : > { %7619 = vmatprep.mubr.msk.f32.mxu1 %vm519_vm7, %v3728_v45  ;;  %v3729_v46 = vsel %vm517_vm6, %v3697_v33, %v3627_v6 }
 0x22f   : > { %7620 = vmatmul.mubr.msk.f32.gmra.mxu1 %vm519_vm7, %v3729_v46  ;;  %v3074_v31 = vpop.f32.mrf.mxu0 }
 0x230   : > { %v3629_v5 = vpop.permute.xlu1 %3628 }
 0x231   : > { %v3730_v17 = vsel %vm517_vm6, %v3698_v32, %v3629_v5  ;;  %v3631_v1 = vpop.permute.xlu0 %3630  ;;  %v7539_v41 = vpop.f32.mrf.mxu0 }
 0x232   : > { %7622 = vmatprep.mubr.msk.f32.mxu1 %vm519_vm7, %v3730_v17  ;;  %v3731_v42 = vsel %vm517_vm6, %v3699_v61, %v3631_v1 }
 0x233   : > { %7623 = vmatmul.mubr.msk.f32.gmra.mxu1 %vm519_vm7, %v3731_v42  ;;  %v3084_v33 = vpop.f32.mrf.mxu0 }
 0x234   : > { %v3633_v53 = vpop.permute.xlu1 %3632 }
 0x235   : > { %v3732_v28 = vsel %vm517_vm6, %v3700_v56, %v3633_v53  ;;  %v3635_v29 = vpop.permute.xlu0 %3634  ;;  %v7542_v45 = vpop.f32.mrf.mxu0 }
 0x236   : > { %7625 = vmatprep.mubr.msk.f32.mxu1 %vm519_vm7, %v3732_v28  ;;  %v3733_v49 = vsel %vm517_vm6, %v3701_v0, %v3635_v29 }
 0x237   : > { %7626 = vmatmul.mubr.msk.f32.gmra.mxu1 %vm519_vm7, %v3733_v49  ;;  %v3094_v6 = vpop.f32.mrf.mxu0 }
 0x238   : > { %v3637_v8 = vpop.permute.xlu1 %3636 }
 0x239   : > { %v3734_v22 = vsel %vm517_vm6, %v3702_v18, %v3637_v8  ;;  %v3639_v26 = vpop.permute.xlu0 %3638  ;;  %v7545_v61 = vpop.f32.mrf.mxu0 }
 0x23a   : > { %7628 = vmatprep.mubr.msk.f32.mxu1 %vm519_vm7, %v3734_v22  ;;  %v3735_v62 = vsel %vm517_vm6, %v3703_v54, %v3639_v26 }
 0x23b   : > { %7629 = vmatmul.mubr.msk.f32.gmra.mxu1 %vm519_vm7, %v3735_v62  ;;  %v3104_v17 = vpop.f32.mrf.mxu0 }
 0x23c   : > { %v4453_v9 = vpop.permute.xlu1 %4452 }
 0x23d   : > { %v4277_v58 = vpop.permute.xlu0 %4276  ;;  %v7548_v24 = vpop.f32.mrf.mxu0 }
 0x23e   : > { %v4548_v63 = vsel %vm515_vm0, %v12534_v55, %v4277_v58 }
 0x23f   : > { %v4580_v21 = vsel %vm517_vm6, %v4548_v63, %v4453_v9  ;;  %v10205_v1 = vpop.f32.mrf.mxu0 }
 0x240   : > { %7687 = vmatprep.mubr.msk.f32.mxu1 %vm519_vm7, %v4580_v21  ;;  %v10121_v43 = vpop.f32.mrf.mxu1 }
 0x241   : > { %v4279_v20 = vpop.permute.xlu0 %4278  ;;  %868 = vrot.lane.b32.xlu0 %v10121_v43, %s7921_s15  ;;  %v10209_v23 = vpop.f32.mrf.mxu0 }
 0x242   : > { %v4549_v2 = vsel %vm515_vm0, %v12535_v34, %v4279_v20  ;;  %v10126_v47 = vpop.f32.mrf.mxu1 }
 0x243   : > { %866 = vrot.lane.b32.xlu1 %v10126_v47, %s7921_s15  ;;  %v10213_v0 = vpop.f32.mrf.mxu0 }
 0x244   : > { %v10129_v44 = vpop.f32.mrf.mxu1 }
 0x245   : > { %v4455_v11 = vpop.permute.xlu0 %4454  ;;  %874 = vrot.lane.b32.xlu0 %v10121_v43, %s7922_s17  ;;  %v10217_v28 = vpop.f32.mrf.mxu0  ;;  %v3070_v20 = vadd.f32 %v7533_v25, %v10129_v44 }
 0x246   : > { %v4581_v40 = vsel %vm517_vm6, %v4549_v2, %v4455_v11  ;;  %v10134_v57 = vpop.f32.mrf.mxu1 }
 0x247   : > { %7688 = vmatmul.mubr.msk.f32.vlgmr.msra.gmra.mxu1 %vm519_vm7, %v4581_v40  ;;  %872 = vrot.lane.b32.xlu1 %v10126_v47, %s7922_s17  ;;  %v10221_v52 = vpop.f32.mrf.mxu0 }
 0x248   : > { %v10137_v50 = vpop.f32.mrf.mxu1 }
 0x249   : > { %880 = vrot.lane.b32.xlu0 %v10121_v43, %s7923_s18  ;;  %v10225_v29 = vpop.f32.mrf.mxu0 }
 0x24a   : > { %v10140_v19 = vpop.f32.mrf.mxu1 }
 0x24b   : > { %878 = vrot.lane.b32.xlu1 %v10126_v47, %s7923_s18  ;;  %v10229_v48 = vpop.f32.mrf.mxu0  ;;  %v3075_v44 = vadd.f32 %v3074_v31, %v10140_v19 }
 0x24c   : > { %v10144_v15 = vpop.f32.mrf.mxu1 }
 0x24d   : > { %886 = vrot.lane.b32.xlu0 %v10121_v43, %s7924_s20  ;;  %v10233_v26 = vpop.f32.mrf.mxu0  ;;  %v3090_v25 = vadd.f32 %v7539_v41, %v10144_v15 }
 0x24e   : > { %v10148_v3 = vpop.f32.mrf.mxu1 }
 0x24f   : > { %884 = vrot.lane.b32.xlu1 %v10126_v47, %s7924_s20  ;;  %v10237_v55 = vpop.f32.mrf.mxu0 }
 0x250   : > { %v10152_v13 = vpop.f32.mrf.mxu1 }
 0x251   : > { %892 = vrot.lane.b32.xlu0 %v10121_v43, %s7925_s21  ;;  %v10242_v11 = vpop.f32.mrf.mxu0 }
 0x252   : > { %v10156_v10 = vpop.f32.mrf.mxu1 }
 0x253   : > { %890 = vrot.lane.b32.xlu1 %v10126_v47, %s7925_s21  ;;  %v3095_v19 = vadd.f32 %v3094_v6, %v10156_v10 }
 0x254   : > { %v10160_v7 = vpop.f32.mrf.mxu1 }
 0x255   : > { %898 = vrot.lane.b32.xlu0 %v10121_v43, %s7926_s22  ;;  %v3110_v15 = vadd.f32 %v7545_v61, %v10160_v7 }
 0x256   : > { %v10164_v39 = vpop.f32.mrf.mxu1 }
 0x257   : > { %896 = vrot.lane.b32.xlu1 %v10126_v47, %s7926_s22 }
 0x258   : > { %v10168_v27 = vpop.f32.mrf.mxu1 }
 0x259   : > { %904 = vrot.lane.b32.xlu0 %v10121_v43, %s7927_s23  ;;  %v10277_v10 = vadd.f32 %v7548_v24, %v10168_v27 }
 0x25a   : > { %v10172_v30 = vpop.f32.mrf.mxu1 }
 0x25b   : > { %902 = vrot.lane.b32.xlu1 %v10126_v47, %s7927_s23  ;;  %s11929_s23 = scalar_lea.vmem %s12162_s6, %s7244_s9 }
 0x25c   : > { %v10176_v16 = vpop.f32.mrf.mxu1 }
 0x25d   : > { %910 = vrot.lane.b32.xlu0 %v10121_v43, %s7928_s24 }
 0x25e   : > { %v10180_v60 = vpop.f32.mrf.mxu1 }
 0x25f   : > { %908 = vrot.lane.b32.xlu1 %v10126_v47, %s7928_s24 }
 0x260   : > { %v10184_v59 = vpop.f32.mrf.mxu1 }
 0x261   : > { %916 = vrot.lane.b32.xlu0 %v10121_v43, %s7929_s25 }
 0x262   : > { %v10188_v12 = vpop.f32.mrf.mxu1 }
 0x263   : > { %914 = vrot.lane.b32.xlu1 %v10126_v47, %s7929_s25  ;;  %s339_s25 = scalar_lea.vmem %s12163_s7, %s12657_s28 }
 0x264   : > { %v10191_v36 = vpop.f32.mrf.mxu1 }
 0x265   : > { %922 = vrot.lane.b32.xlu0 %v10121_v43, %s7930_s26 }
 0x266   : > { %v10193_v37 = vpop.f32.mrf.mxu1 }
 0x267   : > { %920 = vrot.lane.b32.xlu1 %v10126_v47, %s7930_s26 }
 0x268   : > { %v10195_v32 = vpop.f32.mrf.mxu1 }
 0x269   : > { %928 = vrot.lane.b32.xlu0 %v10121_v43, %s7931_s29 }
 0x26a   : > { %v10197_v46 = vpop.f32.mrf.mxu1 }
 0x26b   : > { %926 = vrot.lane.b32.xlu1 %v10126_v47, %s7931_s29 }
 0x26c   : > { %v10199_v5 = vpop.f32.mrf.mxu1 }
 0x26d   : > { %934 = vrot.lane.b32.xlu0 %v10121_v43, %s7932_s30 }
 0x26e   : > { %v10201_v35 = vpop.f32.mrf.mxu1 }
 0x26f   : > { %932 = vrot.lane.b32.xlu1 %v10126_v47, %s7932_s30  ;;  %s342_s30 = scalar_lea.vmem %s12164_s8, %s12657_s28 }
 0x270   : > { %v10203_v56 = vpop.f32.mrf.mxu1 }
 0x271   : > { %940 = vrot.lane.b32.xlu0 %v10121_v43, %s7933_s10  ;;  %12536 = vst [vmem:[#allocation60_spill] sm:$0xff] %v10203_v56 }
 0x272   : > { %v10207_v42 = vpop.f32.mrf.mxu1 }
 0x273   : > { %938 = vrot.lane.b32.xlu1 %v10126_v47, %s7933_s10  ;;  %12537 = vst [vmem:[#allocation59_spill] sm:$0xff] %v10207_v42 }
 0x274   : > { %v10211_v4 = vpop.f32.mrf.mxu1 }
 0x275   : > { %946 = vrot.lane.b32.xlu0 %v10121_v43, %s7934_s11  ;;  %12538 = vst [vmem:[#allocation18_spill] sm:$0xff] %v10211_v4 }
 0x276   : > { %v10215_v53 = vpop.f32.mrf.mxu1 }
 0x277   : > { %944 = vrot.lane.b32.xlu1 %v10126_v47, %s7934_s11  ;;  %12539 = vst [vmem:[#allocation24_spill] sm:$0xff] %v10215_v53  ;;  %v3080_v53 = vadd.f32 %v7536_v14, %v10137_v50  ;;  %v3100_v50 = vadd.f32 %v7542_v45, %v10152_v13  ;;  %v12548_v14 = vld [vmem:[#allocation4_spill] sm:$0xff] }
 0x278   : > { %v10219_v38 = vpop.f32.mrf.mxu1 }
 0x279   : > { %952 = vrot.lane.b32.xlu0 %v10121_v43, %s7935_s12  ;;  %12540 = vst [vmem:[#allocation39_spill] sm:$0xff] %v10219_v38 }
 0x27a   : > { %v10223_v18 = vpop.f32.mrf.mxu1 }
 0x27b   : > { %950 = vrot.lane.b32.xlu1 %v10126_v47, %s7935_s12  ;;  %12541 = vst [vmem:[#allocation21_spill] sm:$0xff] %v10223_v18  ;;  %v3065_v18 = vadd.f32 %v3064_v51, %v10134_v57  ;;  %v10258_v57 = vpop.f32.mrf.mxu0  ;;  %v3085_v51 = vadd.f32 %v3084_v33, %v10148_v3  ;;  %v10274_v33 = vadd.f32 %v3104_v17, %v10164_v39 }
 0x27c   : > { %v10227_v49 = vpop.f32.mrf.mxu1  ;;  %v10287_v39 = vadd.f32 %v10205_v1, %v10172_v30  ;;  %v10303_v30 = vadd.f32 %v10217_v28, %v10184_v59 }
 0x27d   : > { %12542 = vst [vmem:[#allocation42_spill] sm:$0xff] %v10227_v49 }
 0x27e   : > { %v10231_v54 = vpop.f32.mrf.mxu1 }
 0x27f   : > { %12543 = vst [vmem:[#allocation62_spill] sm:$0xff] %v10231_v54 }
 0x280   : > { %v10235_v62 = vpop.f32.mrf.mxu1 }
 0x281   : > { %12544 = vst [vmem:[#allocation61_spill] sm:$0xff] %v10235_v62 }
 0x282   : > { %v10239_v63 = vpop.f32.mrf.mxu1 }
 0x283   : > { %12545 = vst [vmem:[#allocation19_spill] sm:$0xff] %v10239_v63 }
 0x2b3   : > { %v869_v8 = vpop.permute.xlu0 %868 }
 0x2b5   : > { %v867_v22 = vpop.permute.xlu1 %866 }
 0x2b7   : > { %v875_v9 = vpop.permute.xlu0 %874 }
 0x2b8   : > { %v1228_v63 = vcombine.low %v10121_v43, %v875_v9  ;;  %v1229_v4 = vcombine.high %v10121_v43, %v875_v9 }
 0x2b9   : > { %v873_v58 = vpop.permute.xlu1 %872 }
 0x2ba   : > { %v956_v31 = vcombine.low %v10126_v47, %v873_v58  ;;  %v1236_v9 = vrot.slane %v1228_v63, %v12548_v14  ;;  %v957_v7 = vcombine.high %v10126_v47, %v873_v58  ;;  %v10295_v58 = vadd.f32 %v10209_v23, %v10176_v16 }
 0x2bb   : > { %v881_v21 = vpop.permute.xlu0 %880 }
 0x2bc   : > { %v1244_v40 = vcombine.low %v869_v8, %v881_v21  ;;  %v1245_v54 = vcombine.high %v869_v8, %v881_v21  ;;  %v964_v27 = vrot.slane %v956_v31, %v12548_v14 }
 0x2bd   : > { %v879_v2 = vpop.permute.xlu1 %878 }
 0x2be   : > { %v972_v42 = vcombine.low %v867_v22, %v879_v2  ;;  %v1259_v43 = vrot.slane %v1245_v54, %v12548_v14  ;;  %v973_v41 = vcombine.high %v867_v22, %v879_v2  ;;  %v10281_v54 = vpop.f32.mrf.mxu0  ;;  %v10299_v2 = vadd.f32 %v10213_v0, %v10180_v60  ;;  %v12553_v60 = vld [vmem:[#allocation5_spill] sm:$0xff] }
 0x2bf   : > { %v7585_v34 = vpop.f32.mrf.mxu1  ;;  %v10247_v62 = vpop.permute.xlu0 %886 }
 0x2c0   : > { %v10244_v49 = vadd.f32 %v7585_v34, %v3070_v20  ;;  %v1252_v20 = vrot.slane %v1244_v40, %v12548_v14  ;;  %v1243_v34 = vrot.slane %v1229_v4, %v12548_v14  ;;  %v980_v45 = vrot.slane %v972_v42, %v12548_v14 }
 0x2c1   : > { %v3909_v38 = vpop.f32.mrf.mxu1  ;;  %v10256_v21 = vpop.permute.xlu1 %884  ;;  %v10291_v47 = vrot.slane %v973_v41, %v12548_v14  ;;  %v10308_v40 = vrot.slane %v957_v7, %v12548_v14 }
 0x2c2   : > { %12546 = vst [vmem:[#allocation43_spill] sm:$0xff] %v10244_v49  ;;  %v10254_v56 = vadd.f32 %v3909_v38, %v3065_v18  ;;  %v1292_v22 = vcombine.low %v1236_v9, %v1252_v20  ;;  %v1293_v4 = vcombine.high %v1236_v9, %v1252_v20  ;;  %v1309_v17 = vcombine.high %v1243_v34, %v1259_v43  ;;  %v10312_v20 = vpop.f32.mrf.mxu0 }
 0x2c3   : > { %v7588_v8 = vpop.f32.mrf.mxu1  ;;  %v893_v38 = vpop.permute.xlu0 %892  ;;  %v1021_v31 = vcombine.high %v964_v27, %v980_v45 }
 0x2c4   : > { %12547 = vst [vmem:[#allocation64_spill] sm:$0xff] %v10254_v56  ;;  %v10269_v3 = vadd.f32 %v7588_v8, %v3080_v53  ;;  %v1308_v53 = vcombine.low %v1243_v34, %v1259_v43  ;;  %v10315_v0 = vrot.slane %v1292_v22, %v12553_v60  ;;  %v10318_v59 = vrot.slane %v1293_v4, %v12553_v60 }
 0x2c5   : > { %v3919_v18 = vpop.f32.mrf.mxu1  ;;  %v891_v61 = vpop.permute.xlu1 %890  ;;  %v10326_v43 = vrot.slane %v1309_v17, %v12553_v60  ;;  %v1037_v34 = vcombine.high %v10308_v40, %v10291_v47 }
 0x2c6   : > { %12549 = vst [vmem:[#allocation63_spill] sm:$0xff] %v10269_v3  ;;  %v10271_v13 = vadd.f32 %v3919_v18, %v3075_v44  ;;  %v1020_v44 = vcombine.low %v964_v27, %v980_v45  ;;  %v10321_v28 = vrot.slane %v1308_v53, %v12553_v60 }
 0x2c7   : > { %v7591_v6 = vpop.f32.mrf.mxu1  ;;  %v899_v24 = vpop.permute.xlu0 %898 }
 0x2c8   : > { %12550 = vst [vmem:[#allocation28_spill] sm:$0xff] %v10271_v13  ;;  %v10283_v63 = vadd.f32 %v7591_v6, %v3090_v25  ;;  %v1260_v25 = vcombine.low %v10247_v62, %v899_v24  ;;  %v1261_v8 = vcombine.high %v10247_v62, %v899_v24  ;;  %v1036_v62 = vcombine.low %v10308_v40, %v10291_v47  ;;  %v10341_v24 = vpop.f32.mrf.mxu0 }
 0x2c9   : > { %v3929_v42 = vpop.f32.mrf.mxu1  ;;  %v897_v23 = vpop.permute.xlu1 %896  ;;  %v10348_v40 = vrot.slane %v1021_v31, %v12553_v60 }
 0x2ca   : > { %12551 = vst [vmem:[#allocation66_spill] sm:$0xff] %v10283_v63  ;;  %v10305_v1 = vadd.f32 %v3929_v42, %v3085_v51  ;;  %v988_v41 = vcombine.low %v10256_v21, %v897_v23  ;;  %v1268_v4 = vrot.slane %v1260_v25, %v12548_v14  ;;  %v1275_v45 = vrot.slane %v1261_v8, %v12548_v14 }
 0x2cb   : > { %v7594_v16 = vpop.f32.mrf.mxu1  ;;  %v905_v18 = vpop.permute.xlu0 %904  ;;  %v989_v53 = vcombine.high %v10256_v21, %v897_v23 }
 0x2cc   : > { %12552 = vst [vmem:[#allocation65_spill] sm:$0xff] %v10305_v1  ;;  %v10323_v51 = vadd.f32 %v7594_v16, %v3100_v50  ;;  %v1276_v7 = vcombine.low %v893_v38, %v905_v18  ;;  %v1277_v6 = vcombine.high %v893_v38, %v905_v18  ;;  %v10336_v50 = vrot.slane %v1020_v44, %v12553_v60 }
 0x2cd   : > { %v3939_v9 = vpop.f32.mrf.mxu1  ;;  %v903_v17 = vpop.permute.xlu1 %902  ;;  %v10351_v44 = vrot.slane %v1036_v62, %v12553_v60  ;;  %v996_v25 = vrot.slane %v988_v41, %v12548_v14 }
 0x2ce   : > { %12554 = vst [vmem:[#allocation25_spill] sm:$0xff] %v10323_v51  ;;  %v10333_v22 = vadd.f32 %v3939_v9, %v3095_v19  ;;  %v1284_v42 = vrot.slane %v1276_v7, %v12548_v14  ;;  %v1291_v47 = vrot.slane %v1277_v6, %v12548_v14  ;;  %v1004_v19 = vcombine.low %v891_v61, %v903_v17 }
 0x2cf   : > { %v7597_v27 = vpop.f32.mrf.mxu1  ;;  %v1005_v21 = vcombine.high %v891_v61, %v903_v17  ;;  %v10354_v8 = vpop.permute.xlu0 %910 }
 0x2d0   : > { %12555 = vst [vmem:[#allocation68_spill] sm:$0xff] %v10333_v22  ;;  %v10345_v38 = vadd.f32 %v7597_v27, %v3110_v15  ;;  %v1324_v23 = vcombine.low %v1268_v4, %v1284_v42  ;;  %v1325_v18 = vcombine.high %v1268_v4, %v1284_v42  ;;  %v1340_v9 = vcombine.low %v1275_v45, %v1291_v47  ;;  %v10364_v61 = vpop.f32.mrf.mxu0 }
 0x2d1   : > { %v3949_v16 = vpop.f32.mrf.mxu1  ;;  %v1341_v7 = vcombine.high %v1275_v45, %v1291_v47  ;;  %v1003_v15 = vrot.slane %v989_v53, %v12548_v14  ;;  %v1012_v6 = vrot.slane %v1004_v19, %v12548_v14  ;;  %v1019_v31 = vrot.slane %v1005_v21, %v12548_v14 }
 0x2d2   : > { %12556 = vst [vmem:[#allocation67_spill] sm:$0xff] %v10345_v38  ;;  %v10360_v27 = vadd.f32 %v3949_v16, %v10274_v33  ;;  %v10362_v38 = vpop.permute.xlu1 %908  ;;  %v1332_v41 = vrot.slane %v1324_v23, %v12553_v60  ;;  %v1339_v4 = vrot.slane %v1325_v18, %v12553_v60  ;;  %v1348_v45 = vrot.slane %v1340_v9, %v12553_v60 }
 0x2d3   : > { %v7600_v62 = vpop.f32.mrf.mxu1  ;;  %v1355_v53 = vrot.slane %v1341_v7, %v12553_v60  ;;  %v1052_v17 = vcombine.low %v996_v25, %v1012_v6  ;;  %v1053_v42 = vcombine.high %v996_v25, %v1012_v6  ;;  %v1068_v47 = vcombine.low %v1003_v15, %v1019_v31  ;;  %v10370_v21 = vpop.permute.xlu0 %916 }
 0x2d4   : > { %12557 = vst [vmem:[#allocation36_spill] sm:$0xff] %v10360_v27  ;;  %v1069_v19 = vcombine.high %v1003_v15, %v1019_v31  ;;  %v1356_v16 = vcombine.low %v10315_v0, %v1332_v41  ;;  %v1357_v27 = vcombine.high %v10315_v0, %v1332_v41  ;;  %v1358_v22 = vcombine.low %v10318_v59, %v1339_v4  ;;  %v10382_v31 = vpop.f32.mrf.mxu0 }
 0x2d5   : > { %v3959_v33 = vpop.f32.mrf.mxu1  ;;  %v1359_v23 = vcombine.high %v10318_v59, %v1339_v4  ;;  %v1360_v18 = vcombine.low %v10321_v28, %v1348_v45  ;;  %v1361_v9 = vcombine.high %v10321_v28, %v1348_v45  ;;  %v1362_v7 = vcombine.low %v10326_v43, %v1355_v53 }
 0x2d6   : > { %v1363_v25 = vcombine.high %v10326_v43, %v1355_v53  ;;  %v10380_v6 = vpop.permute.xlu1 %914  ;;  %1517 = vst.msk [vmem:[#allocation3 + $0xd9] sm:$0xff] %vm515_vm0, %v1356_v16  ;;  %1519 = vst.msk [vmem:[#allocation3 + $0xf1] sm:$0xff] %vm515_vm0, %v1357_v27  ;;  %v1060_v0 = vrot.slane %v1052_v17, %v12553_v60  ;;  %v1067_v59 = vrot.slane %v1053_v42, %v12553_v60 }
 0x2d7   : > { %v7603_v15 = vpop.f32.mrf.mxu1  ;;  %1521 = vst.msk [vmem:[#allocation3 + $0x109] sm:$0xff] %vm515_vm0, %v1358_v22  ;;  %1523 = vst.msk [vmem:[#allocation3 + $0x121] sm:$0xff] %vm515_vm0, %v1359_v23  ;;  %v1076_v28 = vrot.slane %v1068_v47, %v12553_v60  ;;  %v1083_v43 = vrot.slane %v1069_v19, %v12553_v60  ;;  %v1051_v41 = vrot.slane %v1037_v34, %v12553_v60  ;;  %v923_v45 = vpop.permute.xlu0 %922 }
 0x2d8   : > { %1525 = vst.msk [vmem:[#allocation3 + $0x139] sm:$0xff] %vm515_vm0, %v1360_v18  ;;  %1527 = vst.msk [vmem:[#allocation3 + $0x151] sm:$0xff] %vm515_vm0, %v1361_v9  ;;  %v10398_v22 = vadd.f32 %v7600_v62, %v10277_v10  ;;  %v10401_v27 = vadd.f32 %v3959_v33, %v10287_v39  ;;  %v10404_v4 = vadd.f32 %v7603_v15, %v10295_v58  ;;  %v3194_v58 = vpop.f32.mrf.mxu0 }
 0x2d9   : > { %1529 = vst.msk [vmem:[#allocation3 + $0x169] sm:$0xff] %vm515_vm0, %v1362_v7  ;;  %1531 = vst.msk [vmem:[#allocation3 + $0x181] sm:$0xff] %vm515_vm0, %v1363_v25  ;;  %v3969_v53 = vpop.f32.mrf.mxu1  ;;  %v1084_v34 = vcombine.low %v10336_v50, %v1060_v0  ;;  %v1085_v17 = vcombine.high %v10336_v50, %v1060_v0  ;;  %v1086_v42 = vcombine.low %v10348_v40, %v1067_v59 }
 0x2da   : > { %12558 = vst [vmem:[#allocation33_spill] sm:$0xff] %v10398_v22  ;;  %12559 = vst [vmem:[#allocation40_spill] sm:$0xff] %v10401_v27  ;;  %v1087_v47 = vcombine.high %v10348_v40, %v1067_v59  ;;  %v1088_v19 = vcombine.low %v10351_v44, %v1076_v28  ;;  %v1089_v10 = vcombine.high %v10351_v44, %v1076_v28  ;;  %v10412_v16 = vpop.permute.xlu1 %920  ;;  %v7575_v25 = vpop.f32.mrf.mxu0 }
 0x2db   : > { %12560 = vst [vmem:[#allocation37_spill] sm:$0xff] %v10404_v4  ;;  %v1090_v62 = vcombine.low %v1051_v41, %v1083_v43  ;;  %v1091_v39 = vcombine.high %v1051_v41, %v1083_v43  ;;  %v7606_v33 = vpop.f32.mrf.mxu1  ;;  %1501 = vst.msk [vmem:[#allocation3 + $0x19] sm:$0xff] %vm515_vm0, %v1084_v34  ;;  %v10419_v50 = vadd.f32 %v3969_v53, %v10299_v2  ;;  %v929_v23 = vpop.permute.xlu0 %928 }
 0x2dc   : > { %1503 = vst.msk [vmem:[#allocation3 + $0x31] sm:$0xff] %vm515_vm0, %v1085_v17  ;;  %1505 = vst.msk [vmem:[#allocation3 + $0x49] sm:$0xff] %vm515_vm0, %v1086_v42  ;;  %v10422_v40 = vadd.f32 %v7606_v33, %v10303_v30  ;;  %v3135_v44 = vadd.f32 %v10221_v52, %v10188_v12  ;;  %v3150_v2 = vadd.f32 %v10225_v29, %v10191_v36  ;;  %v3204_v17 = vpop.f32.mrf.mxu0  ;;  %v12571_v33 = vld [vmem:[#allocation24_spill] sm:$0xff] }
 0x2dd   : > { %1507 = vst.msk [vmem:[#allocation3 + $0x61] sm:$0xff] %vm515_vm0, %v1087_v47  ;;  %12561 = vst [vmem:[#allocation41_spill] sm:$0xff] %v10419_v50  ;;  %v3979_v18 = vpop.f32.mrf.mxu1  ;;  %v1380_v12 = vcombine.low %v10370_v21, %v929_v23  ;;  %v1381_v52 = vcombine.high %v10370_v21, %v929_v23  ;;  %v3145_v0 = vadd.f32 %v10229_v48, %v10193_v37 }
 0x2de   : > { %12562 = vst [vmem:[#allocation6_spill] sm:$0xff] %v10422_v40  ;;  %1509 = vst.msk [vmem:[#allocation3 + $0x79] sm:$0xff] %vm515_vm0, %v1088_v19  ;;  %v10432_v9 = vadd.f32 %v3979_v18, %v3135_v44  ;;  %v927_v7 = vpop.permute.xlu1 %926  ;;  %v3160_v36 = vadd.f32 %v10233_v26, %v10195_v32  ;;  %v1364_v29 = vcombine.low %v10354_v8, %v923_v45  ;;  %v12566_v26 = vld [vmem:[#allocation60_spill] sm:$0xff] }
 0x2df   : > { %1511 = vst.msk [vmem:[#allocation3 + $0x91] sm:$0xff] %vm515_vm0, %v1089_v10  ;;  %1513 = vst.msk [vmem:[#allocation3 + $0xa9] sm:$0xff] %vm515_vm0, %v1090_v62  ;;  %v7609_v30 = vpop.f32.mrf.mxu1  ;;  %v10440_v59 = vpop.permute.xlu0 %934  ;;  %v1365_v43 = vcombine.high %v10354_v8, %v923_v45  ;;  %v3155_v41 = vadd.f32 %v10237_v55, %v10197_v46  ;;  %v3170_v21 = vadd.f32 %v10242_v11, %v10199_v5  ;;  %v12567_v55 = vld [vmem:[#allocation59_spill] sm:$0xff]  ;;  %v12568_v11 = vld [vmem:[#allocation18_spill] sm:$0xff] }
 0x2e0   : > { %1515 = vst.msk [vmem:[#allocation3 + $0xc1] sm:$0xff] %vm515_vm0, %v1091_v39  ;;  %12563 = vst [vmem:[#allocation45_spill] sm:$0xff] %v10432_v9  ;;  %v10436_v15 = vadd.f32 %v7609_v30, %v3150_v2  ;;  %v1108_v53 = vcombine.low %v10380_v6, %v927_v7  ;;  %v3165_v32 = vadd.f32 %v10258_v57, %v10201_v35  ;;  %v7578_v30 = vpop.f32.mrf.mxu0 }
 0x2e1   : > { %v3989_v28 = vpop.f32.mrf.mxu1  ;;  %v3180_v8 = vadd.f32 %v10281_v54, %v12566_v26  ;;  %v1388_v45 = vrot.slane %v1380_v12, %v12548_v14  ;;  %v1395_v46 = vrot.slane %v1381_v52, %v12548_v14  ;;  %v3175_v5 = vadd.f32 %v10312_v20, %v12567_v55  ;;  %v12577_v26 = vld [vmem:[#allocation61_spill] sm:$0xff] }
 0x2e2   : > { %12564 = vst [vmem:[#allocation44_spill] sm:$0xff] %v10436_v15  ;;  %v10451_v34 = vadd.f32 %v3989_v28, %v3145_v0  ;;  %v10453_v48 = vpop.permute.xlu1 %932  ;;  %v3190_v42 = vadd.f32 %v10341_v24, %v12568_v11  ;;  %v1092_v47 = vcombine.low %v10362_v38, %v10412_v16  ;;  %v1109_v19 = vcombine.high %v10380_v6, %v927_v7  ;;  %v12572_v24 = vld [vmem:[#allocation39_spill] sm:$0xff]  ;;  %v12574_v28 = vld [vmem:[#allocation21_spill] sm:$0xff] }
 0x2e3   : > { %v7612_v37 = vpop.f32.mrf.mxu1  ;;  %v941_v10 = vpop.permute.xlu0 %940  ;;  %v1372_v57 = vrot.slane %v1364_v29, %v12548_v14  ;;  %v1379_v54 = vrot.slane %v1365_v43, %v12548_v14  ;;  %v10476_v20 = vadd.f32 %v10364_v61, %v12571_v33  ;;  %v10480_v44 = vadd.f32 %v10382_v31, %v12572_v24  ;;  %v12575_v43 = vld [vmem:[#allocation42_spill] sm:$0xff] }
 0x2e4   : > { %12565 = vst [vmem:[#allocation46_spill] sm:$0xff] %v10451_v34  ;;  %v10470_v62 = vadd.f32 %v7612_v37, %v3160_v36  ;;  %v1093_v6 = vcombine.high %v10362_v38, %v10412_v16  ;;  %v1116_v23 = vrot.slane %v1108_v53, %v12548_v14  ;;  %v10488_v61 = vadd.f32 %v3194_v58, %v12574_v28  ;;  %v12576_v53 = vld [vmem:[#allocation62_spill] sm:$0xff] }
 0x2e5   : > { %v3999_v35 = vpop.f32.mrf.mxu1  ;;  %v1428_v7 = vcombine.low %v1372_v57, %v1388_v45  ;;  %v1429_v12 = vcombine.high %v1372_v57, %v1388_v45  ;;  %v1444_v52 = vcombine.low %v1379_v54, %v1395_v46  ;;  %v1100_v36 = vrot.slane %v1092_v47, %v12548_v14 }
 0x2e6   : > { %12569 = vst [vmem:[#allocation47_spill] sm:$0xff] %v10470_v62  ;;  %v10472_v39 = vadd.f32 %v3999_v35, %v3155_v41  ;;  %v939_v2 = vpop.permute.xlu1 %938  ;;  %v1445_v31 = vcombine.high %v1379_v54, %v1395_v46  ;;  %v10492_v29 = vrot.slane %v1109_v19, %v12548_v14  ;;  %v10495_v41 = vadd.f32 %v7575_v25, %v12575_v43 }
 0x2e7   : > { %v7615_v18 = vpop.f32.mrf.mxu1  ;;  %v947_v38 = vpop.permute.xlu0 %946  ;;  %v10498_v37 = vadd.f32 %v3204_v17, %v12576_v53  ;;  %v10506_v58 = vrot.slane %v1093_v6, %v12548_v14  ;;  %v1156_v46 = vcombine.low %v1100_v36, %v1116_v23  ;;  %v1436_v25 = vrot.slane %v1428_v7, %v12553_v60  ;;  %v10872_v34 = vld [vmem:[#allocation3 + $0xc0] sm:$0xff] }
 0x2e8   : > { %12570 = vst [vmem:[#allocation48_spill] sm:$0xff] %v10472_v39  ;;  %v10485_v0 = vadd.f32 %v7615_v18, %v3170_v21  ;;  %v10501_v21 = vadd.f32 %v7578_v30, %v12577_v26  ;;  %v1396_v55 = vcombine.low %v10440_v59, %v947_v38  ;;  %v1397_v11 = vcombine.high %v10440_v59, %v947_v38 }
 0x2e9   : > { %v4009_v16 = vpop.f32.mrf.mxu1  ;;  %v1443_v17 = vrot.slane %v1429_v12, %v12553_v60  ;;  %v10513_v35 = vrot.slane %v1444_v52, %v12553_v60  ;;  %v1157_v54 = vcombine.high %v1100_v36, %v1116_v23  ;;  %v1172_v33 = vcombine.low %v10506_v58, %v10492_v29 }
 0x2ea   : > { %12573 = vst [vmem:[#allocation49_spill] sm:$0xff] %v10485_v0  ;;  %v10503_v45 = vadd.f32 %v4009_v16, %v3165_v32  ;;  %v945_v19 = vpop.permute.xlu1 %944  ;;  %v10518_v32 = vrot.slane %v1445_v31, %v12553_v60  ;;  %v1173_v18 = vcombine.high %v10506_v58, %v10492_v29  ;;  %v1404_v52 = vrot.slane %v1396_v55, %v12548_v14 }
 0x2eb   : > { %v7618_v47 = vpop.f32.mrf.mxu1  ;;  %v1124_v59 = vcombine.low %v10453_v48, %v945_v19  ;;  %v953_v24 = vpop.permute.xlu0 %952  ;;  %v1411_v23 = vrot.slane %v1397_v11, %v12548_v14  ;;  %v1125_v28 = vcombine.high %v10453_v48, %v945_v19  ;;  %v10541_v43 = vrot.slane %v1172_v33, %v12553_v60 }
 0x2ec   : > { %12578 = vst [vmem:[#allocation50_spill] sm:$0xff] %v10503_v45  ;;  %v10515_v57 = vadd.f32 %v7618_v47, %v3180_v8  ;;  %v1412_v30 = vcombine.low %v941_v10, %v953_v24  ;;  %v1413_v7 = vcombine.high %v941_v10, %v953_v24  ;;  %v10528_v8 = vrot.slane %v1156_v46, %v12553_v60 }
 0x2ed   : > { %v4019_v6 = vpop.f32.mrf.mxu1  ;;  %v1132_v53 = vrot.slane %v1124_v59, %v12548_v14  ;;  %v1139_v47 = vrot.slane %v1125_v28, %v12548_v14  ;;  %v4746_v15 = vrot.slane %v10872_v34, 1  ;;  %v4922_v22 = vrot.slane %v10872_v34, 2 }
 0x2ee   : > { %12579 = vst [vmem:[#allocation22_spill] sm:$0xff] %v10515_v57  ;;  %v10525_v12 = vadd.f32 %v4019_v6, %v3175_v5  ;;  %v951_v31 = vpop.permute.xlu1 %950  ;;  %v1420_v38 = vrot.slane %v1412_v30, %v12548_v14  ;;  %v1427_v16 = vrot.slane %v1413_v7, %v12548_v14  ;;  %v10538_v5 = vrot.slane %v1157_v54, %v12553_v60 }
 0x2ef   : > { %v7621_v36 = vpop.f32.mrf.mxu1  ;;  %v1140_v10 = vcombine.low %v939_v2, %v951_v31  ;;  %v1141_v26 = vcombine.high %v939_v2, %v951_v31 }
 0x2f0   : > { %12580 = vst [vmem:[#allocation52_spill] sm:$0xff] %v10525_v12  ;;  %v10535_v29 = vadd.f32 %v7621_v36, %v3190_v42  ;;  %v1460_v48 = vcombine.low %v1404_v52, %v1420_v38  ;;  %v1461_v46 = vcombine.high %v1404_v52, %v1420_v38  ;;  %v1476_v55 = vcombine.low %v1411_v23, %v1427_v16  ;;  %v10842_v12 = vld [vmem:[#allocation3 + $0xa8] sm:$0xff] }
 0x2f1   : > { %v4029_v58 = vpop.f32.mrf.mxu1  ;;  %v1477_v11 = vcombine.high %v1411_v23, %v1427_v16  ;;  %v1148_v42 = vrot.slane %v1140_v10, %v12548_v14  ;;  %v1155_v19 = vrot.slane %v1141_v26, %v12548_v14  ;;  %v4741_v57 = vrot.slane %v10842_v12, 1 }
 0x2f2   : > { %12581 = vst [vmem:[#allocation51_spill] sm:$0xff] %v10535_v29  ;;  %v10548_v54 = vadd.f32 %v4029_v58, %v10476_v20  ;;  %v1468_v33 = vrot.slane %v1460_v48, %v12553_v60  ;;  %v1475_v59 = vrot.slane %v1461_v46, %v12553_v60  ;;  %v1484_v2 = vrot.slane %v1476_v55, %v12553_v60 }
 0x2f3   : > { %v7624_v24 = vpop.f32.mrf.mxu1  ;;  %v1491_v6 = vrot.slane %v1477_v11, %v12553_v60  ;;  %v1188_v30 = vcombine.low %v1132_v53, %v1148_v42  ;;  %v1189_v7 = vcombine.high %v1132_v53, %v1148_v42  ;;  %v1204_v52 = vcombine.low %v1139_v47, %v1155_v19 }
 0x2f4   : > { %12582 = vst [vmem:[#allocation8_spill] sm:$0xff] %v10548_v54  ;;  %v1205_v23 = vcombine.high %v1139_v47, %v1155_v19  ;;  %v1492_v36 = vcombine.low %v1436_v25, %v1468_v33  ;;  %v1493_v31 = vcombine.high %v1436_v25, %v1468_v33  ;;  %v1494_v14 = vcombine.low %v1443_v17, %v1475_v59  ;;  %v3214_v19 = vpop.f32.mrf.mxu0 }
 0x2f5   : > { %v4039_v28 = vpop.f32.mrf.mxu1  ;;  %v1495_v38 = vcombine.high %v1443_v17, %v1475_v59  ;;  %v1496_v20 = vcombine.low %v10513_v35, %v1484_v2  ;;  %v1497_v16 = vcombine.high %v10513_v35, %v1484_v2  ;;  %v1498_v10 = vcombine.low %v10518_v32, %v1491_v6  ;;  %v12586_v2 = vld [vmem:[#allocation19_spill] sm:$0xff] }
 0x2f6   : > { %v1499_v26 = vcombine.high %v10518_v32, %v1491_v6  ;;  %1518 = vst.msk [vmem:[#allocation3 + $0xe1] sm:$0xff] %vm515_vm0, %v1492_v36  ;;  %1520 = vst.msk [vmem:[#allocation3 + $0xf9] sm:$0xff] %vm515_vm0, %v1493_v31  ;;  %v1196_v25 = vrot.slane %v1188_v30, %v12553_v60  ;;  %v1203_v17 = vrot.slane %v1189_v7, %v12553_v60  ;;  %v4639_v6 = vld [vmem:[#allocation3 + $0xd8] sm:$0xff]  ;;  %v4917_v62 = vrot.slane %v10842_v12, 2 }
 0x2f7   : > { %v7627_v58 = vpop.f32.mrf.mxu1  ;;  %1522 = vst.msk [vmem:[#allocation3 + $0x111] sm:$0xff] %vm515_vm0, %v1494_v14  ;;  %1524 = vst.msk [vmem:[#allocation3 + $0x129] sm:$0xff] %vm515_vm0, %v1495_v38  ;;  %v1212_v53 = vrot.slane %v1204_v52, %v12553_v60  ;;  %v1219_v35 = vrot.slane %v1205_v23, %v12553_v60  ;;  %v1187_v48 = vrot.slane %v1173_v18, %v12553_v60  ;;  %v4751_v23 = vrot.slane %v4639_v6, 1 }
 0x2f8   : > { %1526 = vst.msk [vmem:[#allocation3 + $0x141] sm:$0xff] %vm515_vm0, %v1496_v20  ;;  %1528 = vst.msk [vmem:[#allocation3 + $0x159] sm:$0xff] %vm515_vm0, %v1497_v16  ;;  %v10572_v32 = vadd.f32 %v7624_v24, %v10480_v44  ;;  %v10575_v46 = vadd.f32 %v4039_v28, %v10488_v61  ;;  %v10578_v55 = vadd.f32 %v7627_v58, %v10495_v41  ;;  %v4927_v16 = vrot.slane %v4639_v6, 2 }
 0x2f9   : > { %1530 = vst.msk [vmem:[#allocation3 + $0x171] sm:$0xff] %vm515_vm0, %v1498_v10  ;;  %1532 = vst.msk [vmem:[#allocation3 + $0x189] sm:$0xff] %vm515_vm0, %v1499_v26  ;;  %v4049_v11 = vpop.f32.mrf.mxu1  ;;  %v1220_v60 = vcombine.low %v10528_v8, %v1196_v25  ;;  %v1221_v18 = vcombine.high %v10528_v8, %v1196_v25  ;;  %v1222_v47 = vcombine.low %v10538_v5, %v1203_v17  ;;  %v4642_v10 = vld [vmem:[#allocation3 + $0xf0] sm:$0xff] }
 0x2fa   : > { %12583 = vst [vmem:[#allocation10_spill] sm:$0xff] %v10572_v32  ;;  %12584 = vst [vmem:[#allocation23_spill] sm:$0xff] %v10575_v46  ;;  %v1223_v42 = vcombine.high %v10538_v5, %v1203_v17  ;;  %v1224_v33 = vcombine.low %v10541_v43, %v1212_v53  ;;  %v1225_v44 = vcombine.high %v10541_v43, %v1212_v53  ;;  %v4756_v53 = vrot.slane %v4642_v10, 1 }
 0x2fb   : > { %12585 = vst [vmem:[#allocation9_spill] sm:$0xff] %v10578_v55  ;;  %v1226_v24 = vcombine.low %v1187_v48, %v1219_v35  ;;  %v1227_v61 = vcombine.high %v1187_v48, %v1219_v35  ;;  %v7630_v59 = vpop.f32.mrf.mxu1  ;;  %v3215_v41 = vadd.f32 %v3214_v19, %v12586_v2  ;;  %1502 = vst.msk [vmem:[#allocation3 + $0x21] sm:$0xff] %vm515_vm0, %v1220_v60  ;;  %v4645_v19 = vld [vmem:[#allocation3 + $0x108] sm:$0xff] }
 0x2fc   : > { %1504 = vst.msk [vmem:[#allocation3 + $0x39] sm:$0xff] %vm515_vm0, %v1221_v18  ;;  %1506 = vst.msk [vmem:[#allocation3 + $0x51] sm:$0xff] %vm515_vm0, %v1222_v47  ;;  %v10592_v8 = vadd.f32 %v4049_v11, %v10498_v37  ;;  %v10595_v5 = vadd.f32 %v7630_v59, %v10501_v21  ;;  %v4761_v59 = vrot.slane %v4645_v19, 1 }
 0x2fd   : > { %1508 = vst.msk [vmem:[#allocation3 + $0x69] sm:$0xff] %vm515_vm0, %v1223_v42  ;;  %1510 = vst.msk [vmem:[#allocation3 + $0x81] sm:$0xff] %vm515_vm0, %v1224_v33  ;;  %v4059_v43 = vpop.f32.mrf.mxu1  ;;  %v4640_v7 = vld [vmem:[#allocation3 + $0xe0] sm:$0xff]  ;;  %v4641_v52 = vld [vmem:[#allocation3 + $0xe8] sm:$0x3]  ;;  %v4932_v42 = vrot.slane %v4642_v10, 2 }
 0x2fe   : > { %12587 = vst [vmem:[#allocation26_spill] sm:$0xff] %v10592_v8  ;;  %12588 = vst [vmem:[#allocation54_spill] sm:$0xff] %v10595_v5  ;;  %v10601_v30 = vadd.f32 %v4059_v43, %v3215_v41  ;;  %v4752_v37 = vrot.slane %v4640_v7, 1  ;;  %v4754_v28 = vrot.slane %v4641_v52, 1  ;;  %v4928_v31 = vrot.slane %v4640_v7, 2  ;;  %v4643_v38 = vld [vmem:[#allocation3 + $0xf8] sm:$0xff] }
 0x2ff   : > { %1512 = vst.msk [vmem:[#allocation3 + $0x99] sm:$0xff] %vm515_vm0, %v1225_v44  ;;  %1514 = vst.msk [vmem:[#allocation3 + $0xb1] sm:$0xff] %vm515_vm0, %v1226_v24  ;;  %v4930_v14 = vrot.slane %v4641_v52, 2  ;;  %v4644_v20 = vld [vmem:[#allocation3 + $0x100] sm:$0x3]  ;;  %v4757_v25 = vrot.slane %v4643_v38, 1 }
 0x300   : > { %1516 = vst.msk [vmem:[#allocation3 + $0xc9] sm:$0xff] %vm515_vm0, %v1227_v61  ;;  %12589 = vst [vmem:[#allocation53_spill] sm:$0xff] %v10601_v30  ;;  %v4753_v21 = vsel %vm1629_vm2, %v4751_v23, %v4752_v37  ;;  %v4755_v36 = vsel %vm1629_vm2, %v4752_v37, %v4754_v28  ;;  %v4929_v26 = vsel %vm1806_vm5, %v4927_v16, %v4928_v31  ;;  %v4759_v17 = vrot.slane %v4644_v20, 1  ;;  %v4646_v18 = vld [vmem:[#allocation3 + $0x110] sm:$0xff]  ;;  %v4647_v47 = vld [vmem:[#allocation3 + $0x118] sm:$0x3] }
 0x301   : > { %4823 = vrot.lane.b32.xlu0 %v4753_v21, %s7913_s16  ;;  %4825 = vrot.lane.b32.xlu1 %v4755_v36, %s7913_s16  ;;  %v4931_v58 = vsel %vm1806_vm5, %v4928_v31, %v4930_v14  ;;  %v4758_v35 = vsel %vm1629_vm2, %v4756_v53, %v4757_v25  ;;  %v4933_v11 = vrot.slane %v4643_v38, 2  ;;  %v4935_v60 = vrot.slane %v4644_v20, 2  ;;  %v4649_v7 = vld [vmem:[#allocation3 + $0x128] sm:$0xff]  ;;  %v4650_v52 = vld [vmem:[#allocation3 + $0x130] sm:$0x3]  ;;  %v4648_v37 = vld [vmem:[#allocation3 + $0x120] sm:$0xff] }
 0x302   : > { %v4760_v48 = vsel %vm1629_vm2, %v4757_v25, %v4759_v17  ;;  %v4762_v24 = vrot.slane %v4646_v18, 1  ;;  %v4764_v61 = vrot.slane %v4647_v47, 1  ;;  %v4938_v43 = vrot.slane %v4646_v18, 2  ;;  %v4651_v17 = vld [vmem:[#allocation3 + $0x138] sm:$0xff]  ;;  %v10812_v8 = vld [vmem:[#allocation3 + $0x90] sm:$0xff] }
 0x303   : > { %v4934_v33 = vsel %vm1806_vm5, %v4932_v42, %v4933_v11  ;;  %v4936_v44 = vsel %vm1806_vm5, %v4933_v11, %v4935_v60  ;;  %v4940_v6 = vrot.slane %v4647_v47, 2  ;;  %v4937_v23 = vrot.slane %v4645_v19, 2  ;;  %v5790_v27 = vld [vmem:[#allocation3 + $0x40] sm:$0x3] }
 0x304   : > { %v4763_v2 = vsel %vm1629_vm2, %v4761_v59, %v4762_v24  ;;  %v4765_v41 = vsel %vm1629_vm2, %v4762_v24, %v4764_v61  ;;  %v4767_v36 = vrot.slane %v4649_v7, 1  ;;  %v4769_v31 = vrot.slane %v4650_v52, 1  ;;  %v4654_v61 = vld [vmem:[#allocation3 + $0x150] sm:$0xff] }
 0x305   : > { %4999 = vrot.lane.b32.xlu0 %v4929_v26, %s7916_s19  ;;  %5001 = vrot.lane.b32.xlu1 %v4931_v58, %s7916_s19  ;;  %v4939_v28 = vsel %vm1806_vm5, %v4937_v23, %v4938_v43  ;;  %v4941_v21 = vsel %vm1806_vm5, %v4938_v43, %v4940_v6  ;;  %v4766_v14 = vrot.slane %v4648_v37, 1  ;;  %v4943_v16 = vrot.slane %v4649_v7, 2  ;;  %v4652_v26 = vld [vmem:[#allocation3 + $0x140] sm:$0xff]  ;;  %v4653_v58 = vld [vmem:[#allocation3 + $0x148] sm:$0x3] }
 0x306   : > { %v4770_v38 = vsel %vm1629_vm2, %v4767_v36, %v4769_v31  ;;  %v4945_v10 = vrot.slane %v4650_v52, 2  ;;  %v4942_v25 = vrot.slane %v4648_v37, 2  ;;  %v4774_v11 = vrot.slane %v4653_v58, 1  ;;  %v4657_v31 = vld [vmem:[#allocation3 + $0x168] sm:$0xff]  ;;  %v10809_v30 = vld [vmem:[#allocation3 + $0x98] sm:$0xff]  ;;  %v10839_v54 = vld [vmem:[#allocation3 + $0xb0] sm:$0xff] }
 0x307   : > { %v4768_v20 = vsel %vm1629_vm2, %v4766_v14, %v4767_v36  ;;  %v4771_v60 = vrot.slane %v4651_v17, 1  ;;  %v4948_v42 = vrot.slane %v4652_v26, 2  ;;  %v4950_v19 = vrot.slane %v4653_v58, 2  ;;  %v10869_v39 = vld [vmem:[#allocation3 + $0xc8] sm:$0xff] }
 0x308   : > { %v4946_v53 = vsel %vm1806_vm5, %v4943_v16, %v4945_v10  ;;  %v4947_v24 = vrot.slane %v4651_v17, 2  ;;  %v4776_v6 = vrot.slane %v4654_v61, 1  ;;  %v4952_v36 = vrot.slane %v4654_v61, 2 }
 0x309   : > { %4827 = vrot.lane.b32.xlu0 %v4758_v35, %s7913_s16  ;;  %4829 = vrot.lane.b32.xlu1 %v4760_v48, %s7913_s16  ;;  %v4944_v35 = vsel %vm1806_vm5, %v4942_v25, %v4943_v16  ;;  %v4772_v48 = vrot.slane %v4652_v26, 1  ;;  %v4951_v59 = vsel %vm1806_vm5, %v4948_v42, %v4950_v19  ;;  %v4781_v10 = vrot.slane %v4657_v31, 1  ;;  %v10659_v19 = vld [vmem:[#allocation3 + $0x20] sm:$0xff] }
 0x30a   : > { %v4736_v55 = vrot.slane %v10812_v8, 1  ;;  %v10834_v32 = vrot.slane %v10809_v30, 2  ;;  %v4912_v29 = vrot.slane %v10812_v8, 2  ;;  %v10864_v0 = vrot.slane %v10839_v54, 2 }
 0x30b   : > { %v4775_v18 = vsel %vm1629_vm2, %v4772_v48, %v4774_v11  ;;  %v4773_v47 = vsel %vm1629_vm2, %v4771_v60, %v4772_v48  ;;  %v4957_v48 = vrot.slane %v4657_v31, 2  ;;  %v4660_v11 = vld [vmem:[#allocation3 + $0x180] sm:$0xff]  ;;  %v10898_v4 = vrot.slane %v10869_v39, 2 }
 0x30d   : > { %5003 = vrot.lane.b32.xlu0 %v4934_v33, %s7916_s19  ;;  %5005 = vrot.lane.b32.xlu1 %v4936_v44, %s7916_s19  ;;  %v4655_v33 = vld [vmem:[#allocation3 + $0x158] sm:$0xff]  ;;  %v4656_v44 = vld [vmem:[#allocation3 + $0x160] sm:$0x3] }
 0x30e   : > { %v4779_v43 = vrot.slane %v4656_v44, 1  ;;  %v4953_v23 = vrot.slane %v4655_v33, 2  ;;  %v4955_v37 = vrot.slane %v4656_v44, 2  ;;  %v10661_v44 = vld [vmem:[#allocation3 + $0x18] sm:$0xff] }
 0x30f   : > { %v4887_v31 = vrot.slane %v10661_v44, 2 }
 0x310   : > { %v4956_v14 = vsel %vm1806_vm5, %v4953_v23, %v4955_v37 }
 0x311   : > { %4831 = vrot.lane.b32.xlu0 %v4763_v2, %s7913_s16  ;;  %4833 = vrot.lane.b32.xlu1 %v4765_v41, %s7913_s16  ;;  %v4949_v2 = vsel %vm1806_vm5, %v4947_v24, %v4948_v42  ;;  %v4777_v41 = vrot.slane %v4655_v33, 1  ;;  %v4786_v33 = vrot.slane %v4660_v11, 1 }
 0x313   : > { %v4780_v7 = vsel %vm1629_vm2, %v4777_v41, %v4779_v43  ;;  %v4778_v52 = vsel %vm1629_vm2, %v4776_v6, %v4777_v41  ;;  %v7139_v41 = vld [vmem:[%s12161_s5 + $0x14] sm:$0xf]  ;;  %v4962_v43 = vrot.slane %v4660_v11, 2  ;;  %v4711_v6 = vrot.slane %v10661_v44, 1 }
 0x314   : > { %7631 = vmatprep.subr.msk.mxu0 %vm2667_vm4, %v7139_v41 }
 0x315   : > { %5007 = vrot.lane.b32.xlu0 %v4939_v28, %s7916_s19  ;;  %5009 = vrot.lane.b32.xlu1 %v4941_v21, %s7916_s19  ;;  %v4658_v28 = vld [vmem:[#allocation3 + $0x170] sm:$0xff]  ;;  %v4659_v21 = vld [vmem:[#allocation3 + $0x178] sm:$0x3] }
 0x316   : > { %v4784_v16 = vrot.slane %v4659_v21, 1  ;;  %v4958_v25 = vrot.slane %v4658_v28, 2  ;;  %v4960_v17 = vrot.slane %v4659_v21, 2  ;;  %7632 = vmatpush3.msk.msra.mxu0 %vm2667_vm4, %v7139_v41  ;;  %v4617_v21 = vld [vmem:[#allocation3 + $0x28] sm:$0x3] }
 0x318   : > { %v4961_v60 = vsel %vm1806_vm5, %v4958_v25, %v4960_v17  ;;  %v4890_v17 = vrot.slane %v4617_v21, 2 }
 0x319   : > { %4837 = vrot.lane.b32.xlu0 %v4770_v38, %s7913_s16  ;;  %4835 = vrot.lane.b32.xlu1 %v4768_v20, %s7913_s16  ;;  %v4954_v38 = vsel %vm1806_vm5, %v4952_v36, %v4953_v23  ;;  %v4782_v20 = vrot.slane %v4658_v28, 1  ;;  %v10685_v28 = vrot.slane %v10659_v19, 2  ;;  %v10690_v36 = vld [vmem:[#allocation3 + $0x38] sm:$0xff] }
 0x31b   : > { %v4785_v26 = vsel %vm1629_vm2, %v4782_v20, %v4784_v16  ;;  %v4783_v58 = vsel %vm1629_vm2, %v4781_v10, %v4782_v20  ;;  %v10698_v20 = vsel %vm1806_vm5, %v4887_v31, %v10685_v28  ;;  %v4714_v16 = vrot.slane %v4617_v21, 1 }
 0x31c   : > { %v10701_v10 = vrot.slane %v10690_v36, 1 }
 0x31d   : > { %5013 = vrot.lane.b32.xlu0 %v4946_v53, %s7916_s19  ;;  %5011 = vrot.lane.b32.xlu1 %v4944_v35, %s7916_s19  ;;  %v4661_v53 = vld [vmem:[#allocation3 + $0x188] sm:$0xff]  ;;  %v4662_v35 = vld [vmem:[#allocation3 + $0x190] sm:$0x3] }
 0x31e   : > { %v4789_v42 = vrot.slane %v4662_v35, 1  ;;  %v4965_v37 = vrot.slane %v4662_v35, 2  ;;  %v4620_v35 = vld [vmem:[#allocation3 + $0x40] sm:$0x3] }
 0x31f   : > { %v4895_v41 = vrot.slane %v4620_v35, 2 }
 0x321   : > { %4841 = vrot.lane.b32.xlu0 %v4775_v18, %s7913_s16  ;;  %4839 = vrot.lane.b32.xlu1 %v4773_v47, %s7913_s16  ;;  %v4959_v18 = vsel %vm1806_vm5, %v4957_v48, %v4958_v25  ;;  %v4787_v47 = vrot.slane %v4661_v53, 1  ;;  %v10719_v48 = vld [vmem:[#allocation3 + $0x50] sm:$0xff] }
 0x323   : > { %v4790_v24 = vsel %vm1629_vm2, %v4787_v47, %v4789_v42  ;;  %v4788_v61 = vsel %vm1629_vm2, %v4786_v33, %v4787_v47  ;;  %v4719_v42 = vrot.slane %v4620_v35, 1  ;;  %v10731_v33 = vrot.slane %v10719_v48, 1 }
 0x325   : > { %5017 = vrot.lane.b32.xlu0 %v4951_v59, %s7916_s19  ;;  %5015 = vrot.lane.b32.xlu1 %v4949_v2, %s7916_s19  ;;  %v4963_v59 = vrot.slane %v4661_v53, 2  ;;  %v10666_v2 = vrot.slane %v10659_v19, 1  ;;  %v10714_v53 = vrot.slane %v10690_v36, 2 }
 0x327   : > { %v10682_v23 = vsel %vm1629_vm2, %v4711_v6, %v10666_v2  ;;  %v4623_v6 = vld [vmem:[#allocation3 + $0x58] sm:$0x3]  ;;  %v4896_v21 = vsel %vm1806_vm5, %v10714_v53, %v4895_v41 }
 0x328   : > { %v4900_v35 = vrot.slane %v4623_v6, 2 }
 0x329   : > { %4845 = vrot.lane.b32.xlu0 %v4780_v7, %s7913_s16  ;;  %4843 = vrot.lane.b32.xlu1 %v4778_v52, %s7913_s16  ;;  %v7837_v7 = vld [vmem:[%s12161_s5 + $0xc] sm:$0xff]   ;;  %v4964_v52 = vsel %vm1806_vm5, %v4962_v43, %v4963_v59  ;;  %v10744_v43 = vrot.slane %v10719_v48, 2 }
 0x32a   : > { %7633 = vmatprep.subr.mxu0 %v7837_v7 }
 0x32b   : > { %7634 = vmatpush3.msra.mxu0 %v7837_v7  ;;  %v10749_v7 = vld [vmem:[#allocation3 + $0x68] sm:$0xff]  ;;  %v4901_v41 = vsel %vm1806_vm5, %v10744_v43, %v4900_v35 }
 0x32d   : > { %5021 = vrot.lane.b32.xlu0 %v4956_v14, %s7916_s19  ;;  %5019 = vrot.lane.b32.xlu1 %v4954_v38, %s7916_s19  ;;  %v10693_v14 = vld [vmem:[#allocation3 + $0x30] sm:$0xff]  ;;  %v4966_v38 = vsel %vm1806_vm5, %v4963_v59, %v4965_v37  ;;  %v10752_v37 = vld [vmem:[#allocation3 + $0x60] sm:$0xff] }
 0x32e   : > { %v4892_v11 = vrot.slane %v10693_v14, 2 }
 0x330   : > { %v10728_v47 = vsel %vm1806_vm5, %v4892_v11, %v10714_v53  ;;  %v10774_v11 = vrot.slane %v10749_v7, 2 }
 0x331   : > { %4849 = vrot.lane.b32.xlu0 %v4785_v26, %s7913_s16  ;;  %4847 = vrot.lane.b32.xlu1 %v4783_v58, %s7913_s16  ;;  %v4716_v26 = vrot.slane %v10693_v14, 1  ;;  %v4715_v58 = vsel %vm1629_vm2, %v10666_v2, %v4714_v16  ;;  %v10761_v16 = vrot.slane %v10749_v7, 1 }
 0x333   : > { %v10711_v25 = vsel %vm1629_vm2, %v4716_v26, %v10701_v10  ;;  %v4726_v26 = vrot.slane %v10752_v37, 1 }
 0x335   : > { %5025 = vrot.lane.b32.xlu0 %v4961_v60, %s7916_s19  ;;  %5023 = vrot.lane.b32.xlu1 %v4959_v18, %s7916_s19  ;;  %v10722_v60 = vld [vmem:[#allocation3 + $0x48] sm:$0xff]  ;;  %v4891_v18 = vsel %vm1806_vm5, %v10685_v28, %v4890_v17  ;;  %v10771_v17 = vsel %vm1629_vm2, %v4726_v26, %v10761_v16 }
 0x339   : > { %4853 = vrot.lane.b32.xlu0 %v4790_v24, %s7913_s16  ;;  %4851 = vrot.lane.b32.xlu1 %v4788_v61, %s7913_s16  ;;  %v4721_v24 = vrot.slane %v10722_v60, 1  ;;  %v4720_v61 = vsel %vm1629_vm2, %v10701_v10, %v4719_v42  ;;  %v10779_v42 = vld [vmem:[#allocation3 + $0x80] sm:$0xff] }
 0x33b   : > { %v10741_v59 = vsel %vm1629_vm2, %v4721_v24, %v10731_v33  ;;  %v4902_v24 = vrot.slane %v10752_v37, 2 }
 0x33d   : > { %5027 = vrot.lane.b32.xlu1 %v4964_v52, %s7916_s19  ;;  %4791 = vrot.lane.b32.xlu0 %v10682_v23, %s7913_s16  ;;  %v4897_v52 = vrot.slane %v10722_v60, 2 }
 0x33f   : > { %v10758_v31 = vsel %vm1806_vm5, %v4897_v52, %v10744_v43 }
 0x341   : > { %5029 = vrot.lane.b32.xlu1 %v4966_v38, %s7916_s19  ;;  %4967 = vrot.lane.b32.xlu0 %v10698_v20, %s7916_s19  ;;  %v4724_v38 = vrot.slane %v4623_v6, 1  ;;  %v10788_v6 = vsel %vm1806_vm5, %v4902_v24, %v10774_v11  ;;  %v10804_v24 = vrot.slane %v10779_v42, 2 }
 0x345   : > { %4793 = vrot.lane.b32.xlu1 %v4715_v58, %s7913_s16  ;;  %4795 = vrot.lane.b32.xlu0 %v10711_v25, %s7913_s16  ;;  %v4725_v58 = vsel %vm1629_vm2, %v10731_v33, %v4724_v38 }
 0x349   : > { %4969 = vrot.lane.b32.xlu1 %v4891_v18, %s7916_s19  ;;  %4971 = vrot.lane.b32.xlu0 %v10728_v47, %s7916_s19  ;;  %v4626_v18 = vld [vmem:[#allocation3 + $0x70] sm:$0x3] }
 0x34a   : > { %v4729_v52 = vrot.slane %v4626_v18, 1  ;;  %v4905_v35 = vrot.slane %v4626_v18, 2 }
 0x34c   : > { %v4730_v26 = vsel %vm1629_vm2, %v10761_v16, %v4729_v52  ;;  %v4906_v52 = vsel %vm1806_vm5, %v10774_v11, %v4905_v35 }
 0x34d   : > { %4797 = vrot.lane.b32.xlu1 %v4720_v61, %s7913_s16  ;;  %4799 = vrot.lane.b32.xlu0 %v10741_v59, %s7913_s16  ;;  %v10782_v61 = vld [vmem:[#allocation3 + $0x78] sm:$0xff] }
 0x34e   : > { %v4731_v38 = vrot.slane %v10782_v61, 1  ;;  %v4907_v5 = vrot.slane %v10782_v61, 2 }
 0x350   : > { %v10818_v18 = vsel %vm1806_vm5, %v4907_v5, %v10804_v24 }
 0x351   : > { %4973 = vrot.lane.b32.xlu1 %v4896_v21, %s7916_s19  ;;  %4975 = vrot.lane.b32.xlu0 %v10758_v31, %s7916_s19  ;;  %v10791_v21 = vrot.slane %v10779_v42, 1 }
 0x355   : > { %4801 = vrot.lane.b32.xlu1 %v4725_v58, %s7913_s16  ;;  %4803 = vrot.lane.b32.xlu0 %v10771_v17, %s7913_s16  ;;  %v10801_v58 = vsel %vm1629_vm2, %v4731_v38, %v10791_v21 }
 0x359   : > { %4977 = vrot.lane.b32.xlu1 %v4901_v41, %s7916_s19  ;;  %4979 = vrot.lane.b32.xlu0 %v10788_v6, %s7916_s19  ;;  %v4629_v41 = vld [vmem:[#allocation3 + $0x88] sm:$0x3] }
 0x35a   : > { %v4734_v38 = vrot.slane %v4629_v41, 1  ;;  %v4910_v5 = vrot.slane %v4629_v41, 2  ;;  %v10848_v41 = vsel %vm1806_vm5, %v4912_v29, %v10834_v32 }
 0x35c   : > { %v4735_v46 = vsel %vm1629_vm2, %v10791_v21, %v4734_v38 }
 0x35d   : > { %4805 = vrot.lane.b32.xlu1 %v4730_v26, %s7913_s16  ;;  %4807 = vrot.lane.b32.xlu0 %v10801_v58, %s7913_s16  ;;  %v10821_v26 = vrot.slane %v10809_v30, 1 }
 0x35f   : > { %v10831_v35 = vsel %vm1629_vm2, %v4736_v55, %v10821_v26  ;;  %v4911_v55 = vsel %vm1806_vm5, %v10804_v24, %v4910_v5 }
 0x361   : > { %4981 = vrot.lane.b32.xlu1 %v4906_v52, %s7916_s19  ;;  %4983 = vrot.lane.b32.xlu0 %v10818_v18, %s7916_s19  ;;  %v4632_v52 = vld [vmem:[#allocation3 + $0xa0] sm:$0x3] }
 0x362   : > { %v4739_v38 = vrot.slane %v4632_v52, 1  ;;  %v4915_v29 = vrot.slane %v4632_v52, 2  ;;  %v10878_v52 = vsel %vm1806_vm5, %v4917_v62, %v10864_v0 }
 0x364   : > { %v4740_v45 = vsel %vm1629_vm2, %v10821_v26, %v4739_v38 }
 0x365   : > { %4809 = vrot.lane.b32.xlu1 %v4735_v46, %s7913_s16  ;;  %4811 = vrot.lane.b32.xlu0 %v10831_v35, %s7913_s16  ;;  %v10851_v46 = vrot.slane %v10839_v54, 1 }
 0x367   : > { %v10861_v5 = vsel %vm1629_vm2, %v4741_v57, %v10851_v46  ;;  %v4916_v57 = vsel %vm1806_vm5, %v10834_v32, %v4915_v29 }
 0x369   : > { %4985 = vrot.lane.b32.xlu1 %v4911_v55, %s7916_s19  ;;  %4987 = vrot.lane.b32.xlu0 %v10848_v41, %s7916_s19  ;;  %v4635_v55 = vld [vmem:[#allocation3 + $0xb8] sm:$0x3] }
 0x36a   : > { %v4744_v38 = vrot.slane %v4635_v55, 1  ;;  %v4920_v50 = vrot.slane %v4635_v55, 2  ;;  %v10912_v55 = vsel %vm1806_vm5, %v4922_v22, %v10898_v4  ;;  %v4105_v22 = vld [vmem:[#allocation3 + $0x28] sm:$0x3] }
 0x36c   : > { %v4745_v29 = vsel %vm1629_vm2, %v10851_v46, %v4744_v38 }
 0x36d   : > { %4813 = vrot.lane.b32.xlu1 %v4740_v45, %s7913_s16  ;;  %4815 = vrot.lane.b32.xlu0 %v10861_v5, %s7913_s16  ;;  %v10881_v45 = vrot.slane %v10869_v39, 1 }
 0x36f   : > { %v10895_v62 = vsel %vm1629_vm2, %v4746_v15, %v10881_v45  ;;  %v4921_v15 = vsel %vm1806_vm5, %v10864_v0, %v4920_v50 }
 0x371   : > { %4989 = vrot.lane.b32.xlu1 %v4916_v57, %s7916_s19  ;;  %4991 = vrot.lane.b32.xlu0 %v10878_v52, %s7916_s19  ;;  %v4638_v57 = vld [vmem:[#allocation3 + $0xd0] sm:$0x3] }
 0x372   : > { %v4749_v1 = vrot.slane %v4638_v57, 1  ;;  %v4925_v56 = vrot.slane %v4638_v57, 2 }
 0x373   : > { %v10887_v9 = vpop.permute.xlu0 %4823  ;;  %v10889_v40 = vpop.permute.xlu1 %4825 }
 0x374   : > { %v4750_v3 = vsel %vm1629_vm2, %v10881_v45, %v4749_v1 }
 0x375   : > { %4817 = vrot.lane.b32.xlu1 %v4745_v29, %s7913_s16  ;;  %4819 = vrot.lane.b32.xlu0 %v10895_v62, %s7913_s16  ;;  %v5887_v29 = vrot.slane %v5790_v27, 1 }
 0x377   : > { %v10904_v51 = vpop.permute.xlu0 %4999  ;;  %v10906_v38 = vpop.permute.xlu1 %5001  ;;  %v5888_v50 = vsel %vm1629_vm2, %v10701_v10, %v5887_v29  ;;  %v4380_v29 = vrot.slane %v4105_v22, 2 }
 0x379   : > { %4993 = vrot.lane.b32.xlu1 %v4921_v15, %s7916_s19  ;;  %4995 = vrot.lane.b32.xlu0 %v10912_v55, %s7916_s19 }
 0x37b   : > { %v10917_v63 = vpop.permute.xlu0 %4827  ;;  %v10919_v13 = vpop.permute.xlu1 %4829 }
 0x37c   : > { %12590 = vst [vmem:[#allocation7_spill] sm:$0xff] %v10917_v63  ;;  %12591 = vst [vmem:[#allocation11_spill] sm:$0xff] %v10919_v13  ;;  %v4926_v63 = vsel %vm1806_vm5, %v10898_v4, %v4925_v56  ;;  %v4204_v13 = vrot.slane %v4105_v22, 1  ;;  %v5793_v56 = vld [vmem:[#allocation3 + $0x58] sm:$0x3] }
 0x37d   : > { %4821 = vrot.lane.b32.xlu1 %v4750_v3, %s7913_s16  ;;  %5966 = vrot.lane.b32.xlu0 %v5888_v50, %s7913_s16 }
 0x37e   : > { %v4205_v3 = vsel %vm1629_vm2, %v10666_v2, %v4204_v13 }
 0x37f   : > { %v10927_v15 = vpop.permute.xlu0 %5003  ;;  %v10929_v49 = vpop.permute.xlu1 %5005 }
 0x380   : > { %12592 = vst [vmem:[#allocation27_spill] sm:$0xff] %v10929_v49  ;;  %v5892_v49 = vrot.slane %v5793_v56, 1 }
 0x381   : > { %4997 = vrot.lane.b32.xlu1 %v4926_v63, %s7916_s19  ;;  %4280 = vrot.lane.b32.xlu0 %v10682_v23, %s7913_s16  ;;  %v4381_v23 = vsel %vm1806_vm5, %v10685_v28, %v4380_v29 }
 0x383   : > { %v10936_v1 = vpop.permute.xlu0 %4831  ;;  %v10938_v57 = vpop.permute.xlu1 %4833 }
 0x384   : > { %12593 = vst [vmem:[#allocation14_spill] sm:$0xff] %v10936_v1  ;;  %v6063_v1 = vrot.slane %v5790_v27, 2  ;;  %v4108_v27 = vld [vmem:[#allocation3 + $0x40] sm:$0x3] }
 0x385   : > { %5964 = vrot.lane.b32.xlu1 %v10711_v25, %s7913_s16  ;;  %4282 = vrot.lane.b32.xlu0 %v4205_v3, %s7913_s16  ;;  %v5893_v3 = vsel %vm1629_vm2, %v10731_v33, %v5892_v49 }
 0x386   : > { %v6064_v22 = vsel %vm1806_vm5, %v10714_v53, %v6063_v1 }
 0x387   : > { %v10945_v50 = vpop.permute.xlu0 %5007  ;;  %v10947_v63 = vpop.permute.xlu1 %5009 }
 0x389   : > { %6140 = vrot.lane.b32.xlu1 %v10728_v47, %s7916_s19  ;;  %4458 = vrot.lane.b32.xlu0 %v4381_v23, %s7916_s19  ;;  %v4209_v23 = vrot.slane %v4108_v27, 1 }
 0x38b   : > { %v10954_v13 = vpop.permute.xlu0 %4837  ;;  %v10956_v2 = vpop.permute.xlu1 %4835  ;;  %v4210_v49 = vsel %vm1629_vm2, %v10701_v10, %v4209_v23 }
 0x38c   : > { %12594 = vst [vmem:[#allocation30_spill] sm:$0xff] %v10954_v13 }
 0x38d   : > { %6142 = vrot.lane.b32.xlu1 %v6064_v22, %s7916_s19  ;;  %5970 = vrot.lane.b32.xlu0 %v5893_v3, %s7913_s16  ;;  %v4385_v22 = vrot.slane %v4108_v27, 2  ;;  %v10981_v3 = vld [vmem:[%s12161_s5 + $0x20] sm:$0xf]  ;;  %v6068_v27 = vrot.slane %v5793_v56, 2 }
 0x38e   : > { %7735 = vmatprep.subr.msk.mxu0 %vm2667_vm4, %v10981_v3 }
 0x38f   : > { %v10964_v28 = vpop.permute.xlu0 %5013  ;;  %v10966_v29 = vpop.permute.xlu1 %5011  ;;  %v4386_v10 = vsel %vm1806_vm5, %v10714_v53, %v4385_v22  ;;  %v4111_v53 = vld [vmem:[#allocation3 + $0x58] sm:$0x3] }
 0x390   : > { %12595 = vst [vmem:[#allocation56_spill] sm:$0xff] %v10964_v28  ;;  %v6069_v28 = vsel %vm1806_vm5, %v10744_v43, %v6068_v27 }
 0x391   : > { %4456 = vrot.lane.b32.xlu1 %v10698_v20, %s7916_s19  ;;  %4284 = vrot.lane.b32.xlu0 %v10711_v25, %s7913_s16  ;;  %v5796_v20 = vld [vmem:[#allocation3 + $0x70] sm:$0x3] }
 0x392   : > { %v5897_v23 = vrot.slane %v5796_v20, 1 }
 0x393   : > { %v10972_v1 = vpop.permute.xlu0 %4841  ;;  %v10974_v13 = vpop.permute.xlu1 %4839 }
 0x394   : > { %12596 = vst [vmem:[#allocation55_spill] sm:$0xff] %v10972_v1  ;;  %12597 = vst [vmem:[#allocation12_spill] sm:$0xff] %v10974_v13 }
 0x395   : > { %5968 = vrot.lane.b32.xlu1 %v10741_v59, %s7913_s16  ;;  %4286 = vrot.lane.b32.xlu0 %v4210_v49, %s7913_s16 }
 0x397   : > { %v10988_v25 = vpop.permute.xlu0 %5017  ;;  %v10990_v1 = vpop.permute.xlu1 %5015 }
 0x398   : > { %12598 = vst [vmem:[#allocation16_spill] sm:$0xff] %v10988_v25  ;;  %v5898_v25 = vsel %vm1629_vm2, %v10761_v16, %v5897_v23  ;;  %v5799_v23 = vld [vmem:[#allocation3 + $0x88] sm:$0x3] }
 0x399   : > { %6144 = vrot.lane.b32.xlu1 %v10758_v31, %s7916_s19  ;;  %4462 = vrot.lane.b32.xlu0 %v4386_v10, %s7916_s19  ;;  %v4214_v10 = vrot.slane %v4111_v53, 1 }
 0x39b   : > { %v10997_v13 = vpop.permute.xlu0 %4845  ;;  %v10999_v49 = vpop.permute.xlu1 %4843 }
 0x39c   : > { %12599 = vst [vmem:[#allocation32_spill] sm:$0xff] %v10997_v13 }
 0x39d   : > { %6146 = vrot.lane.b32.xlu1 %v6069_v28, %s7916_s19  ;;  %5974 = vrot.lane.b32.xlu0 %v5898_v25, %s7913_s16  ;;  %v4215_v28 = vsel %vm1629_vm2, %v10731_v33, %v4214_v10  ;;  %v4390_v25 = vrot.slane %v4111_v53, 2 }
 0x39f   : > { %v11007_v56 = vpop.permute.xlu0 %5021  ;;  %v11009_v22 = vpop.permute.xlu1 %5019 }
 0x3a0   : > { %12600 = vst [vmem:[#allocation34_spill] sm:$0xff] %v11007_v56  ;;  %12601 = vst [vmem:[#allocation29_spill] sm:$0xff] %v11009_v22  ;;  %v5902_v22 = vrot.slane %v5799_v23, 1 }
 0x3a1   : > { %4460 = vrot.lane.b32.xlu1 %v10728_v47, %s7916_s19  ;;  %4288 = vrot.lane.b32.xlu0 %v10741_v59, %s7913_s16  ;;  %v4391_v59 = vsel %vm1806_vm5, %v10744_v43, %v4390_v25  ;;  %v4114_v43 = vld [vmem:[#allocation3 + $0x70] sm:$0x3] }
 0x3a3   : > { %v11015_v27 = vpop.permute.xlu0 %4849  ;;  %v11017_v13 = vpop.permute.xlu1 %4847 }
 0x3a4   : > { %12602 = vst [vmem:[#allocation35_spill] sm:$0xff] %v11015_v27  ;;  %v6073_v27 = vrot.slane %v5796_v20, 2 }
 0x3a5   : > { %5972 = vrot.lane.b32.xlu1 %v10771_v17, %s7913_s16  ;;  %4290 = vrot.lane.b32.xlu0 %v4215_v28, %s7913_s16  ;;  %v5903_v28 = vsel %vm1629_vm2, %v10791_v21, %v5902_v22 }
 0x3a6   : > { %v6074_v10 = vsel %vm1806_vm5, %v10774_v11, %v6073_v27 }
 0x3a7   : > { %v11024_v56 = vpop.permute.xlu0 %5025  ;;  %v11026_v47 = vpop.permute.xlu1 %5023 }
 0x3a9   : > { %6148 = vrot.lane.b32.xlu1 %v10788_v6, %s7916_s19  ;;  %4466 = vrot.lane.b32.xlu0 %v4391_v59, %s7916_s19  ;;  %v4219_v59 = vrot.slane %v4114_v43, 1 }
 0x3ab   : > { %v11033_v33 = vpop.permute.xlu0 %4853  ;;  %v11035_v53 = vpop.permute.xlu1 %4851 }
 0x3ac   : > { %12603 = vst [vmem:[#allocation58_spill] sm:$0xff] %v11033_v33  ;;  %12604 = vst [vmem:[#allocation20_spill] sm:$0xff] %v11035_v53 }
 0x3ad   : > { %6150 = vrot.lane.b32.xlu1 %v6074_v10, %s7916_s19  ;;  %5978 = vrot.lane.b32.xlu0 %v5903_v28, %s7913_s16  ;;  %v4395_v28 = vrot.slane %v4114_v43, 2 }
 0x3af   : > { %v4792_v20 = vpop.permute.xlu0 %4791  ;;  %v11043_v25 = vpop.permute.xlu1 %5027 }
 0x3b0   : > { %12605 = vst [vmem:[#allocation57_spill] sm:$0xff] %v11043_v25  ;;  %v5063_v27 = vsel %vm515_vm0, %v10661_v44, %v4792_v20  ;;  %v6078_v20 = vrot.slane %v5799_v23, 2 }
 0x3b1   : > { %4464 = vrot.lane.b32.xlu1 %v10758_v31, %s7916_s19  ;;  %4292 = vrot.lane.b32.xlu0 %v10771_v17, %s7913_s16  ;;  %v4220_v31 = vsel %vm1629_vm2, %v10761_v16, %v4219_v59  ;;  %v5802_v17 = vld [vmem:[#allocation3 + $0xa0] sm:$0x3] }
 0x3b3   : > { %v4968_v33 = vpop.permute.xlu0 %4967  ;;  %v11051_v22 = vpop.permute.xlu1 %5029 }
 0x3b4   : > { %12606 = vst [vmem:[#allocation38_spill] sm:$0xff] %v11051_v22  ;;  %v5095_v10 = vsel %vm517_vm6, %v5063_v27, %v4968_v33  ;;  %v4396_v33 = vsel %vm1806_vm5, %v10774_v11, %v4395_v28  ;;  %v5907_v27 = vrot.slane %v5802_v17, 1  ;;  %v6079_v22 = vsel %vm1806_vm5, %v10804_v24, %v6078_v20  ;;  %v7838_v11 = vld [vmem:[%s12161_s5 + $0x18] sm:$0xff]  }
 0x3b5   : > { %7635 = vmatprep.mubr.msk.f32.mxu0 %vm519_vm7, %v5095_v10  ;;  %5976 = vrot.lane.b32.xlu1 %v10801_v58, %s7913_s16 }
 0x3b6   : > { %4294 = vrot.lane.b32.xlu0 %v4220_v31, %s7913_s16 }
 0x3b7   : > { %v4796_v25 = vpop.permute.xlu0 %4795  ;;  %v4794_v53 = vpop.permute.xlu1 %4793 }
 0x3b8   : > { %v5065_v10 = vsel %vm515_vm0, %v10693_v14, %v4796_v25  ;;  %v5064_v16 = vsel %vm515_vm0, %v10659_v19, %v4794_v53  ;;  %v5908_v25 = vsel %vm1629_vm2, %v10821_v26, %v5907_v27  ;;  %v4117_v53 = vld [vmem:[#allocation3 + $0x88] sm:$0x3] }
 0x3b9   : > { %6152 = vrot.lane.b32.xlu1 %v10818_v18, %s7916_s19 }
 0x3ba   : > { %4470 = vrot.lane.b32.xlu0 %v4396_v33, %s7916_s19 }
 0x3bb   : > { %v4972_v43 = vpop.permute.xlu0 %4971  ;;  %v4970_v59 = vpop.permute.xlu1 %4969 }
 0x3bc   : > { %v5097_v31 = vsel %vm517_vm6, %v5065_v10, %v4972_v43  ;;  %v5096_v23 = vsel %vm517_vm6, %v5064_v16, %v4970_v59 }
 0x3bd   : > { %6154 = vrot.lane.b32.xlu1 %v6079_v22, %s7916_s19  ;;  %7636 = vmatmul.mubr.msk.f32.vlgmr.msra.gmra.mxu0 %vm519_vm7, %v5096_v23  ;;  %v4224_v22 = vrot.slane %v4117_v53, 1 }
 0x3be   : > { %5982 = vrot.lane.b32.xlu0 %v5908_v25, %s7913_s16  ;;  %7638 = vmatprep.mubr.msk.f32.mxu0 %vm519_vm7, %v5097_v31  ;;  %v6083_v31 = vrot.slane %v5802_v17, 2 }
 0x3bf   : > { %v4800_v28 = vpop.permute.xlu0 %4799  ;;  %v4798_v33 = vpop.permute.xlu1 %4797  ;;  %7736 = vmatpush3.msk.msra.mxu0 %vm2667_vm4, %v10981_v3 }
 0x3c0   : > { %7737 = vmatprep.subr.mxu0 %v7838_v11  ;;  %v5067_v20 = vsel %vm515_vm0, %v10722_v60, %v4800_v28  ;;  %v5066_v27 = vsel %vm515_vm0, %v10690_v36, %v4798_v33  ;;  %v5805_v36 = vld [vmem:[#allocation3 + $0xb8] sm:$0x3] }
 0x3c1   : > { %4468 = vrot.lane.b32.xlu1 %v10788_v6, %s7916_s19  ;;  %7738 = vmatpush3.msra.mxu0 %v7838_v11  ;;  %v4225_v6 = vsel %vm1629_vm2, %v10791_v21, %v4224_v22  ;;  %v5912_v21 = vrot.slane %v5805_v36, 1 }
 0x3c2   : > { %4296 = vrot.lane.b32.xlu0 %v10801_v58, %s7913_s16  ;;  %v4400_v58 = vrot.slane %v4117_v53, 2 }
 0x3c3   : > { %v4976_v10 = vpop.permute.xlu0 %4975  ;;  %v4974_v16 = vpop.permute.xlu1 %4973  ;;  %v5913_v22 = vsel %vm1629_vm2, %v10851_v46, %v5912_v21 }
 0x3c4   : > { %v5099_v43 = vsel %vm517_vm6, %v5067_v20, %v4976_v10  ;;  %v5098_v3 = vsel %vm517_vm6, %v5066_v27, %v4974_v16  ;;  %v4401_v23 = vsel %vm1806_vm5, %v10804_v24, %v4400_v58  ;;  %v6084_v24 = vsel %vm1806_vm5, %v10834_v32, %v6083_v31 }
 0x3c5   : > { %5980 = vrot.lane.b32.xlu1 %v10831_v35, %s7913_s16  ;;  %7639 = vmatmul.mubr.msk.f32.gmra.mxu0 %vm519_vm7, %v5098_v3  ;;  %v6088_v31 = vrot.slane %v5805_v36, 2 }
 0x3c6   : > { %4298 = vrot.lane.b32.xlu0 %v4225_v6, %s7913_s16  ;;  %7641 = vmatprep.mubr.msk.f32.mxu0 %vm519_vm7, %v5099_v43 }
 0x3c7   : > { %v4804_v60 = vpop.permute.xlu0 %4803  ;;  %v4802_v59 = vpop.permute.xlu1 %4801 }
 0x3c8   : > { %v5069_v11 = vsel %vm515_vm0, %v10752_v37, %v4804_v60  ;;  %v5068_v25 = vsel %vm515_vm0, %v10719_v48, %v4802_v59  ;;  %v4120_v48 = vld [vmem:[#allocation3 + $0xa0] sm:$0x3] }
 0x3c9   : > { %6156 = vrot.lane.b32.xlu1 %v10848_v41, %s7916_s19  ;;  %v4229_v10 = vrot.slane %v4120_v48, 1 }
 0x3ca   : > { %4474 = vrot.lane.b32.xlu0 %v4401_v23, %s7916_s19 }
 0x3cb   : > { %v4980_v53 = vpop.permute.xlu0 %4979  ;;  %v4978_v28 = vpop.permute.xlu1 %4977  ;;  %v4230_v59 = vsel %vm1629_vm2, %v10821_v26, %v4229_v10 }
 0x3cc   : > { %v5101_v33 = vsel %vm517_vm6, %v5069_v11, %v4980_v53  ;;  %v5100_v17 = vsel %vm517_vm6, %v5068_v25, %v4978_v28 }
 0x3cd   : > { %6158 = vrot.lane.b32.xlu1 %v6084_v24, %s7916_s19  ;;  %7642 = vmatmul.mubr.msk.f32.gmra.mxu0 %vm519_vm7, %v5100_v17 }
 0x3ce   : > { %5986 = vrot.lane.b32.xlu0 %v5913_v22, %s7913_s16  ;;  %7644 = vmatprep.mubr.msk.f32.mxu0 %vm519_vm7, %v5101_v33 }
 0x3cf   : > { %v4808_v20 = vpop.permute.xlu0 %4807  ;;  %v4806_v27 = vpop.permute.xlu1 %4805 }
 0x3d0   : > { %v5071_v16 = vsel %vm515_vm0, %v10782_v61, %v4808_v20  ;;  %v5070_v43 = vsel %vm515_vm0, %v10749_v7, %v4806_v27  ;;  %v5808_v7 = vld [vmem:[#allocation3 + $0xd0] sm:$0x3] }
 0x3d1   : > { %4472 = vrot.lane.b32.xlu1 %v10818_v18, %s7916_s19  ;;  %v4405_v18 = vrot.slane %v4120_v48, 2  ;;  %v5917_v26 = vrot.slane %v5808_v7, 1 }
 0x3d2   : > { %4300 = vrot.lane.b32.xlu0 %v10831_v35, %s7913_s16 }
 0x3d3   : > { %v4984_v3 = vpop.permute.xlu0 %4983  ;;  %v4982_v6 = vpop.permute.xlu1 %4981  ;;  %v4406_v23 = vsel %vm1806_vm5, %v10834_v32, %v4405_v18  ;;  %v6089_v32 = vsel %vm1806_vm5, %v10864_v0, %v6088_v31  ;;  %v5918_v33 = vsel %vm1629_vm2, %v10881_v45, %v5917_v26 }
 0x3d4   : > { %v5103_v58 = vsel %vm517_vm6, %v5071_v16, %v4984_v3  ;;  %v5102_v60 = vsel %vm517_vm6, %v5070_v43, %v4982_v6  ;;  %v6093_v6 = vrot.slane %v5808_v7, 2 }
 0x3d5   : > { %5984 = vrot.lane.b32.xlu1 %v10861_v5, %s7913_s16  ;;  %7645 = vmatmul.mubr.msk.f32.gmra.mxu0 %vm519_vm7, %v5102_v60 }
 0x3d6   : > { %4302 = vrot.lane.b32.xlu0 %v4230_v59, %s7913_s16  ;;  %7647 = vmatprep.mubr.msk.f32.mxu0 %vm519_vm7, %v5103_v58  ;;  %v6094_v31 = vsel %vm1806_vm5, %v10898_v4, %v6093_v6 }
 0x3d7   : > { %v4812_v61 = vpop.permute.xlu0 %4811  ;;  %v4810_v35 = vpop.permute.xlu1 %4809 }
 0x3d8   : > { %v5073_v21 = vsel %vm515_vm0, %v10812_v8, %v4812_v61  ;;  %v5072_v11 = vsel %vm515_vm0, %v10779_v42, %v4810_v35  ;;  %v4123_v8 = vld [vmem:[#allocation3 + $0xb8] sm:$0x3] }
 0x3d9   : > { %6160 = vrot.lane.b32.xlu1 %v10878_v52, %s7916_s19  ;;  %v4234_v24 = vrot.slane %v4123_v8, 1 }
 0x3da   : > { %4478 = vrot.lane.b32.xlu0 %v4406_v23, %s7916_s19 }
 0x3db   : > { %v4988_v25 = vpop.permute.xlu0 %4987  ;;  %v4986_v53 = vpop.permute.xlu1 %4985  ;;  %v4235_v43 = vsel %vm1629_vm2, %v10851_v46, %v4234_v24  ;;  %v11230_v24 = vld [vmem:[#allocation3 + $0xf8] sm:$0xff] }
 0x3dc   : > { %v5105_v28 = vsel %vm517_vm6, %v5073_v21, %v4988_v25  ;;  %v5104_v36 = vsel %vm517_vm6, %v5072_v11, %v4986_v53  ;;  %v11202_v21 = vld [vmem:[#allocation3 + $0xd8] sm:$0xff] }
 0x3dd   : > { %6162 = vrot.lane.b32.xlu1 %v6089_v32, %s7916_s19  ;;  %7648 = vmatmul.mubr.msk.f32.gmra.mxu0 %vm519_vm7, %v5104_v36  ;;  %v5919_v25 = vrot.slane %v11202_v21, 1  ;;  %v7873_v32 = vld [vmem:[#allocation3 + $0xd8] sm:$0xff] }
 0x3de   : > { %5990 = vrot.lane.b32.xlu0 %v5918_v33, %s7913_s16  ;;  %7650 = vmatprep.mubr.msk.f32.mxu0 %vm519_vm7, %v5105_v28  ;;  %v5079_v33 = vsel %vm515_vm0, %v7873_v32, %v10887_v9  ;;  %v6095_v9 = vrot.slane %v11202_v21, 2  ;;  %v7879_v32 = vld [vmem:[#allocation3 + $0x120] sm:$0xff] }
 0x3df   : > { %v4816_v42 = vpop.permute.xlu0 %4815  ;;  %v4814_v17 = vpop.permute.xlu1 %4813 }
 0x3e0   : > { %v5075_v22 = vsel %vm515_vm0, %v10842_v12, %v4816_v42  ;;  %v5074_v48 = vsel %vm515_vm0, %v10809_v30, %v4814_v17  ;;  %v11173_v12 = vld [vmem:[#allocation3 + $0xe0] sm:$0xff]  ;;  %v11175_v30 = vld [vmem:[#allocation3 + $0xe8] sm:$0x3] }
 0x3e1   : > { %4476 = vrot.lane.b32.xlu1 %v10848_v41, %s7916_s19  ;;  %v4410_v41 = vrot.slane %v4123_v8, 2  ;;  %v11182_v58 = vrot.slane %v11173_v12, 1  ;;  %v5922_v60 = vrot.slane %v11175_v30, 1  ;;  %v11219_v42 = vrot.slane %v11173_v12, 2 }
 0x3e2   : > { %4304 = vrot.lane.b32.xlu0 %v10861_v5, %s7913_s16 }
 0x3e3   : > { %v4992_v20 = vpop.permute.xlu0 %4991  ;;  %v4990_v27 = vpop.permute.xlu1 %4989  ;;  %v4411_v46 = vsel %vm1806_vm5, %v10864_v0, %v4410_v41  ;;  %v5923_v23 = vsel %vm1629_vm2, %v11182_v58, %v5922_v60  ;;  %v11244_v41 = vsel %vm1806_vm5, %v6095_v9, %v11219_v42  ;;  %v12612_v9 = vld [vmem:[#allocation56_spill] sm:$0xff] }
 0x3e4   : > { %v5107_v10 = vsel %vm517_vm6, %v5075_v22, %v4992_v20  ;;  %v5106_v16 = vsel %vm517_vm6, %v5074_v48, %v4990_v27  ;;  %v11232_v22 = vld [vmem:[#allocation3 + $0x100] sm:$0x3] }
 0x3e5   : > { %5988 = vrot.lane.b32.xlu1 %v10895_v62, %s7913_s16  ;;  %7651 = vmatmul.mubr.msk.f32.gmra.mxu0 %vm519_vm7, %v5106_v16  ;;  %v7874_v48 = vld [vmem:[#allocation3 + $0xe0] sm:$0xff]  ;;  %v12607_v16 = vld [vmem:[#allocation7_spill] sm:$0xff]  ;;  %v5927_v6 = vrot.slane %v11232_v22, 1 }
 0x3e6   : > { %4306 = vrot.lane.b32.xlu0 %v4235_v43, %s7913_s16  ;;  %7653 = vmatprep.mubr.msk.f32.mxu0 %vm519_vm7, %v5107_v10  ;;  %v7875_v10 = vld [vmem:[#allocation3 + $0xf0] sm:$0xff] }
 0x3e7   : > { %v4820_v5 = vpop.permute.xlu0 %4819  ;;  %v4818_v3 = vpop.permute.xlu1 %4817  ;;  %v5081_v43 = vsel %vm515_vm0, %v7875_v10, %v12607_v16  ;;  %v7881_v10 = vld [vmem:[#allocation3 + $0x138] sm:$0xff]  ;;  %v12613_v16 = vld [vmem:[#allocation12_spill] sm:$0xff] }
 0x3e8   : > { %v5077_v59 = vsel %vm515_vm0, %v10872_v34, %v4820_v5  ;;  %v5076_v18 = vsel %vm515_vm0, %v10839_v54, %v4818_v3  ;;  %v4126_v34 = vld [vmem:[#allocation3 + $0xd0] sm:$0x3]  ;;  %v6098_v5 = vrot.slane %v11175_v30, 2  ;;  %v5113_v3 = vsel %vm517_vm6, %v5081_v43, %v10927_v15  ;;  %v7876_v30 = vld [vmem:[#allocation3 + $0xf8] sm:$0xff] }
 0x3e9   : > { %6164 = vrot.lane.b32.xlu1 %v10912_v55, %s7916_s19  ;;  %v4239_v11 = vrot.slane %v4126_v34, 1  ;;  %v4415_v17 = vrot.slane %v4126_v34, 2  ;;  %v4129_v34 = vld [vmem:[#allocation3 + $0xe8] sm:$0x3]  ;;  %v5087_v43 = vsel %vm515_vm0, %v7881_v10, %v12613_v16  ;;  %v7887_v10 = vld [vmem:[#allocation3 + $0x180] sm:$0xff]  ;;  %v12620_v16 = vld [vmem:[#allocation20_spill] sm:$0xff] }
 0x3ea   : > { %4482 = vrot.lane.b32.xlu0 %v4411_v46, %s7916_s19  ;;  %v12608_v46 = vld [vmem:[#allocation11_spill] sm:$0xff] }
 0x3eb   : > { %v4996_v7 = vpop.permute.xlu0 %4995  ;;  %v4994_v61 = vpop.permute.xlu1 %4993  ;;  %v5082_v15 = vsel %vm515_vm0, %v7876_v30, %v12608_v46  ;;  %v12614_v30 = vld [vmem:[#allocation55_spill] sm:$0xff] }
 0x3ec   : > { %v5109_v0 = vsel %vm517_vm6, %v5077_v59, %v4996_v7  ;;  %v5108_v35 = vsel %vm517_vm6, %v5076_v18, %v4994_v61  ;;  %v12609_v59 = vld [vmem:[#allocation27_spill] sm:$0xff]  ;;  %v12610_v61 = vld [vmem:[#allocation14_spill] sm:$0xff] }
 0x3ed   : > { %6166 = vrot.lane.b32.xlu1 %v6094_v31, %s7916_s19  ;;  %7654 = vmatmul.mubr.msk.f32.gmra.mxu0 %vm519_vm7, %v5108_v35  ;;  %v5114_v18 = vsel %vm517_vm6, %v5082_v15, %v12609_v59  ;;  %v7877_v7 = vld [vmem:[#allocation3 + $0x108] sm:$0xff]  ;;  %v6099_v35 = vsel %vm1806_vm5, %v11219_v42, %v6098_v5  ;;  %v4420_v5 = vrot.slane %v4129_v34, 2 }
 0x3ee   : > { %5994 = vrot.lane.b32.xlu0 %v5923_v23, %s7913_s16  ;;  %7656 = vmatprep.mubr.msk.f32.mxu0 %vm519_vm7, %v5109_v0  ;;  %v5083_v0 = vsel %vm515_vm0, %v7877_v7, %v12610_v61 }
 0x3ef   : > { %v11200_v54 = vpop.permute.xlu0 %5966  ;;  %v4822_v26 = vpop.permute.xlu1 %4821  ;;  %v5115_v31 = vsel %vm517_vm6, %v5083_v0, %v10945_v50  ;;  %v11284_v50 = vld [vmem:[#allocation3 + $0xf0] sm:$0xff]  ;;  %v6103_v0 = vrot.slane %v11232_v22, 2  ;;  %v7884_v22 = vld [vmem:[#allocation3 + $0x158] sm:$0xff] }
 0x3f0   : > { %v5078_v53 = vsel %vm515_vm0, %v10869_v39, %v4822_v26  ;;  %v4240_v39 = vsel %vm1629_vm2, %v10881_v45, %v4239_v11  ;;  %v7878_v26 = vld [vmem:[#allocation3 + $0x110] sm:$0xff] }
 0x3f1   : > { %4480 = vrot.lane.b32.xlu1 %v10878_v52, %s7916_s19  ;;  %v5921_v52 = vsel %vm1629_vm2, %v5919_v25, %v11182_v58  ;;  %v5084_v11 = vsel %vm515_vm0, %v7878_v26, %v10938_v57  ;;  %v4244_v57 = vrot.slane %v4129_v34, 1  ;;  %v12617_v26 = vld [vmem:[#allocation32_spill] sm:$0xff] }
 0x3f2   : > { %4308 = vrot.lane.b32.xlu0 %v10895_v62, %s7913_s16  ;;  %v5111_v62 = vsel %vm517_vm6, %v5079_v33, %v10904_v51  ;;  %v5080_v51 = vsel %vm515_vm0, %v7874_v48, %v10889_v40  ;;  %v4416_v40 = vsel %vm1806_vm5, %v10898_v4, %v4415_v17  ;;  %v5085_v33 = vsel %vm515_vm0, %v7879_v32, %v10956_v2  ;;  %v12618_v32 = vld [vmem:[#allocation34_spill] sm:$0xff] }
 0x3f3   : > { %v11211_v28 = vpop.permute.xlu0 %4280  ;;  %v4998_v36 = vpop.permute.xlu1 %4997  ;;  %v5112_v27 = vsel %vm517_vm6, %v5080_v51, %v10906_v38  ;;  %v11255_v38 = vrot.slane %v11230_v24, 1 }
 0x3f4   : > { %v5110_v8 = vsel %vm517_vm6, %v5078_v53, %v4998_v36  ;;  %v5116_v36 = vsel %vm517_vm6, %v5084_v11, %v10947_v63  ;;  %v7880_v63 = vld [vmem:[#allocation3 + $0x128] sm:$0xff]  ;;  %v4550_v2 = vsel %vm515_vm0, %v10661_v44, %v11211_v28  ;;  %v4245_v28 = vsel %vm1629_vm2, %v11182_v58, %v4244_v57  ;;  %v7882_v58 = vld [vmem:[#allocation3 + $0x140] sm:$0xff] }
 0x3f5   : > { %5992 = vrot.lane.b32.xlu1 %v5921_v52, %s7913_s16  ;;  %7657 = vmatmul.mubr.msk.f32.gmra.mxu0 %vm519_vm7, %v5110_v8  ;;  %v5928_v23 = vsel %vm1629_vm2, %v11255_v38, %v5927_v6  ;;  %v5117_v8 = vsel %vm517_vm6, %v5085_v33, %v10966_v29  ;;  %v6100_v6 = vrot.slane %v11284_v50, 2  ;;  %v5088_v46 = vsel %vm515_vm0, %v7882_v58, %v12614_v30 }
 0x3f6   : > { %4310 = vrot.lane.b32.xlu0 %v4240_v39, %s7913_s16  ;;  %7659 = vmatprep.mubr.msk.f32.mxu0 %vm519_vm7, %v5111_v62  ;;  %v5924_v62 = vrot.slane %v11284_v50, 1  ;;  %v12611_v39 = vld [vmem:[#allocation30_spill] sm:$0xff]  ;;  %v5090_v11 = vsel %vm515_vm0, %v7884_v22, %v12617_v26 }
 0x3f7   : > { %v4283_v45 = vpop.permute.xlu0 %4282  ;;  %v11236_v20 = vpop.permute.xlu1 %5964  ;;  %v5086_v17 = vsel %vm515_vm0, %v7880_v63, %v12611_v39  ;;  %v5122_v33 = vsel %vm517_vm6, %v5090_v11, %v12618_v32  ;;  %v7890_v11 = vld [vmem:[#allocation3 + $0x48] sm:$0xff] }
 0x3f8   : > { %v5118_v48 = vsel %vm517_vm6, %v5086_v17, %v12612_v9  ;;  %v5926_v51 = vsel %vm1629_vm2, %v5924_v62, %v11255_v38  ;;  %v4551_v44 = vsel %vm515_vm0, %v10659_v19, %v4283_v45  ;;  %v11327_v19 = vld [vmem:[#allocation3 + $0x110] sm:$0xff]  ;;  %v11329_v45 = vld [vmem:[#allocation3 + $0x118] sm:$0x3]  ;;  %v4132_v17 = vld [vmem:[#allocation3 + $0x100] sm:$0x3] }
 0x3f9   : > { %6168 = vrot.lane.b32.xlu1 %v11244_v41, %s7916_s19  ;;  %7660 = vmatmul.mubr.msk.f32.gmra.mxu0 %vm519_vm7, %v5112_v27  ;;  %v11311_v27 = vrot.slane %v11230_v24, 2  ;;  %v11354_v34 = vrot.slane %v11327_v19, 1 }
 0x3fa   : > { %4486 = vrot.lane.b32.xlu0 %v4416_v40, %s7916_s19  ;;  %7662 = vmatprep.mubr.msk.f32.mxu0 %vm519_vm7, %v5113_v3  ;;  %v5119_v3 = vsel %vm517_vm6, %v5087_v43, %v10990_v1  ;;  %v5093_v43 = vsel %vm515_vm0, %v7887_v10, %v12620_v16 }
 0x3fb   : > { %v4459_v60 = vpop.permute.xlu0 %4458  ;;  %v11262_v4 = vpop.permute.xlu1 %6140  ;;  %v11343_v61 = vsel %vm1806_vm5, %v6100_v6, %v11311_v27  ;;  %v6104_v62 = vsel %vm1806_vm5, %v11311_v27, %v6103_v0  ;;  %v7889_v0 = vld [vmem:[#allocation3 + $0x38] sm:$0xff] }
 0x3fc   : > { %v4583_v40 = vsel %vm517_vm6, %v4551_v44, %v4459_v60  ;;  %v12615_v60 = vld [vmem:[#allocation16_spill] sm:$0xff]  ;;  %v12621_v44 = vld [vmem:[#allocation57_spill] sm:$0xff] }
 0x3fd   : > { %6170 = vrot.lane.b32.xlu1 %v6099_v35, %s7916_s19  ;;  %7663 = vmatmul.mubr.msk.f32.gmra.mxu0 %vm519_vm7, %v5114_v18  ;;  %v5120_v59 = vsel %vm517_vm6, %v5088_v46, %v12615_v60  ;;  %v7883_v18 = vld [vmem:[#allocation3 + $0x150] sm:$0xff]  ;;  %v12616_v35 = vld [vmem:[#allocation29_spill] sm:$0xff]  ;;  %v12623_v46 = vld [vmem:[#allocation38_spill] sm:$0xff] }
 0x3fe   : > { %5998 = vrot.lane.b32.xlu0 %v5928_v23, %s7913_s16  ;;  %7665 = vmatprep.mubr.msk.f32.mxu0 %vm519_vm7, %v5115_v31  ;;  %v5089_v7 = vsel %vm515_vm0, %v7883_v18, %v10999_v49  ;;  %v4421_v23 = vsel %vm1806_vm5, %v11219_v42, %v4420_v5  ;;  %v5932_v49 = vrot.slane %v11329_v45, 1  ;;  %v4249_v5 = vrot.slane %v4132_v17, 1 }
 0x3ff   : > { %v11280_v25 = vpop.permute.xlu0 %5970  ;;  %v11282_v53 = vpop.permute.xlu1 %6142  ;;  %v5121_v31 = vsel %vm517_vm6, %v5089_v7, %v12616_v35  ;;  %v11406_v18 = vrot.slane %v11327_v19, 2  ;;  %v6236_v7 = vsel %vm515_vm0, %v10693_v14, %v11236_v20  ;;  %v11422_v20 = vld [vmem:[#allocation3 + $0x128] sm:$0xff] }
 0x400   : > { %v5933_v39 = vsel %vm1629_vm2, %v11354_v34, %v5932_v49  ;;  %v4250_v35 = vsel %vm1629_vm2, %v11255_v38, %v4249_v5  ;;  %v6237_v38 = vsel %vm515_vm0, %v7889_v0, %v11200_v54 }
 0x401   : > { %4484 = vrot.lane.b32.xlu1 %v10912_v55, %s7916_s19  ;;  %7666 = vmatmul.mubr.msk.f32.gmra.mxu0 %vm519_vm7, %v5116_v36  ;;  %v6269_v26 = vsel %vm517_vm6, %v6237_v38, %v11282_v53  ;;  %v11446_v53 = vrot.slane %v11422_v20, 1  ;;  %v4138_v38 = vld [vmem:[#allocation3 + $0x130] sm:$0x3] }
 0x402   : > { %4312 = vrot.lane.b32.xlu0 %v5921_v52, %s7913_s16  ;;  %7668 = vmatprep.mubr.msk.f32.mxu0 %vm519_vm7, %v5117_v8  ;;  %v7885_v8 = vld [vmem:[#allocation3 + $0x168] sm:$0xff] }
 0x403   : > { %v11303_v29 = vpop.permute.xlu0 %4284  ;;  %v4457_v55 = vpop.permute.xlu1 %4456  ;;  %v5091_v57 = vsel %vm515_vm0, %v7885_v8, %v11017_v13  ;;  %v12619_v13 = vld [vmem:[#allocation35_spill] sm:$0xff] }
 0x404   : > { %v4582_v52 = vsel %vm517_vm6, %v4550_v2, %v4457_v55  ;;  %v5123_v63 = vsel %vm517_vm6, %v5091_v57, %v11026_v47  ;;  %v7886_v2 = vld [vmem:[#allocation3 + $0x170] sm:$0xff]  ;;  %v11379_v47 = vld [vmem:[#allocation3 + $0x108] sm:$0xff]  ;;  %v4552_v58 = vsel %vm515_vm0, %v10693_v14, %v11303_v29 }
 0x405   : > { %5996 = vrot.lane.b32.xlu1 %v5926_v51, %s7913_s16  ;;  %7669 = vmatmul.mubr.msk.f32.gmra.mxu0 %vm519_vm7, %v5118_v48  ;;  %v5092_v55 = vsel %vm515_vm0, %v7886_v2, %v12619_v13  ;;  %v6105_v14 = vrot.slane %v11379_v47, 2 }
 0x406   : > { %4314 = vrot.lane.b32.xlu0 %v4245_v28, %s7913_s16  ;;  %7690 = vmatprep.mubr.msk.f32.mxu1 %vm519_vm7, %v4582_v52  ;;  %v5124_v52 = vsel %vm517_vm6, %v5092_v55, %v11024_v56  ;;  %v5125_v28 = vsel %vm517_vm6, %v5093_v43, %v12621_v44  ;;  %v7888_v56 = vld [vmem:[#allocation3 + $0x188] sm:$0xff] }
 0x407   : > { %7671 = vmatprep.mubr.msk.f32.mxu0 %vm519_vm7, %v5119_v3  ;;  %7691 = vmatmul.mubr.msk.f32.gmra.mxu1 %vm519_vm7, %v4583_v40  ;;  %v4287_v1 = vpop.permute.xlu0 %4286  ;;  %v11335_v15 = vpop.permute.xlu1 %5968  ;;  %v5929_v3 = vrot.slane %v11379_v47, 1  ;;  %v12622_v40 = vld [vmem:[#allocation58_spill] sm:$0xff]  ;;  %v11436_v32 = vsel %vm1806_vm5, %v6105_v14, %v11406_v18 }
 0x408   : > { %v5094_v6 = vsel %vm515_vm0, %v7888_v56, %v12622_v40  ;;  %v4553_v29 = vsel %vm515_vm0, %v7889_v0, %v4287_v1  ;;  %v11424_v1 = vld [vmem:[#allocation3 + $0x130] sm:$0x3] }
 0x409   : > { %6172 = vrot.lane.b32.xlu1 %v11343_v61, %s7916_s19  ;;  %7672 = vmatmul.mubr.msk.f32.gmra.mxu0 %vm519_vm7, %v5120_v59  ;;  %v5126_v60 = vsel %vm517_vm6, %v5094_v6, %v12623_v46  ;;  %v5931_v59 = vsel %vm1629_vm2, %v5929_v3, %v11354_v34  ;;  %v11497_v46 = vld [vmem:[#allocation3 + $0x148] sm:$0x3] }
 0x40a   : > { %4490 = vrot.lane.b32.xlu0 %v4421_v23, %s7916_s19  ;;  %7674 = vmatprep.mubr.msk.f32.mxu0 %vm519_vm7, %v5121_v31  ;;  %v4425_v31 = vrot.slane %v4132_v17, 2  ;;  %v6268_v23 = vsel %vm517_vm6, %v6236_v7, %v11262_v4 }
 0x40b   : > { %v4463_v36 = vpop.permute.xlu0 %4462  ;;  %v6145_v42 = vpop.permute.xlu1 %6144 }
 0x40c   : > { %v4585_v49 = vsel %vm517_vm6, %v4553_v29, %v4463_v36  ;;  %v6238_v36 = vsel %vm515_vm0, %v7890_v11, %v11335_v15  ;;  %v4426_v8 = vsel %vm1806_vm5, %v11311_v27, %v4425_v31  ;;  %v5937_v15 = vrot.slane %v11424_v1, 1 }
 0x40d   : > { %6174 = vrot.lane.b32.xlu1 %v6104_v62, %s7916_s19  ;;  %7675 = vmatmul.mubr.msk.f32.gmra.mxu0 %vm519_vm7, %v5122_v33  ;;  %v6108_v33 = vrot.slane %v11329_v45, 2  ;;  %v6270_v54 = vsel %vm517_vm6, %v6238_v36, %v6145_v42  ;;  %v7891_v45 = vld [vmem:[#allocation3 + $0x50] sm:$0xff]  ;;  %v5942_v29 = vrot.slane %v11497_v46, 1 }
 0x40e   : > { %6002 = vrot.lane.b32.xlu0 %v5933_v39, %s7913_s16  ;;  %7677 = vmatprep.mubr.msk.f32.mxu0 %vm519_vm7, %v5123_v63  ;;  %v6239_v42 = vsel %vm515_vm0, %v7891_v45, %v11280_v25  ;;  %v5938_v2 = vsel %vm1629_vm2, %v11446_v53, %v5937_v15  ;;  %v11465_v25 = vld [vmem:[#allocation3 + $0x68] sm:$0xff]  ;;  %v7895_v15 = vld [vmem:[#allocation3 + $0x60] sm:$0xff] }
 0x40f   : > { %v11377_v9 = vpop.permute.xlu0 %5974  ;;  %v6147_v48 = vpop.permute.xlu1 %6146  ;;  %v6109_v17 = vsel %vm1806_vm5, %v11406_v18, %v6108_v33 }
 0x410   : > { %v6271_v63 = vsel %vm517_vm6, %v6239_v42, %v6147_v48  ;;  %v6241_v13 = vsel %vm515_vm0, %v11465_v25, %v11377_v9 }
 0x411   : > { %4488 = vrot.lane.b32.xlu1 %v11244_v41, %s7916_s19  ;;  %7678 = vmatmul.mubr.msk.f32.gmra.mxu0 %vm519_vm7, %v5124_v52  ;;  %v11470_v52 = vld [vmem:[#allocation3 + $0x120] sm:$0xff] }
 0x412   : > { %4316 = vrot.lane.b32.xlu0 %v5926_v51, %s7913_s16  ;;  %7680 = vmatprep.mubr.msk.f32.mxu0 %vm519_vm7, %v5125_v28  ;;  %v5934_v43 = vrot.slane %v11470_v52, 1 }
 0x413   : > { %v11398_v30 = vpop.permute.xlu0 %4288  ;;  %v4461_v41 = vpop.permute.xlu1 %4460 }
 0x414   : > { %v4584_v51 = vsel %vm517_vm6, %v4552_v58, %v4461_v41  ;;  %v4554_v44 = vsel %vm515_vm0, %v7890_v11, %v11398_v30  ;;  %v5936_v56 = vsel %vm1629_vm2, %v5934_v43, %v11446_v53  ;;  %v6110_v30 = vrot.slane %v11470_v52, 2  ;;  %v11495_v41 = vld [vmem:[#allocation3 + $0x140] sm:$0xff]  ;;  %v11529_v11 = vld [vmem:[#allocation3 + $0x138] sm:$0xff] }
 0x415   : > { %6000 = vrot.lane.b32.xlu1 %v5931_v59, %s7913_s16  ;;  %7681 = vmatmul.mubr.msk.f32.gmra.mxu0 %vm519_vm7, %v5126_v60  ;;  %v11509_v0 = vrot.slane %v11495_v41, 1 }
 0x416   : > { %4318 = vrot.lane.b32.xlu0 %v4250_v35, %s7913_s16  ;;  %7693 = vmatprep.mubr.msk.f32.mxu1 %vm519_vm7, %v4584_v51  ;;  %v11513_v35 = vld [vmem:[#allocation3 + $0x78] sm:$0xff] }
 0x417   : > { %7694 = vmatmul.mubr.msk.f32.gmra.mxu1 %vm519_vm7, %v4585_v49  ;;  %7739 = vmatprep.mubr.msk.f32.mxu0 %vm519_vm7, %v6268_v23  ;;  %v4291_v4 = vpop.permute.xlu0 %4290  ;;  %v5973_v22 = vpop.permute.xlu1 %5972 }
 0x418   : > { %v6240_v27 = vsel %vm515_vm0, %v10752_v37, %v5973_v22  ;;  %v4135_v37 = vld [vmem:[#allocation3 + $0x118] sm:$0x3]  ;;  %v4555_v5 = vsel %vm515_vm0, %v7891_v45, %v4291_v4  ;;  %v11525_v4 = vld [vmem:[#allocation3 + $0x80] sm:$0xff] }
 0x419   : > { %6176 = vrot.lane.b32.xlu1 %v11436_v32, %s7916_s19  ;;  %7740 = vmatmul.mubr.msk.f32.vlgmr.msra.gmra.mxu0 %vm519_vm7, %v6269_v26  ;;  %v4254_v16 = vrot.slane %v4135_v37, 1  ;;  %v4430_v58 = vrot.slane %v4135_v37, 2  ;;  %v6115_v37 = vrot.slane %v11529_v11, 2 }
 0x41a   : > { %4494 = vrot.lane.b32.xlu0 %v4426_v8, %s7916_s19  ;;  %7742 = vmatprep.mubr.msk.f32.mxu0 %vm519_vm7, %v6270_v54  ;;  %v4259_v54 = vrot.slane %v4138_v38, 1  ;;  %v5939_v8 = vrot.slane %v11529_v11, 1 }
 0x41b   : > { %v4467_v57 = vpop.permute.xlu0 %4466  ;;  %v6149_v62 = vpop.permute.xlu1 %6148  ;;  %v4255_v6 = vsel %vm1629_vm2, %v11354_v34, %v4254_v16  ;;  %v4431_v7 = vsel %vm1806_vm5, %v11406_v18, %v4430_v58  ;;  %v7897_v58 = vld [vmem:[#allocation3 + $0x98] sm:$0xff] }
 0x41c   : > { %v6272_v39 = vsel %vm517_vm6, %v6240_v27, %v6149_v62  ;;  %v4587_v40 = vsel %vm517_vm6, %v4555_v5, %v4467_v57 }
 0x41d   : > { %6178 = vrot.lane.b32.xlu1 %v6109_v17, %s7916_s19  ;;  %7743 = vmatmul.mubr.msk.f32.gmra.mxu0 %vm519_vm7, %v6271_v63  ;;  %v11544_v63 = vrot.slane %v11495_v41, 2  ;;  %v4260_v17 = vsel %vm1629_vm2, %v11446_v53, %v4259_v54 }
 0x41e   : > { %6006 = vrot.lane.b32.xlu0 %v5938_v2, %s7913_s16  ;;  %7745 = vmatprep.mubr.msk.f32.mxu0 %vm519_vm7, %v6272_v39  ;;  %v4435_v2 = vrot.slane %v4138_v38, 2 }
 0x41f   : > { %v5979_v55 = vpop.permute.xlu0 %5978  ;;  %v6151_v48 = vpop.permute.xlu1 %6150  ;;  %v11560_v53 = vsel %vm1806_vm5, %v6115_v37, %v11544_v63  ;;  %v7899_v37 = vld [vmem:[#allocation3 + $0xb0] sm:$0xff] }
 0x420   : > { %v6273_v10 = vsel %vm517_vm6, %v6241_v13, %v6151_v48  ;;  %v6243_v22 = vsel %vm515_vm0, %v11525_v4, %v5979_v55  ;;  %v11556_v13 = vld [vmem:[#allocation3 + $0x160] sm:$0x3] }
 0x421   : > { %4492 = vrot.lane.b32.xlu1 %v11343_v61, %s7916_s19  ;;  %7746 = vmatmul.mubr.msk.f32.gmra.mxu0 %vm519_vm7, %v6273_v10  ;;  %v11485_v61 = vrot.slane %v11422_v20, 2  ;;  %v6118_v10 = vrot.slane %v11497_v46, 2 }
 0x422   : > { %4320 = vrot.lane.b32.xlu0 %v5931_v59, %s7913_s16  ;;  %v6113_v59 = vrot.slane %v11424_v1, 2  ;;  %v5943_v1 = vsel %vm1629_vm2, %v11509_v0, %v5942_v29 }
 0x423   : > { %v4293_v9 = vpop.permute.xlu0 %4292  ;;  %v4465_v28 = vpop.permute.xlu1 %4464  ;;  %v11501_v34 = vsel %vm1806_vm5, %v6110_v30, %v11485_v61  ;;  %v4436_v16 = vsel %vm1806_vm5, %v11485_v61, %v4435_v2  ;;  %v4144_v2 = vld [vmem:[#allocation3 + $0x160] sm:$0x3] }
 0x424   : > { %v4586_v3 = vsel %vm517_vm6, %v4554_v44, %v4465_v28  ;;  %v6114_v18 = vsel %vm1806_vm5, %v11485_v61, %v6113_v59  ;;  %v4556_v45 = vsel %vm515_vm0, %v7895_v15, %v4293_v9  ;;  %v5947_v44 = vrot.slane %v11556_v13, 1  ;;  %v11572_v9 = vld [vmem:[#allocation3 + $0x90] sm:$0xff] }
 0x425   : > { %6004 = vrot.lane.b32.xlu1 %v5936_v56, %s7913_s16  ;;  %7696 = vmatprep.mubr.msk.f32.mxu1 %vm519_vm7, %v4586_v3  ;;  %v6119_v61 = vsel %vm1806_vm5, %v11544_v63, %v6118_v10 }
 0x426   : > { %4322 = vrot.lane.b32.xlu0 %v4255_v6, %s7913_s16  ;;  %7697 = vmatmul.mubr.msk.f32.gmra.mxu1 %vm519_vm7, %v4587_v40  ;;  %v4141_v6 = vld [vmem:[#allocation3 + $0x148] sm:$0x3] }
 0x427   : > { %v5977_v60 = vpop.permute.xlu1 %5976 }
 0x428   : > { %v4295_v51 = vpop.permute.xlu0 %4294  ;;  %v6242_v31 = vsel %vm515_vm0, %v11513_v35, %v5977_v60  ;;  %v11585_v60 = vld [vmem:[#allocation3 + $0x150] sm:$0xff] }
 0x429   : > { %6180 = vrot.lane.b32.xlu1 %v11501_v34, %s7916_s19  ;;  %v4557_v27 = vsel %vm515_vm0, %v11465_v25, %v4295_v51  ;;  %v11554_v25 = vld [vmem:[#allocation3 + $0x158] sm:$0xff]  ;;  %v5944_v29 = vrot.slane %v11585_v60, 1 }
 0x42a   : > { %4498 = vrot.lane.b32.xlu0 %v4431_v7, %s7916_s19  ;;  %v11568_v43 = vrot.slane %v11554_v25, 1  ;;  %v4264_v7 = vrot.slane %v4141_v6, 1 }
 0x42b   : > { %v6153_v23 = vpop.permute.xlu1 %6152 }
 0x42c   : > { %v4471_v49 = vpop.permute.xlu0 %4470  ;;  %v6274_v14 = vsel %vm517_vm6, %v6242_v31, %v6153_v23  ;;  %v5948_v40 = vsel %vm1629_vm2, %v11568_v43, %v5947_v44  ;;  %v4269_v44 = vrot.slane %v4144_v2, 1 }
 0x42d   : > { %6182 = vrot.lane.b32.xlu1 %v6114_v18, %s7916_s19  ;;  %7748 = vmatprep.mubr.msk.f32.mxu0 %vm519_vm7, %v6274_v14  ;;  %v4589_v39 = vsel %vm517_vm6, %v4557_v27, %v4471_v49  ;;  %v11629_v27 = vld [vmem:[#allocation3 + $0xa8] sm:$0xff] }
 0x42e   : > { %6010 = vrot.lane.b32.xlu0 %v5943_v1, %s7913_s16  ;;  %v11601_v1 = vrot.slane %v11554_v25, 2 }
 0x42f   : > { %v6155_v26 = vpop.permute.xlu1 %6154 }
 0x430   : > { %v5983_v36 = vpop.permute.xlu0 %5982  ;;  %v6275_v33 = vsel %vm517_vm6, %v6243_v22, %v6155_v26  ;;  %v4265_v22 = vsel %vm1629_vm2, %v11509_v0, %v4264_v7  ;;  %v11611_v26 = vld [vmem:[#allocation3 + $0x170] sm:$0xff] }
 0x431   : > { %4496 = vrot.lane.b32.xlu1 %v11436_v32, %s7916_s19  ;;  %7749 = vmatmul.mubr.msk.f32.gmra.mxu0 %vm519_vm7, %v6275_v33  ;;  %v5941_v32 = vsel %vm1629_vm2, %v5939_v8, %v11509_v0  ;;  %v6245_v30 = vsel %vm515_vm0, %v7897_v58, %v5983_v36  ;;  %v11613_v36 = vld [vmem:[#allocation3 + $0x178] sm:$0x3]  ;;  %v6123_v8 = vrot.slane %v11556_v13, 2 }
 0x432   : > { %4324 = vrot.lane.b32.xlu0 %v5936_v56, %s7913_s16 }
 0x433   : > { %v4469_v42 = vpop.permute.xlu1 %4468 }
 0x434   : > { %v4297_v57 = vpop.permute.xlu0 %4296  ;;  %v4588_v62 = vsel %vm517_vm6, %v4556_v45, %v4469_v42  ;;  %v11625_v45 = vrot.slane %v11611_v26, 1  ;;  %v5952_v42 = vrot.slane %v11613_v36, 1 }
 0x435   : > { %6008 = vrot.lane.b32.xlu1 %v5941_v32, %s7913_s16  ;;  %7699 = vmatprep.mubr.msk.f32.mxu1 %vm519_vm7, %v4588_v62  ;;  %v4558_v31 = vsel %vm515_vm0, %v11513_v35, %v4297_v57  ;;  %v4440_v35 = vrot.slane %v4141_v6, 2 }
 0x436   : > { %4326 = vrot.lane.b32.xlu0 %v4260_v17, %s7913_s16  ;;  %7700 = vmatmul.mubr.msk.f32.gmra.mxu1 %vm519_vm7, %v4589_v39  ;;  %v5953_v17 = vsel %vm1629_vm2, %v11625_v45, %v5952_v42 }
 0x437   : > { %v5981_v55 = vpop.permute.xlu1 %5980  ;;  %v4441_v15 = vsel %vm1806_vm5, %v11544_v63, %v4440_v35  ;;  %v6124_v63 = vsel %vm1806_vm5, %v11601_v1, %v6123_v8 }
 0x438   : > { %v4299_v48 = vpop.permute.xlu0 %4298  ;;  %v6244_v28 = vsel %vm515_vm0, %v11572_v9, %v5981_v55 }
 0x439   : > { %6184 = vrot.lane.b32.xlu1 %v11560_v53, %s7916_s19  ;;  %v4559_v49 = vsel %vm515_vm0, %v11525_v4, %v4299_v48  ;;  %v6120_v4 = vrot.slane %v11585_v60, 2  ;;  %v11642_v48 = vld [vmem:[#allocation3 + $0x168] sm:$0xff] }
 0x43a   : > { %4502 = vrot.lane.b32.xlu0 %v4436_v16, %s7916_s19 }
 0x43b   : > { %v6157_v5 = vpop.permute.xlu1 %6156  ;;  %v11617_v0 = vsel %vm1806_vm5, %v6120_v4, %v11601_v1 }
 0x43c   : > { %v4475_v3 = vpop.permute.xlu0 %4474  ;;  %v6276_v56 = vsel %vm517_vm6, %v6244_v28, %v6157_v5  ;;  %v5949_v28 = vrot.slane %v11642_v48, 1 }
 0x43d   : > { %6186 = vrot.lane.b32.xlu1 %v6119_v61, %s7916_s19  ;;  %7751 = vmatprep.mubr.msk.f32.mxu0 %vm519_vm7, %v6276_v56  ;;  %v4591_v38 = vsel %vm517_vm6, %v4559_v49, %v4475_v3 }
 0x43e   : > { %6014 = vrot.lane.b32.xlu0 %v5948_v40, %s7913_s16  ;;  %v5951_v6 = vsel %vm1629_vm2, %v5949_v28, %v11625_v45 }
 0x43f   : > { %v6159_v46 = vpop.permute.xlu1 %6158 }
 0x440   : > { %v5987_v51 = vpop.permute.xlu0 %5986  ;;  %v6277_v59 = vsel %vm517_vm6, %v6245_v30, %v6159_v46  ;;  %v4270_v46 = vsel %vm1629_vm2, %v11568_v43, %v4269_v44 }
 0x441   : > { %4500 = vrot.lane.b32.xlu1 %v11501_v34, %s7916_s19  ;;  %7752 = vmatmul.mubr.msk.f32.gmra.mxu0 %vm519_vm7, %v6277_v59  ;;  %v5946_v34 = vsel %vm1629_vm2, %v5944_v29, %v11568_v43  ;;  %v6247_v13 = vsel %vm515_vm0, %v7899_v37, %v5987_v51  ;;  %v11667_v51 = vld [vmem:[#allocation3 + $0x188] sm:$0xff]  ;;  %v11669_v59 = vld [vmem:[#allocation3 + $0x190] sm:$0x3] }
 0x442   : > { %4328 = vrot.lane.b32.xlu0 %v5941_v32, %s7913_s16  ;;  %v5955_v49 = vrot.slane %v11667_v51, 1 }
 0x443   : > { %v4473_v23 = vpop.permute.xlu1 %4472 }
 0x444   : > { %v4301_v14 = vpop.permute.xlu0 %4300  ;;  %v4590_v18 = vsel %vm517_vm6, %v4558_v31, %v4473_v23  ;;  %v6128_v31 = vrot.slane %v11613_v36, 2  ;;  %v4147_v36 = vld [vmem:[#allocation3 + $0x178] sm:$0x3] }
 0x445   : > { %6012 = vrot.lane.b32.xlu1 %v5946_v34, %s7913_s16  ;;  %7702 = vmatprep.mubr.msk.f32.mxu1 %vm519_vm7, %v4590_v18  ;;  %v4560_v5 = vsel %vm515_vm0, %v11572_v9, %v4301_v14  ;;  %v4445_v9 = vrot.slane %v4144_v2, 2  ;;  %v5957_v14 = vrot.slane %v11669_v59, 1  ;;  %v11683_v18 = vld [vmem:[#allocation3 + $0xc0] sm:$0xff] }
 0x446   : > { %4330 = vrot.lane.b32.xlu0 %v4265_v22, %s7913_s16  ;;  %7703 = vmatmul.mubr.msk.f32.gmra.mxu1 %vm519_vm7, %v4591_v38 }
 0x447   : > { %v5985_v33 = vpop.permute.xlu1 %5984  ;;  %v4446_v23 = vsel %vm1806_vm5, %v11601_v1, %v4445_v9  ;;  %v5958_v4 = vsel %vm1629_vm2, %v5955_v49, %v5957_v14 }
 0x448   : > { %v4303_v54 = vpop.permute.xlu0 %4302  ;;  %v6246_v57 = vsel %vm515_vm0, %v11629_v27, %v5985_v33  ;;  %v11694_v33 = vld [vmem:[#allocation3 + $0xc8] sm:$0xff] }
 0x449   : > { %6188 = vrot.lane.b32.xlu1 %v11617_v0, %s7916_s19  ;;  %v4561_v56 = vsel %vm515_vm0, %v7897_v58, %v4303_v54  ;;  %v6125_v58 = vrot.slane %v11642_v48, 2 }
 0x44a   : > { %4506 = vrot.lane.b32.xlu0 %v4441_v15, %s7916_s19  ;;  %v11698_v15 = vld [vmem:[#allocation3 + $0x180] sm:$0xff] }
 0x44b   : > { %v6161_v62 = vpop.permute.xlu1 %6160 }
 0x44c   : > { %v4479_v32 = vpop.permute.xlu0 %4478  ;;  %v6278_v39 = vsel %vm517_vm6, %v6246_v57, %v6161_v62  ;;  %v4274_v62 = vrot.slane %v4147_v36, 1 }
 0x44d   : > { %6190 = vrot.lane.b32.xlu1 %v6124_v63, %s7916_s19  ;;  %7754 = vmatprep.mubr.msk.f32.mxu0 %vm519_vm7, %v6278_v39  ;;  %v4593_v30 = vsel %vm517_vm6, %v4561_v56, %v4479_v32  ;;  %v5954_v32 = vrot.slane %v11698_v15, 1 }
 0x44e   : > { %6018 = vrot.lane.b32.xlu0 %v5953_v17, %s7913_s16  ;;  %v4275_v28 = vsel %vm1629_vm2, %v11625_v45, %v4274_v62  ;;  %v6133_v45 = vrot.slane %v11669_v59, 2 }
 0x44f   : > { %v6163_v55 = vpop.permute.xlu1 %6162 }
 0x450   : > { %v5991_v10 = vpop.permute.xlu0 %5990  ;;  %v6279_v16 = vsel %vm517_vm6, %v6247_v13, %v6163_v55  ;;  %v5956_v55 = vsel %vm1629_vm2, %v5954_v32, %v5955_v49 }
 0x451   : > { %4504 = vrot.lane.b32.xlu1 %v11560_v53, %s7916_s19  ;;  %7755 = vmatmul.mubr.msk.f32.gmra.mxu0 %vm519_vm7, %v6279_v16  ;;  %v11657_v53 = vrot.slane %v11611_v26, 2  ;;  %v6249_v54 = vsel %vm515_vm0, %v11694_v33, %v5991_v10  ;;  %v11712_v10 = vld [vmem:[#allocation3 + $0x1a0] sm:$0xff]  ;;  %v5835_v16 = vld [vmem:[#allocation3 + $0x1a8] sm:$0x3] }
 0x452   : > { %4332 = vrot.lane.b32.xlu0 %v5946_v34, %s7913_s16  ;;  %v5962_v56 = vrot.slane %v5835_v16, 1 }
 0x453   : > { %v4477_v3 = vpop.permute.xlu1 %4476  ;;  %v11673_v43 = vsel %vm1806_vm5, %v6125_v58, %v11657_v53  ;;  %v6129_v1 = vsel %vm1806_vm5, %v11657_v53, %v6128_v31  ;;  %v11732_v58 = vld [vmem:[#allocation3 + $0x198] sm:$0xff] }
 0x454   : > { %v4305_v61 = vpop.permute.xlu0 %4304  ;;  %v4592_v40 = vsel %vm517_vm6, %v4560_v5, %v4477_v3  ;;  %v5960_v3 = vrot.slane %v11712_v10, 1 }
 0x455   : > { %6016 = vrot.lane.b32.xlu1 %v5951_v6, %s7913_s16  ;;  %7705 = vmatprep.mubr.msk.f32.mxu1 %vm519_vm7, %v4592_v40  ;;  %v4562_v39 = vsel %vm515_vm0, %v11629_v27, %v4305_v61  ;;  %v4450_v27 = vrot.slane %v4147_v36, 2 }
 0x456   : > { %4334 = vrot.lane.b32.xlu0 %v4270_v46, %s7913_s16  ;;  %7706 = vmatmul.mubr.msk.f32.gmra.mxu1 %vm519_vm7, %v4593_v30  ;;  %v5963_v9 = vsel %vm1629_vm2, %v5960_v3, %v5962_v56 }
 0x457   : > { %v5989_v7 = vpop.permute.xlu1 %5988 }
 0x458   : > { %v4307_v29 = vpop.permute.xlu0 %4306  ;;  %v6248_v34 = vsel %vm515_vm0, %v11683_v18, %v5989_v7  ;;  %v6136_v7 = vrot.slane %v11712_v10, 2 }
 0x459   : > { %6192 = vrot.lane.b32.xlu1 %v11673_v43, %s7916_s19  ;;  %v4563_v17 = vsel %vm515_vm0, %v7899_v37, %v4307_v29  ;;  %v6130_v37 = vrot.slane %v11698_v15, 2  ;;  %v6138_v29 = vrot.slane %v5835_v16, 2 }
 0x45a   : > { %4510 = vrot.lane.b32.xlu0 %v4446_v23, %s7916_s19  ;;  %v5959_v23 = vrot.slane %v11732_v58, 1 }
 0x45b   : > { %v6165_v38 = vpop.permute.xlu1 %6164 }
 0x45c   : > { %v4483_v22 = vpop.permute.xlu0 %4482  ;;  %v6280_v35 = vsel %vm517_vm6, %v6248_v34, %v6165_v38  ;;  %v6139_v34 = vsel %vm1806_vm5, %v6136_v7, %v6138_v29 }
 0x45d   : > { %6194 = vrot.lane.b32.xlu1 %v6129_v1, %s7916_s19  ;;  %7757 = vmatprep.mubr.msk.f32.mxu0 %vm519_vm7, %v6280_v35  ;;  %v4595_v44 = vsel %vm517_vm6, %v4563_v17, %v4483_v22  ;;  %v5961_v35 = vsel %vm1629_vm2, %v5959_v23, %v5960_v3  ;;  %v6135_v1 = vrot.slane %v11732_v58, 2 }
 0x45e   : > { %6022 = vrot.lane.b32.xlu0 %v5958_v4, %s7913_s16 }
 0x45f   : > { %v6167_v8 = vpop.permute.xlu1 %6166 }
 0x460   : > { %v5995_v42 = vpop.permute.xlu0 %5994  ;;  %v6281_v57 = vsel %vm517_vm6, %v6249_v54, %v6167_v8 }
 0x461   : > { %4508 = vrot.lane.b32.xlu1 %v11617_v0, %s7916_s19  ;;  %7758 = vmatmul.mubr.msk.f32.gmra.mxu0 %vm519_vm7, %v6281_v57  ;;  %v6131_v0 = vrot.slane %v11667_v51, 2  ;;  %v6251_v49 = vsel %vm515_vm0, %v11173_v12, %v5995_v42  ;;  %v6137_v57 = vsel %vm1806_vm5, %v6135_v1, %v6136_v7 }
 0x462   : > { %4336 = vrot.lane.b32.xlu0 %v5951_v6, %s7913_s16  ;;  %v4451_v6 = vsel %vm1806_vm5, %v11657_v53, %v4450_v27 }
 0x463   : > { %v4481_v63 = vpop.permute.xlu1 %4480  ;;  %v6132_v40 = vsel %vm1806_vm5, %v6130_v37, %v6131_v0  ;;  %v6134_v53 = vsel %vm1806_vm5, %v6131_v0, %v6133_v45 }
 0x464   : > { %v4309_v2 = vpop.permute.xlu0 %4308  ;;  %v4594_v13 = vsel %vm517_vm6, %v4562_v39, %v4481_v63 }
 0x465   : > { %6020 = vrot.lane.b32.xlu1 %v5956_v55, %s7913_s16  ;;  %7708 = vmatprep.mubr.msk.f32.mxu1 %vm519_vm7, %v4594_v13  ;;  %v4564_v4 = vsel %vm515_vm0, %v11683_v18, %v4309_v2 }
 0x466   : > { %4338 = vrot.lane.b32.xlu0 %v4275_v28, %s7913_s16  ;;  %7709 = vmatmul.mubr.msk.f32.gmra.mxu1 %vm519_vm7, %v4595_v44 }
 0x467   : > { %v5993_v5 = vpop.permute.xlu1 %5992 }
 0x468   : > { %v4311_v61 = vpop.permute.xlu0 %4310  ;;  %v6250_v30 = vsel %vm515_vm0, %v11202_v21, %v5993_v5 }
 0x469   : > { %6196 = vrot.lane.b32.xlu1 %v6132_v40, %s7916_s19  ;;  %v4565_v54 = vsel %vm515_vm0, %v11694_v33, %v4311_v61 }
 0x46a   : > { %4514 = vrot.lane.b32.xlu0 %v4451_v6, %s7916_s19 }
 0x46b   : > { %v6169_v46 = vpop.permute.xlu1 %6168 }
 0x46c   : > { %v4487_v31 = vpop.permute.xlu0 %4486  ;;  %v6282_v59 = vsel %vm517_vm6, %v6250_v30, %v6169_v46 }
 0x46d   : > { %6198 = vrot.lane.b32.xlu1 %v6134_v53, %s7916_s19  ;;  %7760 = vmatprep.mubr.msk.f32.mxu0 %vm519_vm7, %v6282_v59 }
 0x46e   : > { %6026 = vrot.lane.b32.xlu0 %v5963_v9, %s7913_s16 }
 0x46f   : > { %v6171_v14 = vpop.permute.xlu1 %6170 }
 0x470   : > { %v5999_v38 = vpop.permute.xlu0 %5998  ;;  %v6283_v22 = vsel %vm517_vm6, %v6251_v49, %v6171_v14 }
 0x471   : > { %4512 = vrot.lane.b32.xlu1 %v11673_v43, %s7916_s19  ;;  %7761 = vmatmul.mubr.msk.f32.gmra.mxu0 %vm519_vm7, %v6283_v22  ;;  %v4597_v43 = vsel %vm517_vm6, %v4565_v54, %v4487_v31  ;;  %v6253_v17 = vsel %vm515_vm0, %v11230_v24, %v5999_v38 }
 0x472   : > { %6202 = vrot.lane.b32.xlu0 %v6139_v34, %s7916_s19 }
 0x473   : > { %v4485_v36 = vpop.permute.xlu1 %4484 }
 0x474   : > { %v4313_v8 = vpop.permute.xlu0 %4312  ;;  %v4596_v42 = vsel %vm517_vm6, %v4564_v4, %v4485_v36 }
 0x475   : > { %6024 = vrot.lane.b32.xlu1 %v5961_v35, %s7913_s16  ;;  %7711 = vmatprep.mubr.msk.f32.mxu1 %vm519_vm7, %v4596_v42  ;;  %v4566_v0 = vsel %vm515_vm0, %v11202_v21, %v4313_v8 }
 0x476   : > { %7712 = vmatmul.mubr.msk.f32.gmra.mxu1 %vm519_vm7, %v4597_v43 }
 0x477   : > { %v5997_v62 = vpop.permute.xlu1 %5996 }
 0x478   : > { %v4315_v32 = vpop.permute.xlu0 %4314  ;;  %v6252_v18 = vsel %vm515_vm0, %v11284_v50, %v5997_v62 }
 0x479   : > { %6200 = vrot.lane.b32.xlu1 %v6137_v57, %s7916_s19  ;;  %v4567_v44 = vsel %vm515_vm0, %v11173_v12, %v4315_v32 }
 0x47b   : > { %v6173_v33 = vpop.permute.xlu1 %6172 }
 0x47c   : > { %v4491_v39 = vpop.permute.xlu0 %4490  ;;  %v6284_v63 = vsel %vm517_vm6, %v6252_v18, %v6173_v33 }
 0x47d   : > { %7763 = vmatprep.mubr.msk.f32.mxu0 %vm519_vm7, %v6284_v63  ;;  %v4599_v37 = vsel %vm517_vm6, %v4567_v44, %v4491_v39  ;;  %v11778_v56 = vpop.f32.mrf.mxu0 }
 0x47f   : > { %v6175_v2 = vpop.permute.xlu1 %6174  ;;  %v11786_v6 = vpop.f32.mrf.mxu0 }
 0x480   : > { %v6003_v13 = vpop.permute.xlu0 %6002  ;;  %v6285_v55 = vsel %vm517_vm6, %v6253_v17, %v6175_v2 }
 0x481   : > { %7764 = vmatmul.mubr.msk.f32.gmra.mxu0 %vm519_vm7, %v6285_v55  ;;  %v6255_v45 = vsel %vm515_vm0, %v11327_v19, %v6003_v13 }
 0x483   : > { %v4489_v16 = vpop.permute.xlu1 %4488 }
 0x484   : > { %v4317_v28 = vpop.permute.xlu0 %4316  ;;  %v4598_v27 = vsel %vm517_vm6, %v4566_v0, %v4489_v16 }
 0x485   : > { %7714 = vmatprep.mubr.msk.f32.mxu1 %vm519_vm7, %v4598_v27  ;;  %v11789_v7 = vpop.f32.mrf.mxu0  ;;  %v4568_v29 = vsel %vm515_vm0, %v11284_v50, %v4317_v28 }
 0x486   : > { %7715 = vmatmul.mubr.msk.f32.gmra.mxu1 %vm519_vm7, %v4599_v37 }
 0x487   : > { %v6001_v5 = vpop.permute.xlu1 %6000  ;;  %v11797_v49 = vpop.f32.mrf.mxu0 }
 0x488   : > { %v4319_v3 = vpop.permute.xlu0 %4318  ;;  %v6254_v21 = vsel %vm515_vm0, %v11379_v47, %v6001_v5 }
 0x489   : > { %v4569_v59 = vsel %vm515_vm0, %v11230_v24, %v4319_v3 }
 0x48b   : > { %v6177_v61 = vpop.permute.xlu1 %6176 }
 0x48c   : > { %v4495_v40 = vpop.permute.xlu0 %4494  ;;  %v6286_v12 = vsel %vm517_vm6, %v6254_v21, %v6177_v61 }
 0x48d   : > { %7766 = vmatprep.mubr.msk.f32.mxu0 %vm519_vm7, %v6286_v12  ;;  %v4601_v14 = vsel %vm517_vm6, %v4569_v59, %v4495_v40  ;;  %v11802_v34 = vpop.f32.mrf.mxu0 }
 0x48f   : > { %v6179_v30 = vpop.permute.xlu1 %6178  ;;  %v11804_v50 = vpop.f32.mrf.mxu0 }
 0x490   : > { %v6007_v46 = vpop.permute.xlu0 %6006  ;;  %v6287_v9 = vsel %vm517_vm6, %v6255_v45, %v6179_v30 }
 0x491   : > { %7767 = vmatmul.mubr.msk.f32.gmra.mxu0 %vm519_vm7, %v6287_v9  ;;  %v6257_v54 = vsel %vm515_vm0, %v11422_v20, %v6007_v46 }
 0x493   : > { %v4493_v31 = vpop.permute.xlu1 %4492 }
 0x494   : > { %v4321_v53 = vpop.permute.xlu0 %4320  ;;  %v4600_v23 = vsel %vm517_vm6, %v4568_v29, %v4493_v31 }
 0x495   : > { %7717 = vmatprep.mubr.msk.f32.mxu1 %vm519_vm7, %v4600_v23  ;;  %v11809_v36 = vpop.f32.mrf.mxu0  ;;  %v4570_v62 = vsel %vm515_vm0, %v11379_v47, %v4321_v53 }
 0x496   : > { %7718 = vmatmul.mubr.msk.f32.gmra.mxu1 %vm519_vm7, %v4601_v14 }
 0x497   : > { %v6005_v38 = vpop.permute.xlu1 %6004  ;;  %v11815_v57 = vpop.f32.mrf.mxu0 }
 0x498   : > { %v4323_v22 = vpop.permute.xlu0 %4322  ;;  %v6256_v24 = vsel %vm515_vm0, %v11470_v52, %v6005_v38 }
 0x499   : > { %v4571_v33 = vsel %vm515_vm0, %v11327_v19, %v4323_v22 }
 0x49b   : > { %v6181_v35 = vpop.permute.xlu1 %6180 }
 0x49c   : > { %v4499_v1 = vpop.permute.xlu0 %4498  ;;  %v6288_v4 = vsel %vm517_vm6, %v6256_v24, %v6181_v35 }
 0x49d   : > { %7769 = vmatprep.mubr.msk.f32.mxu0 %vm519_vm7, %v6288_v4  ;;  %v11820_v32 = vpop.f32.mrf.mxu0  ;;  %v4603_v17 = vsel %vm517_vm6, %v4571_v33, %v4499_v1 }
 0x49f   : > { %v6183_v8 = vpop.permute.xlu1 %6182  ;;  %v11828_v2 = vpop.f32.mrf.mxu0 }
 0x4a0   : > { %v6011_v42 = vpop.permute.xlu0 %6010  ;;  %v6289_v43 = vsel %vm517_vm6, %v6257_v54, %v6183_v8 }
 0x4a1   : > { %7770 = vmatmul.mubr.msk.f32.gmra.mxu0 %vm519_vm7, %v6289_v43  ;;  %v6259_v27 = vsel %vm515_vm0, %v11495_v41, %v6011_v42 }
 0x4a3   : > { %v4497_v18 = vpop.permute.xlu1 %4496 }
 0x4a4   : > { %v4325_v39 = vpop.permute.xlu0 %4324  ;;  %v4602_v63 = vsel %vm517_vm6, %v4570_v62, %v4497_v18 }
 0x4a5   : > { %7720 = vmatprep.mubr.msk.f32.mxu1 %vm519_vm7, %v4602_v63  ;;  %v11830_v47 = vpop.f32.mrf.mxu0  ;;  %v4572_v61 = vsel %vm515_vm0, %v11470_v52, %v4325_v39 }
 0x4a6   : > { %7721 = vmatmul.mubr.msk.f32.gmra.mxu1 %vm519_vm7, %v4603_v17 }
 0x4a7   : > { %v6009_v13 = vpop.permute.xlu1 %6008  ;;  %v11835_v28 = vpop.f32.mrf.mxu0 }
 0x4a8   : > { %v4327_v55 = vpop.permute.xlu0 %4326  ;;  %v6258_v0 = vsel %vm515_vm0, %v11529_v11, %v6009_v13 }
 0x4a9   : > { %v4573_v45 = vsel %vm515_vm0, %v11422_v20, %v4327_v55 }
 0x4ab   : > { %v6185_v16 = vpop.permute.xlu1 %6184 }
 0x4ac   : > { %v4503_v19 = vpop.permute.xlu0 %4502  ;;  %v6290_v44 = vsel %vm517_vm6, %v6258_v0, %v6185_v16 }
 0x4ad   : > { %7772 = vmatprep.mubr.msk.f32.mxu0 %vm519_vm7, %v6290_v44  ;;  %v11840_v37 = vpop.f32.mrf.mxu0  ;;  %v4605_v9 = vsel %vm517_vm6, %v4573_v45, %v4503_v19 }
 0x4af   : > { %v6187_v5 = vpop.permute.xlu1 %6186  ;;  %v11846_v40 = vpop.f32.mrf.mxu0 }
 0x4b0   : > { %v6015_v3 = vpop.permute.xlu0 %6014  ;;  %v6291_v21 = vsel %vm517_vm6, %v6259_v27, %v6187_v5 }
 0x4b1   : > { %7773 = vmatmul.mubr.msk.f32.gmra.mxu0 %vm519_vm7, %v6291_v21  ;;  %v6261_v35 = vsel %vm515_vm0, %v11554_v25, %v6015_v3  ;;  %v7689_v21 = vpop.f32.mrf.mxu1 }
 0x4b3   : > { %v4501_v12 = vpop.permute.xlu1 %4500 }
 0x4b4   : > { %v4329_v30 = vpop.permute.xlu0 %4328  ;;  %v4604_v46 = vsel %vm517_vm6, %v4572_v61, %v4501_v12 }
 0x4b5   : > { %v11852_v29 = vpop.f32.mrf.mxu0  ;;  %7723 = vmatprep.mubr.msk.f32.mxu1 %vm519_vm7, %v4604_v46  ;;  %v4574_v43 = vsel %vm515_vm0, %v11529_v11, %v4329_v30 }
 0x4b6   : > { %7724 = vmatmul.mubr.msk.f32.gmra.mxu1 %vm519_vm7, %v4605_v9 }
 0x4b7   : > { %v11856_v31 = vpop.f32.mrf.mxu0  ;;  %v6013_v52 = vpop.permute.xlu1 %6012 }
 0x4b8   : > { %v4331_v59 = vpop.permute.xlu0 %4330  ;;  %v6260_v20 = vsel %vm515_vm0, %v11585_v60, %v6013_v52  ;;  %v5628_v52 = vpop.f32.mrf.mxu1 }
 0x4b9   : > { %v11858_v53 = vpop.f32.mrf.mxu0  ;;  %v4575_v33 = vsel %vm515_vm0, %v11495_v41, %v4331_v59 }
 0x4bb   : > { %v11862_v23 = vpop.f32.mrf.mxu0  ;;  %v6189_v14 = vpop.permute.xlu1 %6188 }
 0x4bc   : > { %v4507_v38 = vpop.permute.xlu0 %4506  ;;  %v6292_v22 = vsel %vm517_vm6, %v6260_v20, %v6189_v14 }
 0x4bd   : > { %v11865_v24 = vpop.f32.mrf.mxu0  ;;  %7775 = vmatprep.mubr.msk.f32.mxu0 %vm519_vm7, %v6292_v22  ;;  %v4607_v17 = vsel %vm517_vm6, %v4575_v33, %v4507_v38 }
 0x4bf   : > { %v11870_v1 = vpop.f32.mrf.mxu0  ;;  %v6191_v4 = vpop.permute.xlu1 %6190 }
 0x4c0   : > { %v6019_v54 = vpop.permute.xlu0 %6018  ;;  %v6293_v8 = vsel %vm517_vm6, %v6261_v35, %v6191_v4 }
 0x4c1   : > { %v11873_v42 = vpop.f32.mrf.mxu0  ;;  %7776 = vmatmul.mubr.msk.f32.gmra.mxu0 %vm519_vm7, %v6293_v8  ;;  %v6263_v12 = vsel %vm515_vm0, %v11611_v26, %v6019_v54 }
 0x4c3   : > { %v11878_v62 = vpop.f32.mrf.mxu0  ;;  %v4505_v18 = vpop.permute.xlu1 %4504 }
 0x4c4   : > { %v4333_v39 = vpop.permute.xlu0 %4332  ;;  %v4606_v63 = vsel %vm517_vm6, %v4574_v43, %v4505_v18 }
 0x4c5   : > { %v11884_v13 = vpop.f32.mrf.mxu0  ;;  %7726 = vmatprep.mubr.msk.f32.mxu1 %vm519_vm7, %v4606_v63  ;;  %v4576_v20 = vsel %vm515_vm0, %v11585_v60, %v4333_v39  ;;  %v5634_v60 = vadd.f32 %v7689_v21, %v11778_v56 }
 0x4c6   : > { %7727 = vmatmul.mubr.msk.f32.gmra.mxu1 %vm519_vm7, %v4607_v17 }
 0x4c7   : > { %v11888_v55 = vpop.f32.mrf.mxu0  ;;  %v6017_v0 = vpop.permute.xlu1 %6016 }
 0x4c8   : > { %v4335_v11 = vpop.permute.xlu0 %4334  ;;  %v6262_v41 = vsel %vm515_vm0, %v11642_v48, %v6017_v0  ;;  %v7692_v14 = vpop.f32.mrf.mxu1 }
 0x4c9   : > { %v11890_v16 = vpop.f32.mrf.mxu0  ;;  %v4577_v22 = vsel %vm515_vm0, %v11554_v25, %v4335_v11  ;;  %v5629_v25 = vadd.f32 %v5628_v52, %v11786_v6 }
 0x4ca   : > { %v5638_v18 = vpop.f32.mrf.mxu1 }
 0x4cb   : > { %v11892_v19 = vpop.f32.mrf.mxu0  ;;  %v6193_v27 = vpop.permute.xlu1 %6192 }
 0x4cc   : > { %v4511_v44 = vpop.permute.xlu0 %4510  ;;  %v6294_v5 = vsel %vm517_vm6, %v6262_v41, %v6193_v27  ;;  %v5644_v41 = vadd.f32 %v7692_v14, %v11789_v7  ;;  %v5639_v7 = vadd.f32 %v5638_v18, %v11797_v49 }
 0x4cd   : > { %v11897_v3 = vpop.f32.mrf.mxu0  ;;  %7778 = vmatprep.mubr.msk.f32.mxu0 %vm519_vm7, %v6294_v5  ;;  %v4609_v8 = vsel %vm517_vm6, %v4577_v22, %v4511_v44  ;;  %v12624_v44 = vld [vmem:[#allocation43_spill] sm:$0xff] }
 0x4cf   : > { %v11900_v61 = vpop.f32.mrf.mxu0  ;;  %v6195_v30 = vpop.permute.xlu1 %6194 }
 0x4d0   : > { %v6023_v45 = vpop.permute.xlu0 %6022  ;;  %v6295_v46 = vsel %vm517_vm6, %v6263_v12, %v6195_v30 }
 0x4d1   : > { %v11905_v9 = vpop.f32.mrf.mxu0  ;;  %7779 = vmatmul.mubr.msk.f32.gmra.mxu0 %vm519_vm7, %v6295_v46  ;;  %v12625_v46 = vld [vmem:[#allocation64_spill] sm:$0xff] }
 0x4d3   : > { %v11908_v59 = vpop.f32.mrf.mxu0  ;;  %v4509_v38 = vpop.permute.xlu1 %4508 }
 0x4d4   : > { %v4337_v35 = vpop.permute.xlu0 %4336  ;;  %v4608_v4 = vsel %vm517_vm6, %v4576_v20, %v4509_v38 }
 0x4d5   : > { %v11915_v54 = vpop.f32.mrf.mxu0  ;;  %7729 = vmatprep.mubr.msk.f32.mxu1 %vm519_vm7, %v4608_v4 }
 0x4d6   : > { %7730 = vmatmul.mubr.msk.f32.gmra.mxu1 %vm519_vm7, %v4609_v8 }
 0x4d7   : > { %v11920_v43 = vpop.f32.mrf.mxu0  ;;  %v6021_v33 = vpop.permute.xlu1 %6020 }
 0x4d8   : > { %v7695_v63 = vpop.f32.mrf.mxu1  ;;  %v4339_v11 = vpop.permute.xlu0 %4338  ;;  %v6264_v56 = vsel %vm515_vm0, %v11698_v15, %v6021_v33  ;;  %v6265_v15 = vsel %vm515_vm0, %v11667_v51, %v6023_v45  ;;  %v12626_v33 = vld [vmem:[#allocation63_spill] sm:$0xff] }
 0x4d9   : > { %v7741_v39 = vpop.f32.mrf.mxu0  ;;  %v5654_v14 = vadd.f32 %v7695_v63, %v11802_v34 }
 0x4da   : > { %v6633_v17 = vadd.f32 %v7741_v39, %v5634_v60  ;;  %v5648_v38 = vpop.f32.mrf.mxu1 }
 0x4db   : > { %v6473_v0 = vpop.f32.mrf.mxu0  ;;  %v6197_v5 = vpop.permute.xlu1 %6196  ;;  %v5649_v34 = vadd.f32 %v5648_v38, %v11804_v50  ;;  %v4579_v50 = vsel %vm515_vm0, %v11611_v26, %v4339_v11  ;;  %v12629_v26 = vld [vmem:[#allocation65_spill] sm:$0xff] }
 0x4dc   : > { %v6665_v27 = vadd.f32 %v6633_v17, %v12624_v44  ;;  %v6632_v6 = vadd.f32 %v6473_v0, %v5629_v25  ;;  %v6296_v21 = vsel %vm517_vm6, %v6264_v56, %v6197_v5  ;;  %v4515_v17 = vpop.permute.xlu0 %4514  ;;  %v12627_v44 = vld [vmem:[#allocation28_spill] sm:$0xff]  ;;  %v4578_v5 = vsel %vm515_vm0, %v11642_v48, %v4337_v35 }
 0x4dd   : > { %v7744_v12 = vpop.f32.mrf.mxu0  ;;  %7781 = vmatprep.mubr.msk.f32.mxu0 %vm519_vm7, %v6296_v21  ;;  %v12628_v21 = vld [vmem:[#allocation66_spill] sm:$0xff]  ;;  %v4611_v38 = vsel %vm517_vm6, %v4579_v50, %v4515_v17 }
 0x4de   : > { %6697 = vst.msk [vmem:[%s11929_s23 + $0x8] sm:$0xff] %vm515_vm0, %v6665_v27  ;;  %v6800_v30 = vmul.f32 %v6665_v27, %v6665_v27  ;;  %v6664_v52 = vadd.f32 %v6632_v6, %v12625_v46  ;;  %v6635_v20 = vadd.f32 %v7744_v12, %v5644_v41  ;;  %v6729_v4 = vsel %vm515_vm0, %v6665_v27, 0.0 }
 0x4df   : > { %v6483_v22 = vpop.f32.mrf.mxu0  ;;  %v6199_v25 = vpop.permute.xlu1 %6198 }
 0x4e0   : > { %6696 = vst.msk [vmem:[%s11929_s23] sm:$0xff] %vm515_vm0, %v6664_v52  ;;  %v6728_v8 = vsel %vm515_vm0, %v6664_v52, 0.0  ;;  %v6799_v60 = vmul.f32 %v6664_v52, %v6664_v52  ;;  %v6667_v39 = vadd.f32 %v6635_v20, %v12626_v33  ;;  %v6634_v18 = vadd.f32 %v6483_v22, %v5639_v7 }
 0x4e1   : > { %v6730_v49 = vadd.f32 %v6729_v4, %v6728_v8  ;;  %v6297_v51 = vsel %vm517_vm6, %v6265_v15, %v6199_v25  ;;  %v7747_v45 = vpop.f32.mrf.mxu0  ;;  %v6832_v63 = vsel %vm515_vm0, %v6800_v30, 0.0 }
 0x4e2   : > { %v6831_v0 = vsel %vm515_vm0, %v6799_v60, 0.0  ;;  %6699 = vst.msk [vmem:[%s11929_s23 + $0x18] sm:$0xff] %vm515_vm0, %v6667_v39  ;;  %v6637_v41 = vadd.f32 %v7747_v45, %v5654_v14  ;;  %7782 = vmatmul.mubr.msk.f32.gmra.mxu0 %vm519_vm7, %v6297_v51  ;;  %v6666_v27 = vadd.f32 %v6634_v18, %v12627_v44  ;;  %v6802_v52 = vmul.f32 %v6667_v39, %v6667_v39  ;;  %v6027_v14 = vpop.permute.xlu0 %6026 }
 0x4e3   : > { %v6833_v56 = vadd.f32 %v6832_v63, %v6831_v0  ;;  %v6493_v6 = vpop.f32.mrf.mxu0  ;;  %v4513_v46 = vpop.permute.xlu1 %4512  ;;  %v6733_v11 = vsel %vm515_vm0, %v6667_v39, 0.0 }
 0x4e4   : > { %v6669_v12 = vadd.f32 %v6637_v41, %v12628_v21  ;;  %v6636_v30 = vadd.f32 %v6493_v6, %v5649_v34  ;;  %6698 = vst.msk [vmem:[%s11929_s23 + $0x10] sm:$0xff] %vm515_vm0, %v6666_v27  ;;  %v6731_v20 = vsel %vm515_vm0, %v6666_v27, 0.0  ;;  %v6801_v7 = vmul.f32 %v6666_v27, %v6666_v27 }
 0x4e5   : > { %v4610_v15 = vsel %vm517_vm6, %v4578_v5, %v4513_v46  ;;  %v6732_v48 = vadd.f32 %v6731_v20, %v6730_v49  ;;  %v6836_v25 = vsel %vm515_vm0, %v6802_v52, 0.0  ;;  %v6267_v34 = vsel %vm515_vm0, %v11712_v10, %v6027_v14  ;;  %v12630_v20 = vld [vmem:[#allocation25_spill] sm:$0xff]  ;;  %v12631_v14 = vld [vmem:[#allocation68_spill] sm:$0xff] }
 0x4e6   : > { %6701 = vst.msk [vmem:[%s11929_s23 + $0x28] sm:$0xff] %vm515_vm0, %v6669_v12  ;;  %v6668_v35 = vadd.f32 %v6636_v30, %v12629_v26  ;;  %7732 = vmatprep.mubr.msk.f32.mxu1 %vm519_vm7, %v4610_v15  ;;  %v6834_v22 = vsel %vm515_vm0, %v6801_v7, 0.0  ;;  %v6804_v17 = vmul.f32 %v6669_v12, %v6669_v12  ;;  %v6737_v45 = vsel %vm515_vm0, %v6669_v12, 0.0  ;;  %v7698_v63 = vpop.f32.mrf.mxu1  ;;  %v6203_v0 = vpop.permute.xlu0 %6202 }
 0x4e7   : > { %7733 = vmatmul.mubr.msk.f32.gmra.mxu1 %vm519_vm7, %v4611_v38  ;;  %v6835_v4 = vadd.f32 %v6834_v22, %v6833_v56  ;;  %v6734_v8 = vadd.f32 %v6733_v11, %v6732_v48  ;;  %v6025_v33 = vpop.permute.xlu1 %6024  ;;  %v6299_v50 = vsel %vm517_vm6, %v6267_v34, %v6203_v0  ;;  %v5664_v12 = vadd.f32 %v7698_v63, %v11809_v36  ;;  %v12633_v0 = vld [vmem:[#allocation36_spill] sm:$0xff] }
 0x4e8   : > { %6700 = vst.msk [vmem:[%s11929_s23 + $0x20] sm:$0xff] %vm515_vm0, %v6668_v35  ;;  %v6735_v60 = vsel %vm515_vm0, %v6668_v35, 0.0  ;;  %v6803_v49 = vmul.f32 %v6668_v35, %v6668_v35  ;;  %v6266_v56 = vsel %vm515_vm0, %v11732_v58, %v6025_v33  ;;  %v6840_v6 = vsel %vm515_vm0, %v6804_v17, 0.0  ;;  %v5658_v10 = vpop.f32.mrf.mxu1 }
 0x4e9   : > { %v6736_v18 = vadd.f32 %v6735_v60, %v6734_v8  ;;  %v6837_v51 = vadd.f32 %v6836_v25, %v6835_v4  ;;  %v5659_v58 = vadd.f32 %v5658_v10, %v11815_v57 }
 0x4ea   : > { %v6838_v39 = vsel %vm515_vm0, %v6803_v49, 0.0 }
 0x4eb   : > { %v6839_v41 = vadd.f32 %v6838_v39, %v6837_v51  ;;  %v6201_v44 = vpop.permute.xlu1 %6200  ;;  %v6738_v27 = vadd.f32 %v6737_v45, %v6736_v18  ;;  %v12632_v39 = vld [vmem:[#allocation67_spill] sm:$0xff] }
 0x4ec   : > { %v6298_v5 = vsel %vm517_vm6, %v6266_v56, %v6201_v44 }
 0x4ed   : > { %7784 = vmatprep.mubr.msk.f32.mxu0 %vm519_vm7, %v6298_v5  ;;  %v6841_v21 = vadd.f32 %v6840_v6, %v6839_v41 }
 0x4ee   : > { %7785 = vmatmul.mubr.msk.f32.gmra.mxu0 %vm519_vm7, %v6299_v50 }
 0x4f1   : > { %v7750_v30 = vpop.f32.mrf.mxu0 }
 0x4f2   : > { %v6639_v46 = vadd.f32 %v7750_v30, %v5664_v12 }
 0x4f3   : > { %v6503_v52 = vpop.f32.mrf.mxu0 }
 0x4f4   : > { %v6671_v7 = vadd.f32 %v6639_v46, %v12630_v20  ;;  %v6638_v15 = vadd.f32 %v6503_v52, %v5659_v58 }
 0x4f6   : > { %6703 = vst.msk [vmem:[%s11929_s23 + $0x38] sm:$0xff] %vm515_vm0, %v6671_v7  ;;  %v6670_v38 = vadd.f32 %v6638_v15, %v12631_v14  ;;  %v6806_v48 = vmul.f32 %v6671_v7, %v6671_v7  ;;  %v6741_v36 = vsel %vm515_vm0, %v6671_v7, 0.0  ;;  %v7701_v4 = vpop.f32.mrf.mxu1  ;;  %v12634_v15 = vld [vmem:[#allocation33_spill] sm:$0xff] }
 0x4f7   : > { %v5674_v17 = vadd.f32 %v7701_v4, %v11820_v32 }
 0x4f8   : > { %6702 = vst.msk [vmem:[%s11929_s23 + $0x30] sm:$0xff] %vm515_vm0, %v6670_v38  ;;  %v6739_v26 = vsel %vm515_vm0, %v6670_v38, 0.0  ;;  %v6805_v35 = vmul.f32 %v6670_v38, %v6670_v38  ;;  %v6844_v60 = vsel %vm515_vm0, %v6806_v48, 0.0  ;;  %v5668_v25 = vpop.f32.mrf.mxu1  ;;  %v12635_v48 = vld [vmem:[#allocation40_spill] sm:$0xff] }
 0x4f9   : > { %v6740_v11 = vadd.f32 %v6739_v26, %v6738_v27  ;;  %v5669_v18 = vadd.f32 %v5668_v25, %v11828_v2 }
 0x4fa   : > { %v6842_v57 = vsel %vm515_vm0, %v6805_v35, 0.0 }
 0x4fb   : > { %v6843_v22 = vadd.f32 %v6842_v57, %v6841_v21  ;;  %v6742_v8 = vadd.f32 %v6741_v36, %v6740_v11 }
 0x4fd   : > { %v6845_v33 = vadd.f32 %v6844_v60, %v6843_v22 }
 0x501   : > { %v7753_v49 = vpop.f32.mrf.mxu0 }
 0x502   : > { %v6641_v51 = vadd.f32 %v7753_v49, %v5674_v17 }
 0x503   : > { %v6513_v45 = vpop.f32.mrf.mxu0 }
 0x504   : > { %v6673_v34 = vadd.f32 %v6641_v51, %v12632_v39  ;;  %v6640_v63 = vadd.f32 %v6513_v45, %v5669_v18  ;;  %v12636_v39 = vld [vmem:[#allocation37_spill] sm:$0xff] }
 0x506   : > { %6705 = vst.msk [vmem:[%s11929_s23 + $0x48] sm:$0xff] %vm515_vm0, %v6673_v34  ;;  %v6672_v41 = vadd.f32 %v6640_v63, %v12633_v0  ;;  %v6808_v56 = vmul.f32 %v6673_v34, %v6673_v34  ;;  %v6745_v32 = vsel %vm515_vm0, %v6673_v34, 0.0  ;;  %v7704_v50 = vpop.f32.mrf.mxu1  ;;  %v12637_v0 = vld [vmem:[#allocation41_spill] sm:$0xff] }
 0x507   : > { %v5684_v58 = vadd.f32 %v7704_v50, %v11830_v47 }
 0x508   : > { %6704 = vst.msk [vmem:[%s11929_s23 + $0x40] sm:$0xff] %vm515_vm0, %v6672_v41  ;;  %v6743_v44 = vsel %vm515_vm0, %v6672_v41, 0.0  ;;  %v6807_v27 = vmul.f32 %v6672_v41, %v6672_v41  ;;  %v6848_v10 = vsel %vm515_vm0, %v6808_v56, 0.0  ;;  %v5678_v30 = vpop.f32.mrf.mxu1 }
 0x509   : > { %v6744_v6 = vadd.f32 %v6743_v44, %v6742_v8  ;;  %v5679_v52 = vadd.f32 %v5678_v30, %v11835_v28 }
 0x50a   : > { %v6846_v2 = vsel %vm515_vm0, %v6807_v27, 0.0 }
 0x50b   : > { %v6847_v5 = vadd.f32 %v6846_v2, %v6845_v33  ;;  %v6746_v21 = vadd.f32 %v6745_v32, %v6744_v6 }
 0x50d   : > { %v6849_v12 = vadd.f32 %v6848_v10, %v6847_v5 }
 0x511   : > { %v7756_v46 = vpop.f32.mrf.mxu0 }
 0x512   : > { %v6643_v20 = vadd.f32 %v7756_v46, %v5684_v58 }
 0x513   : > { %v6523_v7 = vpop.f32.mrf.mxu0 }
 0x514   : > { %v6675_v14 = vadd.f32 %v6643_v20, %v12634_v15  ;;  %v6642_v38 = vadd.f32 %v6523_v7, %v5679_v52  ;;  %v12638_v20 = vld [vmem:[#allocation6_spill] sm:$0xff] }
 0x516   : > { %6707 = vst.msk [vmem:[%s11929_s23 + $0x58] sm:$0xff] %vm515_vm0, %v6675_v14  ;;  %v6674_v26 = vadd.f32 %v6642_v38, %v12635_v48  ;;  %v6810_v35 = vmul.f32 %v6675_v14, %v6675_v14  ;;  %v6749_v47 = vsel %vm515_vm0, %v6675_v14, 0.0  ;;  %v7707_v4 = vpop.f32.mrf.mxu1  ;;  %v12639_v14 = vld [vmem:[#allocation45_spill] sm:$0xff] }
 0x517   : > { %v5694_v17 = vadd.f32 %v7707_v4, %v11840_v37 }
 0x518   : > { %6706 = vst.msk [vmem:[%s11929_s23 + $0x50] sm:$0xff] %vm515_vm0, %v6674_v26  ;;  %v6747_v11 = vsel %vm515_vm0, %v6674_v26, 0.0  ;;  %v6809_v36 = vmul.f32 %v6674_v26, %v6674_v26  ;;  %v6852_v60 = vsel %vm515_vm0, %v6810_v35, 0.0  ;;  %v5688_v25 = vpop.f32.mrf.mxu1 }
 0x519   : > { %v6748_v57 = vadd.f32 %v6747_v11, %v6746_v21  ;;  %v5689_v18 = vadd.f32 %v5688_v25, %v11846_v40 }
 0x51a   : > { %v6850_v28 = vsel %vm515_vm0, %v6809_v36, 0.0 }
 0x51b   : > { %v6851_v22 = vadd.f32 %v6850_v28, %v6849_v12  ;;  %v6750_v8 = vadd.f32 %v6749_v47, %v6748_v57 }
 0x51d   : > { %v6853_v33 = vadd.f32 %v6852_v60, %v6851_v22 }
 0x521   : > { %v7759_v49 = vpop.f32.mrf.mxu0 }
 0x522   : > { %v6645_v51 = vadd.f32 %v7759_v49, %v5694_v17  ;;  %v12640_v49 = vld [vmem:[#allocation44_spill] sm:$0xff] }
 0x523   : > { %v6533_v45 = vpop.f32.mrf.mxu0 }
 0x524   : > { %v6677_v34 = vadd.f32 %v6645_v51, %v12636_v39  ;;  %v6644_v63 = vadd.f32 %v6533_v45, %v5689_v18  ;;  %v12641_v45 = vld [vmem:[#allocation46_spill] sm:$0xff] }
 0x526   : > { %6709 = vst.msk [vmem:[%s11929_s23 + $0x68] sm:$0xff] %vm515_vm0, %v6677_v34  ;;  %v6676_v41 = vadd.f32 %v6644_v63, %v12637_v0  ;;  %v6812_v56 = vmul.f32 %v6677_v34, %v6677_v34  ;;  %v6753_v37 = vsel %vm515_vm0, %v6677_v34, 0.0  ;;  %v7710_v2 = vpop.f32.mrf.mxu1 }
 0x527   : > { %v5704_v12 = vadd.f32 %v7710_v2, %v11852_v29 }
 0x528   : > { %6708 = vst.msk [vmem:[%s11929_s23 + $0x60] sm:$0xff] %vm515_vm0, %v6676_v41  ;;  %v6751_v44 = vsel %vm515_vm0, %v6676_v41, 0.0  ;;  %v6811_v27 = vmul.f32 %v6676_v41, %v6676_v41  ;;  %v6856_v50 = vsel %vm515_vm0, %v6812_v56, 0.0  ;;  %v5698_v10 = vpop.f32.mrf.mxu1 }
 0x529   : > { %v6752_v6 = vadd.f32 %v6751_v44, %v6750_v8  ;;  %v5699_v58 = vadd.f32 %v5698_v10, %v11856_v31  ;;  %v12642_v10 = vld [vmem:[#allocation47_spill] sm:$0xff] }
 0x52a   : > { %v6854_v40 = vsel %vm515_vm0, %v6811_v27, 0.0 }
 0x52b   : > { %v6855_v32 = vadd.f32 %v6854_v40, %v6853_v33  ;;  %v6754_v5 = vadd.f32 %v6753_v37, %v6752_v6 }
 0x52d   : > { %v6857_v21 = vadd.f32 %v6856_v50, %v6855_v32 }
 0x531   : > { %v7762_v30 = vpop.f32.mrf.mxu0 }
 0x532   : > { %v6647_v46 = vadd.f32 %v7762_v30, %v5704_v12 }
 0x533   : > { %v6543_v52 = vpop.f32.mrf.mxu0 }
 0x534   : > { %v6679_v7 = vadd.f32 %v6647_v46, %v12638_v20  ;;  %v6646_v15 = vadd.f32 %v6543_v52, %v5699_v58  ;;  %v12643_v58 = vld [vmem:[#allocation48_spill] sm:$0xff] }
 0x536   : > { %6711 = vst.msk [vmem:[%s11929_s23 + $0x78] sm:$0xff] %vm515_vm0, %v6679_v7  ;;  %v6678_v38 = vadd.f32 %v6646_v15, %v12639_v14  ;;  %v6814_v48 = vmul.f32 %v6679_v7, %v6679_v7  ;;  %v6757_v29 = vsel %vm515_vm0, %v6679_v7, 0.0  ;;  %v7713_v57 = vpop.f32.mrf.mxu1 }
 0x537   : > { %v5714_v8 = vadd.f32 %v7713_v57, %v11858_v53 }
 0x538   : > { %6710 = vst.msk [vmem:[%s11929_s23 + $0x70] sm:$0xff] %vm515_vm0, %v6678_v38  ;;  %v6755_v26 = vsel %vm515_vm0, %v6678_v38, 0.0  ;;  %v6813_v35 = vmul.f32 %v6678_v38, %v6678_v38  ;;  %v6860_v28 = vsel %vm515_vm0, %v6814_v48, 0.0  ;;  %v5708_v4 = vpop.f32.mrf.mxu1 }
 0x539   : > { %v6756_v11 = vadd.f32 %v6755_v26, %v6754_v5  ;;  %v5709_v33 = vadd.f32 %v5708_v4, %v11862_v23 }
 0x53a   : > { %v6858_v31 = vsel %vm515_vm0, %v6813_v35, 0.0 }
 0x53b   : > { %v6859_v36 = vadd.f32 %v6858_v31, %v6857_v21  ;;  %v6758_v47 = vadd.f32 %v6757_v29, %v6756_v11 }
 0x53d   : > { %v6861_v22 = vadd.f32 %v6860_v28, %v6859_v36  ;;  %v12644_v28 = vld [vmem:[#allocation49_spill] sm:$0xff] }
 0x541   : > { %v7765_v60 = vpop.f32.mrf.mxu0 }
 0x542   : > { %v6649_v25 = vadd.f32 %v7765_v60, %v5714_v8  ;;  %v12645_v8 = vld [vmem:[#allocation50_spill] sm:$0xff] }
 0x543   : > { %v6553_v17 = vpop.f32.mrf.mxu0 }
 0x544   : > { %v6681_v18 = vadd.f32 %v6649_v25, %v12640_v49  ;;  %v6648_v51 = vadd.f32 %v6553_v17, %v5709_v33 }
 0x546   : > { %6713 = vst.msk [vmem:[%s11929_s23 + $0x88] sm:$0xff] %vm515_vm0, %v6681_v18  ;;  %v6680_v39 = vadd.f32 %v6648_v51, %v12641_v45  ;;  %v6816_v34 = vmul.f32 %v6681_v18, %v6681_v18  ;;  %v6761_v53 = vsel %vm515_vm0, %v6681_v18, 0.0  ;;  %v7716_v44 = vpop.f32.mrf.mxu1 }
 0x547   : > { %v5724_v32 = vadd.f32 %v7716_v44, %v11865_v24  ;;  %v12646_v44 = vld [vmem:[#allocation22_spill] sm:$0xff] }
 0x548   : > { %6712 = vst.msk [vmem:[%s11929_s23 + $0x80] sm:$0xff] %vm515_vm0, %v6680_v39  ;;  %v6759_v63 = vsel %vm515_vm0, %v6680_v39, 0.0  ;;  %v6815_v0 = vmul.f32 %v6680_v39, %v6680_v39  ;;  %v6864_v6 = vsel %vm515_vm0, %v6816_v34, 0.0  ;;  %v5718_v40 = vpop.f32.mrf.mxu1 }
 0x549   : > { %v6760_v41 = vadd.f32 %v6759_v63, %v6758_v47  ;;  %v5719_v5 = vadd.f32 %v5718_v40, %v11870_v1 }
 0x54a   : > { %v6862_v23 = vsel %vm515_vm0, %v6815_v0, 0.0 }
 0x54b   : > { %v6863_v56 = vadd.f32 %v6862_v23, %v6861_v22  ;;  %v6762_v27 = vadd.f32 %v6761_v53, %v6760_v41 }
 0x54d   : > { %v6865_v37 = vadd.f32 %v6864_v6, %v6863_v56 }
 0x551   : > { %v7768_v2 = vpop.f32.mrf.mxu0 }
 0x552   : > { %v6651_v50 = vadd.f32 %v7768_v2, %v5724_v32 }
 0x553   : > { %v6563_v21 = vpop.f32.mrf.mxu0 }
 0x554   : > { %v6683_v12 = vadd.f32 %v6651_v50, %v12642_v10  ;;  %v6650_v30 = vadd.f32 %v6563_v21, %v5719_v5 }
 0x556   : > { %6715 = vst.msk [vmem:[%s11929_s23 + $0x98] sm:$0xff] %vm515_vm0, %v6683_v12  ;;  %v6682_v46 = vadd.f32 %v6650_v30, %v12643_v58  ;;  %v6818_v52 = vmul.f32 %v6683_v12, %v6683_v12  ;;  %v6765_v24 = vsel %vm515_vm0, %v6683_v12, 0.0  ;;  %v7719_v38 = vpop.f32.mrf.mxu1 }
 0x557   : > { %v5734_v29 = vadd.f32 %v7719_v38, %v11873_v42 }
 0x558   : > { %6714 = vst.msk [vmem:[%s11929_s23 + $0x90] sm:$0xff] %vm515_vm0, %v6682_v46  ;;  %v6763_v20 = vsel %vm515_vm0, %v6682_v46, 0.0  ;;  %v6817_v7 = vmul.f32 %v6682_v46, %v6682_v46  ;;  %v6868_v26 = vsel %vm515_vm0, %v6818_v52, 0.0  ;;  %v5728_v11 = vpop.f32.mrf.mxu1 }
 0x559   : > { %v6764_v15 = vadd.f32 %v6763_v20, %v6762_v27  ;;  %v5729_v36 = vadd.f32 %v5728_v11, %v11878_v62 }
 0x55a   : > { %v6866_v1 = vsel %vm515_vm0, %v6817_v7, 0.0 }
 0x55b   : > { %v6867_v14 = vadd.f32 %v6866_v1, %v6865_v37  ;;  %v6766_v48 = vadd.f32 %v6765_v24, %v6764_v15  ;;  %v12647_v37 = vld [vmem:[#allocation52_spill] sm:$0xff]  ;;  %v12648_v1 = vld [vmem:[#allocation51_spill] sm:$0xff] }
 0x55d   : > { %v6869_v35 = vadd.f32 %v6868_v26, %v6867_v14 }
 0x561   : > { %v7771_v31 = vpop.f32.mrf.mxu0 }
 0x562   : > { %v6653_v57 = vadd.f32 %v7771_v31, %v5734_v29 }
 0x563   : > { %v6573_v47 = vpop.f32.mrf.mxu0 }
 0x564   : > { %v6685_v22 = vadd.f32 %v6653_v57, %v12644_v28  ;;  %v6652_v4 = vadd.f32 %v6573_v47, %v5729_v36 }
 0x566   : > { %6717 = vst.msk [vmem:[%s11929_s23 + $0xa8] sm:$0xff] %vm515_vm0, %v6685_v22  ;;  %v6684_v60 = vadd.f32 %v6652_v4, %v12645_v8  ;;  %v6820_v33 = vmul.f32 %v6685_v22, %v6685_v22  ;;  %v6769_v42 = vsel %vm515_vm0, %v6685_v22, 0.0  ;;  %v7722_v51 = vpop.f32.mrf.mxu1 }
 0x567   : > { %v5744_v0 = vadd.f32 %v7722_v51, %v11884_v13 }
 0x568   : > { %6716 = vst.msk [vmem:[%s11929_s23 + $0xa0] sm:$0xff] %vm515_vm0, %v6684_v60  ;;  %v6767_v25 = vsel %vm515_vm0, %v6684_v60, 0.0  ;;  %v6819_v17 = vmul.f32 %v6684_v60, %v6684_v60  ;;  %v6872_v39 = vsel %vm515_vm0, %v6820_v33, 0.0  ;;  %v5738_v63 = vpop.f32.mrf.mxu1 }
 0x569   : > { %v6768_v49 = vadd.f32 %v6767_v25, %v6766_v48  ;;  %v5739_v53 = vadd.f32 %v5738_v63, %v11888_v55  ;;  %v12649_v48 = vld [vmem:[#allocation8_spill] sm:$0xff] }
 0x56a   : > { %v6870_v62 = vsel %vm515_vm0, %v6819_v17, 0.0 }
 0x56b   : > { %v6871_v18 = vadd.f32 %v6870_v62, %v6869_v35  ;;  %v6770_v45 = vadd.f32 %v6769_v42, %v6768_v49  ;;  %v12650_v49 = vld [vmem:[#allocation10_spill] sm:$0xff] }
 0x56d   : > { %v6873_v34 = vadd.f32 %v6872_v39, %v6871_v18  ;;  %v12651_v18 = vld [vmem:[#allocation23_spill] sm:$0xff] }
 0x571   : > { %v7774_v41 = vpop.f32.mrf.mxu0 }
 0x572   : > { %v6655_v23 = vadd.f32 %v7774_v41, %v5744_v0 }
 0x573   : > { %v6583_v56 = vpop.f32.mrf.mxu0 }
 0x574   : > { %v6687_v27 = vadd.f32 %v6655_v23, %v12646_v44  ;;  %v6654_v6 = vadd.f32 %v6583_v56, %v5739_v53 }
 0x576   : > { %6719 = vst.msk [vmem:[%s11929_s23 + $0xb8] sm:$0xff] %vm515_vm0, %v6687_v27  ;;  %v6686_v40 = vadd.f32 %v6654_v6, %v12647_v37  ;;  %v6822_v32 = vmul.f32 %v6687_v27, %v6687_v27  ;;  %v6773_v13 = vsel %vm515_vm0, %v6687_v27, 0.0  ;;  %v7725_v10 = vpop.f32.mrf.mxu1 }
 0x577   : > { %v5754_v52 = vadd.f32 %v7725_v10, %v11890_v16 }
 0x578   : > { %6718 = vst.msk [vmem:[%s11929_s23 + $0xb0] sm:$0xff] %vm515_vm0, %v6686_v40  ;;  %v6771_v2 = vsel %vm515_vm0, %v6686_v40, 0.0  ;;  %v6821_v5 = vmul.f32 %v6686_v40, %v6686_v40  ;;  %v6876_v30 = vsel %vm515_vm0, %v6822_v32, 0.0  ;;  %v5748_v46 = vpop.f32.mrf.mxu1 }
 0x579   : > { %v6772_v50 = vadd.f32 %v6771_v2, %v6770_v45  ;;  %v5749_v7 = vadd.f32 %v5748_v46, %v11892_v19  ;;  %v12652_v2 = vld [vmem:[#allocation9_spill] sm:$0xff] }
 0x57a   : > { %v6874_v55 = vsel %vm515_vm0, %v6821_v5, 0.0 }
 0x57b   : > { %v6875_v21 = vadd.f32 %v6874_v55, %v6873_v34  ;;  %v6774_v12 = vadd.f32 %v6773_v13, %v6772_v50  ;;  %v12653_v13 = vld [vmem:[#allocation26_spill] sm:$0xff] }
 0x57d   : > { %v6877_v58 = vadd.f32 %v6876_v30, %v6875_v21 }
 0x581   : > { %v7777_v20 = vpop.f32.mrf.mxu0 }
 0x582   : > { %v6657_v15 = vadd.f32 %v7777_v20, %v5754_v52 }
 0x583   : > { %v6593_v24 = vpop.f32.mrf.mxu0 }
 0x584   : > { %v6689_v14 = vadd.f32 %v6657_v15, %v12648_v1  ;;  %v6656_v38 = vadd.f32 %v6593_v24, %v5749_v7 }
 0x586   : > { %6721 = vst.msk [vmem:[%s11929_s23 + $0xc8] sm:$0xff] %vm515_vm0, %v6689_v14  ;;  %v6688_v26 = vadd.f32 %v6656_v38, %v12649_v48  ;;  %v6824_v35 = vmul.f32 %v6689_v14, %v6689_v14  ;;  %v6777_v16 = vsel %vm515_vm0, %v6689_v14, 0.0  ;;  %v7728_v28 = vpop.f32.mrf.mxu1 }
 0x587   : > { %v5764_v8 = vadd.f32 %v7728_v28, %v11897_v3 }
 0x588   : > { %6720 = vst.msk [vmem:[%s11929_s23 + $0xc0] sm:$0xff] %vm515_vm0, %v6688_v26  ;;  %v6775_v11 = vsel %vm515_vm0, %v6688_v26, 0.0  ;;  %v6823_v29 = vmul.f32 %v6688_v26, %v6688_v26  ;;  %v6880_v47 = vsel %vm515_vm0, %v6824_v35, 0.0  ;;  %v5758_v4 = vpop.f32.mrf.mxu1  ;;  %v12654_v26 = vld [vmem:[#allocation54_spill] sm:$0xff] }
 0x589   : > { %v6776_v31 = vadd.f32 %v6775_v11, %v6774_v12  ;;  %v5759_v33 = vadd.f32 %v5758_v4, %v11900_v61 }
 0x58a   : > { %v6878_v19 = vsel %vm515_vm0, %v6823_v29, 0.0  ;;  %v12655_v29 = vld [vmem:[#allocation53_spill] sm:$0xff] }
 0x58b   : > { %v6879_v36 = vadd.f32 %v6878_v19, %v6877_v58  ;;  %v6778_v57 = vadd.f32 %v6777_v16, %v6776_v31 }
 0x58d   : > { %v6881_v22 = vadd.f32 %v6880_v47, %v6879_v36 }
 0x591   : > { %v7780_v60 = vpop.f32.mrf.mxu0 }
 0x592   : > { %v6659_v25 = vadd.f32 %v7780_v60, %v5764_v8 }
 0x593   : > { %v6603_v17 = vpop.f32.mrf.mxu0 }
 0x594   : > { %v6691_v42 = vadd.f32 %v6659_v25, %v12650_v49  ;;  %v6658_v62 = vadd.f32 %v6603_v17, %v5759_v33 }
 0x596   : > { %6723 = vst.msk [vmem:[%s11929_s23 + $0xd8] sm:$0xff] %vm515_vm0, %v6691_v42  ;;  %v6690_v51 = vadd.f32 %v6658_v62, %v12651_v18  ;;  %v6826_v45 = vmul.f32 %v6691_v42, %v6691_v42  ;;  %v6781_v3 = vsel %vm515_vm0, %v6691_v42, 0.0  ;;  %v7731_v41 = vpop.f32.mrf.mxu1 }
 0x597   : > { %v5774_v27 = vadd.f32 %v7731_v41, %v11905_v9 }
 0x598   : > { %6722 = vst.msk [vmem:[%s11929_s23 + $0xd0] sm:$0xff] %vm515_vm0, %v6690_v51  ;;  %v6779_v39 = vsel %vm515_vm0, %v6690_v51, 0.0  ;;  %v6825_v34 = vmul.f32 %v6690_v51, %v6690_v51  ;;  %v6884_v23 = vsel %vm515_vm0, %v6826_v45, 0.0  ;;  %v5768_v44 = vpop.f32.mrf.mxu1 }
 0x599   : > { %v6780_v63 = vadd.f32 %v6779_v39, %v6778_v57  ;;  %v5769_v37 = vadd.f32 %v5768_v44, %v11908_v59 }
 0x59a   : > { %v6882_v61 = vsel %vm515_vm0, %v6825_v34, 0.0 }
 0x59b   : > { %v6883_v0 = vadd.f32 %v6882_v61, %v6881_v22  ;;  %v6782_v53 = vadd.f32 %v6781_v3, %v6780_v63 }
 0x59d   : > { %v6885_v56 = vadd.f32 %v6884_v23, %v6883_v0 }
 0x5a2   : > { %v7783_v6 = vpop.f32.mrf.mxu0 }
 0x5a3   : > { %v6661_v40 = vadd.f32 %v7783_v6, %v5774_v27 }
 0x5a4   : > { %v6613_v32 = vpop.f32.mrf.mxu0 }
 0x5a5   : > { %v6693_v5 = vadd.f32 %v6661_v40, %v12652_v2  ;;  %v6660_v50 = vadd.f32 %v6613_v32, %v5769_v37 }
 0x5a7   : > { %6725 = vst.msk [vmem:[%s11929_s23 + $0xe8] sm:$0xff] %vm515_vm0, %v6693_v5  ;;  %v6692_v55 = vadd.f32 %v6660_v50, %v12653_v13  ;;  %v6828_v21 = vmul.f32 %v6693_v5, %v6693_v5  ;;  %v7734_v30 = vpop.f32.mrf.mxu1  ;;  %v6785_v59 = vsel %vm515_vm0, %v6693_v5, 0.0 }
 0x5a8   : > { %v5784_v15 = vadd.f32 %v7734_v30, %v11915_v54 }
 0x5a9   : > { %6724 = vst.msk [vmem:[%s11929_s23 + $0xe0] sm:$0xff] %vm515_vm0, %v6692_v55  ;;  %v6783_v10 = vsel %vm515_vm0, %v6692_v55, 0.0  ;;  %v6827_v12 = vmul.f32 %v6692_v55, %v6692_v55  ;;  %v6888_v20 = vsel %vm515_vm0, %v6828_v21, 0.0  ;;  %v5778_v7 = vpop.f32.mrf.mxu1 }
 0x5aa   : > { %v6784_v9 = vadd.f32 %v6783_v10, %v6782_v53  ;;  %v5779_v14 = vadd.f32 %v5778_v7, %v11920_v43 }
 0x5ab   : > { %v6886_v58 = vsel %vm515_vm0, %v6827_v12, 0.0 }
 0x5ac   : > { %v6887_v46 = vadd.f32 %v6886_v58, %v6885_v56  ;;  %v6786_v52 = vadd.f32 %v6785_v59, %v6784_v9 }
 0x5ae   : > { %v6889_v24 = vadd.f32 %v6888_v20, %v6887_v46  ;;  %v7786_v1 = vpop.f32.mrf.mxu0 }
 0x5af   : > { %v6663_v38 = vadd.f32 %v7786_v1, %v5784_v15 }
 0x5b0   : > { %v6623_v48 = vpop.f32.mrf.mxu0 }
 0x5b1   : > { %v6695_v35 = vadd.f32 %v6663_v38, %v12654_v26  ;;  %v6662_v11 = vadd.f32 %v6623_v48, %v5779_v14 }
 0x5b3   : > { %6727 = vst.msk [vmem:[%s11929_s23 + $0xf8] sm:$0xff] %vm515_vm0, %v6695_v35  ;;  %v6694_v31 = vadd.f32 %v6662_v11, %v12655_v29  ;;  %v6830_v16 = vmul.f32 %v6695_v35, %v6695_v35  ;;  %v6789_v57 = vsel %vm515_vm0, %v6695_v35, 0.0 }
 0x5b5   : > { %6726 = vst.msk [vmem:[%s11929_s23 + $0xf0] sm:$0xff] %vm515_vm0, %v6694_v31  ;;  %v6787_v19 = vsel %vm515_vm0, %v6694_v31, 0.0  ;;  %v6829_v36 = vmul.f32 %v6694_v31, %v6694_v31  ;;  %v6892_v22 = vsel %vm515_vm0, %v6830_v16, 0.0 }
 0x5b6   : > { %v6788_v54 = vadd.f32 %v6787_v19, %v6786_v52 }
 0x5b7   : > { %v6890_v43 = vsel %vm515_vm0, %v6829_v36, 0.0 }
 0x5b8   : > { %v6790_v47 = vadd.f32 %v6789_v57, %v6788_v54  ;;  %v6891_v28 = vadd.f32 %v6890_v43, %v6889_v24 }
 0x5ba   : > { %v6791_v4 = vrot.slane %v6790_v47, 4  ;;  %v6893_v8 = vadd.f32 %v6892_v22, %v6891_v28 }
 0x5bc   : > { %v6792_v60 = vadd.f32 %v6791_v4, %v6790_v47  ;;  %v6894_v33 = vrot.slane %v6893_v8, 4 }
 0x5be   : > { %v6793_v25 = vrot.slane %v6792_v60, 2  ;;  %v6895_v17 = vadd.f32 %v6894_v33, %v6893_v8 }
 0x5c0   : > { %v6794_v49 = vadd.f32 %v6793_v25, %v6792_v60  ;;  %v6896_v42 = vrot.slane %v6895_v17, 2 }
 0x5c2   : > { %v6795_v62 = vrot.slane %v6794_v49, 1  ;;  %v6897_v18 = vadd.f32 %v6896_v42, %v6895_v17 }
 0x5c4   : > { %v6796_v51 = vadd.f32 %v6795_v62, %v6794_v49  ;;  %v6898_v45 = vrot.slane %v6897_v18, 1 }
 0x5c6   : > { %6798 = vst.msk [vmem:[%s339_s25] sm:$0x1] %vm6797_vm13, %v6796_v51  ;;  %v6899_v39 = vadd.f32 %v6898_v45, %v6897_v18 }
 0x5c8   : > { %6900 = vst.msk [vmem:[%s342_s30] sm:$0x1] %vm6797_vm13, %v6899_v39 }
 0x5c9 PF: > { %s19_s27 = sadd.s32 1, %s7908_s27  }
 0x5ca   : > { %p16_p4 = scmp.ge.s32.totalorder %s19_s27, 4  }
 0x5cc   :  { %18 = sbr.rel (!%p16_p4) target bundleno = 1 (0x1), region = 109 }

</bundles_post_ra>
